<compile_context>
chip_gen: v6e
topology: v6e:2x2x1
jax: 0.10.0
libtpu: 0.0.40
codegen_flags: <defaults>
</compile_context>

<pallas_src>
import jax
import jax.numpy as jnp
from jax import lax
from jax.experimental import pallas as pl
from jax.experimental.pallas import tpu as pltpu

EPS = 1e-5  # PyTorch BatchNorm default eps


# ----------------------------------------------------------------------------
# Kernel 1: lane-dense conv-as-matmul + BatchNorm2d(train) + ReLU, fused.
#   pT_ref: [Kp, M]  (Kp = pad8(KH*KW*Cin), M = N*OH*OW)  bf16
#   wT_ref: [Cout, Kp]                                     bf16
#   gb_ref: [Cout, 2]  (col0 = gamma, col1 = beta)         f32
#   o_ref : [Cout, M]                                      bf16
# ----------------------------------------------------------------------------
def conv_bn_relu_kernel(pT_ref, wT_ref, gb_ref, o_ref):
    z = jnp.dot(wT_ref[...], pT_ref[...],
                preferred_element_type=jnp.float32)        # [Cout, M] f32
    # BN2d batch stats: per channel (row) over all N*OH*OW columns (lanes).
    mu = jnp.mean(z, axis=1, keepdims=True)
    c = z - mu
    var = jnp.mean(c * c, axis=1, keepdims=True)            # biased variance
    zn = c * lax.rsqrt(var + EPS)
    gb = gb_ref[...]
    o_ref[...] = jnp.maximum(zn * gb[:, 0:1] + gb[:, 1:2], 0.0).astype(o_ref.dtype)


def conv_bn_relu(x_cnhw, wT, gb, *, k=5, stride=2, pad=2):
    """x_cnhw: [Cin, N, H, W] bf16; wT: [Cout, Kp] bf16 -> [Cout, N, H/2, W/2] bf16."""
    C, N, H, W = x_cnhw.shape
    OH, OW = H // stride, W // stride
    Cout, Kp = wT.shape
    K = k * k * C
    M = N * OH * OW

    xp = jnp.pad(x_cnhw, ((0, 0), (0, 0), (pad, pad), (pad, pad)))
    # im2col, built directly in transposed [K, M] layout; tap order (kh, kw, cin).
    taps = [xp[:, :, i:i + stride * (OH - 1) + 1:stride,
                     j:j + stride * (OW - 1) + 1:stride]
            for i in range(k) for j in range(k)]
    patchesT = jnp.stack(taps, axis=0).reshape(K, M)
    if Kp > K:  # zero-pad contraction dim to a multiple of 8 (matches wT pad cols)
        patchesT = jnp.pad(patchesT, ((0, Kp - K), (0, 0)))

    out = pl.pallas_call(
        conv_bn_relu_kernel,
        out_shape=jax.ShapeDtypeStruct((Cout, M), jnp.bfloat16),
        grid=(1,),
        in_specs=[
            pl.BlockSpec((Kp, M), lambda i: (0, 0)),
            pl.BlockSpec((Cout, Kp), lambda i: (0, 0)),
            pl.BlockSpec((Cout, 2), lambda i: (0, 0)),
        ],
        out_specs=pl.BlockSpec((Cout, M), lambda i: (0, 0)),
    )(patchesT, wT, gb)
    return out.reshape(Cout, N, OH, OW)


# ----------------------------------------------------------------------------
# Kernel 2: fused dual head (mean & logvar): Linear -> BN1d -> ReLU -> Linear.
#   grid = (2 heads,)  -- "parallel" so v7x shards heads across TensorCores;
#   one full-hidden tile per head (w1 block 4 MiB bf16, double-buffered).
#   x_ref  : [N, F]         bf16
#   w1_ref : [1, F, H]      bf16
#   gb1_ref: [1, 2, H]      f32  (row0 = gamma, row1 = beta)
#   w2_ref : [1, H, O]      bf16
#   b2_ref : [1, 1, O]      f32
#   o_ref  : [1, N, O]      f32
# ----------------------------------------------------------------------------
def dual_head_kernel(x_ref, w1_ref, gb1_ref, w2_ref, b2_ref, o_ref):
    h = jnp.dot(x_ref[...], w1_ref[0],
                preferred_element_type=jnp.float32)          # [N, H] f32
    # BN1d batch stats: per feature (column), over batch (rows).
    mu = jnp.mean(h, axis=0, keepdims=True)
    c = h - mu
    var = jnp.mean(c * c, axis=0, keepdims=True)             # biased variance
    hn = c * lax.rsqrt(var + EPS)
    gb = gb1_ref[0]                                          # [2, H]
    hr = jnp.maximum(hn * gb[0:1, :] + gb[1:2, :], 0.0)
    o_ref[0] = jnp.dot(hr.astype(jnp.bfloat16), w2_ref[0],
                       preferred_element_type=jnp.float32) + b2_ref[0]


def dual_head(flat_bf16, heads):
    """flat_bf16: [N, F] bf16; heads: stacked params -> (mean [N,O], logvar [N,O])."""
    N, F = flat_bf16.shape
    w1, gb1, w2, b2 = heads["w1"], heads["gb1"], heads["w2"], heads["b2"]
    H = w1.shape[2]
    O = w2.shape[2]

    out = pl.pallas_call(
        dual_head_kernel,
        out_shape=jax.ShapeDtypeStruct((2, N, O), jnp.float32),
        grid=(2,),
        in_specs=[
            pl.BlockSpec((N, F), lambda h: (0, 0)),
            pl.BlockSpec((1, F, H), lambda h: (h, 0, 0)),
            pl.BlockSpec((1, 2, H), lambda h: (h, 0, 0)),
            pl.BlockSpec((1, H, O), lambda h: (h, 0, 0)),
            pl.BlockSpec((1, 1, O), lambda h: (h, 0, 0)),
        ],
        out_specs=pl.BlockSpec((1, N, O), lambda h: (h, 0, 0)),
        compiler_params=pltpu.CompilerParams(
            dimension_semantics=("parallel",)),
    )(flat_bf16, w1, gb1, w2, b2)
    return out[0], out[1]


# ----------------------------------------------------------------------------
# Encoder forward
# ----------------------------------------------------------------------------
def encoder_forward(x_nchw, params):
    # NCHW -> channel-first [C, N, H, W]; cast to bf16 once, stay bf16 end-to-end.
    h = jnp.transpose(x_nchw, (1, 0, 2, 3)).astype(jnp.bfloat16)
    for layer in params["conv"]:
        h = conv_bn_relu(h, layer["wT"], layer["gb"])
    # flatten in NCHW order to match PyTorch `hidden.view(batch, -1)`
    C, N, OH, OW = h.shape
    flat = jnp.transpose(h, (1, 0, 2, 3)).reshape(N, C * OH * OW)
    mean, logvar = dual_head(flat, params["heads"])
    return mean, logvar


# ----------------------------------------------------------------------------
# Deterministic synthetic parameters (shapes follow Encoder.__init__ with
# input_channels=3, representation_size=4, output_channels=16; input 64x64 so
# the three stride-2 convs give the 8x8 spatial the Linear heads expect).
# ----------------------------------------------------------------------------
def _pad8(n):
    return -(-n // 8) * 8


def init_params(key, in_ch=3, rep=4, out_ch=16):
    flat_dim = rep * 4 * 8 * 8            # representation_size * 4 * 8 * 8 = 1024
    hidden = 2048
    keys = iter(jax.random.split(key, 16))

    def rnd(shape, scale=0.05):
        return (scale * jax.random.normal(next(keys), shape)).astype(jnp.float32)

    def conv_layer(cin, cin_tot, cout, cout_tot):
        # real weights (Cout, kh, kw, Cin); zero-pad Cin to the activation's
        # channel count and Cout to the padded output-channel count.
        w = rnd((cout, 5, 5, cin))
        w = jnp.pad(w, ((0, cout_tot - cout), (0, 0), (0, 0), (0, cin_tot - cin)))
        wT = w.reshape(cout_tot, 5 * 5 * cin_tot)
        K = wT.shape[1]
        Kp = _pad8(K)                      # zero-pad contraction dim to mult of 8
        wT = jnp.pad(wT, ((0, 0), (0, Kp - K))).astype(jnp.bfloat16)
        gamma = jnp.concatenate([jnp.ones((cout,)), jnp.zeros((cout_tot - cout,))])
        beta = jnp.zeros((cout_tot,))      # pad rows: gamma=beta=0 -> output == 0
        gb = jnp.stack([gamma, beta], axis=1).astype(jnp.float32)   # [Cout_tot, 2]
        return dict(wT=wT, gb=gb)
        # NOTE: conv bias omitted — it cancels exactly in train-mode BatchNorm2d.

    c1 = _pad8(rep)          # 4 -> 8 padded output channels for layer 1
    conv = [
        conv_layer(in_ch, in_ch, rep, c1),      # 3 -> 4 (padded to 8), K 75->80
        conv_layer(rep, c1, rep * 2, rep * 2),  # 4(+4 zero) -> 8,       K = 200
        conv_layer(rep * 2, rep * 2, rep * 4, rep * 4),  # 8 -> 16,      K = 200
    ]

    def head():
        return dict(
            w1=rnd((flat_dim, hidden)).astype(jnp.bfloat16),
            gb1=jnp.stack([jnp.ones((hidden,), jnp.float32),   # gamma
                           jnp.zeros((hidden,), jnp.float32)], # beta
                          axis=0),                             # [2, H]
            w2=rnd((hidden, out_ch)).astype(jnp.bfloat16),
            b2=rnd((1, out_ch)),
        )
        # NOTE: Linear-1 bias omitted — it cancels exactly in train-mode BatchNorm1d.

    hm, hl = head(), head()
    heads = dict(
        w1=jnp.stack([hm["w1"], hl["w1"]]),     # [2, F, H]  bf16
        gb1=jnp.stack([hm["gb1"], hl["gb1"]]),  # [2, 2, H]  f32
        w2=jnp.stack([hm["w2"], hl["w2"]]),     # [2, H, O]  bf16
        b2=jnp.stack([hm["b2"], hl["b2"]]),     # [2, 1, O]  f32
    )
    return dict(conv=conv, heads=heads)


if __name__ == "__main__":
    key = jax.random.PRNGKey(0)
    pkey, xkey = jax.random.split(key)
    params = init_params(pkey, in_ch=3, rep=4, out_ch=16)
    x = jax.random.normal(xkey, (2, 3, 64, 64), dtype=jnp.float32)  # NCHW

    fwd = jax.jit(encoder_forward)
    mean, logvar = fwd(x, params)
    jax.block_until_ready((mean, logvar))

    assert mean.shape == (2, 16) and logvar.shape == (2, 16)
    assert bool(jnp.all(jnp.isfinite(mean))) and bool(jnp.all(jnp.isfinite(logvar)))
    print("KERNEL_OK")
</pallas_src>

<mosaic_0001>
module attributes {stable_mosaic.version = 11 : i64} {
  func.func @conv_bn_relu_kernel(%arg0: i32, %arg1: memref<80x2048xbf16, #tpu.memory_space<vmem>>, %arg2: memref<8x80xbf16, #tpu.memory_space<vmem>>, %arg3: memref<8x2xf32, #tpu.memory_space<vmem>>, %arg4: memref<8x2048xbf16, #tpu.memory_space<vmem>>) attributes {dimension_semantics = [#tpu.dimension_semantics<arbitrary>], iteration_bounds = array<i64: 1>, scalar_prefetch = 0 : i64, scratch_operands = 0 : i64, tpu.core_type = #tpu.core_type<tc>, window_params = [{pipeline_mode = #tpu.pipeline_mode<synchronous>, transform_indices = @transform_0, window_bounds = array<i64: 80, 2048>}, {pipeline_mode = #tpu.pipeline_mode<synchronous>, transform_indices = @transform_1, window_bounds = array<i64: 8, 80>}, {pipeline_mode = #tpu.pipeline_mode<synchronous>, transform_indices = @transform_2, window_bounds = array<i64: 8, 2>}, {pipeline_mode = #tpu.pipeline_mode<synchronous>, transform_indices = @transform_3, window_bounds = array<i64: 8, 2048>}]} {
    %c0 = arith.constant 0 : index
    %c0_0 = arith.constant 0 : index
    %0 = vector.load %arg2[%c0, %c0_0] : memref<8x80xbf16, #tpu.memory_space<vmem>>, vector<8x80xbf16>
    %c0_1 = arith.constant 0 : index
    %c0_2 = arith.constant 0 : index
    %1 = vector.load %arg1[%c0_1, %c0_2] : memref<80x2048xbf16, #tpu.memory_space<vmem>>, vector<80x2048xbf16>
    %cst = arith.constant dense<0.000000e+00> : vector<8x2048xf32>
    %2 = tpu.matmul %0, %1, %cst {dimension_numbers = #tpu.dot_dimension_numbers<[1], [0], [0], [1], [0, 0, 1, 1], [], []>} : vector<8x80xbf16>, vector<80x2048xbf16>, vector<8x2048xf32> -> vector<8x2048xf32>
    %cst_3 = arith.constant dense<0.000000e+00> : vector<8xf32>
    %3 = vector.multi_reduction <add>, %2, %cst_3 [1] : vector<8x2048xf32> to vector<8xf32>
    %4 = vector.shape_cast %3 : vector<8xf32> to vector<8x1xf32>
    %cst_4 = arith.constant 2.048000e+03 : f32
    %5 = vector.broadcast %cst_4 : f32 to vector<8x1xf32>
    %6 = arith.divf %4, %5 : vector<8x1xf32>
    %7 = vector.broadcast %6 : vector<8x1xf32> to vector<8x2048xf32>
    %8 = arith.subf %2, %7 : vector<8x2048xf32>
    %9 = arith.mulf %8, %8 : vector<8x2048xf32>
    %cst_5 = arith.constant dense<0.000000e+00> : vector<8xf32>
    %10 = vector.multi_reduction <add>, %9, %cst_5 [1] : vector<8x2048xf32> to vector<8xf32>
    %11 = vector.shape_cast %10 : vector<8xf32> to vector<8x1xf32>
    %cst_6 = arith.constant 2.048000e+03 : f32
    %12 = vector.broadcast %cst_6 : f32 to vector<8x1xf32>
    %13 = arith.divf %11, %12 : vector<8x1xf32>
    %cst_7 = arith.constant 9.99999974E-6 : f32
    %14 = vector.broadcast %cst_7 : f32 to vector<8x1xf32>
    %15 = arith.addf %13, %14 : vector<8x1xf32>
    %16 = math.rsqrt %15 : vector<8x1xf32>
    %17 = vector.broadcast %16 : vector<8x1xf32> to vector<8x2048xf32>
    %18 = arith.mulf %8, %17 : vector<8x2048xf32>
    %c0_8 = arith.constant 0 : index
    %c0_9 = arith.constant 0 : index
    %19 = vector.load %arg3[%c0_8, %c0_9] : memref<8x2xf32, #tpu.memory_space<vmem>>, vector<8x2xf32>
    %20 = vector.extract_strided_slice %19 {offsets = [0, 0], sizes = [8, 1], strides = [1, 1]} : vector<8x2xf32> to vector<8x1xf32>
    %21 = vector.broadcast %20 : vector<8x1xf32> to vector<8x2048xf32>
    %22 = arith.mulf %18, %21 : vector<8x2048xf32>
    %23 = vector.extract_strided_slice %19 {offsets = [0, 1], sizes = [8, 1], strides = [1, 1]} : vector<8x2xf32> to vector<8x1xf32>
    %24 = vector.broadcast %23 : vector<8x1xf32> to vector<8x2048xf32>
    %25 = arith.addf %22, %24 : vector<8x2048xf32>
    %cst_10 = arith.constant 0.000000e+00 : f32
    %26 = vector.broadcast %cst_10 : f32 to vector<8x2048xf32>
    %27 = arith.maximumf %25, %26 : vector<8x2048xf32>
    %28 = arith.truncf %27 : vector<8x2048xf32> to vector<8x2048xbf16>
    %c0_11 = arith.constant 0 : index
    %c0_12 = arith.constant 0 : index
    %29 = vector.load %arg4[%c0_11, %c0_12] : memref<8x2048xbf16, #tpu.memory_space<vmem>>, vector<8x2048xbf16>
    tpu.vector_store %arg4[%c0_11, %c0_12], %28 {strides = array<i32>} : memref<8x2048xbf16, #tpu.memory_space<vmem>>, vector<8x2048xbf16>,
    return
  }
  func.func @transform_0(%arg0: i32) -> (i32, i32) {
    %c0_i32 = arith.constant 0 : i32
    %c0_i32_0 = arith.constant 0 : i32
    %c0_i32_1 = arith.constant 0 : i32
    return %c0_i32, %c0_i32_0 : i32, i32
  }
  func.func @transform_1(%arg0: i32) -> (i32, i32) {
    %c0_i32 = arith.constant 0 : i32
    %c0_i32_0 = arith.constant 0 : i32
    %c0_i32_1 = arith.constant 0 : i32
    return %c0_i32, %c0_i32_0 : i32, i32
  }
  func.func @transform_2(%arg0: i32) -> (i32, i32) {
    %c0_i32 = arith.constant 0 : i32
    %c0_i32_0 = arith.constant 0 : i32
    %c0_i32_1 = arith.constant 0 : i32
    return %c0_i32, %c0_i32_0 : i32, i32
  }
  func.func @transform_3(%arg0: i32) -> (i32, i32) {
    %c0_i32 = arith.constant 0 : i32
    %c0_i32_0 = arith.constant 0 : i32
    %c0_i32_1 = arith.constant 0 : i32
    return %c0_i32, %c0_i32_0 : i32, i32
  }
}

module attributes {stable_mosaic.version = 11 : i64} {
  func.func @conv_bn_relu_kernel(%arg0: i32, %arg1: memref<200x512xbf16, #tpu.memory_space<vmem>>, %arg2: memref<8x200xbf16, #tpu.memory_space<vmem>>, %arg3: memref<8x2xf32, #tpu.memory_space<vmem>>, %arg4: memref<8x512xbf16, #tpu.memory_space<vmem>>) attributes {dimension_semantics = [#tpu.dimension_semantics<arbitrary>], iteration_bounds = array<i64: 1>, scalar_prefetch = 0 : i64, scratch_operands = 0 : i64, tpu.core_type = #tpu.core_type<tc>, window_params = [{pipeline_mode = #tpu.pipeline_mode<synchronous>, transform_indices = @transform_0, window_bounds = array<i64: 200, 512>}, {pipeline_mode = #tpu.pipeline_mode<synchronous>, transform_indices = @transform_1, window_bounds = array<i64: 8, 200>}, {pipeline_mode = #tpu.pipeline_mode<synchronous>, transform_indices = @transform_2, window_bounds = array<i64: 8, 2>}, {pipeline_mode = #tpu.pipeline_mode<synchronous>, transform_indices = @transform_3, window_bounds = array<i64: 8, 512>}]} {
    %c0 = arith.constant 0 : index
    %c0_0 = arith.constant 0 : index
    %0 = vector.load %arg2[%c0, %c0_0] : memref<8x200xbf16, #tpu.memory_space<vmem>>, vector<8x200xbf16>
    %c0_1 = arith.constant 0 : index
    %c0_2 = arith.constant 0 : index
    %1 = vector.load %arg1[%c0_1, %c0_2] : memref<200x512xbf16, #tpu.memory_space<vmem>>, vector<200x512xbf16>
    %cst = arith.constant dense<0.000000e+00> : vector<8x512xf32>
    %2 = tpu.matmul %0, %1, %cst {dimension_numbers = #tpu.dot_dimension_numbers<[1], [0], [0], [1], [0, 0, 1, 1], [], []>} : vector<8x200xbf16>, vector<200x512xbf16>, vector<8x512xf32> -> vector<8x512xf32>
    %cst_3 = arith.constant dense<0.000000e+00> : vector<8xf32>
    %3 = vector.multi_reduction <add>, %2, %cst_3 [1] : vector<8x512xf32> to vector<8xf32>
    %4 = vector.shape_cast %3 : vector<8xf32> to vector<8x1xf32>
    %cst_4 = arith.constant 5.120000e+02 : f32
    %5 = vector.broadcast %cst_4 : f32 to vector<8x1xf32>
    %6 = arith.divf %4, %5 : vector<8x1xf32>
    %7 = vector.broadcast %6 : vector<8x1xf32> to vector<8x512xf32>
    %8 = arith.subf %2, %7 : vector<8x512xf32>
    %9 = arith.mulf %8, %8 : vector<8x512xf32>
    %cst_5 = arith.constant dense<0.000000e+00> : vector<8xf32>
    %10 = vector.multi_reduction <add>, %9, %cst_5 [1] : vector<8x512xf32> to vector<8xf32>
    %11 = vector.shape_cast %10 : vector<8xf32> to vector<8x1xf32>
    %cst_6 = arith.constant 5.120000e+02 : f32
    %12 = vector.broadcast %cst_6 : f32 to vector<8x1xf32>
    %13 = arith.divf %11, %12 : vector<8x1xf32>
    %cst_7 = arith.constant 9.99999974E-6 : f32
    %14 = vector.broadcast %cst_7 : f32 to vector<8x1xf32>
    %15 = arith.addf %13, %14 : vector<8x1xf32>
    %16 = math.rsqrt %15 : vector<8x1xf32>
    %17 = vector.broadcast %16 : vector<8x1xf32> to vector<8x512xf32>
    %18 = arith.mulf %8, %17 : vector<8x512xf32>
    %c0_8 = arith.constant 0 : index
    %c0_9 = arith.constant 0 : index
    %19 = vector.load %arg3[%c0_8, %c0_9] : memref<8x2xf32, #tpu.memory_space<vmem>>, vector<8x2xf32>
    %20 = vector.extract_strided_slice %19 {offsets = [0, 0], sizes = [8, 1], strides = [1, 1]} : vector<8x2xf32> to vector<8x1xf32>
    %21 = vector.broadcast %20 : vector<8x1xf32> to vector<8x512xf32>
    %22 = arith.mulf %18, %21 : vector<8x512xf32>
    %23 = vector.extract_strided_slice %19 {offsets = [0, 1], sizes = [8, 1], strides = [1, 1]} : vector<8x2xf32> to vector<8x1xf32>
    %24 = vector.broadcast %23 : vector<8x1xf32> to vector<8x512xf32>
    %25 = arith.addf %22, %24 : vector<8x512xf32>
    %cst_10 = arith.constant 0.000000e+00 : f32
    %26 = vector.broadcast %cst_10 : f32 to vector<8x512xf32>
    %27 = arith.maximumf %25, %26 : vector<8x512xf32>
    %28 = arith.truncf %27 : vector<8x512xf32> to vector<8x512xbf16>
    %c0_11 = arith.constant 0 : index
    %c0_12 = arith.constant 0 : index
    %29 = vector.load %arg4[%c0_11, %c0_12] : memref<8x512xbf16, #tpu.memory_space<vmem>>, vector<8x512xbf16>
    tpu.vector_store %arg4[%c0_11, %c0_12], %28 {strides = array<i32>} : memref<8x512xbf16, #tpu.memory_space<vmem>>, vector<8x512xbf16>,
    return
  }
  func.func @transform_0(%arg0: i32) -> (i32, i32) {
    %c0_i32 = arith.constant 0 : i32
    %c0_i32_0 = arith.constant 0 : i32
    %c0_i32_1 = arith.constant 0 : i32
    return %c0_i32, %c0_i32_0 : i32, i32
  }
  func.func @transform_1(%arg0: i32) -> (i32, i32) {
    %c0_i32 = arith.constant 0 : i32
    %c0_i32_0 = arith.constant 0 : i32
    %c0_i32_1 = arith.constant 0 : i32
    return %c0_i32, %c0_i32_0 : i32, i32
  }
  func.func @transform_2(%arg0: i32) -> (i32, i32) {
    %c0_i32 = arith.constant 0 : i32
    %c0_i32_0 = arith.constant 0 : i32
    %c0_i32_1 = arith.constant 0 : i32
    return %c0_i32, %c0_i32_0 : i32, i32
  }
  func.func @transform_3(%arg0: i32) -> (i32, i32) {
    %c0_i32 = arith.constant 0 : i32
    %c0_i32_0 = arith.constant 0 : i32
    %c0_i32_1 = arith.constant 0 : i32
    return %c0_i32, %c0_i32_0 : i32, i32
  }
}

module attributes {stable_mosaic.version = 11 : i64} {
  func.func @conv_bn_relu_kernel(%arg0: i32, %arg1: memref<200x128xbf16, #tpu.memory_space<vmem>>, %arg2: memref<16x200xbf16, #tpu.memory_space<vmem>>, %arg3: memref<16x2xf32, #tpu.memory_space<vmem>>, %arg4: memref<16x128xbf16, #tpu.memory_space<vmem>>) attributes {dimension_semantics = [#tpu.dimension_semantics<arbitrary>], iteration_bounds = array<i64: 1>, scalar_prefetch = 0 : i64, scratch_operands = 0 : i64, tpu.core_type = #tpu.core_type<tc>, window_params = [{pipeline_mode = #tpu.pipeline_mode<synchronous>, transform_indices = @transform_0, window_bounds = array<i64: 200, 128>}, {pipeline_mode = #tpu.pipeline_mode<synchronous>, transform_indices = @transform_1, window_bounds = array<i64: 16, 200>}, {pipeline_mode = #tpu.pipeline_mode<synchronous>, transform_indices = @transform_2, window_bounds = array<i64: 16, 2>}, {pipeline_mode = #tpu.pipeline_mode<synchronous>, transform_indices = @transform_3, window_bounds = array<i64: 16, 128>}]} {
    %c0 = arith.constant 0 : index
    %c0_0 = arith.constant 0 : index
    %0 = vector.load %arg2[%c0, %c0_0] : memref<16x200xbf16, #tpu.memory_space<vmem>>, vector<16x200xbf16>
    %c0_1 = arith.constant 0 : index
    %c0_2 = arith.constant 0 : index
    %1 = vector.load %arg1[%c0_1, %c0_2] : memref<200x128xbf16, #tpu.memory_space<vmem>>, vector<200x128xbf16>
    %cst = arith.constant dense<0.000000e+00> : vector<16x128xf32>
    %2 = tpu.matmul %0, %1, %cst {dimension_numbers = #tpu.dot_dimension_numbers<[1], [0], [0], [1], [0, 0, 1, 1], [], []>} : vector<16x200xbf16>, vector<200x128xbf16>, vector<16x128xf32> -> vector<16x128xf32>
    %cst_3 = arith.constant dense<0.000000e+00> : vector<16xf32>
    %3 = vector.multi_reduction <add>, %2, %cst_3 [1] : vector<16x128xf32> to vector<16xf32>
    %4 = vector.shape_cast %3 : vector<16xf32> to vector<16x1xf32>
    %cst_4 = arith.constant 1.280000e+02 : f32
    %5 = vector.broadcast %cst_4 : f32 to vector<16x1xf32>
    %6 = arith.divf %4, %5 : vector<16x1xf32>
    %7 = vector.broadcast %6 : vector<16x1xf32> to vector<16x128xf32>
    %8 = arith.subf %2, %7 : vector<16x128xf32>
    %9 = arith.mulf %8, %8 : vector<16x128xf32>
    %cst_5 = arith.constant dense<0.000000e+00> : vector<16xf32>
    %10 = vector.multi_reduction <add>, %9, %cst_5 [1] : vector<16x128xf32> to vector<16xf32>
    %11 = vector.shape_cast %10 : vector<16xf32> to vector<16x1xf32>
    %cst_6 = arith.constant 1.280000e+02 : f32
    %12 = vector.broadcast %cst_6 : f32 to vector<16x1xf32>
    %13 = arith.divf %11, %12 : vector<16x1xf32>
    %cst_7 = arith.constant 9.99999974E-6 : f32
    %14 = vector.broadcast %cst_7 : f32 to vector<16x1xf32>
    %15 = arith.addf %13, %14 : vector<16x1xf32>
    %16 = math.rsqrt %15 : vector<16x1xf32>
    %17 = vector.broadcast %16 : vector<16x1xf32> to vector<16x128xf32>
    %18 = arith.mulf %8, %17 : vector<16x128xf32>
    %c0_8 = arith.constant 0 : index
    %c0_9 = arith.constant 0 : index
    %19 = vector.load %arg3[%c0_8, %c0_9] : memref<16x2xf32, #tpu.memory_space<vmem>>, vector<16x2xf32>
    %20 = vector.extract_strided_slice %19 {offsets = [0, 0], sizes = [16, 1], strides = [1, 1]} : vector<16x2xf32> to vector<16x1xf32>
    %21 = vector.broadcast %20 : vector<16x1xf32> to vector<16x128xf32>
    %22 = arith.mulf %18, %21 : vector<16x128xf32>
    %23 = vector.extract_strided_slice %19 {offsets = [0, 1], sizes = [16, 1], strides = [1, 1]} : vector<16x2xf32> to vector<16x1xf32>
    %24 = vector.broadcast %23 : vector<16x1xf32> to vector<16x128xf32>
    %25 = arith.addf %22, %24 : vector<16x128xf32>
    %cst_10 = arith.constant 0.000000e+00 : f32
    %26 = vector.broadcast %cst_10 : f32 to vector<16x128xf32>
    %27 = arith.maximumf %25, %26 : vector<16x128xf32>
    %28 = arith.truncf %27 : vector<16x128xf32> to vector<16x128xbf16>
    %c0_11 = arith.constant 0 : index
    %c0_12 = arith.constant 0 : index
    %29 = vector.load %arg4[%c0_11, %c0_12] : memref<16x128xbf16, #tpu.memory_space<vmem>>, vector<16x128xbf16>
    tpu.vector_store %arg4[%c0_11, %c0_12], %28 {strides = array<i32>} : memref<16x128xbf16, #tpu.memory_space<vmem>>, vector<16x128xbf16>,
    return
  }
  func.func @transform_0(%arg0: i32) -> (i32, i32) {
    %c0_i32 = arith.constant 0 : i32
    %c0_i32_0 = arith.constant 0 : i32
    %c0_i32_1 = arith.constant 0 : i32
    return %c0_i32, %c0_i32_0 : i32, i32
  }
  func.func @transform_1(%arg0: i32) -> (i32, i32) {
    %c0_i32 = arith.constant 0 : i32
    %c0_i32_0 = arith.constant 0 : i32
    %c0_i32_1 = arith.constant 0 : i32
    return %c0_i32, %c0_i32_0 : i32, i32
  }
  func.func @transform_2(%arg0: i32) -> (i32, i32) {
    %c0_i32 = arith.constant 0 : i32
    %c0_i32_0 = arith.constant 0 : i32
    %c0_i32_1 = arith.constant 0 : i32
    return %c0_i32, %c0_i32_0 : i32, i32
  }
  func.func @transform_3(%arg0: i32) -> (i32, i32) {
    %c0_i32 = arith.constant 0 : i32
    %c0_i32_0 = arith.constant 0 : i32
    %c0_i32_1 = arith.constant 0 : i32
    return %c0_i32, %c0_i32_0 : i32, i32
  }
}

module attributes {stable_mosaic.version = 11 : i64} {
  func.func @dual_head_kernel(%arg0: i32, %arg1: memref<2x1024xbf16, #tpu.memory_space<vmem>>, %arg2: memref<1x1024x2048xbf16, #tpu.memory_space<vmem>>, %arg3: memref<1x2x2048xf32, #tpu.memory_space<vmem>>, %arg4: memref<1x2048x16xbf16, #tpu.memory_space<vmem>>, %arg5: memref<1x1x16xf32, #tpu.memory_space<vmem>>, %arg6: memref<1x2x16xf32, #tpu.memory_space<vmem>>) attributes {dimension_semantics = [#tpu.dimension_semantics<parallel>], iteration_bounds = array<i64: 2>, scalar_prefetch = 0 : i64, scratch_operands = 0 : i64, tpu.core_type = #tpu.core_type<tc>, window_params = [{pipeline_mode = #tpu.pipeline_mode<synchronous>, transform_indices = @transform_0, window_bounds = array<i64: 2, 1024>}, {transform_indices = @transform_1, window_bounds = array<i64: 1, 1024, 2048>}, {transform_indices = @transform_2, window_bounds = array<i64: 1, 2, 2048>}, {transform_indices = @transform_3, window_bounds = array<i64: 1, 2048, 16>}, {transform_indices = @transform_4, window_bounds = array<i64: 1, 1, 16>}, {transform_indices = @transform_5, window_bounds = array<i64: 1, 2, 16>}]} {
    %c0 = arith.constant 0 : index
    %c0_0 = arith.constant 0 : index
    %0 = vector.load %arg1[%c0, %c0_0] : memref<2x1024xbf16, #tpu.memory_space<vmem>>, vector<2x1024xbf16>
    %c0_1 = arith.constant 0 : index
    %c0_2 = arith.constant 0 : index
    %c0_3 = arith.constant 0 : index
    %1 = vector.load %arg2[%c0_1, %c0_2, %c0_3] : memref<1x1024x2048xbf16, #tpu.memory_space<vmem>>, vector<1x1024x2048xbf16>
    %2 = vector.shape_cast %1 : vector<1x1024x2048xbf16> to vector<1024x2048xbf16>
    %cst = arith.constant dense<0.000000e+00> : vector<2x2048xf32>
    %3 = tpu.matmul %0, %2, %cst {dimension_numbers = #tpu.dot_dimension_numbers<[1], [0], [0], [1], [0, 0, 1, 1], [], []>} : vector<2x1024xbf16>, vector<1024x2048xbf16>, vector<2x2048xf32> -> vector<2x2048xf32>
    %cst_4 = arith.constant dense<0.000000e+00> : vector<2048xf32>
    %4 = vector.multi_reduction <add>, %3, %cst_4 [0] : vector<2x2048xf32> to vector<2048xf32>
    %5 = vector.shape_cast %4 : vector<2048xf32> to vector<1x2048xf32>
    %cst_5 = arith.constant 2.000000e+00 : f32
    %6 = vector.broadcast %cst_5 : f32 to vector<1x2048xf32>
    %7 = arith.divf %5, %6 : vector<1x2048xf32>
    %8 = vector.broadcast %7 : vector<1x2048xf32> to vector<2x2048xf32>
    %9 = arith.subf %3, %8 : vector<2x2048xf32>
    %10 = arith.mulf %9, %9 : vector<2x2048xf32>
    %cst_6 = arith.constant dense<0.000000e+00> : vector<2048xf32>
    %11 = vector.multi_reduction <add>, %10, %cst_6 [0] : vector<2x2048xf32> to vector<2048xf32>
    %12 = vector.shape_cast %11 : vector<2048xf32> to vector<1x2048xf32>
    %cst_7 = arith.constant 2.000000e+00 : f32
    %13 = vector.broadcast %cst_7 : f32 to vector<1x2048xf32>
    %14 = arith.divf %12, %13 : vector<1x2048xf32>
    %cst_8 = arith.constant 9.99999974E-6 : f32
    %15 = vector.broadcast %cst_8 : f32 to vector<1x2048xf32>
    %16 = arith.addf %14, %15 : vector<1x2048xf32>
    %17 = math.rsqrt %16 : vector<1x2048xf32>
    %18 = vector.broadcast %17 : vector<1x2048xf32> to vector<2x2048xf32>
    %19 = arith.mulf %9, %18 : vector<2x2048xf32>
    %c0_9 = arith.constant 0 : index
    %c0_10 = arith.constant 0 : index
    %c0_11 = arith.constant 0 : index
    %20 = vector.load %arg3[%c0_9, %c0_10, %c0_11] : memref<1x2x2048xf32, #tpu.memory_space<vmem>>, vector<1x2x2048xf32>
    %21 = vector.shape_cast %20 : vector<1x2x2048xf32> to vector<2x2048xf32>
    %22 = vector.extract_strided_slice %21 {offsets = [0, 0], sizes = [1, 2048], strides = [1, 1]} : vector<2x2048xf32> to vector<1x2048xf32>
    %23 = vector.broadcast %22 : vector<1x2048xf32> to vector<2x2048xf32>
    %24 = arith.mulf %19, %23 : vector<2x2048xf32>
    %25 = vector.extract_strided_slice %21 {offsets = [1, 0], sizes = [1, 2048], strides = [1, 1]} : vector<2x2048xf32> to vector<1x2048xf32>
    %26 = vector.broadcast %25 : vector<1x2048xf32> to vector<2x2048xf32>
    %27 = arith.addf %24, %26 : vector<2x2048xf32>
    %cst_12 = arith.constant 0.000000e+00 : f32
    %28 = vector.broadcast %cst_12 : f32 to vector<2x2048xf32>
    %29 = arith.maximumf %27, %28 : vector<2x2048xf32>
    %30 = arith.truncf %29 : vector<2x2048xf32> to vector<2x2048xbf16>
    %c0_13 = arith.constant 0 : index
    %c0_14 = arith.constant 0 : index
    %c0_15 = arith.constant 0 : index
    %31 = vector.load %arg4[%c0_13, %c0_14, %c0_15] : memref<1x2048x16xbf16, #tpu.memory_space<vmem>>, vector<1x2048x16xbf16>
    %32 = vector.shape_cast %31 : vector<1x2048x16xbf16> to vector<2048x16xbf16>
    %cst_16 = arith.constant dense<0.000000e+00> : vector<2x16xf32>
    %33 = tpu.matmul %30, %32, %cst_16 {dimension_numbers = #tpu.dot_dimension_numbers<[1], [0], [0], [1], [0, 0, 1, 1], [], []>} : vector<2x2048xbf16>, vector<2048x16xbf16>, vector<2x16xf32> -> vector<2x16xf32>
    %c0_17 = arith.constant 0 : index
    %c0_18 = arith.constant 0 : index
    %c0_19 = arith.constant 0 : index
    %34 = vector.load %arg5[%c0_17, %c0_18, %c0_19] : memref<1x1x16xf32, #tpu.memory_space<vmem>>, vector<1x1x16xf32>
    %35 = vector.shape_cast %34 : vector<1x1x16xf32> to vector<1x16xf32>
    %36 = vector.broadcast %35 : vector<1x16xf32> to vector<2x16xf32>
    %37 = arith.addf %33, %36 : vector<2x16xf32>
    %c0_20 = arith.constant 0 : index
    %c0_21 = arith.constant 0 : index
    %c0_22 = arith.constant 0 : index
    %38 = vector.load %arg6[%c0_20, %c0_21, %c0_22] : memref<1x2x16xf32, #tpu.memory_space<vmem>>, vector<1x2x16xf32>
    %39 = vector.shape_cast %38 : vector<1x2x16xf32> to vector<2x16xf32>
    %40 = vector.shape_cast %37 : vector<2x16xf32> to vector<1x2x16xf32>
    tpu.vector_store %arg6[%c0_20, %c0_21, %c0_22], %40 {strides = array<i32>} : memref<1x2x16xf32, #tpu.memory_space<vmem>>, vector<1x2x16xf32>,
    return
  }
  func.func @transform_0(%arg0: i32) -> (i32, i32) {
    %c0_i32 = arith.constant 0 : i32
    %c0_i32_0 = arith.constant 0 : i32
    %c0_i32_1 = arith.constant 0 : i32
    return %c0_i32, %c0_i32_0 : i32, i32
  }
  func.func @transform_1(%arg0: i32) -> (i32, i32, i32) {
    %c0_i32 = arith.constant 0 : i32
    %c0_i32_0 = arith.constant 0 : i32
    %c0_i32_1 = arith.constant 0 : i32
    return %arg0, %c0_i32, %c0_i32_0 : i32, i32, i32
  }
  func.func @transform_2(%arg0: i32) -> (i32, i32, i32) {
    %c0_i32 = arith.constant 0 : i32
    %c0_i32_0 = arith.constant 0 : i32
    %c0_i32_1 = arith.constant 0 : i32
    return %arg0, %c0_i32, %c0_i32_0 : i32, i32, i32
  }
  func.func @transform_3(%arg0: i32) -> (i32, i32, i32) {
    %c0_i32 = arith.constant 0 : i32
    %c0_i32_0 = arith.constant 0 : i32
    %c0_i32_1 = arith.constant 0 : i32
    return %arg0, %c0_i32, %c0_i32_0 : i32, i32, i32
  }
  func.func @transform_4(%arg0: i32) -> (i32, i32, i32) {
    %c0_i32 = arith.constant 0 : i32
    %c0_i32_0 = arith.constant 0 : i32
    %c0_i32_1 = arith.constant 0 : i32
    return %arg0, %c0_i32, %c0_i32_0 : i32, i32, i32
  }
  func.func @transform_5(%arg0: i32) -> (i32, i32, i32) {
    %c0_i32 = arith.constant 0 : i32
    %c0_i32_0 = arith.constant 0 : i32
    %c0_i32_1 = arith.constant 0 : i32
    return %arg0, %c0_i32, %c0_i32_0 : i32, i32, i32
  }
}

</mosaic_0001>

<bundles_post_ra>
// kernel: encoder_forward.4
= control target key start
LH: loop header
LB: loop body
LE: loop exit
PB: predicated region body
PF: predicated region fallthrough
CT: control target
= control target key end

     0   :  { %v1160_v3 = vmov 0   ;;  %vm496_vm0 = vcmask 654336   ;;  %s1479_s0 = inlined_call_operand.vmem [shape: bf16[80,2048], index: 0, kind: input, shape index: {}]   ;;  %s1480_s1 = inlined_call_operand.vmem [shape: bf16[8,80], index: 1, kind: input, shape index: {}]   ;;  %s1481_s2 = inlined_call_operand.vmem [shape: f32[8,2], index: 2, kind: input, shape index: {}]   ;;  %s1482_s3 = inlined_call_operand.vmem [shape: bf16[8,2048], index: 3, kind: output, shape index: {}]  }
   0x1   :  { %v80_v0 = vld [vmem:[%s1479_s0 + $0x200] sm:$0xff]  ;;  %v81_v2 = vld [vmem:[%s1479_s0 + $0x208] sm:$0xff]  ;;  %532 = vmatprep.mubr.bf16.mxu0 %v1160_v3  ;;  %573 = vmatprep.mubr.bf16.mxu1 %v1160_v3  ;;  %v82_v39 = vld [vmem:[%s1479_s0 + $0x210] sm:$0xff] }
   0x2   :  { %v88_v1 = vld [vmem:[%s1479_s0 + $0x240] sm:$0xff]  ;;  %v89_v5 = vld [vmem:[%s1479_s0 + $0x248] sm:$0xff]  ;;  %1155 = vset.pattern.permute.xlu1 %v1160_v3  ;;  %v90_v40 = vld [vmem:[%s1479_s0 + $0x250] sm:$0xff] }
   0x3   :  { %v1114_v4 = vcombine.high %v80_v0, %v88_v1  ;;  %v1113_v6 = vcombine.low %v80_v0, %v88_v1  ;;  %v64_v7 = vld [vmem:[%s1479_s0 + $0x180] sm:$0xff]  ;;  %v1116_v9 = vcombine.high %v81_v2, %v89_v5  ;;  %v1115_v10 = vcombine.low %v81_v2, %v89_v5  ;;  %v65_v12 = vld [vmem:[%s1479_s0 + $0x188] sm:$0xff]  ;;  %v83_v41 = vld [vmem:[%s1479_s0 + $0x218] sm:$0xff] }
   0x4   :  { %v72_v8 = vld [vmem:[%s1479_s0 + $0x1c0] sm:$0xff]  ;;  %v73_v13 = vld [vmem:[%s1479_s0 + $0x1c8] sm:$0xff]  ;;  %v91_v42 = vld [vmem:[%s1479_s0 + $0x258] sm:$0xff]  ;;  %v1118_v45 = vcombine.high %v82_v39, %v90_v40  ;;  %v1117_v52 = vcombine.low %v82_v39, %v90_v40 }
   0x5   :  { %v1098_v11 = vcombine.high %v64_v7, %v72_v8  ;;  %v48_v14 = vld [vmem:[%s1479_s0 + $0x100] sm:$0xff]  ;;  %506 = vmatprep.subr.bf16.mxu0 %v1114_v4  ;;  %v1100_v15 = vcombine.high %v65_v12, %v73_v13  ;;  %v49_v17 = vld [vmem:[%s1479_s0 + $0x108] sm:$0xff]  ;;  %547 = vmatprep.subr.bf16.mxu1 %v1116_v9  ;;  %v1097_v19 = vcombine.low %v64_v7, %v72_v8  ;;  %v66_v47 = vld [vmem:[%s1479_s0 + $0x190] sm:$0xff] }
   0x6   :  { %v56_v16 = vld [vmem:[%s1479_s0 + $0x140] sm:$0xff]  ;;  %v57_v18 = vld [vmem:[%s1479_s0 + $0x148] sm:$0xff]  ;;  %507 = vmatpush1.bf16.msra.mxu0 %v1113_v6  ;;  %548 = vmatpush1.bf16.msra.mxu1 %v1115_v10  ;;  %v1099_v20 = vcombine.low %v65_v12, %v73_v13  ;;  %v1120_v46 = vcombine.high %v83_v41, %v91_v42  ;;  %v74_v48 = vld [vmem:[%s1479_s0 + $0x1d0] sm:$0xff]  ;;  %v1119_v53 = vcombine.low %v83_v41, %v91_v42 }
   0x7   :  { %508 = vmatprep.subr.bf16.mxu0 %v1098_v11  ;;  %v1082_v21 = vcombine.high %v48_v14, %v56_v16  ;;  %549 = vmatprep.subr.bf16.mxu1 %v1100_v15  ;;  %v1084_v22 = vcombine.high %v49_v17, %v57_v18  ;;  %v32_v23 = vld [vmem:[%s1479_s0 + $0x80] sm:$0xff]  ;;  %v33_v25 = vld [vmem:[%s1479_s0 + $0x88] sm:$0xff]  ;;  %v1081_v27 = vcombine.low %v48_v14, %v56_v16  ;;  %v67_v49 = vld [vmem:[%s1479_s0 + $0x198] sm:$0xff] }
   0x8   :  { %v40_v24 = vld [vmem:[%s1479_s0 + $0xc0] sm:$0xff]  ;;  %v41_v26 = vld [vmem:[%s1479_s0 + $0xc8] sm:$0xff]  ;;  %v1083_v28 = vcombine.low %v49_v17, %v57_v18  ;;  %v75_v50 = vld [vmem:[%s1479_s0 + $0x1d8] sm:$0xff]  ;;  %v1102_v54 = vcombine.high %v66_v47, %v74_v48  ;;  %v1101_v60 = vcombine.low %v66_v47, %v74_v48 }
   0x9   :  { %v1066_v29 = vcombine.high %v32_v23, %v40_v24  ;;  %v1068_v30 = vcombine.high %v33_v25, %v41_v26  ;;  %v16_v31 = vld [vmem:[%s1479_s0] sm:$0xff]  ;;  %v17_v33 = vld [vmem:[%s1479_s0 + $0x8] sm:$0xff]  ;;  %v1065_v35 = vcombine.low %v32_v23, %v40_v24  ;;  %v1067_v36 = vcombine.low %v33_v25, %v41_v26  ;;  %v50_v56 = vld [vmem:[%s1479_s0 + $0x110] sm:$0xff] }
   0xa   :  { %509 = vmatpush1.bf16.msra.mxu0 %v1097_v19  ;;  %550 = vmatpush1.bf16.msra.mxu1 %v1099_v20  ;;  %v24_v32 = vld [vmem:[%s1479_s0 + $0x40] sm:$0xff]  ;;  %v25_v34 = vld [vmem:[%s1479_s0 + $0x48] sm:$0xff]  ;;  %v1104_v55 = vcombine.high %v67_v49, %v75_v50  ;;  %v58_v57 = vld [vmem:[%s1479_s0 + $0x150] sm:$0xff]  ;;  %v1103_v61 = vcombine.low %v67_v49, %v75_v50 }
   0xb   :  { %510 = vmatprep.subr.bf16.mxu0 %v1082_v21  ;;  %551 = vmatprep.subr.bf16.mxu1 %v1084_v22  ;;  %v1050_v37 = vcombine.high %v16_v31, %v24_v32  ;;  %v1052_v38 = vcombine.high %v17_v33, %v25_v34  ;;  %v1049_v43 = vcombine.low %v16_v31, %v24_v32  ;;  %v1272_v51 = vld [vmem:[%s1480_s1] sm:$0xf]  ;;  %v51_v58 = vld [vmem:[%s1479_s0 + $0x118] sm:$0xff]  ;;  %v34_v0 = vld [vmem:[%s1479_s0 + $0x90] sm:$0xff] }
   0xc   :  { %v1051_v44 = vcombine.low %v17_v33, %v25_v34  ;;  %v59_v59 = vld [vmem:[%s1479_s0 + $0x158] sm:$0xff]  ;;  %v1086_v62 = vcombine.high %v50_v56, %v58_v57  ;;  %v42_v1 = vld [vmem:[%s1479_s0 + $0xd0] sm:$0xff]  ;;  %v1085_v5 = vcombine.low %v50_v56, %v58_v57  ;;  %v84_v17 = vld [vmem:[%s1479_s0 + $0x220] sm:$0xff] }
   0xd   :  { %v1088_v63 = vcombine.high %v51_v58, %v59_v59  ;;  %v35_v2 = vld [vmem:[%s1479_s0 + $0x98] sm:$0xff]  ;;  %v1087_v6 = vcombine.low %v51_v58, %v59_v59  ;;  %v1070_v7 = vcombine.high %v34_v0, %v42_v1  ;;  %v18_v9 = vld [vmem:[%s1479_s0 + $0x10] sm:$0xff]  ;;  %v1069_v13 = vcombine.low %v34_v0, %v42_v1  ;;  %v92_v18 = vld [vmem:[%s1479_s0 + $0x260] sm:$0xff] }
   0xe   :  { %511 = vmatpush1.bf16.msra.mxu0 %v1081_v27  ;;  %552 = vmatpush1.bf16.msra.mxu1 %v1083_v28  ;;  %v43_v4 = vld [vmem:[%s1479_s0 + $0xd8] sm:$0xff]  ;;  %v26_v10 = vld [vmem:[%s1479_s0 + $0x50] sm:$0xff]  ;;  %v85_v19 = vld [vmem:[%s1479_s0 + $0x228] sm:$0xff]  ;;  %v1122_v23 = vcombine.high %v84_v17, %v92_v18 }
   0xf   :  { %512 = vmatprep.subr.bf16.mxu0 %v1066_v29  ;;  %553 = vmatprep.subr.bf16.mxu1 %v1068_v30  ;;  %v1072_v8 = vcombine.high %v35_v2, %v43_v4  ;;  %v19_v11 = vld [vmem:[%s1479_s0 + $0x18] sm:$0xff]  ;;  %v1071_v14 = vcombine.low %v35_v2, %v43_v4  ;;  %v1054_v15 = vcombine.high %v18_v9, %v26_v10  ;;  %v93_v20 = vld [vmem:[%s1479_s0 + $0x268] sm:$0xff]  ;;  %v68_v25 = vld [vmem:[%s1479_s0 + $0x1a0] sm:$0xff] }
  0x10   :  { %v27_v12 = vld [vmem:[%s1479_s0 + $0x58] sm:$0xff]  ;;  %v1053_v21 = vcombine.low %v18_v9, %v26_v10  ;;  %v1124_v24 = vcombine.high %v85_v19, %v93_v20  ;;  %v76_v26 = vld [vmem:[%s1479_s0 + $0x1e0] sm:$0xff]  ;;  %v69_v27 = vld [vmem:[%s1479_s0 + $0x1a8] sm:$0xff]  ;;  %v1121_v29 = vcombine.low %v84_v17, %v92_v18  ;;  %v1123_v30 = vcombine.low %v85_v19, %v93_v20 }
  0x11   :  { %v1056_v16 = vcombine.high %v19_v11, %v27_v12  ;;  %v1055_v22 = vcombine.low %v19_v11, %v27_v12  ;;  %v77_v28 = vld [vmem:[%s1479_s0 + $0x1e8] sm:$0xff]  ;;  %v1106_v31 = vcombine.high %v68_v25, %v76_v26  ;;  %v52_v33 = vld [vmem:[%s1479_s0 + $0x120] sm:$0xff]  ;;  %v86_v58 = vld [vmem:[%s1479_s0 + $0x230] sm:$0xff] }
  0x12   :  { %513 = vmatpush1.bf16.msra.mxu0 %v1065_v35  ;;  %554 = vmatpush1.bf16.msra.mxu1 %v1067_v36  ;;  %v1108_v32 = vcombine.high %v69_v27, %v77_v28  ;;  %v60_v34 = vld [vmem:[%s1479_s0 + $0x160] sm:$0xff]  ;;  %v53_v35 = vld [vmem:[%s1479_s0 + $0x128] sm:$0xff]  ;;  %v94_v59 = vld [vmem:[%s1479_s0 + $0x270] sm:$0xff] }
  0x13   :  { %514 = vmatprep.subr.bf16.mxu0 %v1050_v37  ;;  %555 = vmatprep.subr.bf16.mxu1 %v1052_v38  ;;  %v61_v36 = vld [vmem:[%s1479_s0 + $0x168] sm:$0xff]  ;;  %v1105_v37 = vcombine.low %v68_v25, %v76_v26  ;;  %v1107_v38 = vcombine.low %v69_v27, %v77_v28  ;;  %v1090_v39 = vcombine.high %v52_v33, %v60_v34  ;;  %v36_v41 = vld [vmem:[%s1479_s0 + $0xa0] sm:$0xff]  ;;  %v70_v2 = vld [vmem:[%s1479_s0 + $0x1b0] sm:$0xff] }
  0x14   :  { %v1092_v40 = vcombine.high %v53_v35, %v61_v36  ;;  %v44_v42 = vld [vmem:[%s1479_s0 + $0xe0] sm:$0xff]  ;;  %v1126_v0 = vcombine.high %v86_v58, %v94_v59  ;;  %v78_v4 = vld [vmem:[%s1479_s0 + $0x1f0] sm:$0xff] }
  0x15   :  { %v1074_v47 = vcombine.high %v36_v41, %v44_v42  ;;  %v20_v49 = vld [vmem:[%s1479_s0 + $0x20] sm:$0xff]  ;;  %v1110_v9 = vcombine.high %v70_v2, %v78_v4  ;;  %v54_v11 = vld [vmem:[%s1479_s0 + $0x130] sm:$0xff] }
  0x16   :  { %515 = vmatpush1.bf16.msra.mxu0 %v1049_v43  ;;  %556 = vmatpush1.bf16.msra.mxu1 %v1051_v44  ;;  %v37_v43 = vld [vmem:[%s1479_s0 + $0xa8] sm:$0xff]  ;;  %v28_v50 = vld [vmem:[%s1479_s0 + $0x60] sm:$0xff]  ;;  %v62_v12 = vld [vmem:[%s1479_s0 + $0x170] sm:$0xff] }
  0x17   :  { %588 = vmatprep.subr.bf16.mxu0 %v1118_v45  ;;  %629 = vmatprep.subr.bf16.mxu1 %v1120_v46  ;;  %v45_v44 = vld [vmem:[%s1479_s0 + $0xe8] sm:$0xff]  ;;  %v1089_v45 = vcombine.low %v52_v33, %v60_v34  ;;  %v1091_v46 = vcombine.low %v53_v35, %v61_v36  ;;  %v1058_v56 = vcombine.high %v20_v49, %v28_v50  ;;  %v38_v19 = vld [vmem:[%s1479_s0 + $0xb0] sm:$0xff] }
  0x18   :  { %v1076_v48 = vcombine.high %v37_v43, %v45_v44  ;;  %v1094_v17 = vcombine.high %v54_v11, %v62_v12  ;;  %v46_v20 = vld [vmem:[%s1479_s0 + $0xf0] sm:$0xff] }
  0x19   :  { %1129 = vmatmul.mubr.msk.bf16.vlgmr.msra.gmra.mxu0 %vm496_vm0, %v1272_v51  ;;  %1130 = vmatmul.mubr.msk.bf16.vlgmr.msra.gmra.mxu1 %vm496_vm0, %v1272_v51  ;;  %v1078_v25 = vcombine.high %v38_v19, %v46_v20  ;;  %v22_v27 = vld [vmem:[%s1479_s0 + $0x30] sm:$0xff] }
  0x1a   :  { %589 = vmatpush1.bf16.msra.mxu0 %v1117_v52  ;;  %630 = vmatpush1.bf16.msra.mxu1 %v1119_v53  ;;  %v21_v52 = vld [vmem:[%s1479_s0 + $0x28] sm:$0xff]  ;;  %v30_v28 = vld [vmem:[%s1479_s0 + $0x70] sm:$0xff] }
  0x1b   :  { %590 = vmatprep.subr.bf16.mxu0 %v1102_v54  ;;  %631 = vmatprep.subr.bf16.mxu1 %v1104_v55  ;;  %v29_v53 = vld [vmem:[%s1479_s0 + $0x68] sm:$0xff]  ;;  %v1073_v54 = vcombine.low %v36_v41, %v44_v42  ;;  %v1075_v55 = vcombine.low %v37_v43, %v45_v44  ;;  %v1061_v34 = vcombine.low %v22_v27, %v30_v28 }
  0x1c   :  { %614 = vmatprep.mubr.bf16.mxu0 %v1160_v3  ;;  %655 = vmatprep.mubr.bf16.mxu1 %v1160_v3  ;;  %v1060_v57 = vcombine.high %v21_v52, %v29_v53 }
  0x1e   :  { %591 = vmatpush1.bf16.msra.mxu0 %v1101_v60  ;;  %632 = vmatpush1.bf16.msra.mxu1 %v1103_v61  ;;  %v87_v60 = vld [vmem:[%s1479_s0 + $0x238] sm:$0xff] }
  0x1f   :  { %592 = vmatprep.subr.bf16.mxu0 %v1086_v62  ;;  %633 = vmatprep.subr.bf16.mxu1 %v1088_v63  ;;  %v95_v61 = vld [vmem:[%s1479_s0 + $0x278] sm:$0xff]  ;;  %v1057_v62 = vcombine.low %v20_v49, %v28_v50  ;;  %v1059_v63 = vcombine.low %v21_v52, %v29_v53 }
  0x20   :  { %v1128_v1 = vcombine.high %v87_v60, %v95_v61 }
  0x22   :  { %593 = vmatpush1.bf16.msra.mxu0 %v1085_v5  ;;  %634 = vmatpush1.bf16.msra.mxu1 %v1087_v6  ;;  %v71_v5 = vld [vmem:[%s1479_s0 + $0x1b8] sm:$0xff] }
  0x23   :  { %594 = vmatprep.subr.bf16.mxu0 %v1070_v7  ;;  %635 = vmatprep.subr.bf16.mxu1 %v1072_v8  ;;  %v79_v6 = vld [vmem:[%s1479_s0 + $0x1f8] sm:$0xff]  ;;  %v1125_v7 = vcombine.low %v86_v58, %v94_v59  ;;  %v1127_v8 = vcombine.low %v87_v60, %v95_v61 }
  0x24   :  { %v1112_v10 = vcombine.high %v71_v5, %v79_v6 }
  0x26   :  { %595 = vmatpush1.bf16.msra.mxu0 %v1069_v13  ;;  %636 = vmatpush1.bf16.msra.mxu1 %v1071_v14  ;;  %v55_v13 = vld [vmem:[%s1479_s0 + $0x138] sm:$0xff] }
  0x27   :  { %596 = vmatprep.subr.bf16.mxu0 %v1054_v15  ;;  %637 = vmatprep.subr.bf16.mxu1 %v1056_v16  ;;  %v63_v14 = vld [vmem:[%s1479_s0 + $0x178] sm:$0xff]  ;;  %v1109_v15 = vcombine.low %v70_v2, %v78_v4  ;;  %v1111_v16 = vcombine.low %v71_v5, %v79_v6 }
  0x28   :  { %v1096_v18 = vcombine.high %v55_v13, %v63_v14 }
  0x2a   :  { %597 = vmatpush1.bf16.msra.mxu0 %v1053_v21  ;;  %638 = vmatpush1.bf16.msra.mxu1 %v1055_v22  ;;  %v39_v21 = vld [vmem:[%s1479_s0 + $0xb8] sm:$0xff] }
  0x2b   :  { %670 = vmatprep.subr.bf16.mxu0 %v1122_v23  ;;  %711 = vmatprep.subr.bf16.mxu1 %v1124_v24  ;;  %v47_v22 = vld [vmem:[%s1479_s0 + $0xf8] sm:$0xff]  ;;  %v1093_v23 = vcombine.low %v54_v11, %v62_v12  ;;  %v1095_v24 = vcombine.low %v55_v13, %v63_v14 }
  0x2c   :  { %v1080_v26 = vcombine.high %v39_v21, %v47_v22 }
  0x2d   :  { %1131 = vmatmul.mubr.msk.bf16.vlgmr.msra.gmra.mxu0 %vm496_vm0, %v1272_v51  ;;  %1132 = vmatmul.mubr.msk.bf16.vlgmr.msra.gmra.mxu1 %vm496_vm0, %v1272_v51 }
  0x2e   :  { %671 = vmatpush1.bf16.msra.mxu0 %v1121_v29  ;;  %712 = vmatpush1.bf16.msra.mxu1 %v1123_v30  ;;  %v31_v29 = vld [vmem:[%s1479_s0 + $0x78] sm:$0xff]  ;;  %v1077_v30 = vcombine.low %v38_v19, %v46_v20  ;;  %v915_v20 = vld [vmem:[%s1481_s2] sm:$0xff] }
  0x2f   :  { %672 = vmatprep.subr.bf16.mxu0 %v1106_v31  ;;  %713 = vmatprep.subr.bf16.mxu1 %v1108_v32  ;;  %v1079_v31 = vcombine.low %v39_v21, %v47_v22  ;;  %v1062_v32 = vcombine.high %v22_v27, %v30_v28  ;;  %v1161_v21 = vmov 1  }
  0x30   :  { %696 = vmatprep.mubr.bf16.mxu0 %v1160_v3  ;;  %737 = vmatprep.mubr.bf16.mxu1 %v1160_v3 }
  0x31   :  { %1157 = vset.pattern.permute.xlu0 %v1161_v21  ;;  %918 = vperm.xlu1 %1155, %v915_v20  }
  0x32   :  { %673 = vmatpush1.bf16.msra.mxu0 %v1105_v37  ;;  %714 = vmatpush1.bf16.msra.mxu1 %v1107_v38 }
  0x33   :  { %674 = vmatprep.subr.bf16.mxu0 %v1090_v39  ;;  %715 = vmatprep.subr.bf16.mxu1 %v1092_v40 }
  0x35   :  { %1156 = vset.pattern.permute.xlu1 %v1161_v21 }
  0x36   :  { %675 = vmatpush1.bf16.msra.mxu0 %v1089_v45  ;;  %716 = vmatpush1.bf16.msra.mxu1 %v1091_v46 }
  0x37   :  { %676 = vmatprep.subr.bf16.mxu0 %v1074_v47  ;;  %717 = vmatprep.subr.bf16.mxu1 %v1076_v48 }
  0x38   :  { %938 = vperm.xlu1 %1156, %v915_v20  }
  0x3a   :  { %677 = vmatpush1.bf16.msra.mxu0 %v1073_v54  ;;  %718 = vmatpush1.bf16.msra.mxu1 %v1075_v55 }
  0x3b   :  { %678 = vmatprep.subr.bf16.mxu0 %v1058_v56  ;;  %719 = vmatprep.subr.bf16.mxu1 %v1060_v57 }
  0x3e   :  { %679 = vmatpush1.bf16.msra.mxu0 %v1057_v62  ;;  %720 = vmatpush1.bf16.msra.mxu1 %v1059_v63 }
  0x3f   :  { %752 = vmatprep.subr.bf16.mxu0 %v1126_v0  ;;  %793 = vmatprep.subr.bf16.mxu1 %v1128_v1 }
  0x41   :  { %1133 = vmatmul.mubr.msk.bf16.vlgmr.msra.gmra.mxu0 %vm496_vm0, %v1272_v51  ;;  %1134 = vmatmul.mubr.msk.bf16.vlgmr.msra.gmra.mxu1 %vm496_vm0, %v1272_v51 }
  0x42   :  { %753 = vmatpush1.bf16.msra.mxu0 %v1125_v7  ;;  %794 = vmatpush1.bf16.msra.mxu1 %v1127_v8 }
  0x43   :  { %754 = vmatprep.subr.bf16.mxu0 %v1110_v9  ;;  %795 = vmatprep.subr.bf16.mxu1 %v1112_v10 }
  0x44   :  { %778 = vmatprep.mubr.bf16.mxu0 %v1160_v3  ;;  %819 = vmatprep.mubr.bf16.mxu1 %v1160_v3  ;;  %v23_v3 = vld [vmem:[%s1479_s0 + $0x38] sm:$0xff] }
  0x45   :  { %v1064_v33 = vcombine.high %v23_v3, %v31_v29  ;;  %v1063_v35 = vcombine.low %v23_v3, %v31_v29 }
  0x46   :  { %755 = vmatpush1.bf16.msra.mxu0 %v1109_v15  ;;  %796 = vmatpush1.bf16.msra.mxu1 %v1111_v16 }
  0x47   :  { %756 = vmatprep.subr.bf16.mxu0 %v1094_v17  ;;  %797 = vmatprep.subr.bf16.mxu1 %v1096_v18 }
  0x4a   :  { %757 = vmatpush1.bf16.msra.mxu0 %v1093_v23  ;;  %798 = vmatpush1.bf16.msra.mxu1 %v1095_v24 }
  0x4b   :  { %758 = vmatprep.subr.bf16.mxu0 %v1078_v25  ;;  %799 = vmatprep.subr.bf16.mxu1 %v1080_v26 }
  0x4e   :  { %759 = vmatpush1.bf16.msra.mxu0 %v1077_v30  ;;  %800 = vmatpush1.bf16.msra.mxu1 %v1079_v31 }
  0x4f   :  { %760 = vmatprep.subr.bf16.mxu0 %v1062_v32  ;;  %801 = vmatprep.subr.bf16.mxu1 %v1064_v33 }
  0x52   :  { %761 = vmatpush1.bf16.msra.mxu0 %v1061_v34  ;;  %802 = vmatpush1.bf16.msra.mxu1 %v1063_v35 }
  0x55   :  { %1135 = vmatmul.mubr.msk.bf16.vlgmr.msra.gmra.mxu0 %vm496_vm0, %v1272_v51  ;;  %1136 = vmatmul.mubr.msk.bf16.vlgmr.msra.gmra.mxu1 %vm496_vm0, %v1272_v51 }
  0xd9   :  { %v534_v36 = vpop.f32.mrf.mxu0  ;;  %v575_v37 = vpop.f32.mrf.mxu1 }
  0xdb   :  { %v536_v38 = vpop.f32.mrf.mxu0  ;;  %v577_v39 = vpop.f32.mrf.mxu1 }
  0xdc   :  { %v828_v47 = vadd.f32 %v536_v38, %v534_v36 }
  0xdd   :  { %v538_v40 = vpop.f32.mrf.mxu0  ;;  %v579_v41 = vpop.f32.mrf.mxu1 }
  0xde   :  { %v829_v53 = vadd.f32 %v828_v47, %v575_v37 }
  0xdf   :  { %v539_v42 = vpop.f32.mrf.mxu0  ;;  %v580_v43 = vpop.f32.mrf.mxu1 }
  0xe0   :  { %v830_v55 = vadd.f32 %v829_v53, %v577_v39 }
  0xed   :  { %v616_v44 = vpop.f32.mrf.mxu0  ;;  %v657_v45 = vpop.f32.mrf.mxu1 }
  0xee   :  { %v831_v51 = vadd.f32 %v830_v55, %v616_v44 }
  0xef   :  { %v618_v46 = vpop.f32.mrf.mxu0  ;;  %v659_v48 = vpop.f32.mrf.mxu1 }
  0xf0   :  { %v832_v56 = vadd.f32 %v831_v51, %v618_v46 }
  0xf1   :  { %v620_v49 = vpop.f32.mrf.mxu0  ;;  %v661_v50 = vpop.f32.mrf.mxu1 }
  0xf2   :  { %v833_v58 = vadd.f32 %v832_v56, %v657_v45 }
  0xf3   :  { %v621_v52 = vpop.f32.mrf.mxu0  ;;  %v662_v54 = vpop.f32.mrf.mxu1 }
  0xf4   :  { %v834_v63 = vadd.f32 %v833_v58, %v659_v48 }
 0x101   :  { %v698_v57 = vpop.f32.mrf.mxu0  ;;  %v739_v59 = vpop.f32.mrf.mxu1 }
 0x102   :  { %v835_v2 = vadd.f32 %v834_v63, %v698_v57 }
 0x103   :  { %v700_v60 = vpop.f32.mrf.mxu0  ;;  %v741_v61 = vpop.f32.mrf.mxu1 }
 0x104   :  { %v836_v5 = vadd.f32 %v835_v2, %v700_v60 }
 0x105   :  { %v702_v62 = vpop.f32.mrf.mxu0  ;;  %v743_v0 = vpop.f32.mrf.mxu1 }
 0x106   :  { %v837_v6 = vadd.f32 %v836_v5, %v739_v59 }
 0x107   :  { %v703_v1 = vpop.f32.mrf.mxu0  ;;  %v744_v4 = vpop.f32.mrf.mxu1 }
 0x108   :  { %v838_v7 = vadd.f32 %v837_v6, %v741_v61 }
 0x115   :  { %v780_v8 = vpop.f32.mrf.mxu0  ;;  %v821_v10 = vpop.f32.mrf.mxu1 }
 0x116   :  { %v839_v9 = vadd.f32 %v838_v7, %v780_v8 }
 0x117   :  { %v782_v11 = vpop.f32.mrf.mxu0  ;;  %v823_v13 = vpop.f32.mrf.mxu1 }
 0x118   :  { %v840_v12 = vadd.f32 %v839_v9, %v782_v11 }
 0x119   :  { %v784_v14 = vpop.f32.mrf.mxu0  ;;  %v825_v15 = vpop.f32.mrf.mxu1 }
 0x11a   :  { %v841_v16 = vadd.f32 %v840_v12, %v821_v10 }
 0x11b   :  { %v785_v17 = vpop.f32.mrf.mxu0  ;;  %v826_v18 = vpop.f32.mrf.mxu1 }
 0x11c   :  { %v842_v19 = vadd.f32 %v841_v16, %v823_v13 }
 0x11e   :  { %843 = vadd.xlane.f32.xlu0 %v842_v19 }
 0x1a7   :  { %v844_v22 = vpop.xlane.xlu0 %843 }
 0x1a8   :  { %v846_v23 = vmul.f32 0.00048828125, %v844_v22 }
 0x1aa   :  { %v847_v24 = vsub.f32 %v534_v36, %v846_v23  ;;  %v848_v25 = vsub.f32 %v536_v38, %v846_v23  ;;  %v849_v26 = vsub.f32 %v575_v37, %v846_v23  ;;  %v850_v3 = vsub.f32 %v577_v39, %v846_v23 }
 0x1ab   :  { %v851_v29 = vsub.f32 %v616_v44, %v846_v23  ;;  %v852_v32 = vsub.f32 %v618_v46, %v846_v23  ;;  %v853_v35 = vsub.f32 %v657_v45, %v846_v23  ;;  %v854_v42 = vsub.f32 %v659_v48, %v846_v23 }
 0x1ac   :  { %v863_v27 = vmul.f32 %v847_v24, %v847_v24  ;;  %v864_v28 = vmul.f32 %v848_v25, %v848_v25  ;;  %v865_v30 = vmul.f32 %v849_v26, %v849_v26  ;;  %v866_v33 = vmul.f32 %v850_v3, %v850_v3 }
 0x1ad   :  { %v867_v40 = vmul.f32 %v851_v29, %v851_v29  ;;  %v868_v43 = vmul.f32 %v852_v32, %v852_v32  ;;  %v855_v49 = vsub.f32 %v698_v57, %v846_v23  ;;  %v869_v50 = vmul.f32 %v853_v35, %v853_v35 }
 0x1ae   :  { %v879_v31 = vadd.f32 %v864_v28, %v863_v27  ;;  %v856_v38 = vsub.f32 %v700_v60, %v846_v23  ;;  %v870_v37 = vmul.f32 %v854_v42, %v854_v42  ;;  %v857_v53 = vsub.f32 %v739_v59, %v846_v23 }
 0x1af   :  { %v871_v39 = vmul.f32 %v855_v49, %v855_v49  ;;  %v858_v54 = vsub.f32 %v741_v61, %v846_v23  ;;  %v859_v51 = vsub.f32 %v780_v8, %v846_v23  ;;  %v860_v58 = vsub.f32 %v782_v11, %v846_v23  ;;  %v919_v11 = vpop.permute.xlu1 %918 }
 0x1b0   :  { %v880_v34 = vadd.f32 %v879_v31, %v865_v30  ;;  %v872_v55 = vmul.f32 %v856_v38, %v856_v38  ;;  %v873_v56 = vmul.f32 %v857_v53, %v857_v53  ;;  %v861_v63 = vsub.f32 %v821_v10, %v846_v23 }
 0x1b1   :  { %v874_v62 = vmul.f32 %v858_v54, %v858_v54  ;;  %v875_v0 = vmul.f32 %v859_v51, %v859_v51  ;;  %v862_v1 = vsub.f32 %v823_v13, %v846_v23  ;;  %v876_v2 = vmul.f32 %v860_v58, %v860_v58 }
 0x1b2   :  { %v881_v41 = vadd.f32 %v880_v34, %v866_v33  ;;  %v877_v4 = vmul.f32 %v861_v63, %v861_v63 }
 0x1b3   :  { %v878_v59 = vmul.f32 %v862_v1, %v862_v1 }
 0x1b4   :  { %v882_v47 = vadd.f32 %v881_v41, %v867_v40 }
 0x1b6   :  { %v883_v36 = vadd.f32 %v882_v47, %v868_v43 }
 0x1b8   :  { %v884_v52 = vadd.f32 %v883_v36, %v869_v50 }
 0x1ba   :  { %v885_v44 = vadd.f32 %v884_v52, %v870_v37 }
 0x1bc   :  { %v886_v46 = vadd.f32 %v885_v44, %v871_v39 }
 0x1be   :  { %v887_v45 = vadd.f32 %v886_v46, %v872_v55 }
 0x1c0   :  { %v888_v48 = vadd.f32 %v887_v45, %v873_v56 }
 0x1c2   :  { %v889_v57 = vadd.f32 %v888_v48, %v874_v62 }
 0x1c4   :  { %v890_v60 = vadd.f32 %v889_v57, %v875_v0 }
 0x1c6   :  { %v891_v5 = vadd.f32 %v890_v60, %v876_v2 }
 0x1c8   :  { %v892_v6 = vadd.f32 %v891_v5, %v877_v4 }
 0x1ca   :  { %v893_v7 = vadd.f32 %v892_v6, %v878_v59 }
 0x1cc   :  { %894 = vadd.xlane.f32.xlu0 %v893_v7 }
 0x255   :  { %v895_v61 = vpop.xlane.xlu0 %894 }
 0x256   :  { %v896_v9 = vmul.f32 0.00048828125, %v895_v61 }
 0x258   :  { %v897_v8 = vadd.f32 1e-05, %v896_v9 }
 0x25a   :  { %1158 = vrsqrt.f32 %v897_v8 }
 0x267   :  { %v1159_v12 = vpop.eup %1158 }
 0x268   :  { %v899_v14 = vmul.f32 %v1159_v12, %v847_v24  ;;  %v900_v15 = vmul.f32 %v1159_v12, %v848_v25  ;;  %v901_v10 = vmul.f32 %v1159_v12, %v849_v26  ;;  %v902_v16 = vmul.f32 %v1159_v12, %v850_v3  ;;  %v939_v24 = vpop.permute.xlu1 %938 }
 0x269   :  { %v903_v17 = vmul.f32 %v1159_v12, %v851_v29  ;;  %v904_v13 = vmul.f32 %v1159_v12, %v852_v32  ;;  %v905_v18 = vmul.f32 %v1159_v12, %v853_v35  ;;  %v906_v19 = vmul.f32 %v1159_v12, %v854_v42 }
 0x26a   :  { %v907_v20 = vmul.f32 %v1159_v12, %v855_v49  ;;  %v908_v21 = vmul.f32 %v1159_v12, %v856_v38  ;;  %v909_v22 = vmul.f32 %v1159_v12, %v857_v53  ;;  %v910_v23 = vmul.f32 %v1159_v12, %v858_v54 }
 0x26b   :  { %v911_v27 = vmul.f32 %v1159_v12, %v859_v51  ;;  %v912_v28 = vmul.f32 %v1159_v12, %v860_v58  ;;  %v913_v30 = vmul.f32 %v1159_v12, %v861_v63  ;;  %v914_v31 = vmul.f32 %v1159_v12, %v862_v1 }
 0x26c   :  { %v921_v33 = vmul.f32 %v919_v11, %v899_v14  ;;  %v922_v34 = vmul.f32 %v919_v11, %v900_v15  ;;  %v923_v40 = vmul.f32 %v919_v11, %v901_v10  ;;  %v924_v41 = vmul.f32 %v919_v11, %v902_v16 }
 0x26d   :  { %v925_v25 = vmul.f32 %v919_v11, %v903_v17  ;;  %v926_v26 = vmul.f32 %v919_v11, %v904_v13  ;;  %v927_v3 = vmul.f32 %v919_v11, %v905_v18  ;;  %v928_v29 = vmul.f32 %v919_v11, %v906_v19 }
 0x26e   :  { %v929_v32 = vmul.f32 %v919_v11, %v907_v20  ;;  %v930_v35 = vmul.f32 %v919_v11, %v908_v21  ;;  %v931_v42 = vmul.f32 %v919_v11, %v909_v22  ;;  %v932_v43 = vmul.f32 %v919_v11, %v910_v23 }
 0x26f   :  { %v933_v47 = vmul.f32 %v919_v11, %v911_v27  ;;  %v934_v49 = vmul.f32 %v919_v11, %v912_v28  ;;  %v935_v50 = vmul.f32 %v919_v11, %v913_v30  ;;  %v936_v36 = vmul.f32 %v919_v11, %v914_v31 }
 0x270   :  { %v941_v38 = vadd.f32 %v939_v24, %v921_v33  ;;  %v942_v37 = vadd.f32 %v939_v24, %v922_v34  ;;  %v943_v52 = vadd.f32 %v939_v24, %v923_v40  ;;  %v944_v53 = vadd.f32 %v939_v24, %v924_v41 }
 0x271   :  { %v945_v39 = vadd.f32 %v939_v24, %v925_v25  ;;  %v946_v44 = vadd.f32 %v939_v24, %v926_v26  ;;  %v947_v54 = vadd.f32 %v939_v24, %v927_v3  ;;  %v948_v55 = vadd.f32 %v939_v24, %v928_v29 }
 0x272   :  { %v949_v46 = vadd.f32 %v939_v24, %v929_v32  ;;  %v950_v51 = vadd.f32 %v939_v24, %v930_v35  ;;  %v951_v56 = vadd.f32 %v939_v24, %v931_v42  ;;  %v952_v45 = vadd.f32 %v939_v24, %v932_v43 }
 0x273   :  { %v953_v58 = vadd.f32 %v939_v24, %v933_v47  ;;  %v954_v62 = vadd.f32 %v939_v24, %v934_v49  ;;  %v955_v48 = vadd.f32 %v939_v24, %v935_v50  ;;  %v956_v63 = vadd.f32 %v939_v24, %v936_v36 }
 0x274   :  { %v957_v0 = vmax.f32 %v941_v38, 0.0  ;;  %v958_v57 = vmax.f32 %v942_v37, 0.0  ;;  %v959_v1 = vmax.f32 %v943_v52, 0.0  ;;  %v960_v2 = vmax.f32 %v944_v53, 0.0 }
 0x275   :  { %v961_v60 = vmax.f32 %v945_v39, 0.0  ;;  %v962_v4 = vmax.f32 %v946_v44, 0.0  ;;  %v963_v5 = vmax.f32 %v947_v54, 0.0  ;;  %v964_v59 = vmax.f32 %v948_v55, 0.0 }
 0x276   :  { %v965_v6 = vmax.f32 %v949_v46, 0.0  ;;  %v966_v7 = vmax.f32 %v950_v51, 0.0  ;;  %v967_v61 = vmax.f32 %v951_v56, 0.0  ;;  %v968_v9 = vmax.f32 %v952_v45, 0.0 }
 0x277   :  { %v969_v8 = vmax.f32 %v953_v58, 0.0  ;;  %v970_v12 = vmax.f32 %v954_v62, 0.0  ;;  %v971_v11 = vmax.f32 %v955_v48, 0.0  ;;  %v972_v14 = vmax.f32 %v956_v63, 0.0 }
 0x278   :  { %v1145_v15 = vpack.c.bf16 %v958_v57, %v957_v0  ;;  %v1146_v10 = vpack.c.bf16 %v960_v2, %v959_v1  ;;  %v1147_v16 = vpack.c.bf16 %v962_v4, %v961_v60  ;;  %v1148_v17 = vpack.c.bf16 %v964_v59, %v963_v5 }
 0x279   :  { %v1149_v13 = vpack.c.bf16 %v966_v7, %v965_v6  ;;  %v1150_v18 = vpack.c.bf16 %v968_v9, %v967_v61  ;;  %v1151_v19 = vpack.c.bf16 %v970_v12, %v969_v8  ;;  %v1152_v20 = vpack.c.bf16 %v972_v14, %v971_v11 }
 0x27a   :  { %1037 = vst [vmem:[%s1482_s3] sm:$0xff] %v1145_v15  ;;  %1038 = vst [vmem:[%s1482_s3 + $0x8] sm:$0xff] %v1146_v10 }
 0x27b   :  { %1039 = vst [vmem:[%s1482_s3 + $0x10] sm:$0xff] %v1147_v16  ;;  %1040 = vst [vmem:[%s1482_s3 + $0x18] sm:$0xff] %v1148_v17 }
 0x27c   :  { %1041 = vst [vmem:[%s1482_s3 + $0x20] sm:$0xff] %v1149_v13  ;;  %1042 = vst [vmem:[%s1482_s3 + $0x28] sm:$0xff] %v1150_v18 }
 0x27d   :  { %1043 = vst [vmem:[%s1482_s3 + $0x30] sm:$0xff] %v1151_v19  ;;  %1044 = vst [vmem:[%s1482_s3 + $0x38] sm:$0xff] %v1152_v20 }

// kernel: encoder_forward.5
= control target key start
LH: loop header
LB: loop body
LE: loop exit
PB: predicated region body
PF: predicated region fallthrough
CT: control target
= control target key end

     0   :  { %vm326_vm0 = vcmask 1043456   ;;  %vm322_vm1 = vcmask 588800   ;;  %s823_s0 = inlined_call_operand.vmem [shape: bf16[200,512], index: 0, kind: input, shape index: {}]   ;;  %s824_s1 = inlined_call_operand.vmem [shape: bf16[8,200], index: 1, kind: input, shape index: {}]   ;;  %s825_s2 = inlined_call_operand.vmem [shape: f32[8,2], index: 2, kind: input, shape index: {}]   ;;  %s826_s3 = inlined_call_operand.vmem [shape: bf16[8,512], index: 3, kind: output, shape index: {}]  }
   0x1   :  { %v559_v0 = vld [vmem:[%s823_s0 + $0xe4] ss:$16 sps:$4 sm:$0xff]   ;;  %v561_v1 = vld [vmem:[%s823_s0 + $0xec] ss:$16 sps:$4 sm:$0xff]   ;;  %v563_v2 = vld [vmem:[%s823_s0 + $0xe0] ss:$16 sps:$4 sm:$0xff]  }
   0x2   :  { %339 = vmatprep.subr.bf16.mxu0 %v559_v0  ;;  %v564_v3 = vld [vmem:[%s823_s0 + $0xe8] ss:$16 sps:$4 sm:$0xff]   ;;  %380 = vmatprep.subr.bf16.mxu1 %v561_v1  ;;  %v565_v4 = vld [vmem:[%s823_s0 + $0xc4] ss:$16 sps:$4 sm:$0xff]   ;;  %v567_v5 = vld [vmem:[%s823_s0 + $0xcc] ss:$16 sps:$4 sm:$0xff]  }
   0x3   :  { %340 = vmatpush1.bf16.msra.mxu0 %v563_v2  ;;  %381 = vmatpush1.bf16.msra.mxu1 %v564_v3  ;;  %v569_v6 = vld [vmem:[%s823_s0 + $0xc0] ss:$16 sps:$4 sm:$0xff]   ;;  %v570_v7 = vld [vmem:[%s823_s0 + $0xc8] ss:$16 sps:$4 sm:$0xff]   ;;  %v571_v8 = vld [vmem:[%s823_s0 + $0xa4] ss:$16 sps:$4 sm:$0xff]  }
   0x4   :  { %341 = vmatprep.subr.bf16.mxu0 %v565_v4  ;;  %382 = vmatprep.subr.bf16.mxu1 %v567_v5  ;;  %v573_v9 = vld [vmem:[%s823_s0 + $0xac] ss:$16 sps:$4 sm:$0xff]   ;;  %v575_v10 = vld [vmem:[%s823_s0 + $0xa0] ss:$16 sps:$4 sm:$0xff]   ;;  %v576_v11 = vld [vmem:[%s823_s0 + $0xa8] ss:$16 sps:$4 sm:$0xff]  }
   0x5   :  { %v577_v12 = vld [vmem:[%s823_s0 + $0x84] ss:$16 sps:$4 sm:$0xff]   ;;  %v579_v13 = vld [vmem:[%s823_s0 + $0x8c] ss:$16 sps:$4 sm:$0xff]   ;;  %v581_v14 = vld [vmem:[%s823_s0 + $0x80] ss:$16 sps:$4 sm:$0xff]  }
   0x6   :  { %v582_v15 = vld [vmem:[%s823_s0 + $0x88] ss:$16 sps:$4 sm:$0xff]   ;;  %v583_v16 = vld [vmem:[%s823_s0 + $0x64] ss:$16 sps:$4 sm:$0xff]   ;;  %v585_v17 = vld [vmem:[%s823_s0 + $0x6c] ss:$16 sps:$4 sm:$0xff]  }
   0x7   :  { %342 = vmatpush1.bf16.msra.mxu0 %v569_v6  ;;  %383 = vmatpush1.bf16.msra.mxu1 %v570_v7  ;;  %v587_v18 = vld [vmem:[%s823_s0 + $0x60] ss:$16 sps:$4 sm:$0xff]   ;;  %v588_v19 = vld [vmem:[%s823_s0 + $0x68] ss:$16 sps:$4 sm:$0xff]   ;;  %v589_v20 = vld [vmem:[%s823_s0 + $0x44] ss:$16 sps:$4 sm:$0xff]  }
   0x8   :  { %343 = vmatprep.subr.bf16.mxu0 %v571_v8  ;;  %384 = vmatprep.subr.bf16.mxu1 %v573_v9  ;;  %v591_v21 = vld [vmem:[%s823_s0 + $0x4c] ss:$16 sps:$4 sm:$0xff]   ;;  %v593_v22 = vld [vmem:[%s823_s0 + $0x40] ss:$16 sps:$4 sm:$0xff]   ;;  %v594_v23 = vld [vmem:[%s823_s0 + $0x48] ss:$16 sps:$4 sm:$0xff]  }
   0x9   :  { %v595_v24 = vld [vmem:[%s823_s0 + $0x24] ss:$16 sps:$4 sm:$0xff]   ;;  %v597_v25 = vld [vmem:[%s823_s0 + $0x2c] ss:$16 sps:$4 sm:$0xff]   ;;  %v599_v26 = vld [vmem:[%s823_s0 + $0x20] ss:$16 sps:$4 sm:$0xff]  }
   0xa   :  { %v600_v27 = vld [vmem:[%s823_s0 + $0x28] ss:$16 sps:$4 sm:$0xff]   ;;  %v601_v28 = vld [vmem:[%s823_s0 + $0x4] ss:$16 sps:$4 sm:$0xff]   ;;  %v603_v29 = vld [vmem:[%s823_s0 + $0xc] ss:$16 sps:$4 sm:$0xff]  }
   0xb   :  { %344 = vmatpush1.bf16.msra.mxu0 %v575_v10  ;;  %385 = vmatpush1.bf16.msra.mxu1 %v576_v11  ;;  %v64_v30 = vld [vmem:[%s823_s0 + $0x180] sm:$0xff]  ;;  %v65_v31 = vld [vmem:[%s823_s0 + $0x188] sm:$0xff]  ;;  %v639_v6 = vmov 0   ;;  %v640_v8 = vmov 1  }
   0xc   :  { %345 = vmatprep.subr.bf16.mxu0 %v577_v12  ;;  %386 = vmatprep.subr.bf16.mxu1 %v579_v13  ;;  %v605_v32 = vld [vmem:[%s823_s0] ss:$16 sps:$4 sm:$0xff]   ;;  %v606_v33 = vld [vmem:[%s823_s0 + $0x8] ss:$16 sps:$4 sm:$0xff]   ;;  %v543_v34 = vcombine.high %v64_v30, %v64_v30  ;;  %v545_v35 = vcombine.high %v65_v31, %v65_v31  ;;  %v542_v36 = vcombine.low %v64_v30, %v64_v30  ;;  %v611_v38 = vld [vmem:[%s823_s0 + $0x164] ss:$16 sps:$4 sm:$0xff]  }
   0xd   :  { %v544_v37 = vcombine.low %v65_v31, %v65_v31  ;;  %v613_v41 = vld [vmem:[%s823_s0 + $0x16c] ss:$16 sps:$4 sm:$0xff]   ;;  %v15_v42 = vld [vmem:[%s824_s1] sm:$0xff]  ;;  %v616_v45 = vld [vmem:[%s823_s0 + $0x168] ss:$16 sps:$4 sm:$0xff]   ;;  %556 = vset.pattern.permute.xlu1 %v639_v6  ;;  %558 = vset.pattern.permute.xlu0 %v640_v8 }
   0xe   :  { %v328_v39 = vsel %vm326_vm0, %v542_v36, 0  ;;  %v493_v43 = vcombine.high %v15_v42, %v15_v42  ;;  %v615_v44 = vld [vmem:[%s823_s0 + $0x160] ss:$16 sps:$4 sm:$0xff]   ;;  %v617_v46 = vld [vmem:[%s823_s0 + $0x144] ss:$16 sps:$4 sm:$0xff]   ;;  %v492_v58 = vcombine.low %v15_v42, %v15_v42 }
   0xf   :  { %346 = vmatpush1.bf16.msra.mxu0 %v581_v14  ;;  %387 = vmatpush1.bf16.msra.mxu1 %v582_v15  ;;  %v334_v40 = vsel %vm326_vm0, %v544_v37, 0  ;;  %v619_v47 = vld [vmem:[%s823_s0 + $0x14c] ss:$16 sps:$4 sm:$0xff]   ;;  %v621_v48 = vld [vmem:[%s823_s0 + $0x140] ss:$16 sps:$4 sm:$0xff]  }
  0x10   :  { %347 = vmatprep.subr.bf16.mxu0 %v583_v16  ;;  %388 = vmatprep.subr.bf16.mxu1 %v585_v17  ;;  %v622_v49 = vld [vmem:[%s823_s0 + $0x148] ss:$16 sps:$4 sm:$0xff]   ;;  %v623_v50 = vld [vmem:[%s823_s0 + $0x124] ss:$16 sps:$4 sm:$0xff]   ;;  %v625_v51 = vld [vmem:[%s823_s0 + $0x12c] ss:$16 sps:$4 sm:$0xff]  }
  0x11   :  { %547 = vmatprep.mubr.msk.bf16.mxu0 %vm322_vm1, %v493_v43  ;;  %549 = vmatprep.mubr.msk.bf16.mxu1 %vm322_vm1, %v493_v43  ;;  %v627_v52 = vld [vmem:[%s823_s0 + $0x120] ss:$16 sps:$4 sm:$0xff]   ;;  %v628_v53 = vld [vmem:[%s823_s0 + $0x128] ss:$16 sps:$4 sm:$0xff]   ;;  %v629_v54 = vld [vmem:[%s823_s0 + $0x104] ss:$16 sps:$4 sm:$0xff]  }
  0x12   :  { %v631_v55 = vld [vmem:[%s823_s0 + $0x10c] ss:$16 sps:$4 sm:$0xff]   ;;  %v633_v56 = vld [vmem:[%s823_s0 + $0x100] ss:$16 sps:$4 sm:$0xff]   ;;  %v634_v57 = vld [vmem:[%s823_s0 + $0x108] ss:$16 sps:$4 sm:$0xff]  }
  0x13   :  { %348 = vmatpush1.bf16.msra.mxu0 %v587_v18  ;;  %389 = vmatpush1.bf16.msra.mxu1 %v588_v19  ;;  %v448_v7 = vld [vmem:[%s825_s2] sm:$0xff] }
  0x14   :  { %349 = vmatprep.subr.bf16.mxu0 %v589_v20  ;;  %390 = vmatprep.subr.bf16.mxu1 %v591_v21 }
  0x15   :  { %451 = vperm.xlu1 %556, %v448_v7  }
  0x17   :  { %350 = vmatpush1.bf16.msra.mxu0 %v593_v22  ;;  %391 = vmatpush1.bf16.msra.mxu1 %v594_v23 }
  0x18   :  { %351 = vmatprep.subr.bf16.mxu0 %v595_v24  ;;  %392 = vmatprep.subr.bf16.mxu1 %v597_v25 }
  0x19   :  { %557 = vset.pattern.permute.xlu1 %v640_v8 }
  0x1a   :  { %459 = vperm.xlu1 %557, %v448_v7  }
  0x1b   :  { %352 = vmatpush1.bf16.msra.mxu0 %v599_v26  ;;  %393 = vmatpush1.bf16.msra.mxu1 %v600_v27 }
  0x1c   :  { %353 = vmatprep.subr.bf16.mxu0 %v601_v28  ;;  %394 = vmatprep.subr.bf16.mxu1 %v603_v29 }
  0x1f   :  { %354 = vmatpush1.bf16.msra.mxu0 %v605_v32  ;;  %395 = vmatpush1.bf16.msra.mxu1 %v606_v33 }
  0x20   :  { %546 = vmatprep.subr.msk.bf16.mxu0 %vm326_vm0, %v543_v34  ;;  %548 = vmatprep.subr.msk.bf16.mxu1 %vm326_vm0, %v545_v35 }
  0x23   :  { %362 = vmatpush2.bf16.msra.mxu0 %v328_v39  ;;  %403 = vmatpush2.bf16.msra.mxu1 %v334_v40 }
  0x24   :  { %363 = vmatprep.subr.bf16.mxu0 %v611_v38  ;;  %404 = vmatprep.subr.bf16.mxu1 %v613_v41 }
  0x27   :  { %364 = vmatpush2.bf16.msra.mxu0 %v615_v44  ;;  %405 = vmatpush2.bf16.msra.mxu1 %v616_v45 }
  0x28   :  { %365 = vmatprep.subr.bf16.mxu0 %v617_v46  ;;  %406 = vmatprep.subr.bf16.mxu1 %v619_v47 }
  0x2b   :  { %366 = vmatpush2.bf16.msra.mxu0 %v621_v48  ;;  %407 = vmatpush2.bf16.msra.mxu1 %v622_v49 }
  0x2c   :  { %367 = vmatprep.subr.bf16.mxu0 %v623_v50  ;;  %408 = vmatprep.subr.bf16.mxu1 %v625_v51 }
  0x2f   :  { %368 = vmatpush2.bf16.msra.mxu0 %v627_v52  ;;  %409 = vmatpush2.bf16.msra.mxu1 %v628_v53 }
  0x30   :  { %369 = vmatprep.subr.bf16.mxu0 %v629_v54  ;;  %410 = vmatprep.subr.bf16.mxu1 %v631_v55 }
  0x33   :  { %370 = vmatpush2.bf16.msra.mxu0 %v633_v56  ;;  %411 = vmatpush2.bf16.msra.mxu1 %v634_v57 }
  0x36   :  { %372 = vmatmul.mubr.bf16.vlgmr.msra.gmra.mxu0 %v492_v58  ;;  %413 = vmatmul.mubr.bf16.vlgmr.msra.gmra.mxu1 %v492_v58 }
  0x90   :  { %v452_v25 = vpop.permute.xlu1 %451 }
  0x95   :  { %v460_v31 = vpop.permute.xlu1 %459 }
  0xf6   :  { %v373_v59 = vpop.f32.mrf.mxu0  ;;  %v414_v60 = vpop.f32.mrf.mxu1 }
  0xf8   :  { %v375_v61 = vpop.f32.mrf.mxu0  ;;  %v416_v62 = vpop.f32.mrf.mxu1 }
  0xf9   :  { %v421_v63 = vadd.f32 %v375_v61, %v373_v59 }
  0xfa   :  { %v377_v0 = vpop.f32.mrf.mxu0  ;;  %v418_v1 = vpop.f32.mrf.mxu1 }
  0xfb   :  { %v422_v2 = vadd.f32 %v421_v63, %v414_v60 }
  0xfc   :  { %v378_v3 = vpop.f32.mrf.mxu0  ;;  %v419_v4 = vpop.f32.mrf.mxu1 }
  0xfd   :  { %v423_v5 = vadd.f32 %v422_v2, %v416_v62 }
  0xff   :  { %424 = vadd.xlane.f32.xlu0 %v423_v5 }
 0x188   :  { %v425_v9 = vpop.xlane.xlu0 %424 }
 0x189   :  { %v427_v10 = vmul.f32 0.001953125, %v425_v9 }
 0x18b   :  { %v428_v11 = vsub.f32 %v373_v59, %v427_v10  ;;  %v429_v12 = vsub.f32 %v375_v61, %v427_v10  ;;  %v430_v13 = vsub.f32 %v414_v60, %v427_v10  ;;  %v431_v14 = vsub.f32 %v416_v62, %v427_v10 }
 0x18d   :  { %v432_v15 = vmul.f32 %v428_v11, %v428_v11  ;;  %v433_v16 = vmul.f32 %v429_v12, %v429_v12  ;;  %v434_v17 = vmul.f32 %v430_v13, %v430_v13  ;;  %v435_v19 = vmul.f32 %v431_v14, %v431_v14 }
 0x18f   :  { %v436_v18 = vadd.f32 %v433_v16, %v432_v15 }
 0x191   :  { %v437_v20 = vadd.f32 %v436_v18, %v434_v17 }
 0x193   :  { %v438_v21 = vadd.f32 %v437_v20, %v435_v19 }
 0x195   :  { %439 = vadd.xlane.f32.xlu0 %v438_v21 }
 0x21e   :  { %v440_v22 = vpop.xlane.xlu0 %439 }
 0x21f   :  { %v441_v23 = vmul.f32 0.001953125, %v440_v22 }
 0x221   :  { %v442_v24 = vadd.f32 1e-05, %v441_v23 }
 0x223   :  { %637 = vrsqrt.f32 %v442_v24 }
 0x230   :  { %v638_v26 = vpop.eup %637 }
 0x231   :  { %v444_v27 = vmul.f32 %v638_v26, %v428_v11  ;;  %v445_v28 = vmul.f32 %v638_v26, %v429_v12  ;;  %v446_v29 = vmul.f32 %v638_v26, %v430_v13  ;;  %v447_v30 = vmul.f32 %v638_v26, %v431_v14 }
 0x233   :  { %v454_v32 = vmul.f32 %v452_v25, %v444_v27  ;;  %v455_v33 = vmul.f32 %v452_v25, %v445_v28  ;;  %v456_v34 = vmul.f32 %v452_v25, %v446_v29  ;;  %v457_v35 = vmul.f32 %v452_v25, %v447_v30 }
 0x235   :  { %v462_v36 = vadd.f32 %v460_v31, %v454_v32  ;;  %v463_v37 = vadd.f32 %v460_v31, %v455_v33  ;;  %v464_v38 = vadd.f32 %v460_v31, %v456_v34  ;;  %v465_v39 = vadd.f32 %v460_v31, %v457_v35 }
 0x237   :  { %v466_v40 = vmax.f32 %v462_v36, 0.0  ;;  %v467_v41 = vmax.f32 %v463_v37, 0.0  ;;  %v468_v42 = vmax.f32 %v464_v38, 0.0  ;;  %v469_v43 = vmax.f32 %v465_v39, 0.0 }
 0x239   :  { %v552_v44 = vpack.c.bf16 %v467_v41, %v466_v40  ;;  %v553_v45 = vpack.c.bf16 %v469_v43, %v468_v42 }
 0x23b   :  { %486 = vst [vmem:[%s826_s3] sm:$0xff] %v552_v44  ;;  %487 = vst [vmem:[%s826_s3 + $0x8] sm:$0xff] %v553_v45 }

// kernel: encoder_forward.6
= control target key start
LH: loop header
LB: loop body
LE: loop exit
PB: predicated region body
PF: predicated region fallthrough
CT: control target
= control target key end

     0   :  { %v289_v0 = vmov 0   ;;  %vm126_vm0 = vcmask 588800   ;;  %vm130_vm1 = vcmask 1043456   ;;  %v290_v19 = vmov 1   ;;  %s365_s0 = inlined_call_operand.vmem [shape: bf16[200,128], index: 0, kind: input, shape index: {}]   ;;  %s366_s1 = inlined_call_operand.vmem [shape: bf16[16,200], index: 1, kind: input, shape index: {}]   ;;  %s367_s2 = inlined_call_operand.vmem [shape: f32[16,2], index: 2, kind: input, shape index: {}]   ;;  %s368_s3 = inlined_call_operand.vmem [shape: bf16[16,128], index: 3, kind: output, shape index: {}]  }
   0x1   :  { %134 = vmatprep.subr.bf16.mxu0 %v289_v0  ;;  %v269_v1 = vld [vmem:[%s365_s0 + $0x38] sm:$0xff]   ;;  %266 = vset.pattern.permute.xlu1 %v289_v0  ;;  %v270_v2 = vld [vmem:[%s365_s0 + $0x30] sm:$0xff]   ;;  %v271_v3 = vld [vmem:[%s365_s0 + $0x28] sm:$0xff]  }
   0x2   :  { %265 = vset.pattern.permute.xlu0 %v289_v0  ;;  %135 = vmatpush1.bf16.msra.mxu0 %v269_v1  ;;  %v272_v4 = vld [vmem:[%s365_s0 + $0x20] sm:$0xff]   ;;  %v273_v6 = vld [vmem:[%s365_s0 + $0x18] sm:$0xff]   ;;  %v274_v7 = vld [vmem:[%s365_s0 + $0x10] sm:$0xff]  }
   0x3   :  { %136 = vmatprep.subr.bf16.mxu0 %v289_v0  ;;  %v284_v5 = vld [vmem:[%s366_s1 + $0x4] ss:$8 sps:$4 sm:$0xff]   ;;  %v277_v10 = vld [vmem:[%s365_s0 + $0x60] ss:$0 sps:$4 sm:$0xff]   ;;  %v278_v12 = vld [vmem:[%s365_s0 + $0x58] sm:$0xff]  }
   0x4   :  { %253 = vmatprep.mubr.msk.bf16.mxu0 %vm126_vm0, %v284_v5  ;;  %v275_v8 = vld [vmem:[%s365_s0 + $0x8] sm:$0xff]   ;;  %v276_v9 = vld [vmem:[%s365_s0] sm:$0xff]   ;;  %v132_v11 = vsel %vm130_vm1, %v277_v10, 0  ;;  %v279_v13 = vld [vmem:[%s365_s0 + $0x50] sm:$0xff]  }
   0x5   :  { %v280_v14 = vld [vmem:[%s365_s0 + $0x48] sm:$0xff]   ;;  %v281_v15 = vld [vmem:[%s365_s0 + $0x40] sm:$0xff]  }
   0x6   :  { %137 = vmatpush1.bf16.msra.mxu0 %v270_v2  ;;  %v282_v16 = vld [vmem:[%s366_s1] ss:$8 sps:$4 sm:$0xff]  }
   0x7   :  { %138 = vmatprep.subr.bf16.mxu0 %v289_v0  ;;  %v199_v17 = vld [vmem:[%s367_s2 + $0x8] sm:$0xff]  ;;  %v198_v18 = vld [vmem:[%s367_s2] sm:$0xff] }
   0x8   :  { %207 = vperm.xlu1 %266, %v199_v17  }
   0xa   :  { %139 = vmatpush1.bf16.msra.mxu0 %v271_v3 }
   0xb   :  { %140 = vmatprep.subr.bf16.mxu0 %v289_v0 }
   0xc   :  { %267 = vset.pattern.permute.xlu1 %v290_v19 }
   0xd   :  { %213 = vperm.xlu1 %267, %v198_v18  }
   0xe   :  { %141 = vmatpush1.bf16.msra.mxu0 %v272_v4 }
   0xf   :  { %142 = vmatprep.subr.bf16.mxu0 %v289_v0 }
  0x12   :  { %143 = vmatpush1.bf16.msra.mxu0 %v273_v6 }
  0x13   :  { %144 = vmatprep.subr.bf16.mxu0 %v289_v0 }
  0x16   :  { %145 = vmatpush1.bf16.msra.mxu0 %v274_v7 }
  0x17   :  { %146 = vmatprep.subr.bf16.mxu0 %v289_v0 }
  0x1a   :  { %147 = vmatpush1.bf16.msra.mxu0 %v275_v8 }
  0x1b   :  { %148 = vmatprep.subr.bf16.mxu0 %v289_v0 }
  0x1e   :  { %149 = vmatpush1.bf16.msra.mxu0 %v276_v9 }
  0x1f   :  { %156 = vmatprep.subr.bf16.mxu0 %v289_v0 }
  0x22   :  { %157 = vmatpush2.bf16.msra.mxu0 %v132_v11 }
  0x23   :  { %158 = vmatprep.subr.bf16.mxu0 %v289_v0 }
  0x26   :  { %159 = vmatpush2.bf16.msra.mxu0 %v278_v12 }
  0x27   :  { %160 = vmatprep.subr.bf16.mxu0 %v289_v0 }
  0x2a   :  { %161 = vmatpush2.bf16.msra.mxu0 %v279_v13 }
  0x2b   :  { %162 = vmatprep.subr.bf16.mxu0 %v289_v0 }
  0x2e   :  { %163 = vmatpush2.bf16.msra.mxu0 %v280_v14 }
  0x2f   :  { %164 = vmatprep.subr.bf16.mxu0 %v289_v0 }
  0x32   :  { %165 = vmatpush2.bf16.msra.mxu0 %v281_v15 }
  0x35   :  { %167 = vmatmul.mubr.bf16.vlgmr.msra.gmra.mxu0 %v282_v16 }
  0x83   :  { %v208_v32 = vpop.permute.xlu1 %207 }
  0x88   :  { %v214_v33 = vpop.permute.xlu1 %213 }
  0xf5   :  { %v168_v20 = vpop.f32.mrf.mxu0 }
  0xf6   :  { %175 = vadd.xlane.f32.xlu0 %v168_v20 }
  0xf7   :  { %v170_v21 = vpop.f32.mrf.mxu0 }
  0xf9   :  { %v171_v22 = vpop.f32.mrf.mxu0 }
  0xfa   :  { %177 = vadd.xlane.f32.xlu0 %v171_v22 }
  0xfb   :  { %v173_v23 = vpop.f32.mrf.mxu0 }
 0x110   :  { %202 = vperm.xlu0 %265, %v198_v18  }
 0x114   :  { %268 = vset.pattern.permute.xlu0 %v290_v19 }
 0x17f   :  { %v176_v24 = vpop.xlane.xlu0 %175 }
 0x180   :  { %v180_v25 = vmul.f32 0.0078125, %v176_v24 }
 0x182   :  { %v182_v26 = vsub.f32 %v168_v20, %v180_v25 }
 0x183   :  { %v178_v27 = vpop.xlane.xlu0 %177 }
 0x184   :  { %v181_v28 = vmul.f32 0.0078125, %v178_v27  ;;  %v184_v29 = vmul.f32 %v182_v26, %v182_v26 }
 0x186   :  { %v183_v30 = vsub.f32 %v171_v22, %v181_v28  ;;  %186 = vadd.xlane.f32.xlu1 %v184_v29 }
 0x188   :  { %v185_v31 = vmul.f32 %v183_v30, %v183_v30 }
 0x18a   :  { %188 = vadd.xlane.f32.xlu1 %v185_v31 }
 0x18b   :  { %v203_v41 = vpop.permute.xlu0 %202 }
 0x19b   :  { %217 = vperm.xlu1 %267, %v199_v17  }
 0x20f   :  { %v187_v34 = vpop.xlane.xlu1 %186 }
 0x210   :  { %v190_v35 = vmul.f32 0.0078125, %v187_v34 }
 0x212   :  { %v192_v36 = vadd.f32 1e-05, %v190_v35 }
 0x213   :  { %v189_v37 = vpop.xlane.xlu1 %188 }
 0x214   :  { %285 = vrsqrt.f32 %v192_v36  ;;  %v191_v38 = vmul.f32 0.0078125, %v189_v37 }
 0x216   :  { %v193_v39 = vadd.f32 1e-05, %v191_v38 }
 0x217   :  { %v218_v48 = vpop.permute.xlu1 %217 }
 0x218   :  { %287 = vrsqrt.f32 %v193_v39 }
 0x221   :  { %v286_v40 = vpop.eup %285 }
 0x222   :  { %v196_v42 = vmul.f32 %v286_v40, %v182_v26 }
 0x224   :  { %v210_v43 = vmul.f32 %v203_v41, %v196_v42 }
 0x225   :  { %v288_v44 = vpop.eup %287 }
 0x226   :  { %v197_v45 = vmul.f32 %v288_v44, %v183_v30  ;;  %v220_v47 = vadd.f32 %v214_v33, %v210_v43 }
 0x228   :  { %v211_v46 = vmul.f32 %v208_v32, %v197_v45  ;;  %v222_v51 = vmax.f32 %v220_v47, 0.0 }
 0x22a   :  { %v221_v49 = vadd.f32 %v218_v48, %v211_v46 }
 0x22c   :  { %v223_v50 = vmax.f32 %v221_v49, 0.0 }
 0x22e   :  { %v261_v52 = vpack.c.bf16 %v223_v50, %v222_v51 }
 0x230   :  { %262 = vst [vmem:[%s368_s3] sm:$0xff] %v261_v52  }

// kernel: encoder_forward.7
= control target key start
LH: loop header
LB: loop body
LE: loop exit
PB: predicated region body
PF: predicated region fallthrough
CT: control target
= control target key end

     0   :  { %s11485_s18 = smov 0   ;;  %s13159_s0 = inlined_call_operand.vmem [shape: bf16[2,1024], index: 0, kind: input, shape index: {}]   ;;  %s13160_s1 = inlined_call_operand.vmem [shape: bf16[2,1024,2048], index: 1, kind: input, shape index: {}]   ;;  %s13161_s2 = inlined_call_operand.vmem [shape: f32[2,2,2048], index: 2, kind: input, shape index: {}]   ;;  %s13162_s3 = inlined_call_operand.vmem [shape: bf16[2,2048,16], index: 3, kind: input, shape index: {}]   ;;  %s13163_s4 = inlined_call_operand.vmem [shape: f32[2,1,16], index: 4, kind: input, shape index: {}]   ;;  %s13164_s5 = inlined_call_operand.vmem [shape: f32[2,2,16], index: 5, kind: output, shape index: {}]  }
   0x1 LB: > { %s9930_s19 = sadd.s32 4294967295, %s11452_s18   ;;  %p9934_p0 = scmp.ge.s32.totalorder %s11452_s18, 1  ;;  %s11452_s18 = sphi %s11485_s18, %s15_s18  }
   0x2   : > { %p215_p1 = scmp.lt.s32.totalorder %s11452_s18, 3 }
   0x4   : > { %p216_p2 = pnand %p9934_p0, %p215_p1 }
   0x5   : > { %p255_p3 = scmp.lt.s32.totalorder (!%p216_p2), %s9930_s19, 1 }
   0x6   : > { %219 = sbr.rel (%p216_p2) target bundleno = 1502 (0x5de), region = 40 }
   0xb   : > { %v1308_v0 = vlaneseq  ;;  %v11454_v1 = vmov 1966171168   ;;  %s13166_s19 = smov (!%p255_p3, %s9930_s19), 1  ;;  %v278_v5 = vld [vmem:[%s13159_s0] sm:$0xff]  ;;  %vm7793_vm0 = vcmask 1041408   ;;  %vm9842_vm1 = vcmask 123904  }
   0xc   : > { %v1306_v2 = vunpack.c.l.s4 %v11454_v1  ;;  %s11097_s20 = sshll.u32 %s13166_s19, 13  ;;  %v1304_v37 = vcombine.high %v278_v5, %v278_v5  ;;  %s11099_s26 = sshll.u32 %s13166_s19, 10 }
   0xd   : > { %v11495_v3 = vshrl.u32 %v1308_v0, 7  ;;  %s11504_s25 = scalar_lea.vmem %s13160_s1, %s11097_s20  ;;  %s12581_s29 = scalar_lea.vmem %s13162_s3, %s11099_s26 }
   0xe   : > { %v1307_v4 = vunpack.c.0.s8 %v1306_v2  ;;  %v391_v7 = vld [vmem:[%s11504_s25 + $0x380] sm:$0xff]  ;;  %s11098_s30 = sshll.u32 %s13166_s19, 5  ;;  %s272_s11 = scalar_lea.vmem %s13163_s4, %s13166_s19 }
   0xf   : > { %v399_v8 = vld [vmem:[%s11504_s25 + $0x3c0] sm:$0xff]  ;;  %s12781_s8 = scalar_lea.vmem %s13161_s2, %s11098_s30  ;;  %s9941_s12 = sshll.u32 %s13166_s19, 1 }
  0x10   : > { %v11507_v6 = vsub.s32 %v1307_v4, %v11495_v3  ;;  %v647_v9 = vld [vmem:[%s11504_s25 + $0xb80] sm:$0xff]  ;;  %v10055_v10 = vcombine.high %v391_v7, %v399_v8  ;;  %v10054_v12 = vcombine.low %v391_v7, %v399_v8  ;;  %s276_s15 = scalar_lea.vmem %s13164_s5, %s9941_s12 }
  0x11   : > { %v655_v11 = vld [vmem:[%s11504_s25 + $0xbc0] sm:$0xff] }
  0x12   : > { %v375_v13 = vld [vmem:[%s11504_s25 + $0x300] sm:$0xff]  ;;  %v11516_v15 = vrot.slane %v278_v5, %v11507_v6  ;;  %v10311_v16 = vcombine.high %v647_v9, %v655_v11  ;;  %v10310_v17 = vcombine.low %v647_v9, %v655_v11  ;;  %6481 = vmatprep.subr.bf16.mxu0 %v10055_v10  ;;  %v11544_v49 = vrot.slane %v1304_v37, %v11507_v6 }
  0x13   : > { %v383_v14 = vld [vmem:[%s11504_s25 + $0x340] sm:$0xff]  ;;  %6482 = vmatpush1.bf16.msra.mxu0 %v10054_v12 }
  0x14   : > { %v10039_v18 = vcombine.high %v375_v13, %v383_v14  ;;  %v631_v19 = vld [vmem:[%s11504_s25 + $0xb00] sm:$0xff]  ;;  %v1319_v26 = vcombine.high %v11516_v15, %v11516_v15  ;;  %6522 = vmatprep.subr.bf16.mxu1 %v10311_v16  ;;  %v10038_v27 = vcombine.low %v375_v13, %v383_v14  ;;  %v11552_v55 = vrot.slane %v11544_v49, %v11507_v6 }
  0x15   : > { %v639_v20 = vld [vmem:[%s11504_s25 + $0xb40] sm:$0xff]  ;;  %6523 = vmatpush1.bf16.msra.mxu1 %v10310_v17 }
  0x16   : > { %v359_v21 = vld [vmem:[%s11504_s25 + $0x280] sm:$0xff]  ;;  %v10295_v22 = vcombine.high %v631_v19, %v639_v20  ;;  %6483 = vmatprep.subr.bf16.mxu0 %v10039_v18  ;;  %v10294_v28 = vcombine.low %v631_v19, %v639_v20  ;;  %v11531_v35 = vrot.slane %v1319_v26, %v11507_v6 }
  0x17   : > { %v367_v23 = vld [vmem:[%s11504_s25 + $0x2c0] sm:$0xff]  ;;  %6484 = vmatpush1.bf16.msra.mxu0 %v10038_v27 }
  0x18   : > { %v615_v24 = vld [vmem:[%s11504_s25 + $0xa80] sm:$0xff]  ;;  %v10023_v29 = vcombine.high %v359_v21, %v367_v23  ;;  %6524 = vmatprep.subr.bf16.mxu1 %v10295_v22  ;;  %v10022_v36 = vcombine.low %v359_v21, %v367_v23  ;;  %v11535_v40 = vcombine.high %v11531_v35, %v11531_v35  ;;  %6513 = vmatprep.mubr.bf16.mxu0 %v11531_v35 }
  0x19   : > { %v623_v25 = vld [vmem:[%s11504_s25 + $0xac0] sm:$0xff]  ;;  %6525 = vmatpush1.bf16.msra.mxu1 %v10294_v28 }
  0x1a   : > { %v10279_v30 = vcombine.high %v615_v24, %v623_v25  ;;  %v343_v31 = vld [vmem:[%s11504_s25 + $0x200] sm:$0xff]  ;;  %6485 = vmatprep.subr.bf16.mxu0 %v10023_v29  ;;  %v10278_v38 = vcombine.low %v615_v24, %v623_v25  ;;  %6554 = vmatprep.mubr.bf16.mxu1 %v11535_v40 }
  0x1b   : > { %v351_v32 = vld [vmem:[%s11504_s25 + $0x240] sm:$0xff]  ;;  %6486 = vmatpush1.bf16.msra.mxu0 %v10022_v36 }
  0x1c   : > { %v599_v33 = vld [vmem:[%s11504_s25 + $0xa00] sm:$0xff]  ;;  %v10007_v39 = vcombine.high %v343_v31, %v351_v32  ;;  %6526 = vmatprep.subr.bf16.mxu1 %v10279_v30  ;;  %v10006_v46 = vcombine.low %v343_v31, %v351_v32 }
  0x1d   : > { %v607_v34 = vld [vmem:[%s11504_s25 + $0xa40] sm:$0xff]  ;;  %6527 = vmatpush1.bf16.msra.mxu1 %v10278_v38 }
  0x1e   : > { %v10263_v41 = vcombine.high %v599_v33, %v607_v34  ;;  %v327_v42 = vld [vmem:[%s11504_s25 + $0x180] sm:$0xff]  ;;  %6487 = vmatprep.subr.bf16.mxu0 %v10007_v39  ;;  %v10262_v47 = vcombine.low %v599_v33, %v607_v34 }
  0x1f   : > { %v335_v43 = vld [vmem:[%s11504_s25 + $0x1c0] sm:$0xff]  ;;  %6488 = vmatpush1.bf16.msra.mxu0 %v10006_v46 }
  0x20   : > { %v583_v44 = vld [vmem:[%s11504_s25 + $0x980] sm:$0xff]  ;;  %v9991_v48 = vcombine.high %v327_v42, %v335_v43  ;;  %6528 = vmatprep.subr.bf16.mxu1 %v10263_v41  ;;  %v9990_v56 = vcombine.low %v327_v42, %v335_v43 }
  0x21   : > { %v591_v45 = vld [vmem:[%s11504_s25 + $0x9c0] sm:$0xff]  ;;  %6529 = vmatpush1.bf16.msra.mxu1 %v10262_v47 }
  0x22   : > { %v10247_v50 = vcombine.high %v583_v44, %v591_v45  ;;  %v311_v51 = vld [vmem:[%s11504_s25 + $0x100] sm:$0xff]  ;;  %6489 = vmatprep.subr.bf16.mxu0 %v9991_v48  ;;  %v10246_v57 = vcombine.low %v583_v44, %v591_v45 }
  0x23   : > { %v319_v52 = vld [vmem:[%s11504_s25 + $0x140] sm:$0xff]  ;;  %6490 = vmatpush1.bf16.msra.mxu0 %v9990_v56 }
  0x24   : > { %v567_v53 = vld [vmem:[%s11504_s25 + $0x900] sm:$0xff]  ;;  %v9975_v58 = vcombine.high %v311_v51, %v319_v52  ;;  %6530 = vmatprep.subr.bf16.mxu1 %v10247_v50  ;;  %v9974_v0 = vcombine.low %v311_v51, %v319_v52 }
  0x25   : > { %v575_v54 = vld [vmem:[%s11504_s25 + $0x940] sm:$0xff]  ;;  %6531 = vmatpush1.bf16.msra.mxu1 %v10246_v57 }
  0x26   : > { %v10231_v59 = vcombine.high %v567_v53, %v575_v54  ;;  %v295_v60 = vld [vmem:[%s11504_s25 + $0x80] sm:$0xff]  ;;  %6491 = vmatprep.subr.bf16.mxu0 %v9975_v58  ;;  %v10230_v1 = vcombine.low %v567_v53, %v575_v54 }
  0x27   : > { %v303_v61 = vld [vmem:[%s11504_s25 + $0xc0] sm:$0xff]  ;;  %6492 = vmatpush1.bf16.msra.mxu0 %v9974_v0 }
  0x28   : > { %v551_v62 = vld [vmem:[%s11504_s25 + $0x880] sm:$0xff]  ;;  %v9959_v2 = vcombine.high %v295_v60, %v303_v61  ;;  %6532 = vmatprep.subr.bf16.mxu1 %v10231_v59  ;;  %v9958_v10 = vcombine.low %v295_v60, %v303_v61 }
  0x29   : > { %v559_v63 = vld [vmem:[%s11504_s25 + $0x8c0] sm:$0xff]  ;;  %6533 = vmatpush1.bf16.msra.mxu1 %v10230_v1 }
  0x2a   : > { %v10215_v4 = vcombine.high %v551_v62, %v559_v63  ;;  %v279_v5 = vld [vmem:[%s11504_s25] sm:$0xff]  ;;  %6493 = vmatprep.subr.bf16.mxu0 %v9959_v2  ;;  %v10214_v11 = vcombine.low %v551_v62, %v559_v63 }
  0x2b   : > { %v287_v7 = vld [vmem:[%s11504_s25 + $0x40] sm:$0xff]  ;;  %6494 = vmatpush1.bf16.msra.mxu0 %v9958_v10 }
  0x2c   : > { %v535_v8 = vld [vmem:[%s11504_s25 + $0x800] sm:$0xff]  ;;  %v9943_v12 = vcombine.high %v279_v5, %v287_v7  ;;  %6534 = vmatprep.subr.bf16.mxu1 %v10215_v4  ;;  %v9942_v19 = vcombine.low %v279_v5, %v287_v7 }
  0x2d   : > { %v543_v9 = vld [vmem:[%s11504_s25 + $0x840] sm:$0xff]  ;;  %6535 = vmatpush1.bf16.msra.mxu1 %v10214_v11 }
  0x2e   : > { %v10199_v13 = vcombine.high %v535_v8, %v543_v9  ;;  %v519_v14 = vld [vmem:[%s11504_s25 + $0x780] sm:$0xff]  ;;  %6495 = vmatprep.subr.bf16.mxu0 %v9943_v12  ;;  %v10198_v20 = vcombine.low %v535_v8, %v543_v9 }
  0x2f   : > { %v527_v16 = vld [vmem:[%s11504_s25 + $0x7c0] sm:$0xff]  ;;  %6496 = vmatpush1.bf16.msra.mxu0 %v9942_v19 }
  0x30   : > { %v775_v17 = vld [vmem:[%s11504_s25 + $0xf80] sm:$0xff]  ;;  %v10183_v21 = vcombine.high %v519_v14, %v527_v16  ;;  %6536 = vmatprep.subr.bf16.mxu1 %v10199_v13  ;;  %v10182_v27 = vcombine.low %v519_v14, %v527_v16 }
  0x31   : > { %v783_v18 = vld [vmem:[%s11504_s25 + $0xfc0] sm:$0xff]  ;;  %6537 = vmatpush1.bf16.msra.mxu1 %v10198_v20 }
  0x32   : > { %v10439_v22 = vcombine.high %v775_v17, %v783_v18  ;;  %v503_v23 = vld [vmem:[%s11504_s25 + $0x700] sm:$0xff]  ;;  %6497 = vmatprep.subr.bf16.mxu0 %v10183_v21  ;;  %v10438_v28 = vcombine.low %v775_v17, %v783_v18 }
  0x33   : > { %v511_v24 = vld [vmem:[%s11504_s25 + $0x740] sm:$0xff]  ;;  %6498 = vmatpush2.bf16.msra.mxu0 %v10182_v27 }
  0x34   : > { %v759_v25 = vld [vmem:[%s11504_s25 + $0xf00] sm:$0xff]  ;;  %v10167_v29 = vcombine.high %v503_v23, %v511_v24  ;;  %6538 = vmatprep.subr.bf16.mxu1 %v10439_v22  ;;  %v10166_v36 = vcombine.low %v503_v23, %v511_v24 }
  0x35   : > { %v767_v26 = vld [vmem:[%s11504_s25 + $0xf40] sm:$0xff]  ;;  %6539 = vmatpush2.bf16.msra.mxu1 %v10438_v28  ;;  %v11602_v28 = vrot.slane %v11516_v15, %v11507_v6 }
  0x36   : > { %v10423_v30 = vcombine.high %v759_v25, %v767_v26  ;;  %v487_v31 = vld [vmem:[%s11504_s25 + $0x680] sm:$0xff]  ;;  %6499 = vmatprep.subr.bf16.mxu0 %v10167_v29  ;;  %v10422_v37 = vcombine.low %v759_v25, %v767_v26  ;;  %v1320_v26 = vcombine.high %v11544_v49, %v11544_v49 }
  0x37   : > { %v495_v32 = vld [vmem:[%s11504_s25 + $0x6c0] sm:$0xff]  ;;  %6500 = vmatpush2.bf16.msra.mxu0 %v10166_v36  ;;  %v11613_v15 = vcombine.high %v11602_v28, %v11602_v28 }
  0x38   : > { %v743_v33 = vld [vmem:[%s11504_s25 + $0xe80] sm:$0xff]  ;;  %v10151_v38 = vcombine.high %v487_v31, %v495_v32  ;;  %6540 = vmatprep.subr.bf16.mxu1 %v10423_v30  ;;  %v10150_v45 = vcombine.low %v487_v31, %v495_v32  ;;  %v11609_v36 = vrot.slane %v1320_v26, %v11507_v6 }
  0x39   : > { %v751_v34 = vld [vmem:[%s11504_s25 + $0xec0] sm:$0xff]  ;;  %6541 = vmatpush2.bf16.msra.mxu1 %v10422_v37 }
  0x3a   : > { %v10407_v39 = vcombine.high %v743_v33, %v751_v34  ;;  %v471_v41 = vld [vmem:[%s11504_s25 + $0x600] sm:$0xff]  ;;  %6501 = vmatprep.subr.bf16.mxu0 %v10151_v38  ;;  %v10406_v46 = vcombine.low %v743_v33, %v751_v34 }
  0x3b   : > { %v479_v42 = vld [vmem:[%s11504_s25 + $0x640] sm:$0xff]  ;;  %6502 = vmatpush2.bf16.msra.mxu0 %v10150_v45  ;;  %v11622_v45 = vcombine.high %v11609_v36, %v11609_v36 }
  0x3c   : > { %v727_v43 = vld [vmem:[%s11504_s25 + $0xe00] sm:$0xff]  ;;  %v10135_v47 = vcombine.high %v471_v41, %v479_v42  ;;  %6542 = vmatprep.subr.bf16.mxu1 %v10407_v39  ;;  %v10134_v54 = vcombine.low %v471_v41, %v479_v42 }
  0x3d   : > { %v735_v44 = vld [vmem:[%s11504_s25 + $0xe40] sm:$0xff]  ;;  %6543 = vmatpush2.bf16.msra.mxu1 %v10406_v46 }
  0x3e   : > { %v10391_v48 = vcombine.high %v727_v43, %v735_v44  ;;  %v455_v50 = vld [vmem:[%s11504_s25 + $0x580] sm:$0xff]  ;;  %6503 = vmatprep.subr.bf16.mxu0 %v10135_v47  ;;  %v10390_v56 = vcombine.low %v727_v43, %v735_v44 }
  0x3f   : > { %v463_v51 = vld [vmem:[%s11504_s25 + $0x5c0] sm:$0xff]  ;;  %6504 = vmatpush2.bf16.msra.mxu0 %v10134_v54 }
  0x40   : > { %v711_v52 = vld [vmem:[%s11504_s25 + $0xd80] sm:$0xff]  ;;  %v10119_v57 = vcombine.high %v455_v50, %v463_v51  ;;  %6544 = vmatprep.subr.bf16.mxu1 %v10391_v48  ;;  %v10118_v63 = vcombine.low %v455_v50, %v463_v51 }
  0x41   : > { %v719_v53 = vld [vmem:[%s11504_s25 + $0xdc0] sm:$0xff]  ;;  %6545 = vmatpush2.bf16.msra.mxu1 %v10390_v56 }
  0x42   : > { %v10375_v58 = vcombine.high %v711_v52, %v719_v53  ;;  %v439_v59 = vld [vmem:[%s11504_s25 + $0x500] sm:$0xff]  ;;  %6505 = vmatprep.subr.bf16.mxu0 %v10119_v57  ;;  %v10374_v0 = vcombine.low %v711_v52, %v719_v53 }
  0x43   : > { %v447_v60 = vld [vmem:[%s11504_s25 + $0x540] sm:$0xff]  ;;  %6506 = vmatpush2.bf16.msra.mxu0 %v10118_v63 }
  0x44   : > { %v695_v61 = vld [vmem:[%s11504_s25 + $0xd00] sm:$0xff]  ;;  %v10103_v1 = vcombine.high %v439_v59, %v447_v60  ;;  %6546 = vmatprep.subr.bf16.mxu1 %v10375_v58  ;;  %v10102_v9 = vcombine.low %v439_v59, %v447_v60 }
  0x45   : > { %v703_v62 = vld [vmem:[%s11504_s25 + $0xd40] sm:$0xff]  ;;  %6547 = vmatpush2.bf16.msra.mxu1 %v10374_v0 }
  0x46   : > { %v10359_v2 = vcombine.high %v695_v61, %v703_v62  ;;  %v423_v4 = vld [vmem:[%s11504_s25 + $0x480] sm:$0xff]  ;;  %6507 = vmatprep.subr.bf16.mxu0 %v10103_v1  ;;  %v10358_v10 = vcombine.low %v695_v61, %v703_v62 }
  0x47   : > { %v431_v5 = vld [vmem:[%s11504_s25 + $0x4c0] sm:$0xff]  ;;  %6508 = vmatpush2.bf16.msra.mxu0 %v10102_v9 }
  0x48   : > { %v679_v7 = vld [vmem:[%s11504_s25 + $0xc80] sm:$0xff]  ;;  %v10087_v11 = vcombine.high %v423_v4, %v431_v5  ;;  %6548 = vmatprep.subr.bf16.mxu1 %v10359_v2  ;;  %v10086_v18 = vcombine.low %v423_v4, %v431_v5 }
  0x49   : > { %v687_v8 = vld [vmem:[%s11504_s25 + $0xcc0] sm:$0xff]  ;;  %6549 = vmatpush2.bf16.msra.mxu1 %v10358_v10 }
  0x4a   : > { %v10343_v12 = vcombine.high %v679_v7, %v687_v8  ;;  %v407_v13 = vld [vmem:[%s11504_s25 + $0x400] sm:$0xff]  ;;  %6509 = vmatprep.subr.bf16.mxu0 %v10087_v11  ;;  %v10342_v19 = vcombine.low %v679_v7, %v687_v8 }
  0x4b   : > { %v415_v14 = vld [vmem:[%s11504_s25 + $0x440] sm:$0xff]  ;;  %6510 = vmatpush2.bf16.msra.mxu0 %v10086_v18 }
  0x4c   : > { %v663_v16 = vld [vmem:[%s11504_s25 + $0xc00] sm:$0xff]  ;;  %v10071_v20 = vcombine.high %v407_v13, %v415_v14  ;;  %6550 = vmatprep.subr.bf16.mxu1 %v10343_v12  ;;  %v10070_v27 = vcombine.low %v407_v13, %v415_v14 }
  0x4d   : > { %v671_v17 = vld [vmem:[%s11504_s25 + $0xc40] sm:$0xff]  ;;  %6551 = vmatpush2.bf16.msra.mxu1 %v10342_v19 }
  0x4e   : > { %v10327_v21 = vcombine.high %v663_v16, %v671_v17  ;;  %v903_v22 = vld [vmem:[%s11504_s25 + $0x1380] sm:$0xff]  ;;  %6511 = vmatprep.subr.bf16.mxu0 %v10071_v20  ;;  %v10326_v29 = vcombine.low %v663_v16, %v671_v17 }
  0x4f   : > { %v911_v23 = vld [vmem:[%s11504_s25 + $0x13c0] sm:$0xff]  ;;  %6512 = vmatpush2.bf16.msra.mxu0 %v10070_v27 }
  0x50   : > { %v1159_v24 = vld [vmem:[%s11504_s25 + $0x1b80] sm:$0xff]  ;;  %v10567_v30 = vcombine.high %v903_v22, %v911_v23  ;;  %6552 = vmatprep.subr.bf16.mxu1 %v10327_v21  ;;  %v10566_v37 = vcombine.low %v903_v22, %v911_v23 }
  0x51   : > { %v1167_v25 = vld [vmem:[%s11504_s25 + $0x1bc0] sm:$0xff]  ;;  %6553 = vmatpush2.bf16.msra.mxu1 %v10326_v29 }
  0x52   : > { %v10823_v31 = vcombine.high %v1159_v24, %v1167_v25  ;;  %v887_v32 = vld [vmem:[%s11504_s25 + $0x1300] sm:$0xff]  ;;  %6563 = vmatprep.subr.bf16.mxu0 %v10567_v30  ;;  %v10822_v38 = vcombine.low %v1159_v24, %v1167_v25  ;;  %6514 = vmatmul.mubr.bf16.vlgmr.msra.gmra.mxu0 %v11602_v28 }
  0x53   : > { %v895_v33 = vld [vmem:[%s11504_s25 + $0x1340] sm:$0xff]  ;;  %6564 = vmatpush1.bf16.msra.mxu0 %v10566_v37  ;;  %6595 = vmatprep.mubr.bf16.mxu0 %v11609_v36 }
  0x54   : > { %v1143_v34 = vld [vmem:[%s11504_s25 + $0x1b00] sm:$0xff]  ;;  %v10551_v39 = vcombine.high %v887_v32, %v895_v33  ;;  %6604 = vmatprep.subr.bf16.mxu1 %v10823_v31  ;;  %6555 = vmatmul.mubr.bf16.vlgmr.msra.gmra.mxu1 %v11613_v15  ;;  %v10550_v46 = vcombine.low %v887_v32, %v895_v33 }
  0x55   : > { %v1151_v49 = vld [vmem:[%s11504_s25 + $0x1b40] sm:$0xff]  ;;  %6605 = vmatpush1.bf16.msra.mxu1 %v10822_v38  ;;  %6636 = vmatprep.mubr.bf16.mxu1 %v11622_v45 }
  0x56   : > { %v10807_v41 = vcombine.high %v1143_v34, %v1151_v49  ;;  %v871_v42 = vld [vmem:[%s11504_s25 + $0x1280] sm:$0xff]  ;;  %6565 = vmatprep.subr.bf16.mxu0 %v10551_v39  ;;  %v10806_v47 = vcombine.low %v1143_v34, %v1151_v49 }
  0x57   : > { %v879_v43 = vld [vmem:[%s11504_s25 + $0x12c0] sm:$0xff]  ;;  %6566 = vmatpush1.bf16.msra.mxu0 %v10550_v46 }
  0x58   : > { %v1127_v6 = vld [vmem:[%s11504_s25 + $0x1a80] sm:$0xff]  ;;  %v10535_v48 = vcombine.high %v871_v42, %v879_v43  ;;  %6606 = vmatprep.subr.bf16.mxu1 %v10807_v41  ;;  %v10534_v56 = vcombine.low %v871_v42, %v879_v43 }
  0x59   : > { %v1135_v44 = vld [vmem:[%s11504_s25 + $0x1ac0] sm:$0xff]  ;;  %6607 = vmatpush1.bf16.msra.mxu1 %v10806_v47 }
  0x5a   : > { %v10791_v50 = vcombine.high %v1127_v6, %v1135_v44  ;;  %v855_v51 = vld [vmem:[%s11504_s25 + $0x1200] sm:$0xff]  ;;  %6567 = vmatprep.subr.bf16.mxu0 %v10535_v48  ;;  %v10790_v57 = vcombine.low %v1127_v6, %v1135_v44 }
  0x5b   : > { %v863_v52 = vld [vmem:[%s11504_s25 + $0x1240] sm:$0xff]  ;;  %6568 = vmatpush1.bf16.msra.mxu0 %v10534_v56 }
  0x5c   : > { %v1111_v53 = vld [vmem:[%s11504_s25 + $0x1a00] sm:$0xff]  ;;  %v10519_v58 = vcombine.high %v855_v51, %v863_v52  ;;  %6608 = vmatprep.subr.bf16.mxu1 %v10791_v50  ;;  %v10518_v0 = vcombine.low %v855_v51, %v863_v52 }
  0x5d   : > { %v1119_v54 = vld [vmem:[%s11504_s25 + $0x1a40] sm:$0xff]  ;;  %6609 = vmatpush1.bf16.msra.mxu1 %v10790_v57 }
  0x5e   : > { %v10775_v59 = vcombine.high %v1111_v53, %v1119_v54  ;;  %v839_v60 = vld [vmem:[%s11504_s25 + $0x1180] sm:$0xff]  ;;  %6569 = vmatprep.subr.bf16.mxu0 %v10519_v58  ;;  %v10774_v1 = vcombine.low %v1111_v53, %v1119_v54 }
  0x5f   : > { %v847_v61 = vld [vmem:[%s11504_s25 + $0x11c0] sm:$0xff]  ;;  %6570 = vmatpush1.bf16.msra.mxu0 %v10518_v0 }
  0x60   : > { %v1095_v62 = vld [vmem:[%s11504_s25 + $0x1980] sm:$0xff]  ;;  %v10503_v2 = vcombine.high %v839_v60, %v847_v61  ;;  %6610 = vmatprep.subr.bf16.mxu1 %v10775_v59  ;;  %v10502_v10 = vcombine.low %v839_v60, %v847_v61 }
  0x61   : > { %v1103_v63 = vld [vmem:[%s11504_s25 + $0x19c0] sm:$0xff]  ;;  %6611 = vmatpush1.bf16.msra.mxu1 %v10774_v1 }
  0x62   : > { %v10759_v4 = vcombine.high %v1095_v62, %v1103_v63  ;;  %v823_v5 = vld [vmem:[%s11504_s25 + $0x1100] sm:$0xff]  ;;  %6571 = vmatprep.subr.bf16.mxu0 %v10503_v2  ;;  %v10758_v11 = vcombine.low %v1095_v62, %v1103_v63 }
  0x63   : > { %v831_v7 = vld [vmem:[%s11504_s25 + $0x1140] sm:$0xff]  ;;  %6572 = vmatpush1.bf16.msra.mxu0 %v10502_v10 }
  0x64   : > { %v1079_v8 = vld [vmem:[%s11504_s25 + $0x1900] sm:$0xff]  ;;  %v10487_v12 = vcombine.high %v823_v5, %v831_v7  ;;  %6612 = vmatprep.subr.bf16.mxu1 %v10759_v4  ;;  %v10486_v19 = vcombine.low %v823_v5, %v831_v7 }
  0x65   : > { %v1087_v9 = vld [vmem:[%s11504_s25 + $0x1940] sm:$0xff]  ;;  %6613 = vmatpush1.bf16.msra.mxu1 %v10758_v11 }
  0x66   : > { %v10743_v13 = vcombine.high %v1079_v8, %v1087_v9  ;;  %v807_v14 = vld [vmem:[%s11504_s25 + $0x1080] sm:$0xff]  ;;  %6573 = vmatprep.subr.bf16.mxu0 %v10487_v12  ;;  %v10742_v20 = vcombine.low %v1079_v8, %v1087_v9 }
  0x67   : > { %v815_v16 = vld [vmem:[%s11504_s25 + $0x10c0] sm:$0xff]  ;;  %6574 = vmatpush1.bf16.msra.mxu0 %v10486_v19 }
  0x68   : > { %v1063_v17 = vld [vmem:[%s11504_s25 + $0x1880] sm:$0xff]  ;;  %v10471_v21 = vcombine.high %v807_v14, %v815_v16  ;;  %6614 = vmatprep.subr.bf16.mxu1 %v10743_v13  ;;  %v10470_v27 = vcombine.low %v807_v14, %v815_v16 }
  0x69   : > { %v1071_v18 = vld [vmem:[%s11504_s25 + $0x18c0] sm:$0xff]  ;;  %6615 = vmatpush1.bf16.msra.mxu1 %v10742_v20 }
  0x6a   : > { %v10727_v22 = vcombine.high %v1063_v17, %v1071_v18  ;;  %v791_v23 = vld [vmem:[%s11504_s25 + $0x1000] sm:$0xff]  ;;  %6575 = vmatprep.subr.bf16.mxu0 %v10471_v21  ;;  %v10726_v29 = vcombine.low %v1063_v17, %v1071_v18 }
  0x6b   : > { %v799_v24 = vld [vmem:[%s11504_s25 + $0x1040] sm:$0xff]  ;;  %6576 = vmatpush1.bf16.msra.mxu0 %v10470_v27 }
  0x6c   : > { %v1047_v25 = vld [vmem:[%s11504_s25 + $0x1800] sm:$0xff]  ;;  %v10455_v30 = vcombine.high %v791_v23, %v799_v24  ;;  %6616 = vmatprep.subr.bf16.mxu1 %v10727_v22  ;;  %v10454_v37 = vcombine.low %v791_v23, %v799_v24 }
  0x6d   : > { %v1055_v26 = vld [vmem:[%s11504_s25 + $0x1840] sm:$0xff]  ;;  %6617 = vmatpush1.bf16.msra.mxu1 %v10726_v29 }
  0x6e   : > { %v10711_v31 = vcombine.high %v1047_v25, %v1055_v26  ;;  %v1031_v32 = vld [vmem:[%s11504_s25 + $0x1780] sm:$0xff]  ;;  %6577 = vmatprep.subr.bf16.mxu0 %v10455_v30  ;;  %v10710_v38 = vcombine.low %v1047_v25, %v1055_v26 }
  0x6f   : > { %v1039_v33 = vld [vmem:[%s11504_s25 + $0x17c0] sm:$0xff]  ;;  %6578 = vmatpush1.bf16.msra.mxu0 %v10454_v37 }
  0x70   : > { %v1287_v34 = vld [vmem:[%s11504_s25 + $0x1f80] sm:$0xff]  ;;  %v10695_v39 = vcombine.high %v1031_v32, %v1039_v33  ;;  %6618 = vmatprep.subr.bf16.mxu1 %v10711_v31  ;;  %v10694_v46 = vcombine.low %v1031_v32, %v1039_v33 }
  0x71   : > { %v1295_v49 = vld [vmem:[%s11504_s25 + $0x1fc0] sm:$0xff]  ;;  %6619 = vmatpush1.bf16.msra.mxu1 %v10710_v38 }
  0x72   : > { %v10951_v41 = vcombine.high %v1287_v34, %v1295_v49  ;;  %v1015_v42 = vld [vmem:[%s11504_s25 + $0x1700] sm:$0xff]  ;;  %6579 = vmatprep.subr.bf16.mxu0 %v10695_v39  ;;  %v10950_v47 = vcombine.low %v1287_v34, %v1295_v49 }
  0x73   : > { %v1023_v43 = vld [vmem:[%s11504_s25 + $0x1740] sm:$0xff]  ;;  %6580 = vmatpush2.bf16.msra.mxu0 %v10694_v46 }
  0x74   : > { %v1271_v6 = vld [vmem:[%s11504_s25 + $0x1f00] sm:$0xff]  ;;  %v10679_v48 = vcombine.high %v1015_v42, %v1023_v43  ;;  %6620 = vmatprep.subr.bf16.mxu1 %v10951_v41  ;;  %v10678_v56 = vcombine.low %v1015_v42, %v1023_v43  ;;  %v392_v42 = vld [vmem:[%s11504_s25 + $0x388] sm:$0xff] }
  0x75   : > { %v1279_v44 = vld [vmem:[%s11504_s25 + $0x1f40] sm:$0xff]  ;;  %6621 = vmatpush2.bf16.msra.mxu1 %v10950_v47  ;;  %v400_v43 = vld [vmem:[%s11504_s25 + $0x3c8] sm:$0xff] }
  0x76   : > { %v10935_v50 = vcombine.high %v1271_v6, %v1279_v44  ;;  %v999_v51 = vld [vmem:[%s11504_s25 + $0x1680] sm:$0xff]  ;;  %6581 = vmatprep.subr.bf16.mxu0 %v10679_v48  ;;  %v10934_v57 = vcombine.low %v1271_v6, %v1279_v44  ;;  %v648_v6 = vld [vmem:[%s11504_s25 + $0xb88] sm:$0xff]  ;;  %v10057_v48 = vcombine.high %v392_v42, %v400_v43 }
  0x77   : > { %v1007_v52 = vld [vmem:[%s11504_s25 + $0x16c0] sm:$0xff]  ;;  %6582 = vmatpush2.bf16.msra.mxu0 %v10678_v56  ;;  %v656_v44 = vld [vmem:[%s11504_s25 + $0xbc8] sm:$0xff]  ;;  %v11689_v56 = vcombine.high %v11552_v55, %v11552_v55 }
  0x78   : > { %v1255_v53 = vld [vmem:[%s11504_s25 + $0x1e80] sm:$0xff]  ;;  %v10663_v58 = vcombine.high %v999_v51, %v1007_v52  ;;  %6622 = vmatprep.subr.bf16.mxu1 %v10935_v50  ;;  %v10662_v0 = vcombine.low %v999_v51, %v1007_v52  ;;  %v10313_v50 = vcombine.high %v648_v6, %v656_v44  ;;  %v376_v51 = vld [vmem:[%s11504_s25 + $0x308] sm:$0xff] }
  0x79   : > { %v1263_v54 = vld [vmem:[%s11504_s25 + $0x1ec0] sm:$0xff]  ;;  %6623 = vmatpush2.bf16.msra.mxu1 %v10934_v57  ;;  %v384_v52 = vld [vmem:[%s11504_s25 + $0x348] sm:$0xff]  ;;  %v10056_v57 = vcombine.low %v392_v42, %v400_v43 }
  0x7a   : > { %v10919_v59 = vcombine.high %v1255_v53, %v1263_v54  ;;  %v983_v60 = vld [vmem:[%s11504_s25 + $0x1600] sm:$0xff]  ;;  %6583 = vmatprep.subr.bf16.mxu0 %v10663_v58  ;;  %v10918_v1 = vcombine.low %v1255_v53, %v1263_v54  ;;  %v632_v53 = vld [vmem:[%s11504_s25 + $0xb08] sm:$0xff]  ;;  %v10312_v58 = vcombine.low %v648_v6, %v656_v44 }
  0x7b   : > { %v991_v61 = vld [vmem:[%s11504_s25 + $0x1640] sm:$0xff]  ;;  %6584 = vmatpush2.bf16.msra.mxu0 %v10662_v0  ;;  %v640_v54 = vld [vmem:[%s11504_s25 + $0xb48] sm:$0xff] }
  0x7c   : > { %v1239_v62 = vld [vmem:[%s11504_s25 + $0x1e00] sm:$0xff]  ;;  %v10647_v2 = vcombine.high %v983_v60, %v991_v61  ;;  %6624 = vmatprep.subr.bf16.mxu1 %v10919_v59  ;;  %v10646_v10 = vcombine.low %v983_v60, %v991_v61  ;;  %v10041_v59 = vcombine.high %v376_v51, %v384_v52  ;;  %v10297_v60 = vcombine.high %v632_v53, %v640_v54  ;;  %v360_v61 = vld [vmem:[%s11504_s25 + $0x288] sm:$0xff] }
  0x7d   : > { %v1247_v63 = vld [vmem:[%s11504_s25 + $0x1e40] sm:$0xff]  ;;  %6625 = vmatpush2.bf16.msra.mxu1 %v10918_v1  ;;  %v624_v0 = vld [vmem:[%s11504_s25 + $0xac8] sm:$0xff]  ;;  %v10040_v1 = vcombine.low %v376_v51, %v384_v52 }
  0x7e   : > { %v10903_v4 = vcombine.high %v1239_v62, %v1247_v63  ;;  %v967_v5 = vld [vmem:[%s11504_s25 + $0x1580] sm:$0xff]  ;;  %6585 = vmatprep.subr.bf16.mxu0 %v10647_v2  ;;  %v10902_v11 = vcombine.low %v1239_v62, %v1247_v63  ;;  %v368_v62 = vld [vmem:[%s11504_s25 + $0x2c8] sm:$0xff]  ;;  %v10296_v2 = vcombine.low %v632_v53, %v640_v54 }
  0x7f   : > { %v975_v7 = vld [vmem:[%s11504_s25 + $0x15c0] sm:$0xff]  ;;  %6586 = vmatpush2.bf16.msra.mxu0 %v10646_v10  ;;  %v616_v63 = vld [vmem:[%s11504_s25 + $0xa88] sm:$0xff] }
  0x80   : > { %v1223_v8 = vld [vmem:[%s11504_s25 + $0x1d80] sm:$0xff]  ;;  %v10631_v12 = vcombine.high %v967_v5, %v975_v7  ;;  %6626 = vmatprep.subr.bf16.mxu1 %v10903_v4  ;;  %v10630_v19 = vcombine.low %v967_v5, %v975_v7  ;;  %v10025_v4 = vcombine.high %v360_v61, %v368_v62  ;;  %v10281_v5 = vcombine.high %v616_v63, %v624_v0  ;;  %v344_v7 = vld [vmem:[%s11504_s25 + $0x208] sm:$0xff] }
  0x81   : > { %v1231_v9 = vld [vmem:[%s11504_s25 + $0x1dc0] sm:$0xff]  ;;  %6627 = vmatpush2.bf16.msra.mxu1 %v10902_v11  ;;  %v608_v10 = vld [vmem:[%s11504_s25 + $0xa48] sm:$0xff]  ;;  %v10024_v11 = vcombine.low %v360_v61, %v368_v62 }
  0x82   : > { %v10887_v13 = vcombine.high %v1223_v8, %v1231_v9  ;;  %v951_v14 = vld [vmem:[%s11504_s25 + $0x1500] sm:$0xff]  ;;  %6587 = vmatprep.subr.bf16.mxu0 %v10631_v12  ;;  %v10886_v20 = vcombine.low %v1223_v8, %v1231_v9  ;;  %v352_v8 = vld [vmem:[%s11504_s25 + $0x248] sm:$0xff]  ;;  %v10280_v12 = vcombine.low %v616_v63, %v624_v0 }
  0x83   : > { %v959_v16 = vld [vmem:[%s11504_s25 + $0x1540] sm:$0xff]  ;;  %6588 = vmatpush2.bf16.msra.mxu0 %v10630_v19  ;;  %v600_v9 = vld [vmem:[%s11504_s25 + $0xa08] sm:$0xff] }
  0x84   : > { %v1207_v17 = vld [vmem:[%s11504_s25 + $0x1d00] sm:$0xff]  ;;  %v10615_v21 = vcombine.high %v951_v14, %v959_v16  ;;  %6628 = vmatprep.subr.bf16.mxu1 %v10887_v13  ;;  %v10614_v27 = vcombine.low %v951_v14, %v959_v16  ;;  %v10009_v13 = vcombine.high %v344_v7, %v352_v8  ;;  %v10265_v14 = vcombine.high %v600_v9, %v608_v10  ;;  %v328_v16 = vld [vmem:[%s11504_s25 + $0x188] sm:$0xff] }
  0x85   : > { %v1215_v18 = vld [vmem:[%s11504_s25 + $0x1d40] sm:$0xff]  ;;  %6629 = vmatpush2.bf16.msra.mxu1 %v10886_v20  ;;  %v592_v19 = vld [vmem:[%s11504_s25 + $0x9c8] sm:$0xff]  ;;  %v10008_v20 = vcombine.low %v344_v7, %v352_v8 }
  0x86   : > { %v10871_v22 = vcombine.high %v1207_v17, %v1215_v18  ;;  %v935_v23 = vld [vmem:[%s11504_s25 + $0x1480] sm:$0xff]  ;;  %6589 = vmatprep.subr.bf16.mxu0 %v10615_v21  ;;  %v10870_v29 = vcombine.low %v1207_v17, %v1215_v18  ;;  %v336_v17 = vld [vmem:[%s11504_s25 + $0x1c8] sm:$0xff]  ;;  %v10264_v21 = vcombine.low %v600_v9, %v608_v10 }
  0x87   : > { %v943_v24 = vld [vmem:[%s11504_s25 + $0x14c0] sm:$0xff]  ;;  %6590 = vmatpush2.bf16.msra.mxu0 %v10614_v27  ;;  %v584_v18 = vld [vmem:[%s11504_s25 + $0x988] sm:$0xff] }
  0x88   : > { %v1191_v25 = vld [vmem:[%s11504_s25 + $0x1c80] sm:$0xff]  ;;  %v10599_v30 = vcombine.high %v935_v23, %v943_v24  ;;  %6630 = vmatprep.subr.bf16.mxu1 %v10871_v22  ;;  %v10598_v37 = vcombine.low %v935_v23, %v943_v24  ;;  %v9993_v22 = vcombine.high %v328_v16, %v336_v17  ;;  %v10249_v23 = vcombine.high %v584_v18, %v592_v19  ;;  %v312_v24 = vld [vmem:[%s11504_s25 + $0x108] sm:$0xff] }
  0x89   : > { %v1199_v26 = vld [vmem:[%s11504_s25 + $0x1cc0] sm:$0xff]  ;;  %6631 = vmatpush2.bf16.msra.mxu1 %v10870_v29  ;;  %v576_v27 = vld [vmem:[%s11504_s25 + $0x948] sm:$0xff]  ;;  %v9992_v29 = vcombine.low %v328_v16, %v336_v17 }
  0x8a   : > { %v10855_v31 = vcombine.high %v1191_v25, %v1199_v26  ;;  %v919_v32 = vld [vmem:[%s11504_s25 + $0x1400] sm:$0xff]  ;;  %6591 = vmatprep.subr.bf16.mxu0 %v10599_v30  ;;  %v10854_v38 = vcombine.low %v1191_v25, %v1199_v26  ;;  %v320_v25 = vld [vmem:[%s11504_s25 + $0x148] sm:$0xff]  ;;  %v10248_v30 = vcombine.low %v584_v18, %v592_v19 }
  0x8b   : > { %v927_v33 = vld [vmem:[%s11504_s25 + $0x1440] sm:$0xff]  ;;  %6592 = vmatpush2.bf16.msra.mxu0 %v10598_v37  ;;  %v568_v26 = vld [vmem:[%s11504_s25 + $0x908] sm:$0xff] }
  0x8c   : > { %v1175_v34 = vld [vmem:[%s11504_s25 + $0x1c00] sm:$0xff]  ;;  %v10583_v39 = vcombine.high %v919_v32, %v927_v33  ;;  %6632 = vmatprep.subr.bf16.mxu1 %v10855_v31  ;;  %v10582_v46 = vcombine.low %v919_v32, %v927_v33  ;;  %v9977_v31 = vcombine.high %v312_v24, %v320_v25  ;;  %v10233_v32 = vcombine.high %v568_v26, %v576_v27  ;;  %v296_v33 = vld [vmem:[%s11504_s25 + $0x88] sm:$0xff] }
  0x8d   : > { %v1183_v49 = vld [vmem:[%s11504_s25 + $0x1c40] sm:$0xff]  ;;  %6633 = vmatpush2.bf16.msra.mxu1 %v10854_v38  ;;  %v560_v37 = vld [vmem:[%s11504_s25 + $0x8c8] sm:$0xff]  ;;  %v9976_v38 = vcombine.low %v312_v24, %v320_v25 }
  0x8e   : > { %v10839_v41 = vcombine.high %v1175_v34, %v1183_v49  ;;  %6593 = vmatprep.subr.bf16.mxu0 %v10583_v39  ;;  %v10838_v47 = vcombine.low %v1175_v34, %v1183_v49  ;;  %v304_v34 = vld [vmem:[%s11504_s25 + $0xc8] sm:$0xff]  ;;  %v10232_v39 = vcombine.low %v568_v26, %v576_v27 }
  0x8f   : > { %6594 = vmatpush2.bf16.msra.mxu0 %v10582_v46  ;;  %v552_v49 = vld [vmem:[%s11504_s25 + $0x888] sm:$0xff] }
  0x90   : > { %6634 = vmatprep.subr.bf16.mxu1 %v10839_v41  ;;  %6645 = vmatprep.subr.bf16.mxu0 %v10057_v48  ;;  %v9961_v41 = vcombine.high %v296_v33, %v304_v34  ;;  %v10217_v42 = vcombine.high %v552_v49, %v560_v37  ;;  %v280_v43 = vld [vmem:[%s11504_s25 + $0x8] sm:$0xff]  ;;  %v10216_v48 = vcombine.low %v552_v49, %v560_v37 }
  0x91   : > { %6635 = vmatpush2.bf16.msra.mxu1 %v10838_v47  ;;  %v288_v6 = vld [vmem:[%s11504_s25 + $0x48] sm:$0xff]  ;;  %v9960_v47 = vcombine.low %v296_v33, %v304_v34 }
  0x92   : > { %6686 = vmatprep.subr.bf16.mxu1 %v10313_v50  ;;  %6596 = vmatmul.mubr.bf16.vlgmr.msra.gmra.mxu0 %v11552_v55  ;;  %v536_v44 = vld [vmem:[%s11504_s25 + $0x808] sm:$0xff]  ;;  %v9945_v50 = vcombine.high %v280_v43, %v288_v6 }
  0x93   : > { %6646 = vmatpush1.bf16.msra.mxu0 %v10056_v57  ;;  %6677 = vmatprep.mubr.bf16.mxu0 %v11531_v35  ;;  %v544_v46 = vld [vmem:[%s11504_s25 + $0x848] sm:$0xff] }
  0x94   : > { %6637 = vmatmul.mubr.bf16.vlgmr.msra.gmra.mxu1 %v11689_v56  ;;  %6647 = vmatprep.subr.bf16.mxu0 %v10041_v59  ;;  %v10201_v51 = vcombine.high %v536_v44, %v544_v46  ;;  %v520_v52 = vld [vmem:[%s11504_s25 + $0x788] sm:$0xff]  ;;  %v10200_v59 = vcombine.low %v536_v44, %v544_v46 }
  0x95   : > { %6687 = vmatpush1.bf16.msra.mxu1 %v10312_v58  ;;  %6718 = vmatprep.mubr.bf16.mxu1 %v11535_v40  ;;  %v528_v53 = vld [vmem:[%s11504_s25 + $0x7c8] sm:$0xff]  ;;  %v9944_v58 = vcombine.low %v280_v43, %v288_v6 }
  0x96   : > { %6688 = vmatprep.subr.bf16.mxu1 %v10297_v60  ;;  %v776_v54 = vld [vmem:[%s11504_s25 + $0xf88] sm:$0xff]  ;;  %v10185_v60 = vcombine.high %v520_v52, %v528_v53 }
  0x97   : > { %6648 = vmatpush1.bf16.msra.mxu0 %v10040_v1  ;;  %v784_v57 = vld [vmem:[%s11504_s25 + $0xfc8] sm:$0xff] }
  0x98   : > { %6649 = vmatprep.subr.bf16.mxu0 %v10025_v4  ;;  %v10441_v61 = vcombine.high %v776_v54, %v784_v57  ;;  %v504_v62 = vld [vmem:[%s11504_s25 + $0x708] sm:$0xff]  ;;  %v10440_v4 = vcombine.low %v776_v54, %v784_v57 }
  0x99   : > { %6689 = vmatpush1.bf16.msra.mxu1 %v10296_v2  ;;  %v512_v63 = vld [vmem:[%s11504_s25 + $0x748] sm:$0xff]  ;;  %v10184_v2 = vcombine.low %v520_v52, %v528_v53 }
  0x9a   : > { %6690 = vmatprep.subr.bf16.mxu1 %v10281_v5  ;;  %v760_v0 = vld [vmem:[%s11504_s25 + $0xf08] sm:$0xff]  ;;  %v10169_v5 = vcombine.high %v504_v62, %v512_v63 }
  0x9b   : > { %6650 = vmatpush1.bf16.msra.mxu0 %v10024_v11  ;;  %v768_v1 = vld [vmem:[%s11504_s25 + $0xf48] sm:$0xff] }
  0x9c   : > { %6651 = vmatprep.subr.bf16.mxu0 %v10009_v13  ;;  %v10425_v7 = vcombine.high %v760_v0, %v768_v1  ;;  %v488_v8 = vld [vmem:[%s11504_s25 + $0x688] sm:$0xff]  ;;  %v10424_v13 = vcombine.low %v760_v0, %v768_v1 }
  0x9d   : > { %6691 = vmatpush1.bf16.msra.mxu1 %v10280_v12  ;;  %v496_v9 = vld [vmem:[%s11504_s25 + $0x6c8] sm:$0xff]  ;;  %v10168_v12 = vcombine.low %v504_v62, %v512_v63 }
  0x9e   : > { %6692 = vmatprep.subr.bf16.mxu1 %v10265_v14  ;;  %v744_v10 = vld [vmem:[%s11504_s25 + $0xe88] sm:$0xff]  ;;  %v10153_v14 = vcombine.high %v488_v8, %v496_v9 }
  0x9f   : > { %6652 = vmatpush1.bf16.msra.mxu0 %v10008_v20  ;;  %v752_v11 = vld [vmem:[%s11504_s25 + $0xec8] sm:$0xff] }
  0xa0   : > { %6653 = vmatprep.subr.bf16.mxu0 %v9993_v22  ;;  %v10409_v16 = vcombine.high %v744_v10, %v752_v11  ;;  %v472_v17 = vld [vmem:[%s11504_s25 + $0x608] sm:$0xff]  ;;  %v10408_v22 = vcombine.low %v744_v10, %v752_v11 }
  0xa1   : > { %6693 = vmatpush1.bf16.msra.mxu1 %v10264_v21  ;;  %v480_v18 = vld [vmem:[%s11504_s25 + $0x648] sm:$0xff]  ;;  %v10152_v21 = vcombine.low %v488_v8, %v496_v9 }
  0xa2   : > { %6694 = vmatprep.subr.bf16.mxu1 %v10249_v23  ;;  %v728_v19 = vld [vmem:[%s11504_s25 + $0xe08] sm:$0xff]  ;;  %v10137_v23 = vcombine.high %v472_v17, %v480_v18 }
  0xa3   : > { %6654 = vmatpush1.bf16.msra.mxu0 %v9992_v29  ;;  %v736_v20 = vld [vmem:[%s11504_s25 + $0xe48] sm:$0xff] }
  0xa4   : > { %6655 = vmatprep.subr.bf16.mxu0 %v9977_v31  ;;  %v10393_v24 = vcombine.high %v728_v19, %v736_v20  ;;  %v456_v25 = vld [vmem:[%s11504_s25 + $0x588] sm:$0xff]  ;;  %v10392_v31 = vcombine.low %v728_v19, %v736_v20 }
  0xa5   : > { %6695 = vmatpush1.bf16.msra.mxu1 %v10248_v30  ;;  %v464_v26 = vld [vmem:[%s11504_s25 + $0x5c8] sm:$0xff]  ;;  %v10136_v30 = vcombine.low %v472_v17, %v480_v18 }
  0xa6   : > { %6696 = vmatprep.subr.bf16.mxu1 %v10233_v32  ;;  %v712_v27 = vld [vmem:[%s11504_s25 + $0xd88] sm:$0xff]  ;;  %v10121_v32 = vcombine.high %v456_v25, %v464_v26 }
  0xa7   : > { %6656 = vmatpush1.bf16.msra.mxu0 %v9976_v38  ;;  %v720_v29 = vld [vmem:[%s11504_s25 + $0xdc8] sm:$0xff] }
  0xa8   : > { %6657 = vmatprep.subr.bf16.mxu0 %v9961_v41  ;;  %v10377_v33 = vcombine.high %v712_v27, %v720_v29  ;;  %v440_v34 = vld [vmem:[%s11504_s25 + $0x508] sm:$0xff]  ;;  %v10376_v41 = vcombine.low %v712_v27, %v720_v29 }
  0xa9   : > { %6697 = vmatpush1.bf16.msra.mxu1 %v10232_v39  ;;  %v448_v49 = vld [vmem:[%s11504_s25 + $0x548] sm:$0xff]  ;;  %v10120_v39 = vcombine.low %v456_v25, %v464_v26 }
  0xaa   : > { %6698 = vmatprep.subr.bf16.mxu1 %v10217_v42  ;;  %v696_v37 = vld [vmem:[%s11504_s25 + $0xd08] sm:$0xff]  ;;  %v10105_v42 = vcombine.high %v440_v34, %v448_v49 }
  0xab   : > { %6658 = vmatpush1.bf16.msra.mxu0 %v9960_v47  ;;  %v704_v38 = vld [vmem:[%s11504_s25 + $0xd48] sm:$0xff] }
  0xac   : > { %6659 = vmatprep.subr.bf16.mxu0 %v9945_v50  ;;  %v10361_v43 = vcombine.high %v696_v37, %v704_v38  ;;  %v424_v6 = vld [vmem:[%s11504_s25 + $0x488] sm:$0xff]  ;;  %v10360_v50 = vcombine.low %v696_v37, %v704_v38 }
  0xad   : > { %6699 = vmatpush1.bf16.msra.mxu1 %v10216_v48  ;;  %v432_v44 = vld [vmem:[%s11504_s25 + $0x4c8] sm:$0xff]  ;;  %v10104_v48 = vcombine.low %v440_v34, %v448_v49 }
  0xae   : > { %6700 = vmatprep.subr.bf16.mxu1 %v10201_v51  ;;  %v680_v46 = vld [vmem:[%s11504_s25 + $0xc88] sm:$0xff]  ;;  %v10089_v51 = vcombine.high %v424_v6, %v432_v44 }
  0xaf   : > { %6660 = vmatpush1.bf16.msra.mxu0 %v9944_v58  ;;  %v688_v47 = vld [vmem:[%s11504_s25 + $0xcc8] sm:$0xff] }
  0xb0   : > { %6661 = vmatprep.subr.bf16.mxu0 %v10185_v60  ;;  %v10345_v52 = vcombine.high %v680_v46, %v688_v47  ;;  %v408_v53 = vld [vmem:[%s11504_s25 + $0x408] sm:$0xff]  ;;  %v10344_v60 = vcombine.low %v680_v46, %v688_v47 }
  0xb1   : > { %6701 = vmatpush1.bf16.msra.mxu1 %v10200_v59  ;;  %v416_v54 = vld [vmem:[%s11504_s25 + $0x448] sm:$0xff]  ;;  %v10088_v59 = vcombine.low %v424_v6, %v432_v44 }
  0xb2   : > { %6702 = vmatprep.subr.bf16.mxu1 %v10441_v61  ;;  %v664_v57 = vld [vmem:[%s11504_s25 + $0xc08] sm:$0xff]  ;;  %v10073_v61 = vcombine.high %v408_v53, %v416_v54 }
  0xb3   : > { %6662 = vmatpush2.bf16.msra.mxu0 %v10184_v2  ;;  %v672_v58 = vld [vmem:[%s11504_s25 + $0xc48] sm:$0xff] }
  0xb4   : > { %6663 = vmatprep.subr.bf16.mxu0 %v10169_v5  ;;  %v10329_v62 = vcombine.high %v664_v57, %v672_v58  ;;  %v904_v63 = vld [vmem:[%s11504_s25 + $0x1388] sm:$0xff]  ;;  %v10328_v5 = vcombine.low %v664_v57, %v672_v58 }
  0xb5   : > { %6703 = vmatpush2.bf16.msra.mxu1 %v10440_v4  ;;  %v912_v0 = vld [vmem:[%s11504_s25 + $0x13c8] sm:$0xff]  ;;  %v10072_v4 = vcombine.low %v408_v53, %v416_v54 }
  0xb6   : > { %6704 = vmatprep.subr.bf16.mxu1 %v10425_v7  ;;  %v1160_v1 = vld [vmem:[%s11504_s25 + $0x1b88] sm:$0xff]  ;;  %v10569_v7 = vcombine.high %v904_v63, %v912_v0 }
  0xb7   : > { %6664 = vmatpush2.bf16.msra.mxu0 %v10168_v12  ;;  %v1168_v2 = vld [vmem:[%s11504_s25 + $0x1bc8] sm:$0xff] }
  0xb8   : > { %6665 = vmatprep.subr.bf16.mxu0 %v10153_v14  ;;  %v10825_v8 = vcombine.high %v1160_v1, %v1168_v2  ;;  %v888_v9 = vld [vmem:[%s11504_s25 + $0x1308] sm:$0xff]  ;;  %v10824_v14 = vcombine.low %v1160_v1, %v1168_v2 }
  0xb9   : > { %6705 = vmatpush2.bf16.msra.mxu1 %v10424_v13  ;;  %v896_v10 = vld [vmem:[%s11504_s25 + $0x1348] sm:$0xff]  ;;  %v10568_v13 = vcombine.low %v904_v63, %v912_v0 }
  0xba   : > { %6706 = vmatprep.subr.bf16.mxu1 %v10409_v16  ;;  %v1144_v11 = vld [vmem:[%s11504_s25 + $0x1b08] sm:$0xff]  ;;  %v10553_v16 = vcombine.high %v888_v9, %v896_v10 }
  0xbb   : > { %6666 = vmatpush2.bf16.msra.mxu0 %v10152_v21  ;;  %v1152_v12 = vld [vmem:[%s11504_s25 + $0x1b48] sm:$0xff] }
  0xbc   : > { %6667 = vmatprep.subr.bf16.mxu0 %v10137_v23  ;;  %v10809_v17 = vcombine.high %v1144_v11, %v1152_v12  ;;  %v872_v18 = vld [vmem:[%s11504_s25 + $0x1288] sm:$0xff]  ;;  %v10808_v23 = vcombine.low %v1144_v11, %v1152_v12 }
  0xbd   : > { %6707 = vmatpush2.bf16.msra.mxu1 %v10408_v22  ;;  %v880_v19 = vld [vmem:[%s11504_s25 + $0x12c8] sm:$0xff]  ;;  %v10552_v22 = vcombine.low %v888_v9, %v896_v10 }
  0xbe   : > { %6708 = vmatprep.subr.bf16.mxu1 %v10393_v24  ;;  %v1128_v20 = vld [vmem:[%s11504_s25 + $0x1a88] sm:$0xff]  ;;  %v10537_v24 = vcombine.high %v872_v18, %v880_v19 }
  0xbf   : > { %6668 = vmatpush2.bf16.msra.mxu0 %v10136_v30  ;;  %v1136_v21 = vld [vmem:[%s11504_s25 + $0x1ac8] sm:$0xff] }
  0xc0   : > { %6669 = vmatprep.subr.bf16.mxu0 %v10121_v32  ;;  %v10793_v25 = vcombine.high %v1128_v20, %v1136_v21  ;;  %v856_v26 = vld [vmem:[%s11504_s25 + $0x1208] sm:$0xff]  ;;  %v10792_v32 = vcombine.low %v1128_v20, %v1136_v21 }
  0xc1   : > { %6709 = vmatpush2.bf16.msra.mxu1 %v10392_v31  ;;  %v864_v27 = vld [vmem:[%s11504_s25 + $0x1248] sm:$0xff]  ;;  %v10536_v31 = vcombine.low %v872_v18, %v880_v19 }
  0xc2   : > { %6710 = vmatprep.subr.bf16.mxu1 %v10377_v33  ;;  %v1112_v29 = vld [vmem:[%s11504_s25 + $0x1a08] sm:$0xff]  ;;  %v10521_v33 = vcombine.high %v856_v26, %v864_v27 }
  0xc3   : > { %6670 = vmatpush2.bf16.msra.mxu0 %v10120_v39  ;;  %v1120_v30 = vld [vmem:[%s11504_s25 + $0x1a48] sm:$0xff] }
  0xc4   : > { %6671 = vmatprep.subr.bf16.mxu0 %v10105_v42  ;;  %v10777_v34 = vcombine.high %v1112_v29, %v1120_v30  ;;  %v840_v49 = vld [vmem:[%s11504_s25 + $0x1188] sm:$0xff]  ;;  %v10776_v42 = vcombine.low %v1112_v29, %v1120_v30 }
  0xc5   : > { %6711 = vmatpush2.bf16.msra.mxu1 %v10376_v41  ;;  %v848_v37 = vld [vmem:[%s11504_s25 + $0x11c8] sm:$0xff]  ;;  %v10520_v41 = vcombine.low %v856_v26, %v864_v27 }
  0xc6   : > { %6712 = vmatprep.subr.bf16.mxu1 %v10361_v43  ;;  %v1096_v38 = vld [vmem:[%s11504_s25 + $0x1988] sm:$0xff]  ;;  %v10505_v43 = vcombine.high %v840_v49, %v848_v37 }
  0xc7   : > { %6672 = vmatpush2.bf16.msra.mxu0 %v10104_v48  ;;  %v1104_v39 = vld [vmem:[%s11504_s25 + $0x19c8] sm:$0xff] }
  0xc8   : > { %6673 = vmatprep.subr.bf16.mxu0 %v10089_v51  ;;  %v10761_v6 = vcombine.high %v1096_v38, %v1104_v39  ;;  %v824_v44 = vld [vmem:[%s11504_s25 + $0x1108] sm:$0xff]  ;;  %v10760_v51 = vcombine.low %v1096_v38, %v1104_v39 }
  0xc9   : > { %6713 = vmatpush2.bf16.msra.mxu1 %v10360_v50  ;;  %v832_v46 = vld [vmem:[%s11504_s25 + $0x1148] sm:$0xff]  ;;  %v10504_v50 = vcombine.low %v840_v49, %v848_v37 }
  0xca   : > { %6714 = vmatprep.subr.bf16.mxu1 %v10345_v52  ;;  %v1080_v47 = vld [vmem:[%s11504_s25 + $0x1908] sm:$0xff]  ;;  %v10489_v52 = vcombine.high %v824_v44, %v832_v46 }
  0xcb   : > { %6674 = vmatpush2.bf16.msra.mxu0 %v10088_v59  ;;  %v1088_v48 = vld [vmem:[%s11504_s25 + $0x1948] sm:$0xff] }
  0xcc   : > { %6675 = vmatprep.subr.bf16.mxu0 %v10073_v61  ;;  %v10745_v53 = vcombine.high %v1080_v47, %v1088_v48  ;;  %v808_v54 = vld [vmem:[%s11504_s25 + $0x1088] sm:$0xff]  ;;  %v10744_v61 = vcombine.low %v1080_v47, %v1088_v48 }
  0xcd   : > { %6715 = vmatpush2.bf16.msra.mxu1 %v10344_v60  ;;  %v816_v57 = vld [vmem:[%s11504_s25 + $0x10c8] sm:$0xff]  ;;  %v10488_v60 = vcombine.low %v824_v44, %v832_v46 }
  0xce   : > { %6716 = vmatprep.subr.bf16.mxu1 %v10329_v62  ;;  %v1064_v58 = vld [vmem:[%s11504_s25 + $0x1888] sm:$0xff]  ;;  %v10473_v62 = vcombine.high %v808_v54, %v816_v57 }
  0xcf   : > { %6676 = vmatpush2.bf16.msra.mxu0 %v10072_v4  ;;  %v1072_v59 = vld [vmem:[%s11504_s25 + $0x18c8] sm:$0xff] }
  0xd0   : > { %6727 = vmatprep.subr.bf16.mxu0 %v10569_v7  ;;  %v10729_v63 = vcombine.high %v1064_v58, %v1072_v59  ;;  %v792_v0 = vld [vmem:[%s11504_s25 + $0x1008] sm:$0xff]  ;;  %v10728_v7 = vcombine.low %v1064_v58, %v1072_v59 }
  0xd1   : > { %6717 = vmatpush2.bf16.msra.mxu1 %v10328_v5  ;;  %v800_v1 = vld [vmem:[%s11504_s25 + $0x1048] sm:$0xff]  ;;  %v10472_v5 = vcombine.low %v808_v54, %v816_v57 }
  0xd2   : > { %6768 = vmatprep.subr.bf16.mxu1 %v10825_v8  ;;  %6678 = vmatmul.mubr.bf16.vlgmr.msra.gmra.mxu0 %v11602_v28  ;;  %v1048_v2 = vld [vmem:[%s11504_s25 + $0x1808] sm:$0xff]  ;;  %v10457_v8 = vcombine.high %v792_v0, %v800_v1 }
  0xd3   : > { %6728 = vmatpush1.bf16.msra.mxu0 %v10568_v13  ;;  %6759 = vmatprep.mubr.bf16.mxu0 %v11609_v36  ;;  %v1056_v4 = vld [vmem:[%s11504_s25 + $0x1848] sm:$0xff] }
  0xd4   : > { %6719 = vmatmul.mubr.bf16.vlgmr.msra.gmra.mxu1 %v11613_v15  ;;  %6729 = vmatprep.subr.bf16.mxu0 %v10553_v16  ;;  %v10713_v9 = vcombine.high %v1048_v2, %v1056_v4  ;;  %v1032_v10 = vld [vmem:[%s11504_s25 + $0x1788] sm:$0xff]  ;;  %v10712_v16 = vcombine.low %v1048_v2, %v1056_v4 }
  0xd5   : > { %6769 = vmatpush1.bf16.msra.mxu1 %v10824_v14  ;;  %6800 = vmatprep.mubr.bf16.mxu1 %v11622_v45  ;;  %v1040_v11 = vld [vmem:[%s11504_s25 + $0x17c8] sm:$0xff]  ;;  %v10456_v14 = vcombine.low %v792_v0, %v800_v1 }
  0xd6   : > { %6770 = vmatprep.subr.bf16.mxu1 %v10809_v17  ;;  %v1288_v12 = vld [vmem:[%s11504_s25 + $0x1f88] sm:$0xff]  ;;  %v10697_v17 = vcombine.high %v1032_v10, %v1040_v11 }
  0xd7   : > { %6730 = vmatpush1.bf16.msra.mxu0 %v10552_v22  ;;  %v1296_v13 = vld [vmem:[%s11504_s25 + $0x1fc8] sm:$0xff] }
  0xd8   : > { %6731 = vmatprep.subr.bf16.mxu0 %v10537_v24  ;;  %v10953_v18 = vcombine.high %v1288_v12, %v1296_v13  ;;  %v1016_v19 = vld [vmem:[%s11504_s25 + $0x1708] sm:$0xff]  ;;  %v10952_v24 = vcombine.low %v1288_v12, %v1296_v13 }
  0xd9   : > { %6771 = vmatpush1.bf16.msra.mxu1 %v10808_v23  ;;  %v1024_v20 = vld [vmem:[%s11504_s25 + $0x1748] sm:$0xff]  ;;  %v10696_v23 = vcombine.low %v1032_v10, %v1040_v11 }
  0xda   : > { %6772 = vmatprep.subr.bf16.mxu1 %v10793_v25  ;;  %v1272_v21 = vld [vmem:[%s11504_s25 + $0x1f08] sm:$0xff]  ;;  %v10681_v25 = vcombine.high %v1016_v19, %v1024_v20 }
  0xdb   : > { %6732 = vmatpush1.bf16.msra.mxu0 %v10536_v31  ;;  %v1280_v22 = vld [vmem:[%s11504_s25 + $0x1f48] sm:$0xff] }
  0xdc   : > { %6733 = vmatprep.subr.bf16.mxu0 %v10521_v33  ;;  %v10937_v26 = vcombine.high %v1272_v21, %v1280_v22  ;;  %v1000_v27 = vld [vmem:[%s11504_s25 + $0x1688] sm:$0xff]  ;;  %v10936_v33 = vcombine.low %v1272_v21, %v1280_v22  ;;  %v401_v21 = vld [vmem:[%s11504_s25 + $0x3d0] sm:$0xff] }
  0xdd   : > { %6773 = vmatpush1.bf16.msra.mxu1 %v10792_v32  ;;  %v1008_v29 = vld [vmem:[%s11504_s25 + $0x16c8] sm:$0xff]  ;;  %v10680_v32 = vcombine.low %v1016_v19, %v1024_v20  ;;  %v393_v20 = vld [vmem:[%s11504_s25 + $0x390] sm:$0xff] }
  0xde   : > { %6774 = vmatprep.subr.bf16.mxu1 %v10777_v34  ;;  %v1256_v30 = vld [vmem:[%s11504_s25 + $0x1e88] sm:$0xff]  ;;  %v10665_v34 = vcombine.high %v1000_v27, %v1008_v29  ;;  %v649_v22 = vld [vmem:[%s11504_s25 + $0xb90] sm:$0xff] }
  0xdf   : > { %6734 = vmatpush1.bf16.msra.mxu0 %v10520_v41  ;;  %v1264_v31 = vld [vmem:[%s11504_s25 + $0x1ec8] sm:$0xff] }
  0xe0   : > { %6735 = vmatprep.subr.bf16.mxu0 %v10505_v43  ;;  %v10921_v49 = vcombine.high %v1256_v30, %v1264_v31  ;;  %v984_v37 = vld [vmem:[%s11504_s25 + $0x1608] sm:$0xff]  ;;  %v10920_v43 = vcombine.low %v1256_v30, %v1264_v31  ;;  %v385_v30 = vld [vmem:[%s11504_s25 + $0x350] sm:$0xff] }
  0xe1   : > { %6775 = vmatpush1.bf16.msra.mxu1 %v10776_v42  ;;  %v992_v38 = vld [vmem:[%s11504_s25 + $0x1648] sm:$0xff]  ;;  %v10664_v42 = vcombine.low %v1000_v27, %v1008_v29  ;;  %v377_v29 = vld [vmem:[%s11504_s25 + $0x310] sm:$0xff] }
  0xe2   : > { %6776 = vmatprep.subr.bf16.mxu1 %v10761_v6  ;;  %v1240_v39 = vld [vmem:[%s11504_s25 + $0x1e08] sm:$0xff]  ;;  %v10649_v6 = vcombine.high %v984_v37, %v992_v38  ;;  %v633_v31 = vld [vmem:[%s11504_s25 + $0xb10] sm:$0xff] }
  0xe3   : > { %6736 = vmatpush1.bf16.msra.mxu0 %v10504_v50  ;;  %v1248_v41 = vld [vmem:[%s11504_s25 + $0x1e48] sm:$0xff] }
  0xe4   : > { %6737 = vmatprep.subr.bf16.mxu0 %v10489_v52  ;;  %v10905_v44 = vcombine.high %v1240_v39, %v1248_v41  ;;  %v968_v46 = vld [vmem:[%s11504_s25 + $0x1588] sm:$0xff]  ;;  %v10904_v52 = vcombine.low %v1240_v39, %v1248_v41  ;;  %v369_v39 = vld [vmem:[%s11504_s25 + $0x2d0] sm:$0xff] }
  0xe5   : > { %6777 = vmatpush1.bf16.msra.mxu1 %v10760_v51  ;;  %v976_v47 = vld [vmem:[%s11504_s25 + $0x15c8] sm:$0xff]  ;;  %v10648_v51 = vcombine.low %v984_v37, %v992_v38  ;;  %v361_v38 = vld [vmem:[%s11504_s25 + $0x290] sm:$0xff] }
  0xe6   : > { %6778 = vmatprep.subr.bf16.mxu1 %v10745_v53  ;;  %v1224_v48 = vld [vmem:[%s11504_s25 + $0x1d88] sm:$0xff]  ;;  %v10633_v53 = vcombine.high %v968_v46, %v976_v47 }
  0xe7   : > { %6738 = vmatpush1.bf16.msra.mxu0 %v10488_v60  ;;  %v1232_v50 = vld [vmem:[%s11504_s25 + $0x1dc8] sm:$0xff] }
  0xe8   : > { %6739 = vmatprep.subr.bf16.mxu0 %v10473_v62  ;;  %v10889_v54 = vcombine.high %v1224_v48, %v1232_v50  ;;  %v952_v57 = vld [vmem:[%s11504_s25 + $0x1508] sm:$0xff]  ;;  %v10888_v62 = vcombine.low %v1224_v48, %v1232_v50  ;;  %v10027_v50 = vcombine.high %v361_v38, %v369_v39 }
  0xe9   : > { %6779 = vmatpush1.bf16.msra.mxu1 %v10744_v61  ;;  %v960_v58 = vld [vmem:[%s11504_s25 + $0x1548] sm:$0xff]  ;;  %v10632_v61 = vcombine.low %v968_v46, %v976_v47 }
  0xea   : > { %6780 = vmatprep.subr.bf16.mxu1 %v10729_v63  ;;  %v1208_v59 = vld [vmem:[%s11504_s25 + $0x1d08] sm:$0xff]  ;;  %v10617_v63 = vcombine.high %v952_v57, %v960_v58 }
  0xeb   : > { %6740 = vmatpush1.bf16.msra.mxu0 %v10472_v5  ;;  %v1216_v60 = vld [vmem:[%s11504_s25 + $0x1d48] sm:$0xff] }
  0xec   : > { %6741 = vmatprep.subr.bf16.mxu0 %v10457_v8  ;;  %v10873_v0 = vcombine.high %v1208_v59, %v1216_v60  ;;  %v936_v1 = vld [vmem:[%s11504_s25 + $0x1488] sm:$0xff]  ;;  %v10872_v8 = vcombine.low %v1208_v59, %v1216_v60  ;;  %v601_v59 = vld [vmem:[%s11504_s25 + $0xa10] sm:$0xff] }
  0xed   : > { %6781 = vmatpush1.bf16.msra.mxu1 %v10728_v7  ;;  %v944_v2 = vld [vmem:[%s11504_s25 + $0x14c8] sm:$0xff]  ;;  %v10616_v7 = vcombine.low %v952_v57, %v960_v58  ;;  %v609_v60 = vld [vmem:[%s11504_s25 + $0xa50] sm:$0xff] }
  0xee   : > { %6782 = vmatprep.subr.bf16.mxu1 %v10713_v9  ;;  %v1192_v4 = vld [vmem:[%s11504_s25 + $0x1c88] sm:$0xff]  ;;  %v10601_v9 = vcombine.high %v936_v1, %v944_v2 }
  0xef   : > { %6742 = vmatpush1.bf16.msra.mxu0 %v10456_v14  ;;  %v1200_v5 = vld [vmem:[%s11504_s25 + $0x1cc8] sm:$0xff] }
  0xf0   : > { %6743 = vmatprep.subr.bf16.mxu0 %v10697_v17  ;;  %v10857_v10 = vcombine.high %v1192_v4, %v1200_v5  ;;  %v920_v11 = vld [vmem:[%s11504_s25 + $0x1408] sm:$0xff]  ;;  %v10856_v17 = vcombine.low %v1192_v4, %v1200_v5  ;;  %v10267_v4 = vcombine.high %v601_v59, %v609_v60  ;;  %v329_v5 = vld [vmem:[%s11504_s25 + $0x190] sm:$0xff] }
  0xf1   : > { %6783 = vmatpush1.bf16.msra.mxu1 %v10712_v16  ;;  %v928_v12 = vld [vmem:[%s11504_s25 + $0x1448] sm:$0xff]  ;;  %v10600_v16 = vcombine.low %v936_v1, %v944_v2 }
  0xf2   : > { %6784 = vmatprep.subr.bf16.mxu1 %v10953_v18  ;;  %v1176_v13 = vld [vmem:[%s11504_s25 + $0x1c08] sm:$0xff]  ;;  %v10585_v18 = vcombine.high %v920_v11, %v928_v12 }
  0xf3   : > { %6744 = vmatpush2.bf16.msra.mxu0 %v10696_v23  ;;  %v1184_v14 = vld [vmem:[%s11504_s25 + $0x1c48] sm:$0xff]  ;;  %v657_v23 = vld [vmem:[%s11504_s25 + $0xbd0] sm:$0xff] }
  0xf4   : > { %6745 = vmatprep.subr.bf16.mxu0 %v10681_v25  ;;  %v10841_v19 = vcombine.high %v1176_v13, %v1184_v14  ;;  %v10840_v25 = vcombine.low %v1176_v13, %v1184_v14  ;;  %v10315_v27 = vcombine.high %v649_v22, %v657_v23  ;;  %v313_v14 = vld [vmem:[%s11504_s25 + $0x110] sm:$0xff] }
  0xf5   : > { %6785 = vmatpush2.bf16.msra.mxu1 %v10952_v24  ;;  %v10584_v24 = vcombine.low %v920_v11, %v928_v12  ;;  %v10266_v11 = vcombine.low %v601_v59, %v609_v60 }
  0xf6   : > { %6786 = vmatprep.subr.bf16.mxu1 %v10937_v26  ;;  %v10059_v26 = vcombine.high %v393_v20, %v401_v21 }
  0xf7   : > { %6746 = vmatpush2.bf16.msra.mxu0 %v10680_v32  ;;  %v641_v32 = vld [vmem:[%s11504_s25 + $0xb50] sm:$0xff] }
  0xf8   : > { %6747 = vmatprep.subr.bf16.mxu0 %v10665_v34  ;;  %v10314_v34 = vcombine.low %v649_v22, %v657_v23  ;;  %v10299_v37 = vcombine.high %v633_v31, %v641_v32  ;;  %v10298_v48 = vcombine.low %v633_v31, %v641_v32  ;;  %v297_v23 = vld [vmem:[%s11504_s25 + $0x90] sm:$0xff] }
  0xf9   : > { %6787 = vmatpush2.bf16.msra.mxu1 %v10936_v33  ;;  %v10058_v33 = vcombine.low %v393_v20, %v401_v21  ;;  %v281_v32 = vld [vmem:[%s11504_s25 + $0x10] sm:$0xff] }
  0xfa   : > { %6788 = vmatprep.subr.bf16.mxu1 %v10921_v49  ;;  %v10043_v49 = vcombine.high %v377_v29, %v385_v30 }
  0xfb   : > { %6748 = vmatpush2.bf16.msra.mxu0 %v10664_v42  ;;  %v617_v42 = vld [vmem:[%s11504_s25 + $0xa90] sm:$0xff] }
  0xfc   : > { %6749 = vmatprep.subr.bf16.mxu0 %v10649_v6 }
  0xfd   : > { %6789 = vmatpush2.bf16.msra.mxu1 %v10920_v43  ;;  %v625_v43 = vld [vmem:[%s11504_s25 + $0xad0] sm:$0xff] }
  0xfe   : > { %6790 = vmatprep.subr.bf16.mxu1 %v10905_v44  ;;  %v10042_v44 = vcombine.low %v377_v29, %v385_v30 }
  0xff   : > { %6750 = vmatpush2.bf16.msra.mxu0 %v10648_v51 }
 0x100   : > { %6751 = vmatprep.subr.bf16.mxu0 %v10633_v53  ;;  %v345_v53 = vld [vmem:[%s11504_s25 + $0x210] sm:$0xff] }
 0x101   : > { %6791 = vmatpush2.bf16.msra.mxu1 %v10904_v52  ;;  %v10283_v52 = vcombine.high %v617_v42, %v625_v43 }
 0x102   : > { %6792 = vmatprep.subr.bf16.mxu1 %v10889_v54  ;;  %v353_v54 = vld [vmem:[%s11504_s25 + $0x250] sm:$0xff] }
 0x103   : > { %6752 = vmatpush2.bf16.msra.mxu0 %v10632_v61  ;;  %v10011_v1 = vcombine.high %v345_v53, %v353_v54 }
 0x104   : > { %6753 = vmatprep.subr.bf16.mxu0 %v10617_v63 }
 0x105   : > { %6793 = vmatpush2.bf16.msra.mxu1 %v10888_v62  ;;  %v10026_v62 = vcombine.low %v361_v38, %v369_v39 }
 0x106   : > { %6794 = vmatprep.subr.bf16.mxu1 %v10873_v0  ;;  %v10282_v0 = vcombine.low %v617_v42, %v625_v43  ;;  %v521_v42 = vld [vmem:[%s11504_s25 + $0x790] sm:$0xff] }
 0x107   : > { %6754 = vmatpush2.bf16.msra.mxu0 %v10616_v7  ;;  %v337_v7 = vld [vmem:[%s11504_s25 + $0x1d0] sm:$0xff] }
 0x108   : > { %6755 = vmatprep.subr.bf16.mxu0 %v10601_v9  ;;  %v593_v9 = vld [vmem:[%s11504_s25 + $0x9d0] sm:$0xff]  ;;  %v9995_v12 = vcombine.high %v329_v5, %v337_v7 }
 0x109   : > { %6795 = vmatpush2.bf16.msra.mxu1 %v10872_v8  ;;  %v585_v8 = vld [vmem:[%s11504_s25 + $0x990] sm:$0xff] }
 0x10a   : > { %6796 = vmatprep.subr.bf16.mxu1 %v10857_v10  ;;  %v10010_v10 = vcombine.low %v345_v53, %v353_v54  ;;  %v10251_v13 = vcombine.high %v585_v8, %v593_v9  ;;  %v10250_v20 = vcombine.low %v585_v8, %v593_v9  ;;  %v529_v43 = vld [vmem:[%s11504_s25 + $0x7d0] sm:$0xff] }
 0x10b   : > { %6756 = vmatpush2.bf16.msra.mxu0 %v10600_v16  ;;  %v321_v16 = vld [vmem:[%s11504_s25 + $0x150] sm:$0xff]  ;;  %v10186_v59 = vcombine.low %v521_v42, %v529_v43 }
 0x10c   : > { %6757 = vmatprep.subr.bf16.mxu0 %v10585_v18  ;;  %v577_v18 = vld [vmem:[%s11504_s25 + $0x950] sm:$0xff]  ;;  %v9979_v21 = vcombine.high %v313_v14, %v321_v16 }
 0x10d   : > { %6797 = vmatpush2.bf16.msra.mxu1 %v10856_v17  ;;  %v569_v17 = vld [vmem:[%s11504_s25 + $0x910] sm:$0xff] }
 0x10e   : > { %6798 = vmatprep.subr.bf16.mxu1 %v10841_v19  ;;  %v9994_v19 = vcombine.low %v329_v5, %v337_v7  ;;  %v10235_v22 = vcombine.high %v569_v17, %v577_v18  ;;  %v10234_v29 = vcombine.low %v569_v17, %v577_v18  ;;  %v513_v53 = vld [vmem:[%s11504_s25 + $0x750] sm:$0xff] }
 0x10f   : > { %6758 = vmatpush2.bf16.msra.mxu0 %v10584_v24  ;;  %v305_v24 = vld [vmem:[%s11504_s25 + $0xd0] sm:$0xff] }
 0x110   : > { %6809 = vmatprep.subr.bf16.mxu0 %v10059_v26  ;;  %v561_v26 = vld [vmem:[%s11504_s25 + $0x8d0] sm:$0xff]  ;;  %v9963_v30 = vcombine.high %v297_v23, %v305_v24 }
 0x111   : > { %6799 = vmatpush2.bf16.msra.mxu1 %v10840_v25  ;;  %v553_v25 = vld [vmem:[%s11504_s25 + $0x890] sm:$0xff] }
 0x112   : > { %6850 = vmatprep.subr.bf16.mxu1 %v10315_v27  ;;  %v6515_v41 = vpop.f32.mrf.mxu0  ;;  %6760 = vmatmul.mubr.bf16.vlgmr.msra.gmra.mxu0 %v11552_v55  ;;  %v9978_v27 = vcombine.low %v313_v14, %v321_v16  ;;  %v10219_v31 = vcombine.high %v553_v25, %v561_v26  ;;  %v10218_v38 = vcombine.low %v553_v25, %v561_v26  ;;  %v761_v54 = vld [vmem:[%s11504_s25 + $0xf10] sm:$0xff] }
 0x113   : > { %6810 = vmatpush1.bf16.msra.mxu0 %v10058_v33  ;;  %6841 = vmatprep.mubr.bf16.mxu0 %v11531_v35  ;;  %v289_v33 = vld [vmem:[%s11504_s25 + $0x50] sm:$0xff] }
 0x114   : > { %v6556_v6 = vpop.f32.mrf.mxu1  ;;  %6801 = vmatmul.mubr.bf16.vlgmr.msra.gmra.mxu1 %v11689_v56  ;;  %v6517_v47 = vpop.f32.mrf.mxu0  ;;  %6811 = vmatprep.subr.bf16.mxu0 %v10043_v49  ;;  %v545_v49 = vld [vmem:[%s11504_s25 + $0x850] sm:$0xff]  ;;  %v9947_v39 = vcombine.high %v281_v32, %v289_v33 }
 0x115   : > { %v11833_v46 = vadd.f32 %v6556_v6, %v6515_v41  ;;  %6851 = vmatpush1.bf16.msra.mxu1 %v10314_v34  ;;  %6882 = vmatprep.mubr.bf16.mxu1 %v11535_v40  ;;  %v537_v34 = vld [vmem:[%s11504_s25 + $0x810] sm:$0xff] }
 0x116   : > { %v6558_v51 = vpop.f32.mrf.mxu1  ;;  %6852 = vmatprep.subr.bf16.mxu1 %v10299_v37  ;;  %v6519_v58 = vpop.f32.mrf.mxu0  ;;  %v9962_v37 = vcombine.low %v297_v23, %v305_v24  ;;  %v10203_v41 = vcombine.high %v537_v34, %v545_v49  ;;  %v777_v6 = vld [vmem:[%s11504_s25 + $0xf90] sm:$0xff] }
 0x117   : > { %v11838_v57 = vadd.f32 %v6558_v51, %v6517_v47  ;;  %6812 = vmatpush1.bf16.msra.mxu0 %v10042_v44  ;;  %v785_v44 = vld [vmem:[%s11504_s25 + $0xfd0] sm:$0xff]  ;;  %v9946_v47 = vcombine.low %v281_v32, %v289_v33 }
 0x118   : > { %v6560_v61 = vpop.f32.mrf.mxu1  ;;  %v6520_v63 = vpop.f32.mrf.mxu0  ;;  %6813 = vmatprep.subr.bf16.mxu0 %v10027_v50  ;;  %v10187_v50 = vcombine.high %v521_v42, %v529_v43  ;;  %v10443_v51 = vcombine.high %v777_v6, %v785_v44  ;;  %v769_v58 = vld [vmem:[%s11504_s25 + $0xf50] sm:$0xff]  ;;  %v10442_v60 = vcombine.low %v777_v6, %v785_v44 }
 0x119   : > { %6853 = vmatpush1.bf16.msra.mxu1 %v10298_v48  ;;  %v10202_v48 = vcombine.low %v537_v34, %v545_v49  ;;  %v489_v63 = vld [vmem:[%s11504_s25 + $0x690] sm:$0xff]  ;;  %v10426_v5 = vcombine.low %v761_v54, %v769_v58 }
 0x11a   : > { %v6561_v2 = vpop.f32.mrf.mxu1  ;;  %6854 = vmatprep.subr.bf16.mxu1 %v10283_v52  ;;  %v505_v52 = vld [vmem:[%s11504_s25 + $0x710] sm:$0xff] }
 0x11b   : > { %6814 = vmatpush1.bf16.msra.mxu0 %v10026_v62  ;;  %v10171_v61 = vcombine.high %v505_v52, %v513_v53  ;;  %v10427_v62 = vcombine.high %v761_v54, %v769_v58  ;;  %v753_v2 = vld [vmem:[%s11504_s25 + $0xed0] sm:$0xff] }
 0x11c   : > { %6815 = vmatprep.subr.bf16.mxu0 %v10011_v1  ;;  %v745_v1 = vld [vmem:[%s11504_s25 + $0xe90] sm:$0xff] }
 0x11d   : > { %6855 = vmatpush1.bf16.msra.mxu1 %v10282_v0  ;;  %v497_v0 = vld [vmem:[%s11504_s25 + $0x6d0] sm:$0xff]  ;;  %v10411_v8 = vcombine.high %v745_v1, %v753_v2  ;;  %v10410_v14 = vcombine.low %v745_v1, %v753_v2 }
 0x11e   : > { %6856 = vmatprep.subr.bf16.mxu1 %v10267_v4  ;;  %v10170_v4 = vcombine.low %v505_v52, %v513_v53  ;;  %v10155_v7 = vcombine.high %v489_v63, %v497_v0  ;;  %v473_v9 = vld [vmem:[%s11504_s25 + $0x610] sm:$0xff] }
 0x11f   : > { %6816 = vmatpush1.bf16.msra.mxu0 %v10010_v10  ;;  %v481_v10 = vld [vmem:[%s11504_s25 + $0x650] sm:$0xff] }
 0x120   : > { %6817 = vmatprep.subr.bf16.mxu0 %v9995_v12  ;;  %v737_v12 = vld [vmem:[%s11504_s25 + $0xe50] sm:$0xff]  ;;  %v10139_v16 = vcombine.high %v473_v9, %v481_v10 }
 0x121   : > { %6857 = vmatpush1.bf16.msra.mxu1 %v10266_v11  ;;  %v729_v11 = vld [vmem:[%s11504_s25 + $0xe10] sm:$0xff] }
 0x122   : > { %6858 = vmatprep.subr.bf16.mxu1 %v10251_v13  ;;  %v10154_v13 = vcombine.low %v489_v63, %v497_v0  ;;  %v10395_v17 = vcombine.high %v729_v11, %v737_v12  ;;  %v457_v18 = vld [vmem:[%s11504_s25 + $0x590] sm:$0xff]  ;;  %v10394_v23 = vcombine.low %v729_v11, %v737_v12 }
 0x123   : > { %6818 = vmatpush1.bf16.msra.mxu0 %v9994_v19  ;;  %v465_v19 = vld [vmem:[%s11504_s25 + $0x5d0] sm:$0xff] }
 0x124   : > { %6819 = vmatprep.subr.bf16.mxu0 %v9979_v21  ;;  %v721_v21 = vld [vmem:[%s11504_s25 + $0xdd0] sm:$0xff]  ;;  %v10123_v24 = vcombine.high %v457_v18, %v465_v19 }
 0x125   : > { %6859 = vmatpush1.bf16.msra.mxu1 %v10250_v20  ;;  %v713_v20 = vld [vmem:[%s11504_s25 + $0xd90] sm:$0xff] }
 0x126   : > { %6860 = vmatprep.subr.bf16.mxu1 %v10235_v22  ;;  %v10138_v22 = vcombine.low %v473_v9, %v481_v10  ;;  %v10379_v25 = vcombine.high %v713_v20, %v721_v21  ;;  %v441_v26 = vld [vmem:[%s11504_s25 + $0x510] sm:$0xff]  ;;  %v10378_v32 = vcombine.low %v713_v20, %v721_v21 }
 0x127   : > { %6820 = vmatpush1.bf16.msra.mxu0 %v9978_v27  ;;  %v449_v27 = vld [vmem:[%s11504_s25 + $0x550] sm:$0xff] }
 0x128   : > { %6821 = vmatprep.subr.bf16.mxu0 %v9963_v30  ;;  %v705_v30 = vld [vmem:[%s11504_s25 + $0xd50] sm:$0xff]  ;;  %v10107_v33 = vcombine.high %v441_v26, %v449_v27 }
 0x129   : > { %6861 = vmatpush1.bf16.msra.mxu1 %v10234_v29  ;;  %v697_v29 = vld [vmem:[%s11504_s25 + $0xd10] sm:$0xff] }
 0x12a   : > { %6862 = vmatprep.subr.bf16.mxu1 %v10219_v31  ;;  %v10122_v31 = vcombine.low %v457_v18, %v465_v19  ;;  %v10363_v34 = vcombine.high %v697_v29, %v705_v30  ;;  %v425_v49 = vld [vmem:[%s11504_s25 + $0x490] sm:$0xff]  ;;  %v10362_v42 = vcombine.low %v697_v29, %v705_v30 }
 0x12b   : > { %6822 = vmatpush1.bf16.msra.mxu0 %v9962_v37  ;;  %v433_v37 = vld [vmem:[%s11504_s25 + $0x4d0] sm:$0xff] }
 0x12c   : > { %6823 = vmatprep.subr.bf16.mxu0 %v9947_v39  ;;  %v689_v39 = vld [vmem:[%s11504_s25 + $0xcd0] sm:$0xff]  ;;  %v10091_v43 = vcombine.high %v425_v49, %v433_v37 }
 0x12d   : > { %6863 = vmatpush1.bf16.msra.mxu1 %v10218_v38  ;;  %v681_v38 = vld [vmem:[%s11504_s25 + $0xc90] sm:$0xff] }
 0x12e   : > { %6864 = vmatprep.subr.bf16.mxu1 %v10203_v41  ;;  %v10106_v41 = vcombine.low %v441_v26, %v449_v27  ;;  %v10347_v6 = vcombine.high %v681_v38, %v689_v39  ;;  %v409_v44 = vld [vmem:[%s11504_s25 + $0x410] sm:$0xff]  ;;  %v10346_v52 = vcombine.low %v681_v38, %v689_v39 }
 0x12f   : > { %6824 = vmatpush1.bf16.msra.mxu0 %v9946_v47  ;;  %v417_v47 = vld [vmem:[%s11504_s25 + $0x450] sm:$0xff] }
 0x130   : > { %6825 = vmatprep.subr.bf16.mxu0 %v10187_v50  ;;  %v673_v50 = vld [vmem:[%s11504_s25 + $0xc50] sm:$0xff]  ;;  %v10075_v53 = vcombine.high %v409_v44, %v417_v47 }
 0x131   : > { %6865 = vmatpush1.bf16.msra.mxu1 %v10202_v48  ;;  %v665_v48 = vld [vmem:[%s11504_s25 + $0xc10] sm:$0xff] }
 0x132   : > { %6866 = vmatprep.subr.bf16.mxu1 %v10443_v51  ;;  %v10090_v51 = vcombine.low %v425_v49, %v433_v37  ;;  %v10331_v54 = vcombine.high %v665_v48, %v673_v50  ;;  %v905_v58 = vld [vmem:[%s11504_s25 + $0x1390] sm:$0xff]  ;;  %v10330_v63 = vcombine.low %v665_v48, %v673_v50 }
 0x133   : > { %6826 = vmatpush2.bf16.msra.mxu0 %v10186_v59  ;;  %v913_v59 = vld [vmem:[%s11504_s25 + $0x13d0] sm:$0xff] }
 0x134   : > { %6827 = vmatprep.subr.bf16.mxu0 %v10171_v61  ;;  %v1169_v61 = vld [vmem:[%s11504_s25 + $0x1bd0] sm:$0xff]  ;;  %v10571_v0 = vcombine.high %v905_v58, %v913_v59 }
 0x135   : > { %6867 = vmatpush2.bf16.msra.mxu1 %v10442_v60  ;;  %v1161_v60 = vld [vmem:[%s11504_s25 + $0x1b90] sm:$0xff] }
 0x136   : > { %6868 = vmatprep.subr.bf16.mxu1 %v10427_v62  ;;  %v10074_v62 = vcombine.low %v409_v44, %v417_v47  ;;  %v10827_v1 = vcombine.high %v1161_v60, %v1169_v61  ;;  %v889_v2 = vld [vmem:[%s11504_s25 + $0x1310] sm:$0xff]  ;;  %v10826_v9 = vcombine.low %v1161_v60, %v1169_v61 }
 0x137   : > { %6828 = vmatpush2.bf16.msra.mxu0 %v10170_v4  ;;  %v897_v4 = vld [vmem:[%s11504_s25 + $0x1350] sm:$0xff] }
 0x138   : > { %6829 = vmatprep.subr.bf16.mxu0 %v10155_v7  ;;  %v1153_v7 = vld [vmem:[%s11504_s25 + $0x1b50] sm:$0xff]  ;;  %v10555_v10 = vcombine.high %v889_v2, %v897_v4  ;;  %v10554_v20 = vcombine.low %v889_v2, %v897_v4 }
 0x139   : > { %6869 = vmatpush2.bf16.msra.mxu1 %v10426_v5  ;;  %v1145_v5 = vld [vmem:[%s11504_s25 + $0x1b10] sm:$0xff] }
 0x13a   : > { %6870 = vmatprep.subr.bf16.mxu1 %v10411_v8  ;;  %v10570_v8 = vcombine.low %v905_v58, %v913_v59  ;;  %v10811_v11 = vcombine.high %v1145_v5, %v1153_v7  ;;  %v873_v12 = vld [vmem:[%s11504_s25 + $0x1290] sm:$0xff] }
 0x13b   : > { %6830 = vmatpush2.bf16.msra.mxu0 %v10154_v13  ;;  %v881_v13 = vld [vmem:[%s11504_s25 + $0x12d0] sm:$0xff] }
 0x13c   : > { %6831 = vmatprep.subr.bf16.mxu0 %v10139_v16  ;;  %v1129_v16 = vld [vmem:[%s11504_s25 + $0x1a90] sm:$0xff] }
 0x13d   : > { %6871 = vmatpush2.bf16.msra.mxu1 %v10410_v14  ;;  %v857_v27 = vld [vmem:[%s11504_s25 + $0x1210] sm:$0xff] }
 0x13e   : > { %6872 = vmatprep.subr.bf16.mxu1 %v10395_v17  ;;  %v1137_v17 = vld [vmem:[%s11504_s25 + $0x1ad0] sm:$0xff] }
 0x13f   : > { %6832 = vmatpush2.bf16.msra.mxu0 %v10138_v22  ;;  %v10810_v22 = vcombine.low %v1145_v5, %v1153_v7  ;;  %v865_v29 = vld [vmem:[%s11504_s25 + $0x1250] sm:$0xff]  ;;  %v10794_v37 = vcombine.low %v1129_v16, %v1137_v17 }
 0x140   : > { %6833 = vmatprep.subr.bf16.mxu0 %v10123_v24  ;;  %v10523_v38 = vcombine.high %v857_v27, %v865_v29  ;;  %v1105_v44 = vld [vmem:[%s11504_s25 + $0x19d0] sm:$0xff]  ;;  %v10522_v47 = vcombine.low %v857_v27, %v865_v29 }
 0x141   : > { %6873 = vmatpush2.bf16.msra.mxu1 %v10394_v23  ;;  %v10539_v23 = vcombine.high %v873_v12, %v881_v13  ;;  %v1089_v58 = vld [vmem:[%s11504_s25 + $0x1950] sm:$0xff] }
 0x142   : > { %6874 = vmatprep.subr.bf16.mxu1 %v10379_v25  ;;  %v1073_v2 = vld [vmem:[%s11504_s25 + $0x18d0] sm:$0xff] }
 0x143   : > { %6834 = vmatpush2.bf16.msra.mxu0 %v10122_v31  ;;  %v1113_v31 = vld [vmem:[%s11504_s25 + $0x1a10] sm:$0xff] }
 0x144   : > { %6835 = vmatprep.subr.bf16.mxu0 %v10107_v33  ;;  %v1025_v27 = vld [vmem:[%s11504_s25 + $0x1750] sm:$0xff] }
 0x145   : > { %6875 = vmatpush2.bf16.msra.mxu1 %v10378_v32  ;;  %v1121_v32 = vld [vmem:[%s11504_s25 + $0x1a50] sm:$0xff] }
 0x146   : > { %6876 = vmatprep.subr.bf16.mxu1 %v10363_v34  ;;  %v10778_v48 = vcombine.low %v1113_v31, %v1121_v32  ;;  %v1273_v29 = vld [vmem:[%s11504_s25 + $0x1f10] sm:$0xff] }
 0x147   : > { %6836 = vmatpush2.bf16.msra.mxu0 %v10106_v41  ;;  %v10779_v41 = vcombine.high %v1113_v31, %v1121_v32 }
 0x148   : > { %6837 = vmatprep.subr.bf16.mxu0 %v10091_v43  ;;  %v849_v43 = vld [vmem:[%s11504_s25 + $0x11d0] sm:$0xff] }
 0x149   : > { %6877 = vmatpush2.bf16.msra.mxu1 %v10362_v42  ;;  %v841_v42 = vld [vmem:[%s11504_s25 + $0x1190] sm:$0xff] }
 0x14a   : > { %6878 = vmatprep.subr.bf16.mxu1 %v10347_v6  ;;  %v1097_v6 = vld [vmem:[%s11504_s25 + $0x1990] sm:$0xff]  ;;  %v10507_v50 = vcombine.high %v841_v42, %v849_v43  ;;  %v10506_v59 = vcombine.low %v841_v42, %v849_v43 }
 0x14b   : > { %6838 = vmatpush2.bf16.msra.mxu0 %v10090_v51  ;;  %v10763_v51 = vcombine.high %v1097_v6, %v1105_v44  ;;  %v10762_v60 = vcombine.low %v1097_v6, %v1105_v44  ;;  %v985_v44 = vld [vmem:[%s11504_s25 + $0x1610] sm:$0xff] }
 0x14c   : > { %6839 = vmatprep.subr.bf16.mxu0 %v10075_v53  ;;  %v833_v53 = vld [vmem:[%s11504_s25 + $0x1150] sm:$0xff] }
 0x14d   : > { %6879 = vmatpush2.bf16.msra.mxu1 %v10346_v52  ;;  %v825_v52 = vld [vmem:[%s11504_s25 + $0x1110] sm:$0xff] }
 0x14e   : > { %6880 = vmatprep.subr.bf16.mxu1 %v10331_v54  ;;  %v1081_v54 = vld [vmem:[%s11504_s25 + $0x1910] sm:$0xff]  ;;  %v10491_v61 = vcombine.high %v825_v52, %v833_v53  ;;  %v10490_v4 = vcombine.low %v825_v52, %v833_v53 }
 0x14f   : > { %6840 = vmatpush2.bf16.msra.mxu0 %v10074_v62  ;;  %v10747_v62 = vcombine.high %v1081_v54, %v1089_v58  ;;  %v10746_v5 = vcombine.low %v1081_v54, %v1089_v58  ;;  %v969_v58 = vld [vmem:[%s11504_s25 + $0x1590] sm:$0xff] }
 0x150   : > { %6891 = vmatprep.subr.bf16.mxu0 %v10571_v0  ;;  %v817_v0 = vld [vmem:[%s11504_s25 + $0x10d0] sm:$0xff] }
 0x151   : > { %6881 = vmatpush2.bf16.msra.mxu1 %v10330_v63  ;;  %v809_v63 = vld [vmem:[%s11504_s25 + $0x1090] sm:$0xff] }
 0x152   : > { %6932 = vmatprep.subr.bf16.mxu1 %v10827_v1  ;;  %v6597_v14 = vpop.f32.mrf.mxu0  ;;  %6842 = vmatmul.mubr.bf16.vlgmr.msra.gmra.mxu0 %v11602_v28  ;;  %v1065_v1 = vld [vmem:[%s11504_s25 + $0x1890] sm:$0xff]  ;;  %v10475_v7 = vcombine.high %v809_v63, %v817_v0 }
 0x153   : > { %v6598_v18 = vadd.f32 %v6597_v14, %v11833_v46  ;;  %6892 = vmatpush1.bf16.msra.mxu0 %v10570_v8  ;;  %v10795_v46 = vcombine.high %v1129_v16, %v1137_v17  ;;  %6923 = vmatprep.mubr.bf16.mxu0 %v11609_v36  ;;  %v10731_v8 = vcombine.high %v1065_v1, %v1073_v2 }
 0x154   : > { %v6638_v19 = vpop.f32.mrf.mxu1  ;;  %6883 = vmatmul.mubr.bf16.vlgmr.msra.gmra.mxu1 %v11613_v15  ;;  %v6599_v21 = vpop.f32.mrf.mxu0  ;;  %6893 = vmatprep.subr.bf16.mxu0 %v10555_v10  ;;  %v801_v10 = vld [vmem:[%s11504_s25 + $0x1050] sm:$0xff]  ;;  %v10730_v14 = vcombine.low %v1065_v1, %v1073_v2 }
 0x155   : > { %6933 = vmatpush1.bf16.msra.mxu1 %v10826_v9  ;;  %v11906_v24 = vadd.f32 %v6638_v19, %v6598_v18  ;;  %v6600_v25 = vadd.f32 %v6599_v21, %v11838_v57  ;;  %6964 = vmatprep.mubr.bf16.mxu1 %v11622_v45  ;;  %v10538_v57 = vcombine.low %v873_v12, %v881_v13  ;;  %v793_v9 = vld [vmem:[%s11504_s25 + $0x1010] sm:$0xff] }
 0x156   : > { %v6640_v26 = vpop.f32.mrf.mxu1  ;;  %6934 = vmatprep.subr.bf16.mxu1 %v10811_v11  ;;  %v6601_v30 = vpop.f32.mrf.mxu0  ;;  %v1049_v11 = vld [vmem:[%s11504_s25 + $0x1810] sm:$0xff]  ;;  %v10474_v13 = vcombine.low %v809_v63, %v817_v0  ;;  %v10459_v16 = vcombine.high %v793_v9, %v801_v10 }
 0x157   : > { %v11915_v33 = vadd.f32 %v6640_v26, %v6600_v25  ;;  %6894 = vmatpush1.bf16.msra.mxu0 %v10554_v20  ;;  %v1057_v12 = vld [vmem:[%s11504_s25 + $0x1850] sm:$0xff] }
 0x158   : > { %v6642_v34 = vpop.f32.mrf.mxu1  ;;  %v6602_v49 = vpop.f32.mrf.mxu0  ;;  %6895 = vmatprep.subr.bf16.mxu0 %v10539_v23  ;;  %v10715_v17 = vcombine.high %v1049_v11, %v1057_v12  ;;  %v1033_v18 = vld [vmem:[%s11504_s25 + $0x1790] sm:$0xff]  ;;  %v10714_v23 = vcombine.low %v1049_v11, %v1057_v12 }
 0x159   : > { %6935 = vmatpush1.bf16.msra.mxu1 %v10810_v22  ;;  %v1041_v19 = vld [vmem:[%s11504_s25 + $0x17d0] sm:$0xff]  ;;  %v10458_v22 = vcombine.low %v793_v9, %v801_v10 }
 0x15a   : > { %v6643_v39 = vpop.f32.mrf.mxu1  ;;  %6936 = vmatprep.subr.bf16.mxu1 %v10795_v46  ;;  %v1289_v20 = vld [vmem:[%s11504_s25 + $0x1f90] sm:$0xff]  ;;  %v10699_v25 = vcombine.high %v1033_v18, %v1041_v19  ;;  %v10698_v31 = vcombine.low %v1033_v18, %v1041_v19 }
 0x15b   : > { %6896 = vmatpush1.bf16.msra.mxu0 %v10538_v57  ;;  %v1297_v21 = vld [vmem:[%s11504_s25 + $0x1fd0] sm:$0xff] }
 0x15c   : > { %6897 = vmatprep.subr.bf16.mxu0 %v10523_v38  ;;  %v10955_v26 = vcombine.high %v1289_v20, %v1297_v21  ;;  %v1017_v46 = vld [vmem:[%s11504_s25 + $0x1710] sm:$0xff]  ;;  %v10954_v32 = vcombine.low %v1289_v20, %v1297_v21 }
 0x15d   : > { %6937 = vmatpush1.bf16.msra.mxu1 %v10794_v37  ;;  %v1281_v30 = vld [vmem:[%s11504_s25 + $0x1f50] sm:$0xff]  ;;  %v10683_v34 = vcombine.high %v1017_v46, %v1025_v27 }
 0x15e   : > { %6938 = vmatprep.subr.bf16.mxu1 %v10779_v41  ;;  %v10939_v57 = vcombine.high %v1273_v29, %v1281_v30  ;;  %v1001_v49 = vld [vmem:[%s11504_s25 + $0x1690] sm:$0xff]  ;;  %v10682_v41 = vcombine.low %v1017_v46, %v1025_v27  ;;  %v10938_v42 = vcombine.low %v1273_v29, %v1281_v30  ;;  %v394_v30 = vld [vmem:[%s11504_s25 + $0x398] sm:$0xff] }
 0x15f   : > { %6898 = vmatpush1.bf16.msra.mxu0 %v10522_v47  ;;  %v1009_v37 = vld [vmem:[%s11504_s25 + $0x16d0] sm:$0xff] }
 0x160   : > { %6899 = vmatprep.subr.bf16.mxu0 %v10507_v50  ;;  %v1257_v38 = vld [vmem:[%s11504_s25 + $0x1e90] sm:$0xff]  ;;  %v10667_v43 = vcombine.high %v1001_v49, %v1009_v37 }
 0x161   : > { %6939 = vmatpush1.bf16.msra.mxu1 %v10778_v48  ;;  %v1265_v39 = vld [vmem:[%s11504_s25 + $0x1ed0] sm:$0xff] }
 0x162   : > { %6940 = vmatprep.subr.bf16.mxu1 %v10763_v51  ;;  %v10923_v6 = vcombine.high %v1257_v38, %v1265_v39  ;;  %v993_v47 = vld [vmem:[%s11504_s25 + $0x1650] sm:$0xff]  ;;  %v10666_v51 = vcombine.low %v1001_v49, %v1009_v37  ;;  %v10922_v52 = vcombine.low %v1257_v38, %v1265_v39  ;;  %v378_v39 = vld [vmem:[%s11504_s25 + $0x318] sm:$0xff] }
 0x163   : > { %6900 = vmatpush1.bf16.msra.mxu0 %v10506_v59  ;;  %v1241_v48 = vld [vmem:[%s11504_s25 + $0x1e10] sm:$0xff]  ;;  %v10651_v53 = vcombine.high %v985_v44, %v993_v47 }
 0x164   : > { %6901 = vmatprep.subr.bf16.mxu0 %v10491_v61  ;;  %v1249_v50 = vld [vmem:[%s11504_s25 + $0x1e50] sm:$0xff] }
 0x165   : > { %6941 = vmatpush1.bf16.msra.mxu1 %v10762_v60  ;;  %v10907_v54 = vcombine.high %v1241_v48, %v1249_v50  ;;  %v977_v59 = vld [vmem:[%s11504_s25 + $0x15d0] sm:$0xff]  ;;  %v10906_v63 = vcombine.low %v1241_v48, %v1249_v50  ;;  %v362_v50 = vld [vmem:[%s11504_s25 + $0x298] sm:$0xff] }
 0x166   : > { %6942 = vmatprep.subr.bf16.mxu1 %v10747_v62  ;;  %v1225_v60 = vld [vmem:[%s11504_s25 + $0x1d90] sm:$0xff]  ;;  %v10650_v62 = vcombine.low %v985_v44, %v993_v47  ;;  %v10635_v0 = vcombine.high %v969_v58, %v977_v59 }
 0x167   : > { %6902 = vmatpush1.bf16.msra.mxu0 %v10490_v4  ;;  %v1233_v61 = vld [vmem:[%s11504_s25 + $0x1dd0] sm:$0xff] }
 0x168   : > { %6903 = vmatprep.subr.bf16.mxu0 %v10475_v7  ;;  %v10891_v1 = vcombine.high %v1225_v60, %v1233_v61  ;;  %v953_v2 = vld [vmem:[%s11504_s25 + $0x1510] sm:$0xff]  ;;  %v10890_v9 = vcombine.low %v1225_v60, %v1233_v61 }
 0x169   : > { %6943 = vmatpush1.bf16.msra.mxu1 %v10746_v5  ;;  %v961_v4 = vld [vmem:[%s11504_s25 + $0x1550] sm:$0xff] }
 0x16a   : > { %6944 = vmatprep.subr.bf16.mxu1 %v10731_v8  ;;  %v1209_v5 = vld [vmem:[%s11504_s25 + $0x1d10] sm:$0xff]  ;;  %v10634_v8 = vcombine.low %v969_v58, %v977_v59  ;;  %v10619_v10 = vcombine.high %v953_v2, %v961_v4 }
 0x16b   : > { %6904 = vmatpush1.bf16.msra.mxu0 %v10474_v13  ;;  %v1217_v7 = vld [vmem:[%s11504_s25 + $0x1d50] sm:$0xff] }
 0x16c   : > { %6905 = vmatprep.subr.bf16.mxu0 %v10459_v16  ;;  %v10875_v11 = vcombine.high %v1209_v5, %v1217_v7  ;;  %v937_v12 = vld [vmem:[%s11504_s25 + $0x1490] sm:$0xff]  ;;  %v10874_v18 = vcombine.low %v1209_v5, %v1217_v7 }
 0x16d   : > { %6945 = vmatpush1.bf16.msra.mxu1 %v10730_v14  ;;  %v945_v13 = vld [vmem:[%s11504_s25 + $0x14d0] sm:$0xff] }
 0x16e   : > { %6946 = vmatprep.subr.bf16.mxu1 %v10715_v17  ;;  %v1193_v14 = vld [vmem:[%s11504_s25 + $0x1c90] sm:$0xff]  ;;  %v10618_v17 = vcombine.low %v953_v2, %v961_v4  ;;  %v10603_v19 = vcombine.high %v937_v12, %v945_v13  ;;  %v346_v2 = vld [vmem:[%s11504_s25 + $0x218] sm:$0xff] }
 0x16f   : > { %6906 = vmatpush1.bf16.msra.mxu0 %v10458_v22  ;;  %v1201_v16 = vld [vmem:[%s11504_s25 + $0x1cd0] sm:$0xff]  ;;  %v354_v4 = vld [vmem:[%s11504_s25 + $0x258] sm:$0xff] }
 0x170   : > { %6907 = vmatprep.subr.bf16.mxu0 %v10699_v25  ;;  %v10859_v20 = vcombine.high %v1193_v14, %v1201_v16  ;;  %v921_v21 = vld [vmem:[%s11504_s25 + $0x1410] sm:$0xff]  ;;  %v10858_v46 = vcombine.low %v1193_v14, %v1201_v16  ;;  %v10013_v14 = vcombine.high %v346_v2, %v354_v4 }
 0x171   : > { %6947 = vmatpush1.bf16.msra.mxu1 %v10714_v23  ;;  %v929_v22 = vld [vmem:[%s11504_s25 + $0x1450] sm:$0xff] }
 0x172   : > { %6948 = vmatprep.subr.bf16.mxu1 %v10955_v26  ;;  %v1177_v23 = vld [vmem:[%s11504_s25 + $0x1c10] sm:$0xff]  ;;  %v10602_v26 = vcombine.low %v937_v12, %v945_v13  ;;  %v10587_v27 = vcombine.high %v921_v21, %v929_v22 }
 0x173   : > { %6908 = vmatpush2.bf16.msra.mxu0 %v10698_v31  ;;  %v1185_v25 = vld [vmem:[%s11504_s25 + $0x1c50] sm:$0xff]  ;;  %v402_v31 = vld [vmem:[%s11504_s25 + $0x3d8] sm:$0xff] }
 0x174   : > { %6909 = vmatprep.subr.bf16.mxu0 %v10683_v34  ;;  %v10843_v29 = vcombine.high %v1177_v23, %v1185_v25  ;;  %v658_v34 = vld [vmem:[%s11504_s25 + $0xbd8] sm:$0xff]  ;;  %v10842_v49 = vcombine.low %v1177_v23, %v1185_v25  ;;  %v10061_v37 = vcombine.high %v394_v30, %v402_v31 }
 0x175   : > { %6949 = vmatpush2.bf16.msra.mxu1 %v10954_v32  ;;  %v650_v32 = vld [vmem:[%s11504_s25 + $0xb98] sm:$0xff] }
 0x176   : > { %6950 = vmatprep.subr.bf16.mxu1 %v10939_v57  ;;  %v10586_v57 = vcombine.low %v921_v21, %v929_v22  ;;  %v10317_v38 = vcombine.high %v650_v32, %v658_v34  ;;  %v10316_v44 = vcombine.low %v650_v32, %v658_v34  ;;  %v594_v21 = vld [vmem:[%s11504_s25 + $0x9d8] sm:$0xff]  ;;  %v10012_v22 = vcombine.low %v346_v2, %v354_v4 }
 0x177   : > { %6910 = vmatpush2.bf16.msra.mxu0 %v10682_v41  ;;  %v386_v41 = vld [vmem:[%s11504_s25 + $0x358] sm:$0xff] }
 0x178   : > { %6911 = vmatprep.subr.bf16.mxu0 %v10667_v43  ;;  %v642_v43 = vld [vmem:[%s11504_s25 + $0xb58] sm:$0xff]  ;;  %v10045_v47 = vcombine.high %v378_v39, %v386_v41  ;;  %v10044_v59 = vcombine.low %v378_v39, %v386_v41 }
 0x179   : > { %6951 = vmatpush2.bf16.msra.mxu1 %v10938_v42  ;;  %v634_v42 = vld [vmem:[%s11504_s25 + $0xb18] sm:$0xff] }
 0x17a   : > { %6952 = vmatprep.subr.bf16.mxu1 %v10923_v6  ;;  %v10060_v6 = vcombine.low %v394_v30, %v402_v31  ;;  %v10301_v48 = vcombine.high %v634_v42, %v642_v43  ;;  %v578_v30 = vld [vmem:[%s11504_s25 + $0x958] sm:$0xff] }
 0x17b   : > { %6912 = vmatpush2.bf16.msra.mxu0 %v10666_v51  ;;  %v370_v51 = vld [vmem:[%s11504_s25 + $0x2d8] sm:$0xff] }
 0x17c   : > { %6913 = vmatprep.subr.bf16.mxu0 %v10651_v53  ;;  %v618_v53 = vld [vmem:[%s11504_s25 + $0xa98] sm:$0xff] }
 0x17d   : > { %6953 = vmatpush2.bf16.msra.mxu1 %v10922_v52  ;;  %v562_v39 = vld [vmem:[%s11504_s25 + $0x8d8] sm:$0xff] }
 0x17e   : > { %6954 = vmatprep.subr.bf16.mxu1 %v10907_v54  ;;  %v626_v54 = vld [vmem:[%s11504_s25 + $0xad8] sm:$0xff] }
 0x17f   : > { %6914 = vmatpush2.bf16.msra.mxu0 %v10650_v62  ;;  %v10300_v62 = vcombine.low %v634_v42, %v642_v43  ;;  %v10284_v13 = vcombine.low %v618_v53, %v626_v54  ;;  %v506_v4 = vld [vmem:[%s11504_s25 + $0x718] sm:$0xff] }
 0x180   : > { %6915 = vmatprep.subr.bf16.mxu0 %v10635_v0 }
 0x181   : > { %6955 = vmatpush2.bf16.msra.mxu1 %v10906_v63  ;;  %v10029_v63 = vcombine.high %v362_v50, %v370_v51 }
 0x182   : > { %6956 = vmatprep.subr.bf16.mxu1 %v10891_v1  ;;  %v10285_v1 = vcombine.high %v618_v53, %v626_v54 }
 0x183   : > { %6916 = vmatpush2.bf16.msra.mxu0 %v10634_v8  ;;  %v602_v8 = vld [vmem:[%s11504_s25 + $0xa18] sm:$0xff] }
 0x184   : > { %6917 = vmatprep.subr.bf16.mxu0 %v10619_v10 }
 0x185   : > { %6957 = vmatpush2.bf16.msra.mxu1 %v10890_v9  ;;  %v610_v9 = vld [vmem:[%s11504_s25 + $0xa58] sm:$0xff] }
 0x186   : > { %6958 = vmatprep.subr.bf16.mxu1 %v10875_v11  ;;  %v10028_v11 = vcombine.low %v362_v50, %v370_v51  ;;  %v10268_v23 = vcombine.low %v602_v8, %v610_v9  ;;  %v546_v50 = vld [vmem:[%s11504_s25 + $0x858] sm:$0xff] }
 0x187   : > { %6918 = vmatpush2.bf16.msra.mxu0 %v10618_v17  ;;  %v10269_v17 = vcombine.high %v602_v8, %v610_v9  ;;  %v762_v8 = vld [vmem:[%s11504_s25 + $0xf18] sm:$0xff] }
 0x188   : > { %6919 = vmatprep.subr.bf16.mxu0 %v10603_v19  ;;  %v338_v19 = vld [vmem:[%s11504_s25 + $0x1d8] sm:$0xff] }
 0x189   : > { %6959 = vmatpush2.bf16.msra.mxu1 %v10874_v18  ;;  %v330_v18 = vld [vmem:[%s11504_s25 + $0x198] sm:$0xff] }
 0x18a   : > { %6960 = vmatprep.subr.bf16.mxu1 %v10859_v20  ;;  %v586_v20 = vld [vmem:[%s11504_s25 + $0x998] sm:$0xff]  ;;  %v9997_v25 = vcombine.high %v330_v18, %v338_v19  ;;  %v9996_v31 = vcombine.low %v330_v18, %v338_v19 }
 0x18b   : > { %6920 = vmatpush2.bf16.msra.mxu0 %v10602_v26  ;;  %v10253_v26 = vcombine.high %v586_v20, %v594_v21  ;;  %v10252_v32 = vcombine.low %v586_v20, %v594_v21  ;;  %v770_v9 = vld [vmem:[%s11504_s25 + $0xf58] sm:$0xff] }
 0x18c   : > { %6921 = vmatprep.subr.bf16.mxu0 %v10587_v27  ;;  %v322_v27 = vld [vmem:[%s11504_s25 + $0x158] sm:$0xff]  ;;  %v10428_v20 = vcombine.low %v762_v8, %v770_v9 }
 0x18d   : > { %6961 = vmatpush2.bf16.msra.mxu1 %v10858_v46  ;;  %v314_v46 = vld [vmem:[%s11504_s25 + $0x118] sm:$0xff] }
 0x18e   : > { %6962 = vmatprep.subr.bf16.mxu1 %v10843_v29  ;;  %v570_v29 = vld [vmem:[%s11504_s25 + $0x918] sm:$0xff]  ;;  %v9981_v34 = vcombine.high %v314_v46, %v322_v27  ;;  %v9980_v41 = vcombine.low %v314_v46, %v322_v27 }
 0x18f   : > { %6922 = vmatpush2.bf16.msra.mxu0 %v10586_v57  ;;  %v10237_v57 = vcombine.high %v570_v29, %v578_v30  ;;  %v10236_v42 = vcombine.low %v570_v29, %v578_v30  ;;  %v754_v18 = vld [vmem:[%s11504_s25 + $0xed8] sm:$0xff] }
 0x190   : > { %6973 = vmatprep.subr.bf16.mxu0 %v10061_v37  ;;  %v306_v37 = vld [vmem:[%s11504_s25 + $0xd8] sm:$0xff] }
 0x191   : > { %6963 = vmatpush2.bf16.msra.mxu1 %v10842_v49  ;;  %v298_v49 = vld [vmem:[%s11504_s25 + $0x98] sm:$0xff] }
 0x192   : > { %7014 = vmatprep.subr.bf16.mxu1 %v10317_v38  ;;  %v6679_v52 = vpop.f32.mrf.mxu0  ;;  %6924 = vmatmul.mubr.bf16.vlgmr.msra.gmra.mxu0 %v11552_v55  ;;  %v554_v38 = vld [vmem:[%s11504_s25 + $0x898] sm:$0xff]  ;;  %v9965_v43 = vcombine.high %v298_v49, %v306_v37  ;;  %v9964_v51 = vcombine.low %v298_v49, %v306_v37 }
 0x193   : > { %6974 = vmatpush1.bf16.msra.mxu0 %v10060_v6  ;;  %7005 = vmatprep.mubr.bf16.mxu0 %v11531_v35  ;;  %v10221_v6 = vcombine.high %v554_v38, %v562_v39  ;;  %v738_v46 = vld [vmem:[%s11504_s25 + $0xe58] sm:$0xff] }
 0x194   : > { %v6720_v58 = vpop.f32.mrf.mxu1  ;;  %6965 = vmatmul.mubr.bf16.vlgmr.msra.gmra.mxu1 %v11689_v56  ;;  %v6681_v61 = vpop.f32.mrf.mxu0  ;;  %6975 = vmatprep.subr.bf16.mxu0 %v10045_v47  ;;  %v290_v47 = vld [vmem:[%s11504_s25 + $0x58] sm:$0xff] }
 0x195   : > { %v11979_v60 = vadd.f32 %v6720_v58, %v6679_v52  ;;  %7015 = vmatpush1.bf16.msra.mxu1 %v10316_v44  ;;  %7046 = vmatprep.mubr.bf16.mxu1 %v11535_v40  ;;  %v282_v44 = vld [vmem:[%s11504_s25 + $0x18] sm:$0xff]  ;;  %v10220_v52 = vcombine.low %v554_v38, %v562_v39 }
 0x196   : > { %v6722_v0 = vpop.f32.mrf.mxu1  ;;  %7016 = vmatprep.subr.bf16.mxu1 %v10301_v48  ;;  %v6683_v7 = vpop.f32.mrf.mxu0  ;;  %v538_v48 = vld [vmem:[%s11504_s25 + $0x818] sm:$0xff]  ;;  %v9949_v53 = vcombine.high %v282_v44, %v290_v47 }
 0x197   : > { %v11984_v5 = vadd.f32 %v6722_v0, %v6681_v61  ;;  %6976 = vmatpush1.bf16.msra.mxu0 %v10044_v59  ;;  %v10205_v54 = vcombine.high %v538_v48, %v546_v50  ;;  %v522_v58 = vld [vmem:[%s11504_s25 + $0x798] sm:$0xff]  ;;  %v10204_v0 = vcombine.low %v538_v48, %v546_v50 }
 0x198   : > { %v6724_v10 = vpop.f32.mrf.mxu1  ;;  %v6684_v12 = vpop.f32.mrf.mxu0  ;;  %6977 = vmatprep.subr.bf16.mxu0 %v10029_v63  ;;  %v530_v59 = vld [vmem:[%s11504_s25 + $0x7d8] sm:$0xff]  ;;  %v9948_v63 = vcombine.low %v282_v44, %v290_v47 }
 0x199   : > { %7017 = vmatpush1.bf16.msra.mxu1 %v10300_v62  ;;  %v778_v61 = vld [vmem:[%s11504_s25 + $0xf98] sm:$0xff]  ;;  %v10188_v10 = vcombine.low %v522_v58, %v530_v59 }
 0x19a   : > { %v6725_v16 = vpop.f32.mrf.mxu1  ;;  %7018 = vmatprep.subr.bf16.mxu1 %v10285_v1  ;;  %v786_v62 = vld [vmem:[%s11504_s25 + $0xfd8] sm:$0xff]  ;;  %v10189_v1 = vcombine.high %v522_v58, %v530_v59 }
 0x19b   : > { %6978 = vmatpush1.bf16.msra.mxu0 %v10028_v11  ;;  %v10445_v2 = vcombine.high %v778_v61, %v786_v62  ;;  %v514_v7 = vld [vmem:[%s11504_s25 + $0x758] sm:$0xff]  ;;  %v10444_v11 = vcombine.low %v778_v61, %v786_v62 }
 0x19c   : > { %6979 = vmatprep.subr.bf16.mxu0 %v10013_v14  ;;  %v10173_v12 = vcombine.high %v506_v4, %v514_v7  ;;  %v490_v14 = vld [vmem:[%s11504_s25 + $0x698] sm:$0xff]  ;;  %v10172_v19 = vcombine.low %v506_v4, %v514_v7 }
 0x19d   : > { %7019 = vmatpush1.bf16.msra.mxu1 %v10284_v13  ;;  %v10429_v13 = vcombine.high %v762_v8, %v770_v9  ;;  %v498_v16 = vld [vmem:[%s11504_s25 + $0x6d8] sm:$0xff] }
 0x19e   : > { %7020 = vmatprep.subr.bf16.mxu1 %v10269_v17  ;;  %v746_v17 = vld [vmem:[%s11504_s25 + $0xe98] sm:$0xff]  ;;  %v10157_v21 = vcombine.high %v490_v14, %v498_v16  ;;  %v10156_v27 = vcombine.low %v490_v14, %v498_v16 }
 0x19f   : > { %6980 = vmatpush1.bf16.msra.mxu0 %v10012_v22  ;;  %v10413_v22 = vcombine.high %v746_v17, %v754_v18  ;;  %v10412_v29 = vcombine.low %v746_v17, %v754_v18  ;;  %v722_v49 = vld [vmem:[%s11504_s25 + $0xdd8] sm:$0xff] }
 0x1a0   : > { %6981 = vmatprep.subr.bf16.mxu0 %v9997_v25  ;;  %v482_v25 = vld [vmem:[%s11504_s25 + $0x658] sm:$0xff] }
 0x1a1   : > { %7021 = vmatpush1.bf16.msra.mxu1 %v10268_v23  ;;  %v474_v23 = vld [vmem:[%s11504_s25 + $0x618] sm:$0xff] }
 0x1a2   : > { %7022 = vmatprep.subr.bf16.mxu1 %v10253_v26  ;;  %v730_v26 = vld [vmem:[%s11504_s25 + $0xe18] sm:$0xff]  ;;  %v10141_v30 = vcombine.high %v474_v23, %v482_v25  ;;  %v10140_v37 = vcombine.low %v474_v23, %v482_v25 }
 0x1a3   : > { %6982 = vmatpush1.bf16.msra.mxu0 %v9996_v31  ;;  %v10397_v31 = vcombine.high %v730_v26, %v738_v46  ;;  %v10396_v38 = vcombine.low %v730_v26, %v738_v46  ;;  %v706_v44 = vld [vmem:[%s11504_s25 + $0xd58] sm:$0xff] }
 0x1a4   : > { %6983 = vmatprep.subr.bf16.mxu0 %v9981_v34  ;;  %v466_v34 = vld [vmem:[%s11504_s25 + $0x5d8] sm:$0xff] }
 0x1a5   : > { %7023 = vmatpush1.bf16.msra.mxu1 %v10252_v32  ;;  %v458_v32 = vld [vmem:[%s11504_s25 + $0x598] sm:$0xff] }
 0x1a6   : > { %7024 = vmatprep.subr.bf16.mxu1 %v10237_v57  ;;  %v714_v57 = vld [vmem:[%s11504_s25 + $0xd98] sm:$0xff]  ;;  %v10125_v39 = vcombine.high %v458_v32, %v466_v34  ;;  %v10124_v47 = vcombine.low %v458_v32, %v466_v34 }
 0x1a7   : > { %6984 = vmatpush1.bf16.msra.mxu0 %v9980_v41  ;;  %v10381_v41 = vcombine.high %v714_v57, %v722_v49  ;;  %v10380_v48 = vcombine.low %v714_v57, %v722_v49  ;;  %v690_v58 = vld [vmem:[%s11504_s25 + $0xcd8] sm:$0xff] }
 0x1a8   : > { %6985 = vmatprep.subr.bf16.mxu0 %v9965_v43  ;;  %v450_v43 = vld [vmem:[%s11504_s25 + $0x558] sm:$0xff] }
 0x1a9   : > { %7025 = vmatpush1.bf16.msra.mxu1 %v10236_v42  ;;  %v442_v42 = vld [vmem:[%s11504_s25 + $0x518] sm:$0xff] }
 0x1aa   : > { %7026 = vmatprep.subr.bf16.mxu1 %v10221_v6  ;;  %v698_v6 = vld [vmem:[%s11504_s25 + $0xd18] sm:$0xff]  ;;  %v10109_v50 = vcombine.high %v442_v42, %v450_v43  ;;  %v10108_v59 = vcombine.low %v442_v42, %v450_v43 }
 0x1ab   : > { %6986 = vmatpush1.bf16.msra.mxu0 %v9964_v51  ;;  %v10365_v51 = vcombine.high %v698_v6, %v706_v44  ;;  %v10364_v61 = vcombine.low %v698_v6, %v706_v44  ;;  %v674_v4 = vld [vmem:[%s11504_s25 + $0xc58] sm:$0xff] }
 0x1ac   : > { %6987 = vmatprep.subr.bf16.mxu0 %v9949_v53  ;;  %v434_v53 = vld [vmem:[%s11504_s25 + $0x4d8] sm:$0xff] }
 0x1ad   : > { %7027 = vmatpush1.bf16.msra.mxu1 %v10220_v52  ;;  %v426_v52 = vld [vmem:[%s11504_s25 + $0x498] sm:$0xff] }
 0x1ae   : > { %7028 = vmatprep.subr.bf16.mxu1 %v10205_v54  ;;  %v682_v54 = vld [vmem:[%s11504_s25 + $0xc98] sm:$0xff]  ;;  %v10093_v62 = vcombine.high %v426_v52, %v434_v53  ;;  %v10092_v7 = vcombine.low %v426_v52, %v434_v53 }
 0x1af   : > { %6988 = vmatpush1.bf16.msra.mxu0 %v9948_v63  ;;  %v10349_v63 = vcombine.high %v682_v54, %v690_v58  ;;  %v10348_v8 = vcombine.low %v682_v54, %v690_v58  ;;  %v1170_v14 = vld [vmem:[%s11504_s25 + $0x1bd8] sm:$0xff] }
 0x1b0   : > { %6989 = vmatprep.subr.bf16.mxu0 %v10189_v1  ;;  %v418_v1 = vld [vmem:[%s11504_s25 + $0x458] sm:$0xff] }
 0x1b1   : > { %7029 = vmatpush1.bf16.msra.mxu1 %v10204_v0  ;;  %v410_v0 = vld [vmem:[%s11504_s25 + $0x418] sm:$0xff] }
 0x1b2   : > { %7030 = vmatprep.subr.bf16.mxu1 %v10445_v2  ;;  %v666_v2 = vld [vmem:[%s11504_s25 + $0xc18] sm:$0xff]  ;;  %v10077_v9 = vcombine.high %v410_v0, %v418_v1  ;;  %v10076_v16 = vcombine.low %v410_v0, %v418_v1 }
 0x1b3   : > { %6990 = vmatpush2.bf16.msra.mxu0 %v10188_v10  ;;  %v10333_v10 = vcombine.high %v666_v2, %v674_v4  ;;  %v10332_v17 = vcombine.low %v666_v2, %v674_v4  ;;  %v1154_v23 = vld [vmem:[%s11504_s25 + $0x1b58] sm:$0xff] }
 0x1b4   : > { %6991 = vmatprep.subr.bf16.mxu0 %v10173_v12  ;;  %v914_v12 = vld [vmem:[%s11504_s25 + $0x13d8] sm:$0xff] }
 0x1b5   : > { %7031 = vmatpush2.bf16.msra.mxu1 %v10444_v11  ;;  %v906_v11 = vld [vmem:[%s11504_s25 + $0x1398] sm:$0xff] }
 0x1b6   : > { %7032 = vmatprep.subr.bf16.mxu1 %v10429_v13  ;;  %v1162_v13 = vld [vmem:[%s11504_s25 + $0x1b98] sm:$0xff]  ;;  %v10573_v18 = vcombine.high %v906_v11, %v914_v12  ;;  %v10572_v25 = vcombine.low %v906_v11, %v914_v12 }
 0x1b7   : > { %6992 = vmatpush2.bf16.msra.mxu0 %v10172_v19  ;;  %v10829_v19 = vcombine.high %v1162_v13, %v1170_v14  ;;  %v10828_v26 = vcombine.low %v1162_v13, %v1170_v14  ;;  %v1130_v32 = vld [vmem:[%s11504_s25 + $0x1a98] sm:$0xff] }
 0x1b8   : > { %6993 = vmatprep.subr.bf16.mxu0 %v10157_v21  ;;  %v898_v21 = vld [vmem:[%s11504_s25 + $0x1358] sm:$0xff] }
 0x1b9   : > { %7033 = vmatpush2.bf16.msra.mxu1 %v10428_v20  ;;  %v890_v20 = vld [vmem:[%s11504_s25 + $0x1318] sm:$0xff] }
 0x1ba   : > { %7034 = vmatprep.subr.bf16.mxu1 %v10413_v22  ;;  %v1146_v22 = vld [vmem:[%s11504_s25 + $0x1b18] sm:$0xff]  ;;  %v10557_v46 = vcombine.high %v890_v20, %v898_v21 }
 0x1bb   : > { %6994 = vmatpush2.bf16.msra.mxu0 %v10156_v27  ;;  %v10813_v27 = vcombine.high %v1146_v22, %v1154_v23  ;;  %v1138_v34 = vld [vmem:[%s11504_s25 + $0x1ad8] sm:$0xff] }
 0x1bc   : > { %6995 = vmatprep.subr.bf16.mxu0 %v10141_v30  ;;  %v882_v30 = vld [vmem:[%s11504_s25 + $0x12d8] sm:$0xff]  ;;  %v10796_v58 = vcombine.low %v1130_v32, %v1138_v34 }
 0x1bd   : > { %7035 = vmatpush2.bf16.msra.mxu1 %v10412_v29  ;;  %v874_v29 = vld [vmem:[%s11504_s25 + $0x1298] sm:$0xff] }
 0x1be   : > { %7036 = vmatprep.subr.bf16.mxu1 %v10397_v31  ;;  %v858_v44 = vld [vmem:[%s11504_s25 + $0x1218] sm:$0xff] }
 0x1bf   : > { %6996 = vmatpush2.bf16.msra.mxu0 %v10140_v37  ;;  %v10556_v37 = vcombine.low %v890_v20, %v898_v21  ;;  %v850_v0 = vld [vmem:[%s11504_s25 + $0x11d8] sm:$0xff] }
 0x1c0   : > { %6997 = vmatprep.subr.bf16.mxu0 %v10125_v39  ;;  %v10812_v39 = vcombine.low %v1146_v22, %v1154_v23  ;;  %v1098_v1 = vld [vmem:[%s11504_s25 + $0x1998] sm:$0xff] }
 0x1c1   : > { %7037 = vmatpush2.bf16.msra.mxu1 %v10396_v38  ;;  %v1106_v2 = vld [vmem:[%s11504_s25 + $0x19d8] sm:$0xff] }
 0x1c2   : > { %7038 = vmatprep.subr.bf16.mxu1 %v10381_v41  ;;  %v10541_v41 = vcombine.high %v874_v29, %v882_v30  ;;  %v834_v11 = vld [vmem:[%s11504_s25 + $0x1158] sm:$0xff] }
 0x1c3   : > { %6998 = vmatpush2.bf16.msra.mxu0 %v10124_v47  ;;  %v866_v47 = vld [vmem:[%s11504_s25 + $0x1258] sm:$0xff] }
 0x1c4   : > { %6999 = vmatprep.subr.bf16.mxu0 %v10109_v50  ;;  %v1114_v50 = vld [vmem:[%s11504_s25 + $0x1a18] sm:$0xff]  ;;  %v10524_v4 = vcombine.low %v858_v44, %v866_v47 }
 0x1c5   : > { %7039 = vmatpush2.bf16.msra.mxu1 %v10380_v48  ;;  %v1082_v12 = vld [vmem:[%s11504_s25 + $0x1918] sm:$0xff] }
 0x1c6   : > { %7040 = vmatprep.subr.bf16.mxu1 %v10365_v51  ;;  %v1122_v51 = vld [vmem:[%s11504_s25 + $0x1a58] sm:$0xff] }
 0x1c7   : > { %7000 = vmatpush2.bf16.msra.mxu0 %v10108_v59  ;;  %v10525_v59 = vcombine.high %v858_v44, %v866_v47  ;;  %v1090_v13 = vld [vmem:[%s11504_s25 + $0x1958] sm:$0xff] }
 0x1c8   : > { %7001 = vmatprep.subr.bf16.mxu0 %v10093_v62  ;;  %v10781_v62 = vcombine.high %v1114_v50, %v1122_v51  ;;  %v818_v20 = vld [vmem:[%s11504_s25 + $0x10d8] sm:$0xff] }
 0x1c9   : > { %7041 = vmatpush2.bf16.msra.mxu1 %v10364_v61  ;;  %v1066_v21 = vld [vmem:[%s11504_s25 + $0x1898] sm:$0xff] }
 0x1ca   : > { %7042 = vmatprep.subr.bf16.mxu1 %v10349_v63  ;;  %v842_v63 = vld [vmem:[%s11504_s25 + $0x1198] sm:$0xff] }
 0x1cb   : > { %7002 = vmatpush2.bf16.msra.mxu0 %v10092_v7  ;;  %v10780_v7 = vcombine.low %v1114_v50, %v1122_v51  ;;  %v10508_v14 = vcombine.low %v842_v63, %v850_v0  ;;  %v1074_v22 = vld [vmem:[%s11504_s25 + $0x18d8] sm:$0xff] }
 0x1cc   : > { %7003 = vmatprep.subr.bf16.mxu0 %v10077_v9  ;;  %v10765_v9 = vcombine.high %v1098_v1, %v1106_v2  ;;  %v1018_v47 = vld [vmem:[%s11504_s25 + $0x1718] sm:$0xff] }
 0x1cd   : > { %7043 = vmatpush2.bf16.msra.mxu1 %v10348_v8  ;;  %v10509_v8 = vcombine.high %v842_v63, %v850_v0  ;;  %v1274_v50 = vld [vmem:[%s11504_s25 + $0x1f18] sm:$0xff] }
 0x1ce   : > { %7044 = vmatprep.subr.bf16.mxu1 %v10333_v10  ;;  %v826_v10 = vld [vmem:[%s11504_s25 + $0x1118] sm:$0xff] }
 0x1cf   : > { %7004 = vmatpush2.bf16.msra.mxu0 %v10076_v16  ;;  %v10764_v16 = vcombine.low %v1098_v1, %v1106_v2  ;;  %v10492_v23 = vcombine.low %v826_v10, %v834_v11  ;;  %v1282_v51 = vld [vmem:[%s11504_s25 + $0x1f58] sm:$0xff] }
 0x1d0   : > { %7055 = vmatprep.subr.bf16.mxu0 %v10573_v18  ;;  %v10749_v18 = vcombine.high %v1082_v12, %v1090_v13  ;;  %v1266_v63 = vld [vmem:[%s11504_s25 + $0x1ed8] sm:$0xff]  ;;  %v10940_v1 = vcombine.low %v1274_v50, %v1282_v51 }
 0x1d1   : > { %7045 = vmatpush2.bf16.msra.mxu1 %v10332_v17  ;;  %v10493_v17 = vcombine.high %v826_v10, %v834_v11  ;;  %v1250_v10 = vld [vmem:[%s11504_s25 + $0x1e58] sm:$0xff] }
 0x1d2   : > { %7096 = vmatprep.subr.bf16.mxu1 %v10829_v19  ;;  %v6761_v31 = vpop.f32.mrf.mxu0  ;;  %7006 = vmatmul.mubr.bf16.vlgmr.msra.gmra.mxu0 %v11602_v28  ;;  %v810_v19 = vld [vmem:[%s11504_s25 + $0x1098] sm:$0xff] }
 0x1d3   : > { %v6762_v57 = vadd.f32 %v6761_v31, %v11979_v60  ;;  %7056 = vmatpush1.bf16.msra.mxu0 %v10572_v25  ;;  %v10797_v60 = vcombine.high %v1130_v32, %v1138_v34  ;;  %7087 = vmatprep.mubr.bf16.mxu0 %v11609_v36  ;;  %v10748_v25 = vcombine.low %v1082_v12, %v1090_v13  ;;  %v1058_v31 = vld [vmem:[%s11504_s25 + $0x1858] sm:$0xff] }
 0x1d4   : > { %v6802_v49 = vpop.f32.mrf.mxu1  ;;  %7047 = vmatmul.mubr.bf16.vlgmr.msra.gmra.mxu1 %v11613_v15  ;;  %v6763_v38 = vpop.f32.mrf.mxu0  ;;  %7057 = vmatprep.subr.bf16.mxu0 %v10557_v46  ;;  %v10733_v46 = vcombine.high %v1066_v21, %v1074_v22  ;;  %v10476_v32 = vcombine.low %v810_v19, %v818_v20  ;;  %v10732_v34 = vcombine.low %v1066_v21, %v1074_v22 }
 0x1d5   : > { %7097 = vmatpush1.bf16.msra.mxu1 %v10828_v26  ;;  %v12052_v42 = vadd.f32 %v6802_v49, %v6762_v57  ;;  %v6764_v43 = vadd.f32 %v6763_v38, %v11984_v5  ;;  %7128 = vmatprep.mubr.bf16.mxu1 %v11622_v45  ;;  %v10540_v5 = vcombine.low %v874_v29, %v882_v30  ;;  %v802_v29 = vld [vmem:[%s11504_s25 + $0x1058] sm:$0xff] }
 0x1d6   : > { %v6804_v6 = vpop.f32.mrf.mxu1  ;;  %7098 = vmatprep.subr.bf16.mxu1 %v10813_v27  ;;  %v6765_v48 = vpop.f32.mrf.mxu0  ;;  %v10477_v26 = vcombine.high %v810_v19, %v818_v20  ;;  %v794_v27 = vld [vmem:[%s11504_s25 + $0x1018] sm:$0xff] }
 0x1d7   : > { %v12061_v52 = vadd.f32 %v6804_v6, %v6764_v43  ;;  %7058 = vmatpush1.bf16.msra.mxu0 %v10556_v37  ;;  %v1050_v30 = vld [vmem:[%s11504_s25 + $0x1818] sm:$0xff]  ;;  %v10461_v57 = vcombine.high %v794_v27, %v802_v29  ;;  %v10460_v43 = vcombine.low %v794_v27, %v802_v29 }
 0x1d8   : > { %v6806_v53 = vpop.f32.mrf.mxu1  ;;  %v6766_v54 = vpop.f32.mrf.mxu0  ;;  %7059 = vmatprep.subr.bf16.mxu0 %v10541_v41  ;;  %v10717_v49 = vcombine.high %v1050_v30, %v1058_v31  ;;  %v1034_v37 = vld [vmem:[%s11504_s25 + $0x1798] sm:$0xff]  ;;  %v10716_v6 = vcombine.low %v1050_v30, %v1058_v31 }
 0x1d9   : > { %7099 = vmatpush1.bf16.msra.mxu1 %v10812_v39  ;;  %v1042_v38 = vld [vmem:[%s11504_s25 + $0x17d8] sm:$0xff] }
 0x1da   : > { %v6807_v61 = vpop.f32.mrf.mxu1  ;;  %7100 = vmatprep.subr.bf16.mxu1 %v10797_v60  ;;  %v1290_v39 = vld [vmem:[%s11504_s25 + $0x1f98] sm:$0xff]  ;;  %v10701_v60 = vcombine.high %v1034_v37, %v1042_v38  ;;  %v10700_v53 = vcombine.low %v1034_v37, %v1042_v38 }
 0x1db   : > { %7060 = vmatpush1.bf16.msra.mxu0 %v10540_v5  ;;  %v1298_v41 = vld [vmem:[%s11504_s25 + $0x1fd8] sm:$0xff] }
 0x1dc   : > { %7061 = vmatprep.subr.bf16.mxu0 %v10525_v59  ;;  %v10957_v44 = vcombine.high %v1290_v39, %v1298_v41  ;;  %v1026_v48 = vld [vmem:[%s11504_s25 + $0x1758] sm:$0xff]  ;;  %v10956_v5 = vcombine.low %v1290_v39, %v1298_v41 }
 0x1dd   : > { %7101 = vmatpush1.bf16.msra.mxu1 %v10796_v58  ;;  %v10685_v54 = vcombine.high %v1018_v47, %v1026_v48  ;;  %v10941_v58 = vcombine.high %v1274_v50, %v1282_v51  ;;  %v1002_v59 = vld [vmem:[%s11504_s25 + $0x1698] sm:$0xff]  ;;  %v10684_v0 = vcombine.low %v1018_v47, %v1026_v48 }
 0x1de   : > { %7102 = vmatprep.subr.bf16.mxu1 %v10781_v62  ;;  %v1010_v61 = vld [vmem:[%s11504_s25 + $0x16d8] sm:$0xff] }
 0x1df   : > { %7062 = vmatpush1.bf16.msra.mxu0 %v10524_v4  ;;  %v1258_v62 = vld [vmem:[%s11504_s25 + $0x1e98] sm:$0xff]  ;;  %v10669_v2 = vcombine.high %v1002_v59, %v1010_v61  ;;  %v10668_v11 = vcombine.low %v1002_v59, %v1010_v61  ;;  %v659_v59 = vld [vmem:[%s11504_s25 + $0xbe0] sm:$0xff] }
 0x1e0   : > { %7063 = vmatprep.subr.bf16.mxu0 %v10509_v8  ;;  %v10925_v4 = vcombine.high %v1258_v62, %v1266_v63  ;;  %v994_v8 = vld [vmem:[%s11504_s25 + $0x1658] sm:$0xff]  ;;  %v10924_v12 = vcombine.low %v1258_v62, %v1266_v63 }
 0x1e1   : > { %7103 = vmatpush1.bf16.msra.mxu1 %v10780_v7  ;;  %v986_v7 = vld [vmem:[%s11504_s25 + $0x1618] sm:$0xff] }
 0x1e2   : > { %7104 = vmatprep.subr.bf16.mxu1 %v10765_v9  ;;  %v1242_v9 = vld [vmem:[%s11504_s25 + $0x1e18] sm:$0xff]  ;;  %v10653_v13 = vcombine.high %v986_v7, %v994_v8  ;;  %v10652_v20 = vcombine.low %v986_v7, %v994_v8  ;;  %v643_v7 = vld [vmem:[%s11504_s25 + $0xb60] sm:$0xff] }
 0x1e3   : > { %7064 = vmatpush1.bf16.msra.mxu0 %v10508_v14  ;;  %v10909_v14 = vcombine.high %v1242_v9, %v1250_v10  ;;  %v1234_v19 = vld [vmem:[%s11504_s25 + $0x1dd8] sm:$0xff]  ;;  %v10908_v21 = vcombine.low %v1242_v9, %v1250_v10 }
 0x1e4   : > { %7065 = vmatprep.subr.bf16.mxu0 %v10493_v17  ;;  %v978_v17 = vld [vmem:[%s11504_s25 + $0x15d8] sm:$0xff] }
 0x1e5   : > { %7105 = vmatpush1.bf16.msra.mxu1 %v10764_v16  ;;  %v970_v16 = vld [vmem:[%s11504_s25 + $0x1598] sm:$0xff] }
 0x1e6   : > { %7106 = vmatprep.subr.bf16.mxu1 %v10749_v18  ;;  %v1226_v18 = vld [vmem:[%s11504_s25 + $0x1d98] sm:$0xff]  ;;  %v10637_v22 = vcombine.high %v970_v16, %v978_v17  ;;  %v10636_v29 = vcombine.low %v970_v16, %v978_v17  ;;  %v619_v16 = vld [vmem:[%s11504_s25 + $0xaa0] sm:$0xff] }
 0x1e7   : > { %7066 = vmatpush1.bf16.msra.mxu0 %v10492_v23  ;;  %v10893_v23 = vcombine.high %v1226_v18, %v1234_v19  ;;  %v1218_v27 = vld [vmem:[%s11504_s25 + $0x1d58] sm:$0xff]  ;;  %v10892_v30 = vcombine.low %v1226_v18, %v1234_v19  ;;  %v627_v17 = vld [vmem:[%s11504_s25 + $0xae0] sm:$0xff] }
 0x1e8   : > { %7067 = vmatprep.subr.bf16.mxu0 %v10477_v26  ;;  %v962_v26 = vld [vmem:[%s11504_s25 + $0x1558] sm:$0xff] }
 0x1e9   : > { %7107 = vmatpush1.bf16.msra.mxu1 %v10748_v25  ;;  %v954_v25 = vld [vmem:[%s11504_s25 + $0x1518] sm:$0xff] }
 0x1ea   : > { %7108 = vmatprep.subr.bf16.mxu1 %v10733_v46  ;;  %v1210_v46 = vld [vmem:[%s11504_s25 + $0x1d18] sm:$0xff]  ;;  %v10621_v31 = vcombine.high %v954_v25, %v962_v26  ;;  %v10620_v38 = vcombine.low %v954_v25, %v962_v26  ;;  %v10287_v26 = vcombine.high %v619_v16, %v627_v17 }
 0x1eb   : > { %7068 = vmatpush1.bf16.msra.mxu0 %v10476_v32  ;;  %v10877_v32 = vcombine.high %v1210_v46, %v1218_v27  ;;  %v1202_v37 = vld [vmem:[%s11504_s25 + $0x1cd8] sm:$0xff]  ;;  %v10876_v39 = vcombine.low %v1210_v46, %v1218_v27  ;;  %v347_v46 = vld [vmem:[%s11504_s25 + $0x220] sm:$0xff] }
 0x1ec   : > { %7069 = vmatprep.subr.bf16.mxu0 %v10461_v57  ;;  %v946_v57 = vld [vmem:[%s11504_s25 + $0x14d8] sm:$0xff]  ;;  %v355_v27 = vld [vmem:[%s11504_s25 + $0x260] sm:$0xff] }
 0x1ed   : > { %7109 = vmatpush1.bf16.msra.mxu1 %v10732_v34  ;;  %v938_v34 = vld [vmem:[%s11504_s25 + $0x1498] sm:$0xff] }
 0x1ee   : > { %7110 = vmatprep.subr.bf16.mxu1 %v10717_v49  ;;  %v1194_v49 = vld [vmem:[%s11504_s25 + $0x1c98] sm:$0xff]  ;;  %v10605_v41 = vcombine.high %v938_v34, %v946_v57  ;;  %v10604_v48 = vcombine.low %v938_v34, %v946_v57 }
 0x1ef   : > { %7070 = vmatpush1.bf16.msra.mxu0 %v10460_v43  ;;  %v10861_v43 = vcombine.high %v1194_v49, %v1202_v37  ;;  %v1186_v47 = vld [vmem:[%s11504_s25 + $0x1c58] sm:$0xff]  ;;  %v10860_v50 = vcombine.low %v1194_v49, %v1202_v37  ;;  %v10286_v37 = vcombine.low %v619_v16, %v627_v17 }
 0x1f0   : > { %7071 = vmatprep.subr.bf16.mxu0 %v10701_v60  ;;  %v930_v60 = vld [vmem:[%s11504_s25 + $0x1458] sm:$0xff] }
 0x1f1   : > { %7111 = vmatpush1.bf16.msra.mxu1 %v10716_v6  ;;  %v922_v6 = vld [vmem:[%s11504_s25 + $0x1418] sm:$0xff] }
 0x1f2   : > { %7112 = vmatprep.subr.bf16.mxu1 %v10957_v44  ;;  %v1178_v44 = vld [vmem:[%s11504_s25 + $0x1c18] sm:$0xff]  ;;  %v10589_v51 = vcombine.high %v922_v6, %v930_v60  ;;  %v10588_v61 = vcombine.low %v922_v6, %v930_v60  ;;  %v339_v6 = vld [vmem:[%s11504_s25 + $0x1e0] sm:$0xff] }
 0x1f3   : > { %7072 = vmatpush2.bf16.msra.mxu0 %v10700_v53  ;;  %v10845_v53 = vcombine.high %v1178_v44, %v1186_v47  ;;  %v10844_v62 = vcombine.low %v1178_v44, %v1186_v47  ;;  %v587_v60 = vld [vmem:[%s11504_s25 + $0x9a0] sm:$0xff]  ;;  %v10014_v47 = vcombine.low %v347_v46, %v355_v27 }
 0x1f4   : > { %7073 = vmatprep.subr.bf16.mxu0 %v10685_v54  ;;  %v403_v54 = vld [vmem:[%s11504_s25 + $0x3e0] sm:$0xff] }
 0x1f5   : > { %7113 = vmatpush2.bf16.msra.mxu1 %v10956_v5  ;;  %v395_v5 = vld [vmem:[%s11504_s25 + $0x3a0] sm:$0xff] }
 0x1f6   : > { %7114 = vmatprep.subr.bf16.mxu1 %v10941_v58  ;;  %v651_v58 = vld [vmem:[%s11504_s25 + $0xba0] sm:$0xff]  ;;  %v10063_v63 = vcombine.high %v395_v5, %v403_v54  ;;  %v10062_v8 = vcombine.low %v395_v5, %v403_v54 }
 0x1f7   : > { %7074 = vmatpush2.bf16.msra.mxu0 %v10684_v0  ;;  %v10319_v0 = vcombine.high %v651_v58, %v659_v59  ;;  %v10318_v9 = vcombine.low %v651_v58, %v659_v59  ;;  %v595_v44 = vld [vmem:[%s11504_s25 + $0x9e0] sm:$0xff] }
 0x1f8   : > { %7075 = vmatprep.subr.bf16.mxu0 %v10669_v2  ;;  %v387_v2 = vld [vmem:[%s11504_s25 + $0x360] sm:$0xff] }
 0x1f9   : > { %7115 = vmatpush2.bf16.msra.mxu1 %v10940_v1  ;;  %v379_v1 = vld [vmem:[%s11504_s25 + $0x320] sm:$0xff] }
 0x1fa   : > { %7116 = vmatprep.subr.bf16.mxu1 %v10925_v4  ;;  %v635_v4 = vld [vmem:[%s11504_s25 + $0xb20] sm:$0xff]  ;;  %v10047_v10 = vcombine.high %v379_v1, %v387_v2  ;;  %v10046_v19 = vcombine.low %v379_v1, %v387_v2 }
 0x1fb   : > { %7076 = vmatpush2.bf16.msra.mxu0 %v10668_v11  ;;  %v10303_v11 = vcombine.high %v635_v4, %v643_v7  ;;  %v323_v5 = vld [vmem:[%s11504_s25 + $0x160] sm:$0xff] }
 0x1fc   : > { %7077 = vmatprep.subr.bf16.mxu0 %v10653_v13  ;;  %v371_v13 = vld [vmem:[%s11504_s25 + $0x2e0] sm:$0xff] }
 0x1fd   : > { %7117 = vmatpush2.bf16.msra.mxu1 %v10924_v12  ;;  %v363_v12 = vld [vmem:[%s11504_s25 + $0x2a0] sm:$0xff] }
 0x1fe   : > { %7118 = vmatprep.subr.bf16.mxu1 %v10909_v14  ;;  %v10030_v57 = vcombine.low %v363_v12, %v371_v13  ;;  %v571_v54 = vld [vmem:[%s11504_s25 + $0x920] sm:$0xff] }
 0x1ff   : > { %7078 = vmatpush2.bf16.msra.mxu0 %v10652_v20  ;;  %v579_v58 = vld [vmem:[%s11504_s25 + $0x960] sm:$0xff] }
 0x200   : > { %7079 = vmatprep.subr.bf16.mxu0 %v10637_v22  ;;  %v10302_v22 = vcombine.low %v635_v4, %v643_v7  ;;  %v307_v1 = vld [vmem:[%s11504_s25 + $0xe0] sm:$0xff] }
 0x201   : > { %7119 = vmatpush2.bf16.msra.mxu1 %v10908_v21  ;;  %v555_v2 = vld [vmem:[%s11504_s25 + $0x8a0] sm:$0xff] }
 0x202   : > { %7120 = vmatprep.subr.bf16.mxu1 %v10893_v23  ;;  %v10031_v23 = vcombine.high %v363_v12, %v371_v13  ;;  %v563_v4 = vld [vmem:[%s11504_s25 + $0x8e0] sm:$0xff] }
 0x203   : > { %7080 = vmatpush2.bf16.msra.mxu0 %v10636_v29  ;;  %v291_v12 = vld [vmem:[%s11504_s25 + $0x60] sm:$0xff]  ;;  %v10222_v17 = vcombine.low %v555_v2, %v563_v4 }
 0x204   : > { %7081 = vmatprep.subr.bf16.mxu0 %v10621_v31  ;;  %v603_v31 = vld [vmem:[%s11504_s25 + $0xa20] sm:$0xff] }
 0x205   : > { %7121 = vmatpush2.bf16.msra.mxu1 %v10892_v30  ;;  %v539_v13 = vld [vmem:[%s11504_s25 + $0x820] sm:$0xff] }
 0x206   : > { %7122 = vmatprep.subr.bf16.mxu1 %v10877_v32  ;;  %v611_v32 = vld [vmem:[%s11504_s25 + $0xa60] sm:$0xff] }
 0x207   : > { %7082 = vmatpush2.bf16.msra.mxu0 %v10620_v38  ;;  %v10015_v38 = vcombine.high %v347_v46, %v355_v27 }
 0x208   : > { %7083 = vmatprep.subr.bf16.mxu0 %v10605_v41  ;;  %v10271_v41 = vcombine.high %v603_v31, %v611_v32 }
 0x209   : > { %7123 = vmatpush2.bf16.msra.mxu1 %v10876_v39 }
 0x20a   : > { %7124 = vmatprep.subr.bf16.mxu1 %v10861_v43  ;;  %v331_v43 = vld [vmem:[%s11504_s25 + $0x1a0] sm:$0xff] }
 0x20b   : > { %7084 = vmatpush2.bf16.msra.mxu0 %v10604_v48  ;;  %v10270_v48 = vcombine.low %v603_v31, %v611_v32  ;;  %v9998_v59 = vcombine.low %v331_v43, %v339_v6  ;;  %v507_v31 = vld [vmem:[%s11504_s25 + $0x720] sm:$0xff] }
 0x20c   : > { %7085 = vmatprep.subr.bf16.mxu0 %v10589_v51  ;;  %v10255_v51 = vcombine.high %v587_v60, %v595_v44  ;;  %v515_v32 = vld [vmem:[%s11504_s25 + $0x760] sm:$0xff] }
 0x20d   : > { %7125 = vmatpush2.bf16.msra.mxu1 %v10860_v50  ;;  %v9999_v50 = vcombine.high %v331_v43, %v339_v6  ;;  %v499_v43 = vld [vmem:[%s11504_s25 + $0x6e0] sm:$0xff] }
 0x20e   : > { %7126 = vmatprep.subr.bf16.mxu1 %v10845_v53  ;;  %v315_v53 = vld [vmem:[%s11504_s25 + $0x120] sm:$0xff] }
 0x20f   : > { %7086 = vmatpush2.bf16.msra.mxu0 %v10588_v61  ;;  %v10254_v61 = vcombine.low %v587_v60, %v595_v44  ;;  %v9982_v7 = vcombine.low %v315_v53, %v323_v5  ;;  %v747_v6 = vld [vmem:[%s11504_s25 + $0xea0] sm:$0xff]  ;;  %v10174_v44 = vcombine.low %v507_v31, %v515_v32 }
 0x210   : > { %7137 = vmatprep.subr.bf16.mxu0 %v10063_v63  ;;  %v10239_v63 = vcombine.high %v571_v54, %v579_v58  ;;  %v755_v60 = vld [vmem:[%s11504_s25 + $0xee0] sm:$0xff] }
 0x211   : > { %7127 = vmatpush2.bf16.msra.mxu1 %v10844_v62  ;;  %v9983_v62 = vcombine.high %v315_v53, %v323_v5  ;;  %v483_v53 = vld [vmem:[%s11504_s25 + $0x660] sm:$0xff] }
 0x212   : > { %7178 = vmatprep.subr.bf16.mxu1 %v10319_v0  ;;  %v6843_v14 = vpop.f32.mrf.mxu0  ;;  %7088 = vmatmul.mubr.bf16.vlgmr.msra.gmra.mxu0 %v11552_v55  ;;  %v299_v0 = vld [vmem:[%s11504_s25 + $0xa0] sm:$0xff] }
 0x213   : > { %7138 = vmatpush1.bf16.msra.mxu0 %v10062_v8  ;;  %7169 = vmatprep.mubr.bf16.mxu0 %v11531_v35  ;;  %v10238_v8 = vcombine.low %v571_v54, %v579_v58  ;;  %v9966_v16 = vcombine.low %v299_v0, %v307_v1  ;;  %v731_v5 = vld [vmem:[%s11504_s25 + $0xe20] sm:$0xff] }
 0x214   : > { %v6884_v18 = vpop.f32.mrf.mxu1  ;;  %7129 = vmatmul.mubr.bf16.vlgmr.msra.gmra.mxu1 %v11689_v56  ;;  %v6845_v21 = vpop.f32.mrf.mxu0  ;;  %7139 = vmatprep.subr.bf16.mxu0 %v10047_v10  ;;  %v10223_v10 = vcombine.high %v555_v2, %v563_v4  ;;  %v739_v54 = vld [vmem:[%s11504_s25 + $0xe60] sm:$0xff] }
 0x215   : > { %v12125_v20 = vadd.f32 %v6884_v18, %v6843_v14  ;;  %7179 = vmatpush1.bf16.msra.mxu1 %v10318_v9  ;;  %7210 = vmatprep.mubr.bf16.mxu1 %v11535_v40  ;;  %v9967_v9 = vcombine.high %v299_v0, %v307_v1  ;;  %v547_v14 = vld [vmem:[%s11504_s25 + $0x860] sm:$0xff] }
 0x216   : > { %v6886_v25 = vpop.f32.mrf.mxu1  ;;  %7180 = vmatprep.subr.bf16.mxu1 %v10303_v11  ;;  %v6847_v30 = vpop.f32.mrf.mxu0  ;;  %v283_v11 = vld [vmem:[%s11504_s25 + $0x20] sm:$0xff]  ;;  %v10206_v46 = vcombine.low %v539_v13, %v547_v14 }
 0x217   : > { %v12130_v29 = vadd.f32 %v6886_v25, %v6845_v21  ;;  %7140 = vmatpush1.bf16.msra.mxu0 %v10046_v19  ;;  %v9951_v18 = vcombine.high %v283_v11, %v291_v12  ;;  %v10207_v19 = vcombine.high %v539_v13, %v547_v14  ;;  %v523_v21 = vld [vmem:[%s11504_s25 + $0x7a0] sm:$0xff] }
 0x218   : > { %v6888_v34 = vpop.f32.mrf.mxu1  ;;  %v6848_v49 = vpop.f32.mrf.mxu0  ;;  %7141 = vmatprep.subr.bf16.mxu0 %v10031_v23  ;;  %v779_v23 = vld [vmem:[%s11504_s25 + $0xfa0] sm:$0xff] }
 0x219   : > { %7181 = vmatpush1.bf16.msra.mxu1 %v10302_v22  ;;  %v531_v22 = vld [vmem:[%s11504_s25 + $0x7e0] sm:$0xff] }
 0x21a   : > { %v6889_v39 = vpop.f32.mrf.mxu1  ;;  %7182 = vmatprep.subr.bf16.mxu1 %v10287_v26  ;;  %v787_v25 = vld [vmem:[%s11504_s25 + $0xfe0] sm:$0xff]  ;;  %v9950_v26 = vcombine.low %v283_v11, %v291_v12  ;;  %v10191_v27 = vcombine.high %v523_v21, %v531_v22  ;;  %v10190_v49 = vcombine.low %v523_v21, %v531_v22 }
 0x21b   : > { %7142 = vmatpush1.bf16.msra.mxu0 %v10030_v57  ;;  %v10447_v30 = vcombine.high %v779_v23, %v787_v25  ;;  %v763_v34 = vld [vmem:[%s11504_s25 + $0xf20] sm:$0xff] }
 0x21c   : > { %7143 = vmatprep.subr.bf16.mxu0 %v10015_v38  ;;  %v771_v57 = vld [vmem:[%s11504_s25 + $0xf60] sm:$0xff]  ;;  %v10175_v38 = vcombine.high %v507_v31, %v515_v32 }
 0x21d   : > { %7183 = vmatpush1.bf16.msra.mxu1 %v10286_v37  ;;  %v10446_v37 = vcombine.low %v779_v23, %v787_v25  ;;  %v10431_v39 = vcombine.high %v763_v34, %v771_v57  ;;  %v467_v0 = vld [vmem:[%s11504_s25 + $0x5e0] sm:$0xff] }
 0x21e   : > { %7184 = vmatprep.subr.bf16.mxu1 %v10271_v41  ;;  %v491_v41 = vld [vmem:[%s11504_s25 + $0x6a0] sm:$0xff] }
 0x21f   : > { %7144 = vmatpush1.bf16.msra.mxu0 %v10014_v47  ;;  %v10430_v47 = vcombine.low %v763_v34, %v771_v57  ;;  %v10158_v58 = vcombine.low %v491_v41, %v499_v43  ;;  %v715_v1 = vld [vmem:[%s11504_s25 + $0xda0] sm:$0xff] }
 0x220   : > { %7145 = vmatprep.subr.bf16.mxu0 %v9999_v50  ;;  %v10415_v50 = vcombine.high %v747_v6, %v755_v60  ;;  %v723_v2 = vld [vmem:[%s11504_s25 + $0xde0] sm:$0xff] }
 0x221   : > { %7185 = vmatpush1.bf16.msra.mxu1 %v10270_v48  ;;  %v10159_v48 = vcombine.high %v491_v41, %v499_v43  ;;  %v451_v11 = vld [vmem:[%s11504_s25 + $0x560] sm:$0xff] }
 0x222   : > { %7186 = vmatprep.subr.bf16.mxu1 %v10255_v51  ;;  %v475_v51 = vld [vmem:[%s11504_s25 + $0x620] sm:$0xff] }
 0x223   : > { %7146 = vmatpush1.bf16.msra.mxu0 %v9998_v59  ;;  %v10414_v59 = vcombine.low %v747_v6, %v755_v60  ;;  %v10142_v4 = vcombine.low %v475_v51, %v483_v53  ;;  %v699_v12 = vld [vmem:[%s11504_s25 + $0xd20] sm:$0xff] }
 0x224   : > { %7147 = vmatprep.subr.bf16.mxu0 %v9983_v62  ;;  %v10399_v62 = vcombine.high %v731_v5, %v739_v54  ;;  %v707_v13 = vld [vmem:[%s11504_s25 + $0xd60] sm:$0xff] }
 0x225   : > { %7187 = vmatpush1.bf16.msra.mxu1 %v10254_v61  ;;  %v10143_v61 = vcombine.high %v475_v51, %v483_v53  ;;  %v435_v21 = vld [vmem:[%s11504_s25 + $0x4e0] sm:$0xff] }
 0x226   : > { %7188 = vmatprep.subr.bf16.mxu1 %v10239_v63  ;;  %v459_v63 = vld [vmem:[%s11504_s25 + $0x5a0] sm:$0xff] }
 0x227   : > { %7148 = vmatpush1.bf16.msra.mxu0 %v9982_v7  ;;  %v10398_v7 = vcombine.low %v731_v5, %v739_v54  ;;  %v10126_v14 = vcombine.low %v459_v63, %v467_v0  ;;  %v683_v22 = vld [vmem:[%s11504_s25 + $0xca0] sm:$0xff] }
 0x228   : > { %7149 = vmatprep.subr.bf16.mxu0 %v9967_v9  ;;  %v10383_v9 = vcombine.high %v715_v1, %v723_v2  ;;  %v691_v23 = vld [vmem:[%s11504_s25 + $0xce0] sm:$0xff] }
 0x229   : > { %7189 = vmatpush1.bf16.msra.mxu1 %v10238_v8  ;;  %v10127_v8 = vcombine.high %v459_v63, %v467_v0  ;;  %v419_v31 = vld [vmem:[%s11504_s25 + $0x460] sm:$0xff] }
 0x22a   : > { %7190 = vmatprep.subr.bf16.mxu1 %v10223_v10  ;;  %v443_v10 = vld [vmem:[%s11504_s25 + $0x520] sm:$0xff] }
 0x22b   : > { %7150 = vmatpush1.bf16.msra.mxu0 %v9966_v16  ;;  %v10382_v16 = vcombine.low %v715_v1, %v723_v2  ;;  %v10110_v25 = vcombine.low %v443_v10, %v451_v11  ;;  %v667_v32 = vld [vmem:[%s11504_s25 + $0xc20] sm:$0xff] }
 0x22c   : > { %7151 = vmatprep.subr.bf16.mxu0 %v9951_v18  ;;  %v10367_v18 = vcombine.high %v699_v12, %v707_v13  ;;  %v675_v34 = vld [vmem:[%s11504_s25 + $0xc60] sm:$0xff] }
 0x22d   : > { %7191 = vmatpush1.bf16.msra.mxu1 %v10222_v17  ;;  %v10111_v17 = vcombine.high %v443_v10, %v451_v11  ;;  %v915_v41 = vld [vmem:[%s11504_s25 + $0x13e0] sm:$0xff] }
 0x22e   : > { %7192 = vmatprep.subr.bf16.mxu1 %v10207_v19  ;;  %v427_v19 = vld [vmem:[%s11504_s25 + $0x4a0] sm:$0xff] }
 0x22f   : > { %7152 = vmatpush1.bf16.msra.mxu0 %v9950_v26  ;;  %v10366_v26 = vcombine.low %v699_v12, %v707_v13  ;;  %v10094_v57 = vcombine.low %v427_v19, %v435_v21  ;;  %v1163_v43 = vld [vmem:[%s11504_s25 + $0x1ba0] sm:$0xff] }
 0x230   : > { %7153 = vmatprep.subr.bf16.mxu0 %v10191_v27  ;;  %v10351_v27 = vcombine.high %v683_v22, %v691_v23  ;;  %v1171_v6 = vld [vmem:[%s11504_s25 + $0x1be0] sm:$0xff] }
 0x231   : > { %7193 = vmatpush1.bf16.msra.mxu1 %v10206_v46  ;;  %v10095_v46 = vcombine.high %v427_v19, %v435_v21  ;;  %v899_v51 = vld [vmem:[%s11504_s25 + $0x1360] sm:$0xff] }
 0x232   : > { %7194 = vmatprep.subr.bf16.mxu1 %v10447_v30  ;;  %v411_v30 = vld [vmem:[%s11504_s25 + $0x420] sm:$0xff] }
 0x233   : > { %7154 = vmatpush2.bf16.msra.mxu0 %v10190_v49  ;;  %v10350_v49 = vcombine.low %v683_v22, %v691_v23  ;;  %v10078_v60 = vcombine.low %v411_v30, %v419_v31  ;;  %v1147_v53 = vld [vmem:[%s11504_s25 + $0x1b20] sm:$0xff] }
 0x234   : > { %7155 = vmatprep.subr.bf16.mxu0 %v10175_v38  ;;  %v10335_v38 = vcombine.high %v667_v32, %v675_v34  ;;  %v1155_v5 = vld [vmem:[%s11504_s25 + $0x1b60] sm:$0xff] }
 0x235   : > { %7195 = vmatpush2.bf16.msra.mxu1 %v10446_v37  ;;  %v10079_v37 = vcombine.high %v411_v30, %v419_v31  ;;  %v883_v63 = vld [vmem:[%s11504_s25 + $0x12e0] sm:$0xff]  ;;  %v10814_v10 = vcombine.low %v1147_v53, %v1155_v5 }
 0x236   : > { %7196 = vmatprep.subr.bf16.mxu1 %v10431_v39  ;;  %v907_v39 = vld [vmem:[%s11504_s25 + $0x13a0] sm:$0xff] }
 0x237   : > { %7156 = vmatpush2.bf16.msra.mxu0 %v10174_v44  ;;  %v10334_v44 = vcombine.low %v667_v32, %v675_v34  ;;  %v10574_v54 = vcombine.low %v907_v39, %v915_v41  ;;  %v1131_v1 = vld [vmem:[%s11504_s25 + $0x1aa0] sm:$0xff] }
 0x238   : > { %7157 = vmatprep.subr.bf16.mxu0 %v10159_v48  ;;  %v10831_v48 = vcombine.high %v1163_v43, %v1171_v6  ;;  %v1139_v2 = vld [vmem:[%s11504_s25 + $0x1ae0] sm:$0xff] }
 0x239   : > { %7197 = vmatpush2.bf16.msra.mxu1 %v10430_v47  ;;  %v10575_v47 = vcombine.high %v907_v39, %v915_v41  ;;  %v1115_v19 = vld [vmem:[%s11504_s25 + $0x1a20] sm:$0xff] }
 0x23a   : > { %7198 = vmatprep.subr.bf16.mxu1 %v10415_v50  ;;  %v891_v50 = vld [vmem:[%s11504_s25 + $0x1320] sm:$0xff] }
 0x23b   : > { %7158 = vmatpush2.bf16.msra.mxu0 %v10158_v58  ;;  %v10830_v58 = vcombine.low %v1163_v43, %v1171_v6  ;;  %v1123_v21 = vld [vmem:[%s11504_s25 + $0x1a60] sm:$0xff] }
 0x23c   : > { %7159 = vmatprep.subr.bf16.mxu0 %v10143_v61  ;;  %v10815_v61 = vcombine.high %v1147_v53, %v1155_v5  ;;  %v10783_v30 = vcombine.high %v1115_v19, %v1123_v21  ;;  %v843_v31 = vld [vmem:[%s11504_s25 + $0x11a0] sm:$0xff] }
 0x23d   : > { %7199 = vmatpush2.bf16.msra.mxu1 %v10414_v59  ;;  %v10559_v59 = vcombine.high %v891_v50, %v899_v51  ;;  %v851_v32 = vld [vmem:[%s11504_s25 + $0x11e0] sm:$0xff] }
 0x23e   : > { %7200 = vmatprep.subr.bf16.mxu1 %v10399_v62  ;;  %v875_v62 = vld [vmem:[%s11504_s25 + $0x12a0] sm:$0xff] }
 0x23f   : > { %7160 = vmatpush2.bf16.msra.mxu0 %v10142_v4  ;;  %v10543_v11 = vcombine.high %v875_v62, %v883_v63  ;;  %v1099_v34 = vld [vmem:[%s11504_s25 + $0x19a0] sm:$0xff] }
 0x240   : > { %7161 = vmatprep.subr.bf16.mxu0 %v10127_v8  ;;  %v10558_v8 = vcombine.low %v891_v50, %v899_v51  ;;  %v827_v41 = vld [vmem:[%s11504_s25 + $0x1120] sm:$0xff] }
 0x241   : > { %7201 = vmatpush2.bf16.msra.mxu1 %v10398_v7  ;;  %v835_v43 = vld [vmem:[%s11504_s25 + $0x1160] sm:$0xff] }
 0x242   : > { %7202 = vmatprep.subr.bf16.mxu1 %v10383_v9  ;;  %v1083_v6 = vld [vmem:[%s11504_s25 + $0x1920] sm:$0xff] }
 0x243   : > { %7162 = vmatpush2.bf16.msra.mxu0 %v10126_v14  ;;  %v811_v51 = vld [vmem:[%s11504_s25 + $0x10a0] sm:$0xff] }
 0x244   : > { %7163 = vmatprep.subr.bf16.mxu0 %v10111_v17  ;;  %v867_v17 = vld [vmem:[%s11504_s25 + $0x1260] sm:$0xff] }
 0x245   : > { %7203 = vmatpush2.bf16.msra.mxu1 %v10382_v16  ;;  %v859_v16 = vld [vmem:[%s11504_s25 + $0x1220] sm:$0xff] }
 0x246   : > { %7204 = vmatprep.subr.bf16.mxu1 %v10367_v18  ;;  %v819_v53 = vld [vmem:[%s11504_s25 + $0x10e0] sm:$0xff] }
 0x247   : > { %7164 = vmatpush2.bf16.msra.mxu0 %v10110_v25  ;;  %v1067_v5 = vld [vmem:[%s11504_s25 + $0x18a0] sm:$0xff] }
 0x248   : > { %7165 = vmatprep.subr.bf16.mxu0 %v10095_v46  ;;  %v10527_v46 = vcombine.high %v859_v16, %v867_v17 }
 0x249   : > { %7205 = vmatpush2.bf16.msra.mxu1 %v10366_v26  ;;  %v10798_v26 = vcombine.low %v1131_v1, %v1139_v2 }
 0x24a   : > { %7206 = vmatprep.subr.bf16.mxu1 %v10351_v27 }
 0x24b   : > { %7166 = vmatpush2.bf16.msra.mxu0 %v10094_v57  ;;  %v1107_v57 = vld [vmem:[%s11504_s25 + $0x19e0] sm:$0xff] }
 0x24c   : > { %7167 = vmatprep.subr.bf16.mxu0 %v10079_v37  ;;  %v10782_v37 = vcombine.low %v1115_v19, %v1123_v21  ;;  %v10767_v39 = vcombine.high %v1099_v34, %v1107_v57  ;;  %v1019_v19 = vld [vmem:[%s11504_s25 + $0x1720] sm:$0xff] }
 0x24d   : > { %7207 = vmatpush2.bf16.msra.mxu1 %v10350_v49  ;;  %v10526_v49 = vcombine.low %v859_v16, %v867_v17  ;;  %v1027_v21 = vld [vmem:[%s11504_s25 + $0x1760] sm:$0xff] }
 0x24e   : > { %7208 = vmatprep.subr.bf16.mxu1 %v10335_v38  ;;  %v10511_v38 = vcombine.high %v843_v31, %v851_v32 }
 0x24f   : > { %7168 = vmatpush2.bf16.msra.mxu0 %v10078_v60  ;;  %v1091_v60 = vld [vmem:[%s11504_s25 + $0x1960] sm:$0xff] }
 0x250   : > { %7219 = vmatprep.subr.bf16.mxu0 %v10575_v47  ;;  %v10766_v47 = vcombine.low %v1099_v34, %v1107_v57  ;;  %v10751_v50 = vcombine.high %v1083_v6, %v1091_v60  ;;  %v1267_v34 = vld [vmem:[%s11504_s25 + $0x1ee0] sm:$0xff]  ;;  %v10686_v57 = vcombine.low %v1019_v19, %v1027_v21 }
 0x251   : > { %7209 = vmatpush2.bf16.msra.mxu1 %v10334_v44  ;;  %v10510_v44 = vcombine.low %v843_v31, %v851_v32  ;;  %v1011_v31 = vld [vmem:[%s11504_s25 + $0x16e0] sm:$0xff] }
 0x252   : > { %7260 = vmatprep.subr.bf16.mxu1 %v10831_v48  ;;  %v6925_v0 = vpop.f32.mrf.mxu0  ;;  %7170 = vmatmul.mubr.bf16.vlgmr.msra.gmra.mxu0 %v11602_v28  ;;  %v10495_v48 = vcombine.high %v827_v41, %v835_v43  ;;  %v1259_v32 = vld [vmem:[%s11504_s25 + $0x1ea0] sm:$0xff] }
 0x253   : > { %v6926_v4 = vadd.f32 %v6925_v0, %v12125_v20  ;;  %7220 = vmatpush1.bf16.msra.mxu0 %v10574_v54  ;;  %v10799_v20 = vcombine.high %v1131_v1, %v1139_v2  ;;  %7251 = vmatprep.mubr.bf16.mxu0 %v11609_v36  ;;  %v1075_v54 = vld [vmem:[%s11504_s25 + $0x18e0] sm:$0xff] }
 0x254   : > { %v6966_v7 = vpop.f32.mrf.mxu1  ;;  %7211 = vmatmul.mubr.bf16.vlgmr.msra.gmra.mxu1 %v11613_v15  ;;  %v6927_v9 = vpop.f32.mrf.mxu0  ;;  %7221 = vmatprep.subr.bf16.mxu0 %v10559_v59  ;;  %v10750_v59 = vcombine.low %v1083_v6, %v1091_v60  ;;  %v803_v0 = vld [vmem:[%s11504_s25 + $0x1060] sm:$0xff] }
 0x255   : > { %7261 = vmatpush1.bf16.msra.mxu1 %v10830_v58  ;;  %v12198_v12 = vadd.f32 %v6966_v7, %v6926_v4  ;;  %v6928_v13 = vadd.f32 %v6927_v9, %v12130_v29  ;;  %7292 = vmatprep.mubr.bf16.mxu1 %v11622_v45  ;;  %v10542_v29 = vcombine.low %v875_v62, %v883_v63  ;;  %v795_v63 = vld [vmem:[%s11504_s25 + $0x1020] sm:$0xff] }
 0x256   : > { %v6968_v14 = vpop.f32.mrf.mxu1  ;;  %7262 = vmatprep.subr.bf16.mxu1 %v10815_v61  ;;  %v6929_v18 = vpop.f32.mrf.mxu0  ;;  %v10494_v58 = vcombine.low %v827_v41, %v835_v43  ;;  %v10479_v61 = vcombine.high %v811_v51, %v819_v53  ;;  %v10735_v62 = vcombine.high %v1067_v5, %v1075_v54  ;;  %v1051_v1 = vld [vmem:[%s11504_s25 + $0x1820] sm:$0xff]  ;;  %v10478_v4 = vcombine.low %v811_v51, %v819_v53 }
 0x257   : > { %v12207_v22 = vadd.f32 %v6968_v14, %v6928_v13  ;;  %7222 = vmatpush1.bf16.msra.mxu0 %v10558_v8  ;;  %v1059_v2 = vld [vmem:[%s11504_s25 + $0x1860] sm:$0xff]  ;;  %v10734_v7 = vcombine.low %v1067_v5, %v1075_v54  ;;  %v10463_v8 = vcombine.high %v795_v63, %v803_v0 }
 0x258   : > { %v6970_v23 = vpop.f32.mrf.mxu1  ;;  %v6930_v25 = vpop.f32.mrf.mxu0  ;;  %7223 = vmatprep.subr.bf16.mxu0 %v10543_v11  ;;  %v10719_v9 = vcombine.high %v1051_v1, %v1059_v2  ;;  %v1043_v11 = vld [vmem:[%s11504_s25 + $0x17e0] sm:$0xff]  ;;  %v10718_v16 = vcombine.low %v1051_v1, %v1059_v2 }
 0x259   : > { %7263 = vmatpush1.bf16.msra.mxu1 %v10814_v10  ;;  %v1035_v10 = vld [vmem:[%s11504_s25 + $0x17a0] sm:$0xff] }
 0x25a   : > { %v6971_v27 = vpop.f32.mrf.mxu1  ;;  %7264 = vmatprep.subr.bf16.mxu1 %v10799_v20  ;;  %v1291_v13 = vld [vmem:[%s11504_s25 + $0x1fa0] sm:$0xff]  ;;  %v10462_v20 = vcombine.low %v795_v63, %v803_v0  ;;  %v10703_v17 = vcombine.high %v1035_v10, %v1043_v11  ;;  %v10702_v25 = vcombine.low %v1035_v10, %v1043_v11 }
 0x25b   : > { %7224 = vmatpush1.bf16.msra.mxu0 %v10542_v29  ;;  %v1299_v14 = vld [vmem:[%s11504_s25 + $0x1fe0] sm:$0xff] }
 0x25c   : > { %7225 = vmatprep.subr.bf16.mxu0 %v10527_v46  ;;  %v10959_v18 = vcombine.high %v1291_v13, %v1299_v14  ;;  %v1275_v23 = vld [vmem:[%s11504_s25 + $0x1f20] sm:$0xff]  ;;  %v10687_v46 = vcombine.high %v1019_v19, %v1027_v21 }
 0x25d   : > { %7265 = vmatpush1.bf16.msra.mxu1 %v10798_v26  ;;  %v1283_v29 = vld [vmem:[%s11504_s25 + $0x1f60] sm:$0xff]  ;;  %v10958_v26 = vcombine.low %v1291_v13, %v1299_v14 }
 0x25e   : > { %7266 = vmatprep.subr.bf16.mxu1 %v10783_v30  ;;  %v10943_v27 = vcombine.high %v1275_v23, %v1283_v29  ;;  %v1003_v30 = vld [vmem:[%s11504_s25 + $0x16a0] sm:$0xff] }
 0x25f   : > { %7226 = vmatpush1.bf16.msra.mxu0 %v10526_v49  ;;  %v10942_v49 = vcombine.low %v1275_v23, %v1283_v29  ;;  %v995_v41 = vld [vmem:[%s11504_s25 + $0x1660] sm:$0xff]  ;;  %v10670_v60 = vcombine.low %v1003_v30, %v1011_v31 }
 0x260   : > { %7227 = vmatprep.subr.bf16.mxu0 %v10511_v38  ;;  %v10927_v38 = vcombine.high %v1259_v32, %v1267_v34  ;;  %v1243_v43 = vld [vmem:[%s11504_s25 + $0x1e20] sm:$0xff] }
 0x261   : > { %7267 = vmatpush1.bf16.msra.mxu1 %v10782_v37  ;;  %v10671_v37 = vcombine.high %v1003_v30, %v1011_v31  ;;  %v1251_v6 = vld [vmem:[%s11504_s25 + $0x1e60] sm:$0xff]  ;;  %v404_v30 = vld [vmem:[%s11504_s25 + $0x3e8] sm:$0xff] }
 0x262   : > { %7268 = vmatprep.subr.bf16.mxu1 %v10767_v39  ;;  %v987_v39 = vld [vmem:[%s11504_s25 + $0x1620] sm:$0xff]  ;;  %v652_v31 = vld [vmem:[%s11504_s25 + $0xba8] sm:$0xff] }
 0x263   : > { %7228 = vmatpush1.bf16.msra.mxu0 %v10510_v44  ;;  %v10926_v44 = vcombine.low %v1259_v32, %v1267_v34  ;;  %v979_v51 = vld [vmem:[%s11504_s25 + $0x15e0] sm:$0xff]  ;;  %v10654_v54 = vcombine.low %v987_v39, %v995_v41  ;;  %v660_v32 = vld [vmem:[%s11504_s25 + $0xbe8] sm:$0xff] }
 0x264   : > { %7229 = vmatprep.subr.bf16.mxu0 %v10495_v48  ;;  %v10911_v48 = vcombine.high %v1243_v43, %v1251_v6  ;;  %v1227_v53 = vld [vmem:[%s11504_s25 + $0x1da0] sm:$0xff] }
 0x265   : > { %7269 = vmatpush1.bf16.msra.mxu1 %v10766_v47  ;;  %v10655_v47 = vcombine.high %v987_v39, %v995_v41  ;;  %v1235_v5 = vld [vmem:[%s11504_s25 + $0x1de0] sm:$0xff]  ;;  %v388_v39 = vld [vmem:[%s11504_s25 + $0x368] sm:$0xff] }
 0x266   : > { %7270 = vmatprep.subr.bf16.mxu1 %v10751_v50  ;;  %v971_v50 = vld [vmem:[%s11504_s25 + $0x15a0] sm:$0xff]  ;;  %v636_v41 = vld [vmem:[%s11504_s25 + $0xb28] sm:$0xff] }
 0x267   : > { %7230 = vmatpush1.bf16.msra.mxu0 %v10494_v58  ;;  %v10910_v58 = vcombine.low %v1243_v43, %v1251_v6  ;;  %v963_v63 = vld [vmem:[%s11504_s25 + $0x1560] sm:$0xff]  ;;  %v10638_v2 = vcombine.low %v971_v50, %v979_v51  ;;  %v644_v43 = vld [vmem:[%s11504_s25 + $0xb68] sm:$0xff] }
 0x268   : > { %7231 = vmatprep.subr.bf16.mxu0 %v10479_v61  ;;  %v10895_v61 = vcombine.high %v1227_v53, %v1235_v5  ;;  %v1211_v0 = vld [vmem:[%s11504_s25 + $0x1d20] sm:$0xff] }
 0x269   : > { %7271 = vmatpush1.bf16.msra.mxu1 %v10750_v59  ;;  %v10639_v59 = vcombine.high %v971_v50, %v979_v51  ;;  %v1219_v1 = vld [vmem:[%s11504_s25 + $0x1d60] sm:$0xff]  ;;  %v372_v50 = vld [vmem:[%s11504_s25 + $0x2e8] sm:$0xff] }
 0x26a   : > { %7272 = vmatprep.subr.bf16.mxu1 %v10735_v62  ;;  %v955_v62 = vld [vmem:[%s11504_s25 + $0x1520] sm:$0xff] }
 0x26b   : > { %7232 = vmatpush1.bf16.msra.mxu0 %v10478_v4  ;;  %v10894_v4 = vcombine.low %v1227_v53, %v1235_v5  ;;  %v947_v10 = vld [vmem:[%s11504_s25 + $0x14e0] sm:$0xff]  ;;  %v10622_v14 = vcombine.low %v955_v62, %v963_v63  ;;  %v620_v53 = vld [vmem:[%s11504_s25 + $0xaa8] sm:$0xff] }
 0x26c   : > { %7233 = vmatprep.subr.bf16.mxu0 %v10463_v8  ;;  %v10879_v8 = vcombine.high %v1211_v0, %v1219_v1  ;;  %v1195_v11 = vld [vmem:[%s11504_s25 + $0x1ca0] sm:$0xff]  ;;  %v628_v5 = vld [vmem:[%s11504_s25 + $0xae8] sm:$0xff] }
 0x26d   : > { %7273 = vmatpush1.bf16.msra.mxu1 %v10734_v7  ;;  %v10623_v7 = vcombine.high %v955_v62, %v963_v63  ;;  %v1203_v13 = vld [vmem:[%s11504_s25 + $0x1ce0] sm:$0xff]  ;;  %v10304_v62 = vcombine.low %v636_v41, %v644_v43 }
 0x26e   : > { %7274 = vmatprep.subr.bf16.mxu1 %v10719_v9  ;;  %v939_v9 = vld [vmem:[%s11504_s25 + $0x14a0] sm:$0xff] }
 0x26f   : > { %7234 = vmatpush1.bf16.msra.mxu0 %v10462_v20  ;;  %v10878_v20 = vcombine.low %v1211_v0, %v1219_v1  ;;  %v931_v19 = vld [vmem:[%s11504_s25 + $0x1460] sm:$0xff]  ;;  %v10606_v29 = vcombine.low %v939_v9, %v947_v10  ;;  %v10289_v1 = vcombine.high %v620_v53, %v628_v5 }
 0x270   : > { %7235 = vmatprep.subr.bf16.mxu0 %v10703_v17  ;;  %v10863_v17 = vcombine.high %v1195_v11, %v1203_v13  ;;  %v1179_v21 = vld [vmem:[%s11504_s25 + $0x1c20] sm:$0xff] }
 0x271   : > { %7275 = vmatpush1.bf16.msra.mxu1 %v10718_v16  ;;  %v10607_v16 = vcombine.high %v939_v9, %v947_v10  ;;  %v1187_v23 = vld [vmem:[%s11504_s25 + $0x1c60] sm:$0xff]  ;;  %v604_v9 = vld [vmem:[%s11504_s25 + $0xa28] sm:$0xff] }
 0x272   : > { %7276 = vmatprep.subr.bf16.mxu1 %v10959_v18  ;;  %v923_v18 = vld [vmem:[%s11504_s25 + $0x1420] sm:$0xff]  ;;  %v612_v10 = vld [vmem:[%s11504_s25 + $0xa68] sm:$0xff] }
 0x273   : > { %7236 = vmatpush2.bf16.msra.mxu0 %v10702_v25  ;;  %v10862_v25 = vcombine.low %v1195_v11, %v1203_v13  ;;  %v10590_v34 = vcombine.low %v923_v18, %v931_v19 }
 0x274   : > { %7237 = vmatprep.subr.bf16.mxu0 %v10687_v46  ;;  %v10847_v46 = vcombine.high %v1179_v21, %v1187_v23 }
 0x275   : > { %7277 = vmatpush2.bf16.msra.mxu1 %v10958_v26  ;;  %v10591_v26 = vcombine.high %v923_v18, %v931_v19  ;;  %v10273_v18 = vcombine.high %v604_v9, %v612_v10  ;;  %v332_v19 = vld [vmem:[%s11504_s25 + $0x1a8] sm:$0xff] }
 0x276   : > { %7278 = vmatprep.subr.bf16.mxu1 %v10943_v27  ;;  %v396_v27 = vld [vmem:[%s11504_s25 + $0x3a8] sm:$0xff] }
 0x277   : > { %7238 = vmatpush2.bf16.msra.mxu0 %v10686_v57  ;;  %v10846_v57 = vcombine.low %v1179_v21, %v1187_v23  ;;  %v10064_v6 = vcombine.low %v396_v27, %v404_v30  ;;  %v340_v21 = vld [vmem:[%s11504_s25 + $0x1e8] sm:$0xff] }
 0x278   : > { %7239 = vmatprep.subr.bf16.mxu0 %v10671_v37  ;;  %v10321_v37 = vcombine.high %v652_v31, %v660_v32  ;;  %v588_v23 = vld [vmem:[%s11504_s25 + $0x9a8] sm:$0xff] }
 0x279   : > { %7279 = vmatpush2.bf16.msra.mxu1 %v10942_v49  ;;  %v10065_v49 = vcombine.high %v396_v27, %v404_v30  ;;  %v316_v30 = vld [vmem:[%s11504_s25 + $0x128] sm:$0xff] }
 0x27a   : > { %7280 = vmatprep.subr.bf16.mxu1 %v10927_v38  ;;  %v380_v38 = vld [vmem:[%s11504_s25 + $0x328] sm:$0xff] }
 0x27b   : > { %7240 = vmatpush2.bf16.msra.mxu0 %v10670_v60  ;;  %v10320_v60 = vcombine.low %v652_v31, %v660_v32  ;;  %v324_v31 = vld [vmem:[%s11504_s25 + $0x168] sm:$0xff] }
 0x27c   : > { %7241 = vmatprep.subr.bf16.mxu0 %v10655_v47  ;;  %v10305_v47 = vcombine.high %v636_v41, %v644_v43  ;;  %v572_v32 = vld [vmem:[%s11504_s25 + $0x928] sm:$0xff] }
 0x27d   : > { %7281 = vmatpush2.bf16.msra.mxu1 %v10926_v44  ;;  %v10049_v44 = vcombine.high %v380_v38, %v388_v39  ;;  %v308_v41 = vld [vmem:[%s11504_s25 + $0xe8] sm:$0xff] }
 0x27e   : > { %7282 = vmatprep.subr.bf16.mxu1 %v10911_v48  ;;  %v364_v48 = vld [vmem:[%s11504_s25 + $0x2a8] sm:$0xff] }
 0x27f   : > { %7242 = vmatpush2.bf16.msra.mxu0 %v10654_v54  ;;  %v10033_v63 = vcombine.high %v364_v48, %v372_v50  ;;  %v10032_v13 = vcombine.low %v364_v48, %v372_v50  ;;  %v556_v43 = vld [vmem:[%s11504_s25 + $0x8a8] sm:$0xff] }
 0x280   : > { %7243 = vmatprep.subr.bf16.mxu0 %v10639_v59  ;;  %v284_v50 = vld [vmem:[%s11504_s25 + $0x28] sm:$0xff] }
 0x281   : > { %7283 = vmatpush2.bf16.msra.mxu1 %v10910_v58  ;;  %v10048_v58 = vcombine.low %v380_v38, %v388_v39  ;;  %v300_v39 = vld [vmem:[%s11504_s25 + $0xa8] sm:$0xff] }
 0x282   : > { %7284 = vmatprep.subr.bf16.mxu1 %v10895_v61 }
 0x283   : > { %7244 = vmatpush2.bf16.msra.mxu0 %v10638_v2  ;;  %v348_v2 = vld [vmem:[%s11504_s25 + $0x228] sm:$0xff] }
 0x284   : > { %7245 = vmatprep.subr.bf16.mxu0 %v10623_v7 }
 0x285   : > { %7285 = vmatpush2.bf16.msra.mxu1 %v10894_v4  ;;  %v356_v4 = vld [vmem:[%s11504_s25 + $0x268] sm:$0xff] }
 0x286   : > { %7286 = vmatprep.subr.bf16.mxu1 %v10879_v8 }
 0x287   : > { %7246 = vmatpush2.bf16.msra.mxu0 %v10622_v14 }
 0x288   : > { %7247 = vmatprep.subr.bf16.mxu0 %v10607_v16  ;;  %v10017_v16 = vcombine.high %v348_v2, %v356_v4 }
 0x289   : > { %7287 = vmatpush2.bf16.msra.mxu1 %v10878_v20  ;;  %v10288_v20 = vcombine.low %v620_v53, %v628_v5  ;;  %v540_v53 = vld [vmem:[%s11504_s25 + $0x828] sm:$0xff] }
 0x28a   : > { %7288 = vmatprep.subr.bf16.mxu1 %v10863_v17  ;;  %v548_v5 = vld [vmem:[%s11504_s25 + $0x868] sm:$0xff] }
 0x28b   : > { %7248 = vmatpush2.bf16.msra.mxu0 %v10606_v29  ;;  %v596_v29 = vld [vmem:[%s11504_s25 + $0x9e8] sm:$0xff] }
 0x28c   : > { %7249 = vmatprep.subr.bf16.mxu0 %v10591_v26  ;;  %v10272_v26 = vcombine.low %v604_v9, %v612_v10  ;;  %v10257_v27 = vcombine.high %v588_v23, %v596_v29 }
 0x28d   : > { %7289 = vmatpush2.bf16.msra.mxu1 %v10862_v25  ;;  %v10016_v25 = vcombine.low %v348_v2, %v356_v4  ;;  %v788_v2 = vld [vmem:[%s11504_s25 + $0xfe8] sm:$0xff] }
 0x28e   : > { %7290 = vmatprep.subr.bf16.mxu1 %v10847_v46  ;;  %v10001_v46 = vcombine.high %v332_v19, %v340_v21 }
 0x28f   : > { %7250 = vmatpush2.bf16.msra.mxu0 %v10590_v34  ;;  %v580_v34 = vld [vmem:[%s11504_s25 + $0x968] sm:$0xff] }
 0x290   : > { %7301 = vmatprep.subr.bf16.mxu0 %v10065_v49  ;;  %v10256_v49 = vcombine.low %v588_v23, %v596_v29  ;;  %v10241_v38 = vcombine.high %v572_v32, %v580_v34  ;;  %v500_v23 = vld [vmem:[%s11504_s25 + $0x6e8] sm:$0xff] }
 0x291   : > { %7291 = vmatpush2.bf16.msra.mxu1 %v10846_v57  ;;  %v10000_v57 = vcombine.low %v332_v19, %v340_v21  ;;  %v492_v21 = vld [vmem:[%s11504_s25 + $0x6a8] sm:$0xff] }
 0x292   : > { %7342 = vmatprep.subr.bf16.mxu1 %v10321_v37  ;;  %v7007_v51 = vpop.f32.mrf.mxu0  ;;  %7252 = vmatmul.mubr.bf16.vlgmr.msra.gmra.mxu0 %v11552_v55  ;;  %v9985_v37 = vcombine.high %v316_v30, %v324_v31  ;;  %v748_v29 = vld [vmem:[%s11504_s25 + $0xea8] sm:$0xff] }
 0x293   : > { %7302 = vmatpush1.bf16.msra.mxu0 %v10064_v6  ;;  %7333 = vmatprep.mubr.bf16.mxu0 %v11531_v35  ;;  %v564_v6 = vld [vmem:[%s11504_s25 + $0x8e8] sm:$0xff] }
 0x294   : > { %v7048_v54 = vpop.f32.mrf.mxu1  ;;  %7293 = vmatmul.mubr.bf16.vlgmr.msra.gmra.mxu1 %v11689_v56  ;;  %v7009_v61 = vpop.f32.mrf.mxu0  ;;  %7303 = vmatprep.subr.bf16.mxu0 %v10049_v44  ;;  %v10240_v44 = vcombine.low %v572_v32, %v580_v34  ;;  %v10225_v48 = vcombine.high %v556_v43, %v564_v6  ;;  %v484_v32 = vld [vmem:[%s11504_s25 + $0x668] sm:$0xff] }
 0x295   : > { %v12271_v59 = vadd.f32 %v7048_v54, %v7007_v51  ;;  %7343 = vmatpush1.bf16.msra.mxu1 %v10320_v60  ;;  %7374 = vmatprep.mubr.bf16.mxu1 %v11535_v40  ;;  %v9984_v60 = vcombine.low %v316_v30, %v324_v31  ;;  %v292_v51 = vld [vmem:[%s11504_s25 + $0x68] sm:$0xff]  ;;  %v9968_v54 = vcombine.low %v300_v39, %v308_v41 }
 0x296   : > { %v7050_v0 = vpop.f32.mrf.mxu1  ;;  %7344 = vmatprep.subr.bf16.mxu1 %v10305_v47  ;;  %v7011_v8 = vpop.f32.mrf.mxu0  ;;  %v9969_v47 = vcombine.high %v300_v39, %v308_v41  ;;  %v9952_v4 = vcombine.low %v284_v50, %v292_v51  ;;  %v476_v31 = vld [vmem:[%s11504_s25 + $0x628] sm:$0xff] }
 0x297   : > { %v12276_v7 = vadd.f32 %v7050_v0, %v7009_v61  ;;  %7304 = vmatpush1.bf16.msra.mxu0 %v10048_v58  ;;  %v10224_v58 = vcombine.low %v556_v43, %v564_v6  ;;  %v9953_v61 = vcombine.high %v284_v50, %v292_v51  ;;  %v532_v0 = vld [vmem:[%s11504_s25 + $0x7e8] sm:$0xff]  ;;  %v10208_v8 = vcombine.low %v540_v53, %v548_v5 }
 0x298   : > { %v7052_v11 = vpop.f32.mrf.mxu1  ;;  %v7012_v14 = vpop.f32.mrf.mxu0  ;;  %7305 = vmatprep.subr.bf16.mxu0 %v10033_v63  ;;  %v524_v63 = vld [vmem:[%s11504_s25 + $0x7a8] sm:$0xff] }
 0x299   : > { %7345 = vmatpush1.bf16.msra.mxu1 %v10304_v62  ;;  %v10209_v62 = vcombine.high %v540_v53, %v548_v5  ;;  %v10193_v9 = vcombine.high %v524_v63, %v532_v0  ;;  %v508_v11 = vld [vmem:[%s11504_s25 + $0x728] sm:$0xff] }
 0x29a   : > { %v7053_v17 = vpop.f32.mrf.mxu1  ;;  %7346 = vmatprep.subr.bf16.mxu1 %v10289_v1  ;;  %v780_v1 = vld [vmem:[%s11504_s25 + $0xfa8] sm:$0xff] }
 0x29b   : > { %7306 = vmatpush1.bf16.msra.mxu0 %v10032_v13  ;;  %v10449_v10 = vcombine.high %v780_v1, %v788_v2  ;;  %v516_v13 = vld [vmem:[%s11504_s25 + $0x768] sm:$0xff]  ;;  %v10448_v17 = vcombine.low %v780_v1, %v788_v2 }
 0x29c   : > { %7307 = vmatprep.subr.bf16.mxu0 %v10017_v16  ;;  %v764_v14 = vld [vmem:[%s11504_s25 + $0xf28] sm:$0xff]  ;;  %v10192_v16 = vcombine.low %v524_v63, %v532_v0 }
 0x29d   : > { %7347 = vmatpush1.bf16.msra.mxu1 %v10288_v20  ;;  %v772_v20 = vld [vmem:[%s11504_s25 + $0xf68] sm:$0xff] }
 0x29e   : > { %7348 = vmatprep.subr.bf16.mxu1 %v10273_v18  ;;  %v10177_v18 = vcombine.high %v508_v11, %v516_v13  ;;  %v10433_v19 = vcombine.high %v764_v14, %v772_v20  ;;  %v732_v34 = vld [vmem:[%s11504_s25 + $0xe28] sm:$0xff] }
 0x29f   : > { %7308 = vmatpush1.bf16.msra.mxu0 %v10016_v25  ;;  %v756_v25 = vld [vmem:[%s11504_s25 + $0xee8] sm:$0xff] }
 0x2a0   : > { %7309 = vmatprep.subr.bf16.mxu0 %v10001_v46  ;;  %v10432_v46 = vcombine.low %v764_v14, %v772_v20  ;;  %v10417_v30 = vcombine.high %v748_v29, %v756_v25  ;;  %v460_v41 = vld [vmem:[%s11504_s25 + $0x5a8] sm:$0xff] }
 0x2a1   : > { %7349 = vmatpush1.bf16.msra.mxu1 %v10272_v26  ;;  %v10176_v26 = vcombine.low %v508_v11, %v516_v13  ;;  %v468_v43 = vld [vmem:[%s11504_s25 + $0x5e8] sm:$0xff] }
 0x2a2   : > { %7350 = vmatprep.subr.bf16.mxu1 %v10257_v27  ;;  %v10161_v27 = vcombine.high %v492_v21, %v500_v23  ;;  %v716_v6 = vld [vmem:[%s11504_s25 + $0xda8] sm:$0xff] }
 0x2a3   : > { %7310 = vmatpush1.bf16.msra.mxu0 %v10000_v57  ;;  %v740_v57 = vld [vmem:[%s11504_s25 + $0xe68] sm:$0xff] }
 0x2a4   : > { %7311 = vmatprep.subr.bf16.mxu0 %v9985_v37  ;;  %v10416_v37 = vcombine.low %v748_v29, %v756_v25  ;;  %v10401_v39 = vcombine.high %v732_v34, %v740_v57  ;;  %v444_v51 = vld [vmem:[%s11504_s25 + $0x528] sm:$0xff] }
 0x2a5   : > { %7351 = vmatpush1.bf16.msra.mxu1 %v10256_v49  ;;  %v10160_v49 = vcombine.low %v492_v21, %v500_v23  ;;  %v452_v53 = vld [vmem:[%s11504_s25 + $0x568] sm:$0xff] }
 0x2a6   : > { %7352 = vmatprep.subr.bf16.mxu1 %v10241_v38  ;;  %v10145_v38 = vcombine.high %v476_v31, %v484_v32  ;;  %v700_v5 = vld [vmem:[%s11504_s25 + $0xd28] sm:$0xff] }
 0x2a7   : > { %7312 = vmatpush1.bf16.msra.mxu0 %v9984_v60  ;;  %v724_v60 = vld [vmem:[%s11504_s25 + $0xde8] sm:$0xff] }
 0x2a8   : > { %7313 = vmatprep.subr.bf16.mxu0 %v9969_v47  ;;  %v10400_v47 = vcombine.low %v732_v34, %v740_v57  ;;  %v10385_v50 = vcombine.high %v716_v6, %v724_v60  ;;  %v428_v0 = vld [vmem:[%s11504_s25 + $0x4a8] sm:$0xff] }
 0x2a9   : > { %7353 = vmatpush1.bf16.msra.mxu1 %v10240_v44  ;;  %v10144_v44 = vcombine.low %v476_v31, %v484_v32  ;;  %v436_v1 = vld [vmem:[%s11504_s25 + $0x4e8] sm:$0xff] }
 0x2aa   : > { %7354 = vmatprep.subr.bf16.mxu1 %v10225_v48  ;;  %v10129_v48 = vcombine.high %v460_v41, %v468_v43  ;;  %v684_v2 = vld [vmem:[%s11504_s25 + $0xca8] sm:$0xff] }
 0x2ab   : > { %7314 = vmatpush1.bf16.msra.mxu0 %v9968_v54  ;;  %v708_v54 = vld [vmem:[%s11504_s25 + $0xd68] sm:$0xff] }
 0x2ac   : > { %7315 = vmatprep.subr.bf16.mxu0 %v9953_v61  ;;  %v10384_v61 = vcombine.low %v716_v6, %v724_v60  ;;  %v10369_v63 = vcombine.high %v700_v5, %v708_v54  ;;  %v412_v13 = vld [vmem:[%s11504_s25 + $0x428] sm:$0xff] }
 0x2ad   : > { %7355 = vmatpush1.bf16.msra.mxu1 %v10224_v58  ;;  %v10128_v58 = vcombine.low %v460_v41, %v468_v43  ;;  %v420_v14 = vld [vmem:[%s11504_s25 + $0x468] sm:$0xff] }
 0x2ae   : > { %7356 = vmatprep.subr.bf16.mxu1 %v10209_v62  ;;  %v10113_v62 = vcombine.high %v444_v51, %v452_v53  ;;  %v668_v20 = vld [vmem:[%s11504_s25 + $0xc28] sm:$0xff] }
 0x2af   : > { %7316 = vmatpush1.bf16.msra.mxu0 %v9952_v4  ;;  %v692_v4 = vld [vmem:[%s11504_s25 + $0xce8] sm:$0xff] }
 0x2b0   : > { %7317 = vmatprep.subr.bf16.mxu0 %v10193_v9  ;;  %v10368_v9 = vcombine.low %v700_v5, %v708_v54  ;;  %v10353_v11 = vcombine.high %v684_v2, %v692_v4  ;;  %v908_v23 = vld [vmem:[%s11504_s25 + $0x13a8] sm:$0xff] }
 0x2b1   : > { %7357 = vmatpush1.bf16.msra.mxu1 %v10208_v8  ;;  %v10112_v8 = vcombine.low %v444_v51, %v452_v53  ;;  %v916_v29 = vld [vmem:[%s11504_s25 + $0x13e8] sm:$0xff] }
 0x2b2   : > { %7358 = vmatprep.subr.bf16.mxu1 %v10449_v10  ;;  %v10097_v10 = vcombine.high %v428_v0, %v436_v1  ;;  %v1164_v25 = vld [vmem:[%s11504_s25 + $0x1ba8] sm:$0xff] }
 0x2b3   : > { %7318 = vmatpush2.bf16.msra.mxu0 %v10192_v16  ;;  %v676_v16 = vld [vmem:[%s11504_s25 + $0xc68] sm:$0xff] }
 0x2b4   : > { %7319 = vmatprep.subr.bf16.mxu0 %v10177_v18  ;;  %v10352_v18 = vcombine.low %v684_v2, %v692_v4  ;;  %v10337_v21 = vcombine.high %v668_v20, %v676_v16  ;;  %v892_v32 = vld [vmem:[%s11504_s25 + $0x1328] sm:$0xff] }
 0x2b5   : > { %7359 = vmatpush2.bf16.msra.mxu1 %v10448_v17  ;;  %v10096_v17 = vcombine.low %v428_v0, %v436_v1  ;;  %v900_v34 = vld [vmem:[%s11504_s25 + $0x1368] sm:$0xff] }
 0x2b6   : > { %7360 = vmatprep.subr.bf16.mxu1 %v10433_v19  ;;  %v10081_v19 = vcombine.high %v412_v13, %v420_v14  ;;  %v1148_v57 = vld [vmem:[%s11504_s25 + $0x1b28] sm:$0xff]  ;;  %v10560_v51 = vcombine.low %v892_v32, %v900_v34 }
 0x2b7   : > { %7320 = vmatpush2.bf16.msra.mxu0 %v10176_v26  ;;  %v1172_v26 = vld [vmem:[%s11504_s25 + $0x1be8] sm:$0xff] }
 0x2b8   : > { %7321 = vmatprep.subr.bf16.mxu0 %v10161_v27  ;;  %v10336_v27 = vcombine.low %v668_v20, %v676_v16  ;;  %v10833_v31 = vcombine.high %v1164_v25, %v1172_v26  ;;  %v876_v43 = vld [vmem:[%s11504_s25 + $0x12a8] sm:$0xff] }
 0x2b9   : > { %7361 = vmatpush2.bf16.msra.mxu1 %v10432_v46  ;;  %v10080_v46 = vcombine.low %v412_v13, %v420_v14  ;;  %v884_v6 = vld [vmem:[%s11504_s25 + $0x12e8] sm:$0xff] }
 0x2ba   : > { %7362 = vmatprep.subr.bf16.mxu1 %v10417_v30  ;;  %v10577_v30 = vcombine.high %v908_v23, %v916_v29  ;;  %v10545_v54 = vcombine.high %v876_v43, %v884_v6  ;;  %v868_v0 = vld [vmem:[%s11504_s25 + $0x1268] sm:$0xff] }
 0x2bb   : > { %7322 = vmatpush2.bf16.msra.mxu0 %v10160_v49  ;;  %v1156_v49 = vld [vmem:[%s11504_s25 + $0x1b68] sm:$0xff] }
 0x2bc   : > { %7323 = vmatprep.subr.bf16.mxu0 %v10145_v38  ;;  %v10832_v38 = vcombine.low %v1164_v25, %v1172_v26  ;;  %v10817_v41 = vcombine.high %v1148_v57, %v1156_v49  ;;  %v10816_v5 = vcombine.low %v1148_v57, %v1156_v49  ;;  %v1116_v2 = vld [vmem:[%s11504_s25 + $0x1a28] sm:$0xff] }
 0x2bd   : > { %7363 = vmatpush2.bf16.msra.mxu1 %v10416_v37  ;;  %v10576_v37 = vcombine.low %v908_v23, %v916_v29  ;;  %v1124_v4 = vld [vmem:[%s11504_s25 + $0x1a68] sm:$0xff] }
 0x2be   : > { %7364 = vmatprep.subr.bf16.mxu1 %v10401_v39  ;;  %v10561_v39 = vcombine.high %v892_v32, %v900_v34  ;;  %v10785_v20 = vcombine.high %v1116_v2, %v1124_v4  ;;  %v844_v16 = vld [vmem:[%s11504_s25 + $0x11a8] sm:$0xff]  ;;  %v10784_v23 = vcombine.low %v1116_v2, %v1124_v4 }
 0x2bf   : > { %7324 = vmatpush2.bf16.msra.mxu0 %v10144_v44  ;;  %v1132_v44 = vld [vmem:[%s11504_s25 + $0x1aa8] sm:$0xff] }
 0x2c0   : > { %7325 = vmatprep.subr.bf16.mxu0 %v10129_v48  ;;  %v828_v26 = vld [vmem:[%s11504_s25 + $0x1128] sm:$0xff] }
 0x2c1   : > { %7365 = vmatpush2.bf16.msra.mxu1 %v10400_v47  ;;  %v1140_v47 = vld [vmem:[%s11504_s25 + $0x1ae8] sm:$0xff] }
 0x2c2   : > { %7366 = vmatprep.subr.bf16.mxu1 %v10385_v50  ;;  %v812_v49 = vld [vmem:[%s11504_s25 + $0x10a8] sm:$0xff] }
 0x2c3   : > { %7326 = vmatpush2.bf16.msra.mxu0 %v10128_v58 }
 0x2c4   : > { %7327 = vmatprep.subr.bf16.mxu0 %v10113_v62 }
 0x2c5   : > { %7367 = vmatpush2.bf16.msra.mxu1 %v10384_v61 }
 0x2c6   : > { %7368 = vmatprep.subr.bf16.mxu1 %v10369_v63  ;;  %v860_v63 = vld [vmem:[%s11504_s25 + $0x1228] sm:$0xff] }
 0x2c7   : > { %7328 = vmatpush2.bf16.msra.mxu0 %v10112_v8  ;;  %v10529_v13 = vcombine.high %v860_v63, %v868_v0 }
 0x2c8   : > { %7329 = vmatprep.subr.bf16.mxu0 %v10097_v10 }
 0x2c9   : > { %7369 = vmatpush2.bf16.msra.mxu1 %v10368_v9 }
 0x2ca   : > { %7370 = vmatprep.subr.bf16.mxu1 %v10353_v11  ;;  %v10800_v11 = vcombine.low %v1132_v44, %v1140_v47 }
 0x2cb   : > { %7330 = vmatpush2.bf16.msra.mxu0 %v10096_v17  ;;  %v852_v17 = vld [vmem:[%s11504_s25 + $0x11e8] sm:$0xff] }
 0x2cc   : > { %7331 = vmatprep.subr.bf16.mxu0 %v10081_v19  ;;  %v1108_v19 = vld [vmem:[%s11504_s25 + $0x19e8] sm:$0xff]  ;;  %v10513_v29 = vcombine.high %v844_v16, %v852_v17 }
 0x2cd   : > { %7371 = vmatpush2.bf16.msra.mxu1 %v10352_v18  ;;  %v1100_v18 = vld [vmem:[%s11504_s25 + $0x19a8] sm:$0xff] }
 0x2ce   : > { %7372 = vmatprep.subr.bf16.mxu1 %v10337_v21  ;;  %v10528_v21 = vcombine.low %v860_v63, %v868_v0  ;;  %v10769_v25 = vcombine.high %v1100_v18, %v1108_v19  ;;  %v10768_v32 = vcombine.low %v1100_v18, %v1108_v19  ;;  %v1300_v63 = vld [vmem:[%s11504_s25 + $0x1fe8] sm:$0xff] }
 0x2cf   : > { %7332 = vmatpush2.bf16.msra.mxu0 %v10080_v46  ;;  %v836_v46 = vld [vmem:[%s11504_s25 + $0x1168] sm:$0xff] }
 0x2d0   : > { %7383 = vmatprep.subr.bf16.mxu0 %v10577_v30  ;;  %v1092_v30 = vld [vmem:[%s11504_s25 + $0x1968] sm:$0xff]  ;;  %v10497_v34 = vcombine.high %v828_v26, %v836_v46 }
 0x2d1   : > { %7373 = vmatpush2.bf16.msra.mxu1 %v10336_v27  ;;  %v1084_v27 = vld [vmem:[%s11504_s25 + $0x1928] sm:$0xff] }
 0x2d2   : > { %7424 = vmatprep.subr.bf16.mxu1 %v10833_v31  ;;  %v7089_v60 = vpop.f32.mrf.mxu0  ;;  %7334 = vmatmul.mubr.bf16.vlgmr.msra.gmra.mxu0 %v11602_v28  ;;  %v10512_v31 = vcombine.low %v844_v16, %v852_v17  ;;  %v10753_v57 = vcombine.high %v1084_v27, %v1092_v30  ;;  %v1004_v17 = vld [vmem:[%s11504_s25 + $0x16a8] sm:$0xff] }
 0x2d3   : > { %v7090_v48 = vadd.f32 %v7089_v60, %v12271_v59  ;;  %7384 = vmatpush1.bf16.msra.mxu0 %v10576_v37  ;;  %v10801_v59 = vcombine.high %v1132_v44, %v1140_v47  ;;  %7415 = vmatprep.mubr.bf16.mxu0 %v11609_v36  ;;  %v820_v37 = vld [vmem:[%s11504_s25 + $0x10e8] sm:$0xff] }
 0x2d4   : > { %v7130_v50 = vpop.f32.mrf.mxu1  ;;  %7375 = vmatmul.mubr.bf16.vlgmr.msra.gmra.mxu1 %v11613_v15  ;;  %v7091_v53 = vpop.f32.mrf.mxu0  ;;  %7385 = vmatprep.subr.bf16.mxu0 %v10561_v39  ;;  %v1076_v39 = vld [vmem:[%s11504_s25 + $0x18e8] sm:$0xff] }
 0x2d5   : > { %7425 = vmatpush1.bf16.msra.mxu1 %v10832_v38  ;;  %v12344_v58 = vadd.f32 %v7130_v50, %v7090_v48  ;;  %v7092_v61 = vadd.f32 %v7091_v53, %v12276_v7  ;;  %7456 = vmatprep.mubr.bf16.mxu1 %v11622_v45  ;;  %v10544_v7 = vcombine.low %v876_v43, %v884_v6  ;;  %v1068_v38 = vld [vmem:[%s11504_s25 + $0x18a8] sm:$0xff] }
 0x2d6   : > { %v7132_v62 = vpop.f32.mrf.mxu1  ;;  %7426 = vmatprep.subr.bf16.mxu1 %v10817_v41  ;;  %v7093_v1 = vpop.f32.mrf.mxu0  ;;  %v10496_v41 = vcombine.low %v828_v26, %v836_v46  ;;  %v10752_v43 = vcombine.low %v1084_v27, %v1092_v30  ;;  %v10481_v6 = vcombine.high %v812_v49, %v820_v37  ;;  %v10737_v60 = vcombine.high %v1068_v38, %v1076_v39  ;;  %v796_v44 = vld [vmem:[%s11504_s25 + $0x1028] sm:$0xff] }
 0x2d7   : > { %v12353_v8 = vadd.f32 %v7132_v62, %v7092_v61  ;;  %7386 = vmatpush1.bf16.msra.mxu0 %v10560_v51  ;;  %v804_v47 = vld [vmem:[%s11504_s25 + $0x1068] sm:$0xff]  ;;  %v10480_v51 = vcombine.low %v812_v49, %v820_v37  ;;  %v10736_v53 = vcombine.low %v1068_v38, %v1076_v39 }
 0x2d8   : > { %v7134_v9 = vpop.f32.mrf.mxu1  ;;  %v7094_v10 = vpop.f32.mrf.mxu0  ;;  %7387 = vmatprep.subr.bf16.mxu0 %v10545_v54  ;;  %v1052_v48 = vld [vmem:[%s11504_s25 + $0x1828] sm:$0xff]  ;;  %v10464_v0 = vcombine.low %v796_v44, %v804_v47 }
 0x2d9   : > { %7427 = vmatpush1.bf16.msra.mxu1 %v10816_v5  ;;  %v1060_v50 = vld [vmem:[%s11504_s25 + $0x1868] sm:$0xff]  ;;  %v10465_v5 = vcombine.high %v796_v44, %v804_v47 }
 0x2da   : > { %v7135_v14 = vpop.f32.mrf.mxu1  ;;  %7428 = vmatprep.subr.bf16.mxu1 %v10801_v59  ;;  %v10721_v54 = vcombine.high %v1052_v48, %v1060_v50  ;;  %v1036_v61 = vld [vmem:[%s11504_s25 + $0x17a8] sm:$0xff]  ;;  %v10720_v1 = vcombine.low %v1052_v48, %v1060_v50 }
 0x2db   : > { %7388 = vmatpush1.bf16.msra.mxu0 %v10544_v7  ;;  %v1044_v62 = vld [vmem:[%s11504_s25 + $0x17e8] sm:$0xff] }
 0x2dc   : > { %7389 = vmatprep.subr.bf16.mxu0 %v10529_v13  ;;  %v1292_v59 = vld [vmem:[%s11504_s25 + $0x1fa8] sm:$0xff]  ;;  %v10705_v2 = vcombine.high %v1036_v61, %v1044_v62  ;;  %v10704_v13 = vcombine.low %v1036_v61, %v1044_v62 }
 0x2dd   : > { %7429 = vmatpush1.bf16.msra.mxu1 %v10800_v11  ;;  %v10961_v4 = vcombine.high %v1292_v59, %v1300_v63  ;;  %v1020_v9 = vld [vmem:[%s11504_s25 + $0x1728] sm:$0xff]  ;;  %v10960_v14 = vcombine.low %v1292_v59, %v1300_v63 }
 0x2de   : > { %7430 = vmatprep.subr.bf16.mxu1 %v10785_v20  ;;  %v1028_v7 = vld [vmem:[%s11504_s25 + $0x1768] sm:$0xff] }
 0x2df   : > { %7390 = vmatpush1.bf16.msra.mxu0 %v10528_v21  ;;  %v1276_v10 = vld [vmem:[%s11504_s25 + $0x1f28] sm:$0xff]  ;;  %v10689_v20 = vcombine.high %v1020_v9, %v1028_v7 }
 0x2e0   : > { %7391 = vmatprep.subr.bf16.mxu0 %v10513_v29  ;;  %v1284_v11 = vld [vmem:[%s11504_s25 + $0x1f68] sm:$0xff] }
 0x2e1   : > { %7431 = vmatpush1.bf16.msra.mxu1 %v10784_v23  ;;  %v10945_v16 = vcombine.high %v1276_v10, %v1284_v11  ;;  %v1012_v18 = vld [vmem:[%s11504_s25 + $0x16e8] sm:$0xff]  ;;  %v10688_v23 = vcombine.low %v1020_v9, %v1028_v7  ;;  %v10944_v29 = vcombine.low %v1276_v10, %v1284_v11 }
 0x2e2   : > { %7432 = vmatprep.subr.bf16.mxu1 %v10769_v25  ;;  %v1260_v19 = vld [vmem:[%s11504_s25 + $0x1ea8] sm:$0xff]  ;;  %v10673_v25 = vcombine.high %v1004_v17, %v1012_v18 }
 0x2e3   : > { %7392 = vmatpush1.bf16.msra.mxu0 %v10512_v31  ;;  %v1268_v21 = vld [vmem:[%s11504_s25 + $0x1ee8] sm:$0xff] }
 0x2e4   : > { %7393 = vmatprep.subr.bf16.mxu0 %v10497_v34  ;;  %v10929_v26 = vcombine.high %v1260_v19, %v1268_v21  ;;  %v988_v46 = vld [vmem:[%s11504_s25 + $0x1628] sm:$0xff]  ;;  %v10928_v34 = vcombine.low %v1260_v19, %v1268_v21  ;;  %v405_v19 = vld [vmem:[%s11504_s25 + $0x3f0] sm:$0xff] }
 0x2e5   : > { %7433 = vmatpush1.bf16.msra.mxu1 %v10768_v32  ;;  %v996_v27 = vld [vmem:[%s11504_s25 + $0x1668] sm:$0xff]  ;;  %v10672_v32 = vcombine.low %v1004_v17, %v1012_v18  ;;  %v397_v18 = vld [vmem:[%s11504_s25 + $0x3b0] sm:$0xff] }
 0x2e6   : > { %7434 = vmatprep.subr.bf16.mxu1 %v10753_v57  ;;  %v1244_v30 = vld [vmem:[%s11504_s25 + $0x1e28] sm:$0xff]  ;;  %v10657_v57 = vcombine.high %v988_v46, %v996_v27  ;;  %v653_v21 = vld [vmem:[%s11504_s25 + $0xbb0] sm:$0xff] }
 0x2e7   : > { %7394 = vmatpush1.bf16.msra.mxu0 %v10496_v41  ;;  %v1252_v31 = vld [vmem:[%s11504_s25 + $0x1e68] sm:$0xff] }
 0x2e8   : > { %7395 = vmatprep.subr.bf16.mxu0 %v10481_v6  ;;  %v10913_v49 = vcombine.high %v1244_v30, %v1252_v31  ;;  %v972_v37 = vld [vmem:[%s11504_s25 + $0x15a8] sm:$0xff]  ;;  %v10912_v6 = vcombine.low %v1244_v30, %v1252_v31  ;;  %v389_v30 = vld [vmem:[%s11504_s25 + $0x370] sm:$0xff] }
 0x2e9   : > { %7435 = vmatpush1.bf16.msra.mxu1 %v10752_v43  ;;  %v980_v38 = vld [vmem:[%s11504_s25 + $0x15e8] sm:$0xff]  ;;  %v10656_v43 = vcombine.low %v988_v46, %v996_v27  ;;  %v381_v27 = vld [vmem:[%s11504_s25 + $0x330] sm:$0xff] }
 0x2ea   : > { %7436 = vmatprep.subr.bf16.mxu1 %v10737_v60  ;;  %v1228_v39 = vld [vmem:[%s11504_s25 + $0x1da8] sm:$0xff]  ;;  %v10641_v60 = vcombine.high %v972_v37, %v980_v38  ;;  %v637_v31 = vld [vmem:[%s11504_s25 + $0xb30] sm:$0xff] }
 0x2eb   : > { %7396 = vmatpush1.bf16.msra.mxu0 %v10480_v51  ;;  %v1236_v41 = vld [vmem:[%s11504_s25 + $0x1de8] sm:$0xff] }
 0x2ec   : > { %7397 = vmatprep.subr.bf16.mxu0 %v10465_v5  ;;  %v10897_v44 = vcombine.high %v1228_v39, %v1236_v41  ;;  %v956_v47 = vld [vmem:[%s11504_s25 + $0x1528] sm:$0xff]  ;;  %v10896_v5 = vcombine.low %v1228_v39, %v1236_v41  ;;  %v373_v39 = vld [vmem:[%s11504_s25 + $0x2f0] sm:$0xff] }
 0x2ed   : > { %7437 = vmatpush1.bf16.msra.mxu1 %v10736_v53  ;;  %v964_v48 = vld [vmem:[%s11504_s25 + $0x1568] sm:$0xff]  ;;  %v10640_v53 = vcombine.low %v972_v37, %v980_v38  ;;  %v365_v38 = vld [vmem:[%s11504_s25 + $0x2b0] sm:$0xff] }
 0x2ee   : > { %7438 = vmatprep.subr.bf16.mxu1 %v10721_v54  ;;  %v1212_v50 = vld [vmem:[%s11504_s25 + $0x1d28] sm:$0xff]  ;;  %v10625_v54 = vcombine.high %v956_v47, %v964_v48 }
 0x2ef   : > { %7398 = vmatpush1.bf16.msra.mxu0 %v10464_v0  ;;  %v1220_v51 = vld [vmem:[%s11504_s25 + $0x1d68] sm:$0xff] }
 0x2f0   : > { %7399 = vmatprep.subr.bf16.mxu0 %v10705_v2  ;;  %v10881_v61 = vcombine.high %v1212_v50, %v1220_v51  ;;  %v940_v62 = vld [vmem:[%s11504_s25 + $0x14a8] sm:$0xff]  ;;  %v10880_v2 = vcombine.low %v1212_v50, %v1220_v51  ;;  %v10035_v51 = vcombine.high %v365_v38, %v373_v39 }
 0x2f1   : > { %7439 = vmatpush1.bf16.msra.mxu1 %v10720_v1  ;;  %v948_v59 = vld [vmem:[%s11504_s25 + $0x14e8] sm:$0xff]  ;;  %v10624_v1 = vcombine.low %v956_v47, %v964_v48 }
 0x2f2   : > { %7440 = vmatprep.subr.bf16.mxu1 %v10961_v4  ;;  %v1196_v63 = vld [vmem:[%s11504_s25 + $0x1ca8] sm:$0xff]  ;;  %v10609_v4 = vcombine.high %v940_v62, %v948_v59 }
 0x2f3   : > { %7400 = vmatpush2.bf16.msra.mxu0 %v10704_v13  ;;  %v1204_v0 = vld [vmem:[%s11504_s25 + $0x1ce8] sm:$0xff] }
 0x2f4   : > { %7401 = vmatprep.subr.bf16.mxu0 %v10689_v20  ;;  %v10865_v9 = vcombine.high %v1196_v63, %v1204_v0  ;;  %v924_v7 = vld [vmem:[%s11504_s25 + $0x1428] sm:$0xff]  ;;  %v10864_v20 = vcombine.low %v1196_v63, %v1204_v0  ;;  %v605_v63 = vld [vmem:[%s11504_s25 + $0xa30] sm:$0xff] }
 0x2f5   : > { %7441 = vmatpush2.bf16.msra.mxu1 %v10960_v14  ;;  %v932_v10 = vld [vmem:[%s11504_s25 + $0x1468] sm:$0xff]  ;;  %v10608_v14 = vcombine.low %v940_v62, %v948_v59  ;;  %v613_v0 = vld [vmem:[%s11504_s25 + $0xa70] sm:$0xff] }
 0x2f6   : > { %7442 = vmatprep.subr.bf16.mxu1 %v10945_v16  ;;  %v1180_v11 = vld [vmem:[%s11504_s25 + $0x1c28] sm:$0xff]  ;;  %v10593_v16 = vcombine.high %v924_v7, %v932_v10 }
 0x2f7   : > { %7402 = vmatpush2.bf16.msra.mxu0 %v10688_v23  ;;  %v1188_v13 = vld [vmem:[%s11504_s25 + $0x1c68] sm:$0xff]  ;;  %v661_v23 = vld [vmem:[%s11504_s25 + $0xbf0] sm:$0xff] }
 0x2f8   : > { %7403 = vmatprep.subr.bf16.mxu0 %v10673_v25  ;;  %v10849_v17 = vcombine.high %v1180_v11, %v1188_v13  ;;  %v10848_v25 = vcombine.low %v1180_v11, %v1188_v13  ;;  %v10323_v46 = vcombine.high %v653_v21, %v661_v23  ;;  %v10275_v11 = vcombine.high %v605_v63, %v613_v0  ;;  %v333_v13 = vld [vmem:[%s11504_s25 + $0x1b0] sm:$0xff] }
 0x2f9   : > { %7443 = vmatpush2.bf16.msra.mxu1 %v10944_v29  ;;  %v10592_v29 = vcombine.low %v924_v7, %v932_v10 }
 0x2fa   : > { %7444 = vmatprep.subr.bf16.mxu1 %v10929_v26  ;;  %v10067_v26 = vcombine.high %v397_v18, %v405_v19 }
 0x2fb   : > { %7404 = vmatpush2.bf16.msra.mxu0 %v10672_v32  ;;  %v645_v32 = vld [vmem:[%s11504_s25 + $0xb70] sm:$0xff] }
 0x2fc   : > { %7405 = vmatprep.subr.bf16.mxu0 %v10657_v57  ;;  %v10322_v57 = vcombine.low %v653_v21, %v661_v23  ;;  %v10307_v37 = vcombine.high %v637_v31, %v645_v32  ;;  %v10306_v50 = vcombine.low %v637_v31, %v645_v32  ;;  %v317_v23 = vld [vmem:[%s11504_s25 + $0x130] sm:$0xff] }
 0x2fd   : > { %7445 = vmatpush2.bf16.msra.mxu1 %v10928_v34  ;;  %v10066_v34 = vcombine.low %v397_v18, %v405_v19  ;;  %v10274_v18 = vcombine.low %v605_v63, %v613_v0  ;;  %v301_v32 = vld [vmem:[%s11504_s25 + $0xb0] sm:$0xff] }
 0x2fe   : > { %7446 = vmatprep.subr.bf16.mxu1 %v10913_v49  ;;  %v10051_v49 = vcombine.high %v381_v27, %v389_v30 }
 0x2ff   : > { %7406 = vmatpush2.bf16.msra.mxu0 %v10656_v43  ;;  %v621_v43 = vld [vmem:[%s11504_s25 + $0xab0] sm:$0xff] }
 0x300   : > { %7407 = vmatprep.subr.bf16.mxu0 %v10641_v60 }
 0x301   : > { %7447 = vmatpush2.bf16.msra.mxu1 %v10912_v6  ;;  %v629_v6 = vld [vmem:[%s11504_s25 + $0xaf0] sm:$0xff] }
 0x302   : > { %7448 = vmatprep.subr.bf16.mxu1 %v10897_v44  ;;  %v10050_v44 = vcombine.low %v381_v27, %v389_v30 }
 0x303   : > { %7408 = vmatpush2.bf16.msra.mxu0 %v10640_v53 }
 0x304   : > { %7409 = vmatprep.subr.bf16.mxu0 %v10625_v54  ;;  %v349_v54 = vld [vmem:[%s11504_s25 + $0x230] sm:$0xff] }
 0x305   : > { %7449 = vmatpush2.bf16.msra.mxu1 %v10896_v5  ;;  %v10291_v5 = vcombine.high %v621_v43, %v629_v6 }
 0x306   : > { %7450 = vmatprep.subr.bf16.mxu1 %v10881_v61  ;;  %v357_v61 = vld [vmem:[%s11504_s25 + $0x270] sm:$0xff] }
 0x307   : > { %7410 = vmatpush2.bf16.msra.mxu0 %v10624_v1  ;;  %v10019_v7 = vcombine.high %v349_v54, %v357_v61 }
 0x308   : > { %7411 = vmatprep.subr.bf16.mxu0 %v10609_v4 }
 0x309   : > { %7451 = vmatpush2.bf16.msra.mxu1 %v10880_v2  ;;  %v10034_v2 = vcombine.low %v365_v38, %v373_v39 }
 0x30a   : > { %7452 = vmatprep.subr.bf16.mxu1 %v10865_v9  ;;  %v10290_v9 = vcombine.low %v621_v43, %v629_v6  ;;  %v285_v43 = vld [vmem:[%s11504_s25 + $0x30] sm:$0xff] }
 0x30b   : > { %7412 = vmatpush2.bf16.msra.mxu0 %v10608_v14  ;;  %v341_v14 = vld [vmem:[%s11504_s25 + $0x1f0] sm:$0xff] }
 0x30c   : > { %7413 = vmatprep.subr.bf16.mxu0 %v10593_v16  ;;  %v597_v16 = vld [vmem:[%s11504_s25 + $0x9f0] sm:$0xff]  ;;  %v10003_v19 = vcombine.high %v333_v13, %v341_v14 }
 0x30d   : > { %7453 = vmatpush2.bf16.msra.mxu1 %v10864_v20  ;;  %v589_v20 = vld [vmem:[%s11504_s25 + $0x9b0] sm:$0xff] }
 0x30e   : > { %7454 = vmatprep.subr.bf16.mxu1 %v10849_v17  ;;  %v10018_v17 = vcombine.low %v349_v54, %v357_v61  ;;  %v10259_v21 = vcombine.high %v589_v20, %v597_v16  ;;  %v10258_v27 = vcombine.low %v589_v20, %v597_v16  ;;  %v293_v6 = vld [vmem:[%s11504_s25 + $0x70] sm:$0xff] }
 0x30f   : > { %7414 = vmatpush2.bf16.msra.mxu0 %v10592_v29  ;;  %v325_v29 = vld [vmem:[%s11504_s25 + $0x170] sm:$0xff]  ;;  %v9954_v63 = vcombine.low %v285_v43, %v293_v6 }
 0x310   : > { %7465 = vmatprep.subr.bf16.mxu0 %v10067_v26  ;;  %v581_v26 = vld [vmem:[%s11504_s25 + $0x970] sm:$0xff]  ;;  %v9987_v30 = vcombine.high %v317_v23, %v325_v29 }
 0x311   : > { %7455 = vmatpush2.bf16.msra.mxu1 %v10848_v25  ;;  %v573_v25 = vld [vmem:[%s11504_s25 + $0x930] sm:$0xff] }
 0x312   : > { %7506 = vmatprep.subr.bf16.mxu1 %v10323_v46  ;;  %v7171_v41 = vpop.f32.mrf.mxu0  ;;  %7416 = vmatmul.mubr.bf16.vlgmr.msra.gmra.mxu0 %v11552_v55  ;;  %v10002_v46 = vcombine.low %v333_v13, %v341_v14  ;;  %v10243_v31 = vcombine.high %v573_v25, %v581_v26  ;;  %v10242_v38 = vcombine.low %v573_v25, %v581_v26  ;;  %v533_v54 = vld [vmem:[%s11504_s25 + $0x7f0] sm:$0xff] }
 0x313   : > { %7466 = vmatpush1.bf16.msra.mxu0 %v10066_v34  ;;  %7497 = vmatprep.mubr.bf16.mxu0 %v11531_v35  ;;  %v309_v34 = vld [vmem:[%s11504_s25 + $0xf0] sm:$0xff] }
 0x314   : > { %v7212_v60 = vpop.f32.mrf.mxu1  ;;  %7457 = vmatmul.mubr.bf16.vlgmr.msra.gmra.mxu1 %v11689_v56  ;;  %v7173_v48 = vpop.f32.mrf.mxu0  ;;  %7467 = vmatprep.subr.bf16.mxu0 %v10051_v49  ;;  %v565_v49 = vld [vmem:[%s11504_s25 + $0x8f0] sm:$0xff]  ;;  %v9971_v39 = vcombine.high %v301_v32, %v309_v34 }
 0x315   : > { %v12417_v47 = vadd.f32 %v7212_v60, %v7171_v41  ;;  %7507 = vmatpush1.bf16.msra.mxu1 %v10322_v57  ;;  %7538 = vmatprep.mubr.bf16.mxu1 %v11535_v40  ;;  %v557_v57 = vld [vmem:[%s11504_s25 + $0x8b0] sm:$0xff] }
 0x316   : > { %v7214_v53 = vpop.f32.mrf.mxu1  ;;  %7508 = vmatprep.subr.bf16.mxu1 %v10307_v37  ;;  %v7175_v59 = vpop.f32.mrf.mxu0  ;;  %v9986_v37 = vcombine.low %v317_v23, %v325_v29  ;;  %v10227_v41 = vcombine.high %v557_v57, %v565_v49  ;;  %v541_v60 = vld [vmem:[%s11504_s25 + $0x830] sm:$0xff] }
 0x317   : > { %v12422_v62 = vadd.f32 %v7214_v53, %v7173_v48  ;;  %7468 = vmatpush1.bf16.msra.mxu0 %v10050_v44  ;;  %v549_v44 = vld [vmem:[%s11504_s25 + $0x870] sm:$0xff]  ;;  %v9970_v48 = vcombine.low %v301_v32, %v309_v34 }
 0x318   : > { %v7216_v1 = vpop.f32.mrf.mxu1  ;;  %v7176_v4 = vpop.f32.mrf.mxu0  ;;  %7469 = vmatprep.subr.bf16.mxu0 %v10035_v51  ;;  %v9955_v51 = vcombine.high %v285_v43, %v293_v6  ;;  %v10211_v53 = vcombine.high %v541_v60, %v549_v44  ;;  %v781_v61 = vld [vmem:[%s11504_s25 + $0xfb0] sm:$0xff]  ;;  %v10210_v0 = vcombine.low %v541_v60, %v549_v44 }
 0x319   : > { %7509 = vmatpush1.bf16.msra.mxu1 %v10306_v50  ;;  %v10226_v50 = vcombine.low %v557_v57, %v565_v49  ;;  %v789_v59 = vld [vmem:[%s11504_s25 + $0xff0] sm:$0xff] }
 0x31a   : > { %v7217_v10 = vpop.f32.mrf.mxu1  ;;  %7510 = vmatprep.subr.bf16.mxu1 %v10291_v5  ;;  %v525_v5 = vld [vmem:[%s11504_s25 + $0x7b0] sm:$0xff]  ;;  %v10450_v13 = vcombine.low %v781_v61, %v789_v59 }
 0x31b   : > { %7470 = vmatpush1.bf16.msra.mxu0 %v10034_v2  ;;  %v10195_v1 = vcombine.high %v525_v5, %v533_v54  ;;  %v10451_v2 = vcombine.high %v781_v61, %v789_v59  ;;  %v509_v4 = vld [vmem:[%s11504_s25 + $0x730] sm:$0xff] }
 0x31c   : > { %7471 = vmatprep.subr.bf16.mxu0 %v10019_v7  ;;  %v765_v7 = vld [vmem:[%s11504_s25 + $0xf30] sm:$0xff] }
 0x31d   : > { %7511 = vmatpush1.bf16.msra.mxu1 %v10290_v9  ;;  %v517_v9 = vld [vmem:[%s11504_s25 + $0x770] sm:$0xff] }
 0x31e   : > { %7512 = vmatprep.subr.bf16.mxu1 %v10275_v11  ;;  %v773_v10 = vld [vmem:[%s11504_s25 + $0xf70] sm:$0xff]  ;;  %v10194_v11 = vcombine.low %v525_v5, %v533_v54  ;;  %v10179_v14 = vcombine.high %v509_v4, %v517_v9 }
 0x31f   : > { %7472 = vmatpush1.bf16.msra.mxu0 %v10018_v17  ;;  %v10435_v20 = vcombine.high %v765_v7, %v773_v10  ;;  %v493_v16 = vld [vmem:[%s11504_s25 + $0x6b0] sm:$0xff]  ;;  %v10434_v23 = vcombine.low %v765_v7, %v773_v10 }
 0x320   : > { %7473 = vmatprep.subr.bf16.mxu0 %v10003_v19  ;;  %v501_v17 = vld [vmem:[%s11504_s25 + $0x6f0] sm:$0xff] }
 0x321   : > { %7513 = vmatpush1.bf16.msra.mxu1 %v10274_v18  ;;  %v749_v18 = vld [vmem:[%s11504_s25 + $0xeb0] sm:$0xff]  ;;  %v10163_v29 = vcombine.high %v493_v16, %v501_v17 }
 0x322   : > { %7514 = vmatprep.subr.bf16.mxu1 %v10259_v21  ;;  %v757_v19 = vld [vmem:[%s11504_s25 + $0xef0] sm:$0xff]  ;;  %v10178_v21 = vcombine.low %v509_v4, %v517_v9 }
 0x323   : > { %7474 = vmatpush1.bf16.msra.mxu0 %v10002_v46  ;;  %v10419_v25 = vcombine.high %v749_v18, %v757_v19  ;;  %v477_v26 = vld [vmem:[%s11504_s25 + $0x630] sm:$0xff]  ;;  %v10418_v32 = vcombine.low %v749_v18, %v757_v19 }
 0x324   : > { %7475 = vmatprep.subr.bf16.mxu0 %v9987_v30  ;;  %v485_v46 = vld [vmem:[%s11504_s25 + $0x670] sm:$0xff] }
 0x325   : > { %7515 = vmatpush1.bf16.msra.mxu1 %v10258_v27  ;;  %v733_v27 = vld [vmem:[%s11504_s25 + $0xe30] sm:$0xff]  ;;  %v10147_v34 = vcombine.high %v477_v26, %v485_v46 }
 0x326   : > { %7516 = vmatprep.subr.bf16.mxu1 %v10243_v31  ;;  %v741_v30 = vld [vmem:[%s11504_s25 + $0xe70] sm:$0xff]  ;;  %v10162_v31 = vcombine.low %v493_v16, %v501_v17 }
 0x327   : > { %7476 = vmatpush1.bf16.msra.mxu0 %v9986_v37  ;;  %v10403_v57 = vcombine.high %v733_v27, %v741_v30  ;;  %v461_v49 = vld [vmem:[%s11504_s25 + $0x5b0] sm:$0xff]  ;;  %v10402_v43 = vcombine.low %v733_v27, %v741_v30 }
 0x328   : > { %7477 = vmatprep.subr.bf16.mxu0 %v9971_v39  ;;  %v469_v37 = vld [vmem:[%s11504_s25 + $0x5f0] sm:$0xff] }
 0x329   : > { %7517 = vmatpush1.bf16.msra.mxu1 %v10242_v38  ;;  %v717_v38 = vld [vmem:[%s11504_s25 + $0xdb0] sm:$0xff]  ;;  %v10131_v6 = vcombine.high %v461_v49, %v469_v37 }
 0x32a   : > { %7518 = vmatprep.subr.bf16.mxu1 %v10227_v41  ;;  %v725_v39 = vld [vmem:[%s11504_s25 + $0xdf0] sm:$0xff]  ;;  %v10146_v41 = vcombine.low %v477_v26, %v485_v46 }
 0x32b   : > { %7478 = vmatpush1.bf16.msra.mxu0 %v9970_v48  ;;  %v10387_v60 = vcombine.high %v717_v38, %v725_v39  ;;  %v445_v44 = vld [vmem:[%s11504_s25 + $0x530] sm:$0xff]  ;;  %v10386_v5 = vcombine.low %v717_v38, %v725_v39 }
 0x32c   : > { %7479 = vmatprep.subr.bf16.mxu0 %v9955_v51  ;;  %v453_v48 = vld [vmem:[%s11504_s25 + $0x570] sm:$0xff] }
 0x32d   : > { %7519 = vmatpush1.bf16.msra.mxu1 %v10226_v50  ;;  %v701_v50 = vld [vmem:[%s11504_s25 + $0xd30] sm:$0xff]  ;;  %v10115_v54 = vcombine.high %v445_v44, %v453_v48 }
 0x32e   : > { %7520 = vmatprep.subr.bf16.mxu1 %v10211_v53  ;;  %v709_v51 = vld [vmem:[%s11504_s25 + $0xd70] sm:$0xff]  ;;  %v10130_v53 = vcombine.low %v461_v49, %v469_v37  ;;  %v7794_v49 = vsel %vm7793_vm0, %v11906_v24, 0.0 }
 0x32f   : > { %7480 = vmatpush1.bf16.msra.mxu0 %v9954_v63  ;;  %v10371_v61 = vcombine.high %v701_v50, %v709_v51  ;;  %v429_v59 = vld [vmem:[%s11504_s25 + $0x4b0] sm:$0xff]  ;;  %v10370_v4 = vcombine.low %v701_v50, %v709_v51 }
 0x330   : > { %7481 = vmatprep.subr.bf16.mxu0 %v10195_v1  ;;  %v437_v63 = vld [vmem:[%s11504_s25 + $0x4f0] sm:$0xff] }
 0x331   : > { %7521 = vmatpush1.bf16.msra.mxu1 %v10210_v0  ;;  %v685_v0 = vld [vmem:[%s11504_s25 + $0xcb0] sm:$0xff]  ;;  %v10099_v9 = vcombine.high %v429_v59, %v437_v63 }
 0x332   : > { %7522 = vmatprep.subr.bf16.mxu1 %v10451_v2  ;;  %v693_v1 = vld [vmem:[%s11504_s25 + $0xcf0] sm:$0xff]  ;;  %v10114_v2 = vcombine.low %v445_v44, %v453_v48  ;;  %v7795_v48 = vrot.slane %v7794_v49, 4 }
 0x333   : > { %7482 = vmatpush2.bf16.msra.mxu0 %v10194_v11  ;;  %v10355_v7 = vcombine.high %v685_v0, %v693_v1  ;;  %v413_v10 = vld [vmem:[%s11504_s25 + $0x430] sm:$0xff]  ;;  %v10354_v16 = vcombine.low %v685_v0, %v693_v1 }
 0x334   : > { %7483 = vmatprep.subr.bf16.mxu0 %v10179_v14  ;;  %v421_v11 = vld [vmem:[%s11504_s25 + $0x470] sm:$0xff] }
 0x335   : > { %7523 = vmatpush2.bf16.msra.mxu1 %v10450_v13  ;;  %v669_v13 = vld [vmem:[%s11504_s25 + $0xc30] sm:$0xff]  ;;  %v10083_v17 = vcombine.high %v413_v10, %v421_v11 }
 0x336   : > { %7524 = vmatprep.subr.bf16.mxu1 %v10435_v20  ;;  %v677_v14 = vld [vmem:[%s11504_s25 + $0xc70] sm:$0xff]  ;;  %v10098_v20 = vcombine.low %v429_v59, %v437_v63 }
 0x337   : > { %7484 = vmatpush2.bf16.msra.mxu0 %v10178_v21  ;;  %v10339_v18 = vcombine.high %v669_v13, %v677_v14  ;;  %v909_v19 = vld [vmem:[%s11504_s25 + $0x13b0] sm:$0xff]  ;;  %v10338_v26 = vcombine.low %v669_v13, %v677_v14 }
 0x338   : > { %7485 = vmatprep.subr.bf16.mxu0 %v10163_v29  ;;  %v917_v21 = vld [vmem:[%s11504_s25 + $0x13f0] sm:$0xff] }
 0x339   : > { %7525 = vmatpush2.bf16.msra.mxu1 %v10434_v23  ;;  %v1165_v23 = vld [vmem:[%s11504_s25 + $0x1bb0] sm:$0xff]  ;;  %v10579_v46 = vcombine.high %v909_v19, %v917_v21 }
 0x33a   : > { %7526 = vmatprep.subr.bf16.mxu1 %v10419_v25  ;;  %v1173_v29 = vld [vmem:[%s11504_s25 + $0x1bf0] sm:$0xff]  ;;  %v10082_v25 = vcombine.low %v413_v10, %v421_v11  ;;  %v7796_v10 = vadd.f32 %v7795_v48, %v7794_v49 }
 0x33b   : > { %7486 = vmatpush2.bf16.msra.mxu0 %v10162_v31  ;;  %v10835_v27 = vcombine.high %v1165_v23, %v1173_v29  ;;  %v893_v30 = vld [vmem:[%s11504_s25 + $0x1330] sm:$0xff]  ;;  %v10834_v37 = vcombine.low %v1165_v23, %v1173_v29 }
 0x33c   : > { %7487 = vmatprep.subr.bf16.mxu0 %v10147_v34  ;;  %v901_v31 = vld [vmem:[%s11504_s25 + $0x1370] sm:$0xff] }
 0x33d   : > { %7527 = vmatpush2.bf16.msra.mxu1 %v10418_v32  ;;  %v1149_v32 = vld [vmem:[%s11504_s25 + $0x1b30] sm:$0xff]  ;;  %v10563_v38 = vcombine.high %v893_v30, %v901_v31 }
 0x33e   : > { %7528 = vmatprep.subr.bf16.mxu1 %v10403_v57  ;;  %v1157_v34 = vld [vmem:[%s11504_s25 + $0x1b70] sm:$0xff]  ;;  %v10578_v57 = vcombine.low %v909_v19, %v917_v21 }
 0x33f   : > { %7488 = vmatpush2.bf16.msra.mxu0 %v10146_v41  ;;  %v10819_v39 = vcombine.high %v1149_v32, %v1157_v34  ;;  %v877_v41 = vld [vmem:[%s11504_s25 + $0x12b0] sm:$0xff] }
 0x340   : > { %7489 = vmatprep.subr.bf16.mxu0 %v10131_v6  ;;  %v1141_v44 = vld [vmem:[%s11504_s25 + $0x1af0] sm:$0xff] }
 0x341   : > { %7529 = vmatpush2.bf16.msra.mxu1 %v10402_v43  ;;  %v885_v43 = vld [vmem:[%s11504_s25 + $0x12f0] sm:$0xff] }
 0x342   : > { %7530 = vmatprep.subr.bf16.mxu1 %v10387_v60  ;;  %v1133_v60 = vld [vmem:[%s11504_s25 + $0x1ab0] sm:$0xff]  ;;  %v10546_v13 = vcombine.low %v877_v41, %v885_v43 }
 0x343   : > { %7490 = vmatpush2.bf16.msra.mxu0 %v10130_v53  ;;  %v10562_v53 = vcombine.low %v893_v30, %v901_v31  ;;  %v861_v1 = vld [vmem:[%s11504_s25 + $0x1230] sm:$0xff] }
 0x344   : > { %7491 = vmatprep.subr.bf16.mxu0 %v10115_v54  ;;  %v10818_v54 = vcombine.low %v1149_v32, %v1157_v34  ;;  %v845_v19 = vld [vmem:[%s11504_s25 + $0x11b0] sm:$0xff] }
 0x345   : > { %7531 = vmatpush2.bf16.msra.mxu1 %v10386_v5  ;;  %v853_v21 = vld [vmem:[%s11504_s25 + $0x11f0] sm:$0xff] }
 0x346   : > { %7532 = vmatprep.subr.bf16.mxu1 %v10371_v61  ;;  %v10547_v61 = vcombine.high %v877_v41, %v885_v43  ;;  %v1101_v23 = vld [vmem:[%s11504_s25 + $0x19b0] sm:$0xff] }
 0x347   : > { %7492 = vmatpush2.bf16.msra.mxu0 %v10114_v2  ;;  %v869_v2 = vld [vmem:[%s11504_s25 + $0x1270] sm:$0xff] }
 0x348   : > { %7493 = vmatprep.subr.bf16.mxu0 %v10099_v9  ;;  %v1117_v9 = vld [vmem:[%s11504_s25 + $0x1a30] sm:$0xff] }
 0x349   : > { %7533 = vmatpush2.bf16.msra.mxu1 %v10370_v4  ;;  %v1109_v29 = vld [vmem:[%s11504_s25 + $0x19f0] sm:$0xff] }
 0x34a   : > { %7534 = vmatprep.subr.bf16.mxu1 %v10355_v7  ;;  %v1125_v7 = vld [vmem:[%s11504_s25 + $0x1a70] sm:$0xff]  ;;  %v10771_v30 = vcombine.high %v1101_v23, %v1109_v29 }
 0x34b   : > { %7494 = vmatpush2.bf16.msra.mxu0 %v10098_v20  ;;  %v10802_v20 = vcombine.low %v1133_v60, %v1141_v44  ;;  %v829_v31 = vld [vmem:[%s11504_s25 + $0x1130] sm:$0xff] }
 0x34c   : > { %7495 = vmatprep.subr.bf16.mxu0 %v10083_v17  ;;  %v837_v32 = vld [vmem:[%s11504_s25 + $0x1170] sm:$0xff] }
 0x34d   : > { %7535 = vmatpush2.bf16.msra.mxu1 %v10354_v16  ;;  %v10531_v16 = vcombine.high %v861_v1, %v869_v2  ;;  %v1085_v34 = vld [vmem:[%s11504_s25 + $0x1930] sm:$0xff] }
 0x34e   : > { %7536 = vmatprep.subr.bf16.mxu1 %v10339_v18  ;;  %v10787_v18 = vcombine.high %v1117_v9, %v1125_v7  ;;  %v813_v43 = vld [vmem:[%s11504_s25 + $0x10b0] sm:$0xff] }
 0x34f   : > { %7496 = vmatpush2.bf16.msra.mxu0 %v10082_v25  ;;  %v7797_v25 = vrot.slane %v7796_v10, 2 }
 0x350   : > { %7547 = vmatprep.subr.bf16.mxu0 %v10579_v46  ;;  %v10786_v46 = vcombine.low %v1117_v9, %v1125_v7  ;;  %v7801_v9 = vsel %vm7793_vm0, %v11915_v33, 0.0 }
 0x351   : > { %7537 = vmatpush2.bf16.msra.mxu1 %v10338_v26  ;;  %v10530_v26 = vcombine.low %v861_v1, %v869_v2  ;;  %v7798_v49 = vadd.f32 %v7797_v25, %v7796_v10  ;;  %v1037_v10 = vld [vmem:[%s11504_s25 + $0x17b0] sm:$0xff] }
 0x352   : > { %7588 = vmatprep.subr.bf16.mxu1 %v10835_v27  ;;  %v7253_v6 = vpop.f32.mrf.mxu0  ;;  %7498 = vmatmul.mubr.bf16.vlgmr.msra.gmra.mxu0 %v11602_v28  ;;  %v10515_v27 = vcombine.high %v845_v19, %v853_v21  ;;  %v1277_v25 = vld [vmem:[%s11504_s25 + $0x1f30] sm:$0xff] }
 0x353   : > { %v7254_v50 = vadd.f32 %v7253_v6, %v12417_v47  ;;  %7548 = vmatpush1.bf16.msra.mxu0 %v10578_v57  ;;  %v10803_v47 = vcombine.high %v1133_v60, %v1141_v44  ;;  %7579 = vmatprep.mubr.bf16.mxu0 %v11609_v36  ;;  %v1093_v57 = vld [vmem:[%s11504_s25 + $0x1970] sm:$0xff]  ;;  %v7799_v48 = vrot.slane %v7798_v49, 1 }
 0x354   : > { %v7294_v51 = vpop.f32.mrf.mxu1  ;;  %7539 = vmatmul.mubr.bf16.vlgmr.msra.gmra.mxu1 %v11613_v15  ;;  %v7255_v5 = vpop.f32.mrf.mxu0  ;;  %7549 = vmatprep.subr.bf16.mxu0 %v10563_v38  ;;  %v10770_v38 = vcombine.low %v1101_v23, %v1109_v29  ;;  %v10755_v41 = vcombine.high %v1085_v34, %v1093_v57  ;;  %v821_v6 = vld [vmem:[%s11504_s25 + $0x10f0] sm:$0xff] }
 0x355   : > { %7589 = vmatpush1.bf16.msra.mxu1 %v10834_v37  ;;  %v12492_v59 = vadd.f32 %v7294_v51, %v7254_v50  ;;  %v7256_v63 = vadd.f32 %v7255_v5, %v12422_v62  ;;  %7620 = vmatprep.mubr.bf16.mxu1 %v11622_v45  ;;  %v10514_v37 = vcombine.low %v845_v19, %v853_v21  ;;  %v1069_v60 = vld [vmem:[%s11504_s25 + $0x18b0] sm:$0xff] }
 0x356   : > { %v7296_v0 = vpop.f32.mrf.mxu1  ;;  %7590 = vmatprep.subr.bf16.mxu1 %v10819_v39  ;;  %v7257_v4 = vpop.f32.mrf.mxu0  ;;  %v10499_v39 = vcombine.high %v829_v31, %v837_v32  ;;  %v1077_v44 = vld [vmem:[%s11504_s25 + $0x18f0] sm:$0xff]  ;;  %v10498_v50 = vcombine.low %v829_v31, %v837_v32  ;;  %v10754_v51 = vcombine.low %v1085_v34, %v1093_v57  ;;  %v10482_v1 = vcombine.low %v813_v43, %v821_v6 }
 0x357   : > { %v12501_v11 = vadd.f32 %v7296_v0, %v7256_v63  ;;  %7550 = vmatpush1.bf16.msra.mxu0 %v10562_v53  ;;  %v10483_v53 = vcombine.high %v813_v43, %v821_v6  ;;  %v10739_v5 = vcombine.high %v1069_v60, %v1077_v44  ;;  %v1053_v63 = vld [vmem:[%s11504_s25 + $0x1830] sm:$0xff]  ;;  %v10738_v2 = vcombine.low %v1069_v60, %v1077_v44 }
 0x358   : > { %v7298_v62 = vpop.f32.mrf.mxu1  ;;  %v7258_v14 = vpop.f32.mrf.mxu0  ;;  %7551 = vmatprep.subr.bf16.mxu0 %v10547_v61  ;;  %v805_v61 = vld [vmem:[%s11504_s25 + $0x1070] sm:$0xff] }
 0x359   : > { %7591 = vmatpush1.bf16.msra.mxu1 %v10818_v54  ;;  %v797_v54 = vld [vmem:[%s11504_s25 + $0x1030] sm:$0xff] }
 0x35a   : > { %v7299_v17 = vpop.f32.mrf.mxu1  ;;  %7592 = vmatprep.subr.bf16.mxu1 %v10803_v47  ;;  %v1061_v0 = vld [vmem:[%s11504_s25 + $0x1870] sm:$0xff]  ;;  %v7800_v47 = vadd.f32 %v7799_v48, %v7798_v49  ;;  %v10467_v4 = vcombine.high %v797_v54, %v805_v61 }
 0x35b   : > { %7552 = vmatpush1.bf16.msra.mxu0 %v10546_v13  ;;  %v10723_v7 = vcombine.high %v1053_v63, %v1061_v0  ;;  %v1045_v62 = vld [vmem:[%s11504_s25 + $0x17f0] sm:$0xff]  ;;  %v7802_v17 = vrot.slane %v7801_v9, 4 }
 0x35c   : > { %7553 = vmatprep.subr.bf16.mxu0 %v10531_v16  ;;  %v1293_v13 = vld [vmem:[%s11504_s25 + $0x1fb0] sm:$0xff]  ;;  %v10466_v16 = vcombine.low %v797_v54, %v805_v61  ;;  %v10707_v19 = vcombine.high %v1037_v10, %v1045_v62 }
 0x35d   : > { %7593 = vmatpush1.bf16.msra.mxu1 %v10802_v20  ;;  %v1301_v14 = vld [vmem:[%s11504_s25 + $0x1ff0] sm:$0xff]  ;;  %v7907_v20 = vmul.f32 0.5, %v7800_v47 }
 0x35e   : > { %7594 = vmatprep.subr.bf16.mxu1 %v10787_v18  ;;  %v10722_v18 = vcombine.low %v1053_v63, %v1061_v0  ;;  %v10963_v21 = vcombine.high %v1293_v13, %v1301_v14  ;;  %v1021_v23 = vld [vmem:[%s11504_s25 + $0x1730] sm:$0xff]  ;;  %v10962_v31 = vcombine.low %v1293_v13, %v1301_v14 }
 0x35f   : > { %7554 = vmatpush1.bf16.msra.mxu0 %v10530_v26  ;;  %v1029_v29 = vld [vmem:[%s11504_s25 + $0x1770] sm:$0xff] }
 0x360   : > { %7555 = vmatprep.subr.bf16.mxu0 %v10515_v27  ;;  %v1285_v26 = vld [vmem:[%s11504_s25 + $0x1f70] sm:$0xff]  ;;  %v10706_v27 = vcombine.low %v1037_v10, %v1045_v62  ;;  %v10691_v32 = vcombine.high %v1021_v23, %v1029_v29 }
 0x361   : > { %7595 = vmatpush1.bf16.msra.mxu1 %v10786_v46  ;;  %v12530_v46 = vsub.f32 %v11906_v24, %v7907_v20  ;;  %v10947_v34 = vcombine.high %v1277_v25, %v1285_v26  ;;  %v1005_v57 = vld [vmem:[%s11504_s25 + $0x16b0] sm:$0xff]  ;;  %v10946_v43 = vcombine.low %v1277_v25, %v1285_v26 }
 0x362   : > { %7596 = vmatprep.subr.bf16.mxu1 %v10771_v30  ;;  %v7803_v30 = vadd.f32 %v7802_v17, %v7801_v9  ;;  %v1013_v49 = vld [vmem:[%s11504_s25 + $0x16f0] sm:$0xff] }
 0x363   : > { %7556 = vmatpush1.bf16.msra.mxu0 %v10514_v37  ;;  %v1261_v37 = vld [vmem:[%s11504_s25 + $0x1eb0] sm:$0xff]  ;;  %v7939_v24 = vmul.f32 %v12530_v46, %v12530_v46  ;;  %v10675_v6 = vcombine.high %v1005_v57, %v1013_v49 }
 0x364   : > { %7557 = vmatprep.subr.bf16.mxu0 %v10499_v39  ;;  %v10690_v39 = vcombine.low %v1021_v23, %v1029_v29  ;;  %v989_v44 = vld [vmem:[%s11504_s25 + $0x1630] sm:$0xff] }
 0x365   : > { %7597 = vmatpush1.bf16.msra.mxu1 %v10770_v38  ;;  %v1269_v38 = vld [vmem:[%s11504_s25 + $0x1ef0] sm:$0xff] }
 0x366   : > { %7598 = vmatprep.subr.bf16.mxu1 %v10755_v41  ;;  %v7804_v41 = vrot.slane %v7803_v30, 2  ;;  %v10931_v60 = vcombine.high %v1261_v37, %v1269_v38  ;;  %v997_v48 = vld [vmem:[%s11504_s25 + $0x1670] sm:$0xff]  ;;  %v10930_v61 = vcombine.low %v1261_v37, %v1269_v38 }
 0x367   : > { %7558 = vmatpush1.bf16.msra.mxu0 %v10498_v50  ;;  %v1245_v50 = vld [vmem:[%s11504_s25 + $0x1e30] sm:$0xff]  ;;  %v10659_v63 = vcombine.high %v989_v44, %v997_v48 }
 0x368   : > { %7559 = vmatprep.subr.bf16.mxu0 %v10483_v53  ;;  %v7955_v53 = vsel %vm7793_vm0, %v7939_v24, 0.0  ;;  %v7805_v54 = vadd.f32 %v7804_v41, %v7803_v30  ;;  %v973_v47 = vld [vmem:[%s11504_s25 + $0x15b0] sm:$0xff] }
 0x369   : > { %7599 = vmatpush1.bf16.msra.mxu1 %v10754_v51  ;;  %v1253_v51 = vld [vmem:[%s11504_s25 + $0x1e70] sm:$0xff] }
 0x36a   : > { %7600 = vmatprep.subr.bf16.mxu1 %v10739_v5  ;;  %v10674_v5 = vcombine.low %v1005_v57, %v1013_v49  ;;  %v10915_v0 = vcombine.high %v1245_v50, %v1253_v51  ;;  %v1237_v9 = vld [vmem:[%s11504_s25 + $0x1df0] sm:$0xff]  ;;  %v7806_v10 = vrot.slane %v7805_v54, 1  ;;  %v10914_v62 = vcombine.low %v1245_v50, %v1253_v51 }
 0x36b   : > { %7560 = vmatpush1.bf16.msra.mxu0 %v10482_v1  ;;  %v981_v1 = vld [vmem:[%s11504_s25 + $0x15f0] sm:$0xff] }
 0x36c   : > { %7561 = vmatprep.subr.bf16.mxu0 %v10467_v4  ;;  %v1229_v4 = vld [vmem:[%s11504_s25 + $0x1db0] sm:$0xff]  ;;  %v10643_v13 = vcombine.high %v973_v47, %v981_v1  ;;  %v7807_v23 = vadd.f32 %v7806_v10, %v7805_v54  ;;  %v398_v54 = vld [vmem:[%s11504_s25 + $0x3b8] sm:$0xff] }
 0x36d   : > { %7601 = vmatpush1.bf16.msra.mxu1 %v10738_v2  ;;  %v7956_v2 = vrot.slane %v7955_v53, 4  ;;  %v10899_v14 = vcombine.high %v1229_v4, %v1237_v9  ;;  %v957_v20 = vld [vmem:[%s11504_s25 + $0x1530] sm:$0xff]  ;;  %v10898_v29 = vcombine.low %v1229_v4, %v1237_v9  ;;  %v382_v10 = vld [vmem:[%s11504_s25 + $0x338] sm:$0xff] }
 0x36e   : > { %7602 = vmatprep.subr.bf16.mxu1 %v10723_v7  ;;  %v10658_v7 = vcombine.low %v989_v44, %v997_v48  ;;  %v949_v30 = vld [vmem:[%s11504_s25 + $0x14f0] sm:$0xff]  ;;  %v7908_v49 = vmul.f32 0.5, %v7807_v23  ;;  %v366_v23 = vld [vmem:[%s11504_s25 + $0x2b8] sm:$0xff] }
 0x36f   : > { %7562 = vmatpush1.bf16.msra.mxu0 %v10466_v16  ;;  %v965_v16 = vld [vmem:[%s11504_s25 + $0x1570] sm:$0xff]  ;;  %v7957_v17 = vadd.f32 %v7956_v2, %v7955_v53  ;;  %v7815_v53 = vsel %vm7793_vm0, %v12061_v52, 0.0 }
 0x370   : > { %7563 = vmatprep.subr.bf16.mxu0 %v10707_v19  ;;  %v1221_v19 = vld [vmem:[%s11504_s25 + $0x1d70] sm:$0xff]  ;;  %v10627_v25 = vcombine.high %v957_v20, %v965_v16  ;;  %v10626_v57 = vcombine.low %v957_v20, %v965_v16  ;;  %v12560_v48 = vsub.f32 %v11915_v33, %v7908_v49  ;;  %v7816_v2 = vrot.slane %v7815_v53, 4  ;;  %v646_v20 = vld [vmem:[%s11504_s25 + $0xb78] sm:$0xff] }
 0x371   : > { %7603 = vmatpush1.bf16.msra.mxu1 %v10722_v18  ;;  %v1213_v18 = vld [vmem:[%s11504_s25 + $0x1d30] sm:$0xff]  ;;  %v350_v49 = vld [vmem:[%s11504_s25 + $0x238] sm:$0xff] }
 0x372   : > { %7604 = vmatprep.subr.bf16.mxu1 %v10963_v21  ;;  %v10642_v21 = vcombine.low %v973_v47, %v981_v1  ;;  %v10883_v26 = vcombine.high %v1213_v18, %v1221_v19  ;;  %v10882_v37 = vcombine.low %v1213_v18, %v1221_v19  ;;  %v933_v41 = vld [vmem:[%s11504_s25 + $0x1470] sm:$0xff]  ;;  %v662_v47 = vld [vmem:[%s11504_s25 + $0xbf8] sm:$0xff]  ;;  %v7940_v1 = vmul.f32 %v12560_v48, %v12560_v48 }
 0x373   : > { %7564 = vmatpush2.bf16.msra.mxu0 %v10706_v27  ;;  %v941_v27 = vld [vmem:[%s11504_s25 + $0x14b0] sm:$0xff]  ;;  %v7817_v18 = vadd.f32 %v7816_v2, %v7815_v53  ;;  %v606_v53 = vld [vmem:[%s11504_s25 + $0xa38] sm:$0xff] }
 0x374   : > { %7565 = vmatprep.subr.bf16.mxu0 %v10691_v32  ;;  %v1197_v32 = vld [vmem:[%s11504_s25 + $0x1cb0] sm:$0xff]  ;;  %v10611_v38 = vcombine.high %v941_v27, %v949_v30  ;;  %v10610_v44 = vcombine.low %v941_v27, %v949_v30 }
 0x375   : > { %7605 = vmatpush2.bf16.msra.mxu1 %v10962_v31  ;;  %v7958_v31 = vrot.slane %v7957_v17, 2 }
 0x376   : > { %7606 = vmatprep.subr.bf16.mxu1 %v10947_v34  ;;  %v1205_v34 = vld [vmem:[%s11504_s25 + $0x1cf0] sm:$0xff] }
 0x377   : > { %7566 = vmatpush2.bf16.msra.mxu0 %v10690_v39  ;;  %v10867_v24 = vcombine.high %v1197_v32, %v1205_v34  ;;  %v925_v39 = vld [vmem:[%s11504_s25 + $0x1430] sm:$0xff]  ;;  %v10866_v50 = vcombine.low %v1197_v32, %v1205_v34 }
 0x378   : > { %7567 = vmatprep.subr.bf16.mxu0 %v10675_v6  ;;  %v1181_v6 = vld [vmem:[%s11504_s25 + $0x1c30] sm:$0xff]  ;;  %v10595_v51 = vcombine.high %v925_v39, %v933_v41  ;;  %v10594_v33 = vcombine.low %v925_v39, %v933_v41 }
 0x379   : > { %7607 = vmatpush2.bf16.msra.mxu1 %v10946_v43  ;;  %v7959_v43 = vadd.f32 %v7958_v31, %v7957_v17  ;;  %v7962_v17 = vsel %vm7793_vm0, %v7940_v1, 0.0  ;;  %v630_v31 = vld [vmem:[%s11504_s25 + $0xaf8] sm:$0xff] }
 0x37a   : > { %7608 = vmatprep.subr.bf16.mxu1 %v10931_v60  ;;  %v1189_v60 = vld [vmem:[%s11504_s25 + $0x1c70] sm:$0xff]  ;;  %v7963_v32 = vrot.slane %v7962_v17, 4  ;;  %v342_v1 = vld [vmem:[%s11504_s25 + $0x1f8] sm:$0xff] }
 0x37b   : > { %7568 = vmatpush2.bf16.msra.mxu0 %v10674_v5  ;;  %v10851_v5 = vcombine.high %v1181_v6, %v1189_v60  ;;  %v10850_v4 = vcombine.low %v1181_v6, %v1189_v60 }
 0x37c   : > { %7569 = vmatprep.subr.bf16.mxu0 %v10659_v63  ;;  %v7960_v63 = vrot.slane %v7959_v43, 1 }
 0x37d   : > { %7609 = vmatpush2.bf16.msra.mxu1 %v10930_v61  ;;  %v406_v61 = vld [vmem:[%s11504_s25 + $0x3f8] sm:$0xff] }
 0x37e   : > { %7610 = vmatprep.subr.bf16.mxu1 %v10915_v0  ;;  %v654_v0 = vld [vmem:[%s11504_s25 + $0xbb8] sm:$0xff]  ;;  %v10069_v9 = vcombine.high %v398_v54, %v406_v61  ;;  %v10068_v16 = vcombine.low %v398_v54, %v406_v61 }
 0x37f   : > { %7570 = vmatpush2.bf16.msra.mxu0 %v10658_v7  ;;  %v10325_v7 = vcombine.high %v654_v0, %v662_v47  ;;  %v10324_v19 = vcombine.low %v654_v0, %v662_v47 }
 0x380   : > { %7571 = vmatprep.subr.bf16.mxu0 %v10643_v13  ;;  %v7961_v13 = vadd.f32 %v7960_v63, %v7959_v43  ;;  %v358_v43 = vld [vmem:[%s11504_s25 + $0x278] sm:$0xff] }
 0x381   : > { %7611 = vmatpush2.bf16.msra.mxu1 %v10914_v62  ;;  %v390_v62 = vld [vmem:[%s11504_s25 + $0x378] sm:$0xff] }
 0x382   : > { %7612 = vmatprep.subr.bf16.mxu1 %v10899_v14  ;;  %v638_v14 = vld [vmem:[%s11504_s25 + $0xb38] sm:$0xff]  ;;  %v8067_v27 = vmul.f32 0.5, %v7961_v13 }
 0x383   : > { %7572 = vmatpush2.bf16.msra.mxu0 %v10642_v21  ;;  %v10053_v21 = vcombine.high %v382_v10, %v390_v62  ;;  %v10308_v39 = vcombine.low %v638_v14, %v646_v20  ;;  %v334_v63 = vld [vmem:[%s11504_s25 + $0x1b8] sm:$0xff] }
 0x384   : > { %7573 = vmatprep.subr.bf16.mxu0 %v10627_v25  ;;  %v10309_v25 = vcombine.high %v638_v14, %v646_v20  ;;  %v10005_v20 = vcombine.high %v334_v63, %v342_v1 }
 0x385   : > { %7613 = vmatpush2.bf16.msra.mxu1 %v10898_v29  ;;  %v374_v29 = vld [vmem:[%s11504_s25 + $0x2f8] sm:$0xff] }
 0x386   : > { %7614 = vmatprep.subr.bf16.mxu1 %v10883_v26  ;;  %v622_v26 = vld [vmem:[%s11504_s25 + $0xab8] sm:$0xff]  ;;  %v10037_v41 = vcombine.high %v366_v23, %v374_v29  ;;  %v10036_v61 = vcombine.low %v366_v23, %v374_v29 }
 0x387   : > { %7574 = vmatpush2.bf16.msra.mxu0 %v10626_v57  ;;  %v10052_v57 = vcombine.low %v382_v10, %v390_v62  ;;  %v10293_v60 = vcombine.high %v622_v26, %v630_v31  ;;  %v10292_v47 = vcombine.low %v622_v26, %v630_v31  ;;  %v10020_v10 = vcombine.low %v350_v49, %v358_v43  ;;  %v318_v62 = vld [vmem:[%s11504_s25 + $0x138] sm:$0xff] }
 0x388   : > { %7575 = vmatprep.subr.bf16.mxu0 %v10611_v38  ;;  %v582_v23 = vld [vmem:[%s11504_s25 + $0x978] sm:$0xff] }
 0x389   : > { %7615 = vmatpush2.bf16.msra.mxu1 %v10882_v37  ;;  %v7818_v37 = vrot.slane %v7817_v18, 2  ;;  %v302_v29 = vld [vmem:[%s11504_s25 + $0xb8] sm:$0xff] }
 0x38a   : > { %7616 = vmatprep.subr.bf16.mxu1 %v10867_v24 }
 0x38b   : > { %7576 = vmatpush2.bf16.msra.mxu0 %v10610_v44  ;;  %v12592_v44 = vadd.f32 1e-05, %v8067_v27  ;;  %v7819_v0 = vadd.f32 %v7818_v37, %v7817_v18  ;;  %v286_v37 = vld [vmem:[%s11504_s25 + $0x38] sm:$0xff] }
 0x38c   : > { %7577 = vmatprep.subr.bf16.mxu0 %v10595_v51 }
 0x38d   : > { %7617 = vmatpush2.bf16.msra.mxu1 %v10866_v50  ;;  %v7820_v13 = vrot.slane %v7819_v0, 1 }
 0x38e   : > { %7618 = vmatprep.subr.bf16.mxu1 %v10851_v5  ;;  %v614_v5 = vld [vmem:[%s11504_s25 + $0xa78] sm:$0xff] }
 0x38f   : > { %7578 = vmatpush2.bf16.msra.mxu0 %v10594_v33  ;;  %v10021_v33 = vcombine.high %v350_v49, %v358_v43  ;;  %v10276_v14 = vcombine.low %v606_v53, %v614_v5  ;;  %v294_v43 = vld [vmem:[%s11504_s25 + $0x78] sm:$0xff] }
 0x390   : > { %7629 = vmatprep.subr.bf16.mxu0 %v10069_v9  ;;  %v590_v9 = vld [vmem:[%s11504_s25 + $0x9b8] sm:$0xff] }
 0x391   : > { %7619 = vmatpush2.bf16.msra.mxu1 %v10850_v4  ;;  %v10277_v4 = vcombine.high %v606_v53, %v614_v5  ;;  %v550_v53 = vld [vmem:[%s11504_s25 + $0x878] sm:$0xff] }
 0x392   : > { %7670 = vmatprep.subr.bf16.mxu1 %v10325_v7  ;;  %v7335_v30 = vpop.f32.mrf.mxu0  ;;  %7580 = vmatmul.mubr.bf16.vlgmr.msra.gmra.mxu0 %v11552_v55  ;;  %v598_v7 = vld [vmem:[%s11504_s25 + $0x9f8] sm:$0xff] }
 0x393   : > { %7630 = vmatpush1.bf16.msra.mxu0 %v10068_v16  ;;  %7661 = vmatprep.mubr.bf16.mxu0 %v11531_v35  ;;  %v326_v16 = vld [vmem:[%s11504_s25 + $0x178] sm:$0xff]  ;;  %v10261_v18 = vcombine.high %v590_v9, %v598_v7  ;;  %v10260_v26 = vcombine.low %v590_v9, %v598_v7 }
 0x394   : > { %v7376_v34 = vpop.f32.mrf.mxu1  ;;  %7621 = vmatmul.mubr.bf16.vlgmr.msra.gmra.mxu1 %v11689_v56  ;;  %v7337_v24 = vpop.f32.mrf.mxu0  ;;  %7631 = vmatprep.subr.bf16.mxu0 %v10053_v21  ;;  %v9989_v27 = vcombine.high %v318_v62, %v326_v16  ;;  %v9988_v49 = vcombine.low %v318_v62, %v326_v16  ;;  %v510_v9 = vld [vmem:[%s11504_s25 + $0x738] sm:$0xff] }
 0x395   : > { %v12588_v38 = vadd.f32 %v7376_v34, %v7335_v30  ;;  %7671 = vmatpush1.bf16.msra.mxu1 %v10324_v19  ;;  %7702 = vmatprep.mubr.bf16.mxu1 %v11535_v40  ;;  %v7964_v40 = vadd.f32 %v7963_v32, %v7962_v17  ;;  %v574_v19 = vld [vmem:[%s11504_s25 + $0x938] sm:$0xff]  ;;  %v10004_v17 = vcombine.low %v334_v63, %v342_v1 }
 0x396   : > { %v7378_v6 = vpop.f32.mrf.mxu1  ;;  %7672 = vmatprep.subr.bf16.mxu1 %v10309_v25  ;;  %v7339_v51 = vpop.f32.mrf.mxu0  ;;  %v7821_v25 = vadd.f32 %v7820_v13, %v7819_v0  ;;  %v310_v30 = vld [vmem:[%s11504_s25 + $0xf8] sm:$0xff]  ;;  %v10245_v31 = vcombine.high %v574_v19, %v582_v23  ;;  %v9957_v0 = vcombine.high %v286_v37, %v294_v43 }
 0x397   : > { %v12594_v50 = vadd.f32 %v7378_v6, %v7337_v24  ;;  %7632 = vmatpush1.bf16.msra.mxu0 %v10052_v57  ;;  %v7965_v21 = vrot.slane %v7964_v40, 2  ;;  %v558_v32 = vld [vmem:[%s11504_s25 + $0x8b8] sm:$0xff]  ;;  %v9972_v5 = vcombine.low %v302_v29, %v310_v30 }
 0x398   : > { %v7380_v54 = vpop.f32.mrf.mxu1  ;;  %v7340_v35 = vpop.f32.mrf.mxu0  ;;  %7633 = vmatprep.subr.bf16.mxu0 %v10037_v41  ;;  %v566_v57 = vld [vmem:[%s11504_s25 + $0x8f8] sm:$0xff]  ;;  %v7910_v24 = vmul.f32 0.5, %v7821_v25  ;;  %v9973_v41 = vcombine.high %v302_v29, %v310_v30 }
 0x399   : > { %7673 = vmatpush1.bf16.msra.mxu1 %v10308_v39  ;;  %v7966_v34 = vadd.f32 %v7965_v21, %v7964_v40  ;;  %v10244_v39 = vcombine.low %v574_v19, %v582_v23  ;;  %v10229_v6 = vcombine.high %v558_v32, %v566_v57  ;;  %v526_v54 = vld [vmem:[%s11504_s25 + $0x7b8] sm:$0xff]  ;;  %v10228_v63 = vcombine.low %v558_v32, %v566_v57 }
 0x39a   : > { %v7381_v2 = vpop.f32.mrf.mxu1  ;;  %7674 = vmatprep.subr.bf16.mxu1 %v10293_v60  ;;  %v542_v60 = vld [vmem:[%s11504_s25 + $0x838] sm:$0xff] }
 0x39b   : > { %7634 = vmatpush1.bf16.msra.mxu0 %v10036_v61  ;;  %v7967_v51 = vrot.slane %v7966_v34, 1  ;;  %v12617_v61 = vsub.f32 %v12061_v52, %v7910_v24  ;;  %v534_v35 = vld [vmem:[%s11504_s25 + $0x7f8] sm:$0xff]  ;;  %v10212_v40 = vcombine.low %v542_v60, %v550_v53 }
 0x39c   : > { %7635 = vmatprep.subr.bf16.mxu0 %v10021_v33  ;;  %v782_v33 = vld [vmem:[%s11504_s25 + $0xfb8] sm:$0xff]  ;;  %v10197_v7 = vcombine.high %v526_v54, %v534_v35  ;;  %v10196_v16 = vcombine.low %v526_v54, %v534_v35  ;;  %v7829_v35 = vsel %vm7793_vm0, %v12207_v22, 0.0 }
 0x39d   : > { %7675 = vmatpush1.bf16.msra.mxu1 %v10292_v47  ;;  %v10213_v47 = vcombine.high %v542_v60, %v550_v53  ;;  %v7968_v1 = vadd.f32 %v7967_v51, %v7966_v34  ;;  %v790_v2 = vld [vmem:[%s11504_s25 + $0xff8] sm:$0xff]  ;;  %v7942_v52 = vmul.f32 %v12617_v61, %v12617_v61 }
 0x39e   : > { %7676 = vmatprep.subr.bf16.mxu1 %v10277_v4  ;;  %v9956_v4 = vcombine.low %v286_v37, %v294_v43  ;;  %v10453_v62 = vcombine.high %v782_v33, %v790_v2  ;;  %v766_v13 = vld [vmem:[%s11504_s25 + $0xf38] sm:$0xff]  ;;  %v10452_v21 = vcombine.low %v782_v33, %v790_v2 }
 0x39f   : > { %7636 = vmatpush1.bf16.msra.mxu0 %v10020_v10  ;;  %v518_v10 = vld [vmem:[%s11504_s25 + $0x778] sm:$0xff]  ;;  %v7976_v19 = vsel %vm7793_vm0, %v7942_v52, 0.0 }
 0x3a0   : > { %7637 = vmatprep.subr.bf16.mxu0 %v10005_v20  ;;  %v774_v20 = vld [vmem:[%s11504_s25 + $0xf78] sm:$0xff]  ;;  %v10181_v23 = vcombine.high %v510_v9, %v518_v10  ;;  %v10180_v30 = vcombine.low %v510_v9, %v518_v10  ;;  %v7977_v32 = vrot.slane %v7976_v19, 4 }
 0x3a1   : > { %7677 = vmatpush1.bf16.msra.mxu1 %v10276_v14  ;;  %v8068_v14 = vmul.f32 0.5, %v7968_v1  ;;  %v10437_v29 = vcombine.high %v766_v13, %v774_v20  ;;  %v10436_v34 = vcombine.low %v766_v13, %v774_v20  ;;  %v734_v24 = vld [vmem:[%s11504_s25 + $0xe38] sm:$0xff] }
 0x3a2   : > { %7678 = vmatprep.subr.bf16.mxu1 %v10261_v18  ;;  %v494_v18 = vld [vmem:[%s11504_s25 + $0x6b8] sm:$0xff]  ;;  %v7978_v60 = vadd.f32 %v7977_v32, %v7976_v19 }
 0x3a3   : > { %7638 = vmatpush1.bf16.msra.mxu0 %v10004_v17  ;;  %v502_v17 = vld [vmem:[%s11504_s25 + $0x6f8] sm:$0xff]  ;;  %v12631_v25 = vadd.f32 1e-05, %v8068_v14 }
 0x3a4   : > { %7639 = vmatprep.subr.bf16.mxu0 %v9989_v27  ;;  %v758_v27 = vld [vmem:[%s11504_s25 + $0xef8] sm:$0xff]  ;;  %v10165_v57 = vcombine.high %v494_v18, %v502_v17  ;;  %v10164_v43 = vcombine.low %v494_v18, %v502_v17  ;;  %v7979_v2 = vrot.slane %v7978_v60, 2 }
 0x3a5   : > { %7679 = vmatpush1.bf16.msra.mxu1 %v10260_v26  ;;  %v750_v26 = vld [vmem:[%s11504_s25 + $0xeb8] sm:$0xff]  ;;  %11414 = vrsqrt.f32 %v12631_v25 }
 0x3a6   : > { %7680 = vmatprep.subr.bf16.mxu1 %v10245_v31  ;;  %v478_v31 = vld [vmem:[%s11504_s25 + $0x638] sm:$0xff]  ;;  %v10421_v37 = vcombine.high %v750_v26, %v758_v27  ;;  %v10420_v51 = vcombine.low %v750_v26, %v758_v27 }
 0x3a7   : > { %7640 = vmatpush1.bf16.msra.mxu0 %v9988_v49  ;;  %v486_v49 = vld [vmem:[%s11504_s25 + $0x678] sm:$0xff] }
 0x3a8   : > { %7641 = vmatprep.subr.bf16.mxu0 %v9973_v41  ;;  %v742_v41 = vld [vmem:[%s11504_s25 + $0xe78] sm:$0xff]  ;;  %v10149_v53 = vcombine.high %v478_v31, %v486_v49  ;;  %v10148_v33 = vcombine.low %v478_v31, %v486_v49 }
 0x3a9   : > { %7681 = vmatpush1.bf16.msra.mxu1 %v10244_v39  ;;  %v7808_v39 = vsel %vm7793_vm0, %v12052_v42, 0.0  ;;  %v446_v1 = vld [vmem:[%s11504_s25 + $0x538] sm:$0xff] }
 0x3aa   : > { %7682 = vmatprep.subr.bf16.mxu1 %v10229_v6  ;;  %v462_v6 = vld [vmem:[%s11504_s25 + $0x5b8] sm:$0xff]  ;;  %v7809_v54 = vrot.slane %v7808_v39, 4 }
 0x3ab   : > { %7642 = vmatpush1.bf16.msra.mxu0 %v9972_v5  ;;  %v470_v5 = vld [vmem:[%s11504_s25 + $0x5f8] sm:$0xff] }
 0x3ac   : > { %7643 = vmatprep.subr.bf16.mxu0 %v9957_v0  ;;  %v718_v0 = vld [vmem:[%s11504_s25 + $0xdb8] sm:$0xff]  ;;  %v10133_v9 = vcombine.high %v462_v6, %v470_v5  ;;  %v10132_v14 = vcombine.low %v462_v6, %v470_v5 }
 0x3ad   : > { %7683 = vmatpush1.bf16.msra.mxu1 %v10228_v63  ;;  %v10405_v63 = vcombine.high %v734_v24, %v742_v41  ;;  %v454_v52 = vld [vmem:[%s11504_s25 + $0x578] sm:$0xff] }
 0x3ae   : > { %7684 = vmatprep.subr.bf16.mxu1 %v10213_v47  ;;  %v726_v47 = vld [vmem:[%s11504_s25 + $0xdf8] sm:$0xff]  ;;  %v10117_v19 = vcombine.high %v446_v1, %v454_v52  ;;  %v10116_v31 = vcombine.low %v446_v1, %v454_v52 }
 0x3af   : > { %7644 = vmatpush1.bf16.msra.mxu0 %v9956_v4  ;;  %v10404_v4 = vcombine.low %v734_v24, %v742_v41  ;;  %v702_v10 = vld [vmem:[%s11504_s25 + $0xd38] sm:$0xff]  ;;  %v10388_v18 = vcombine.low %v718_v0, %v726_v47 }
 0x3b0   : > { %7645 = vmatprep.subr.bf16.mxu0 %v10197_v7  ;;  %v10389_v7 = vcombine.high %v718_v0, %v726_v47  ;;  %v710_v13 = vld [vmem:[%s11504_s25 + $0xd78] sm:$0xff] }
 0x3b1   : > { %7685 = vmatpush1.bf16.msra.mxu1 %v10212_v40  ;;  %v7830_v40 = vrot.slane %v7829_v35, 4  ;;  %v430_v20 = vld [vmem:[%s11504_s25 + $0x4b8] sm:$0xff]  ;;  %v10373_v17 = vcombine.high %v702_v10, %v710_v13 }
 0x3b2   : > { %7686 = vmatprep.subr.bf16.mxu1 %v10453_v62  ;;  %v7810_v62 = vadd.f32 %v7809_v54, %v7808_v39  ;;  %v694_v27 = vld [vmem:[%s11504_s25 + $0xcf8] sm:$0xff] }
 0x3b3   : > { %7646 = vmatpush2.bf16.msra.mxu0 %v10196_v16  ;;  %v7980_v16 = vadd.f32 %v7979_v2, %v7978_v60  ;;  %v414_v32 = vld [vmem:[%s11504_s25 + $0x438] sm:$0xff] }
 0x3b4   : > { %7647 = vmatprep.subr.bf16.mxu0 %v10181_v23  ;;  %v7831_v23 = vadd.f32 %v7830_v40, %v7829_v35  ;;  %v7811_v26 = vrot.slane %v7810_v62, 2  ;;  %v670_v41 = vld [vmem:[%s11504_s25 + $0xc38] sm:$0xff] }
 0x3b5   : > { %7687 = vmatpush2.bf16.msra.mxu1 %v10452_v21  ;;  %v438_v21 = vld [vmem:[%s11504_s25 + $0x4f8] sm:$0xff] }
 0x3b6   : > { %7688 = vmatprep.subr.bf16.mxu1 %v10437_v29  ;;  %v686_v29 = vld [vmem:[%s11504_s25 + $0xcb8] sm:$0xff]  ;;  %v10101_v49 = vcombine.high %v430_v20, %v438_v21  ;;  %v7832_v24 = vrot.slane %v7831_v23, 2  ;;  %v7812_v60 = vadd.f32 %v7811_v26, %v7810_v62 }
 0x3b7   : > { %7648 = vmatpush2.bf16.msra.mxu0 %v10180_v30  ;;  %v7843_v30 = vsel %vm7793_vm0, %v12353_v8, 0.0  ;;  %v10357_v39 = vcombine.high %v686_v29, %v694_v27  ;;  %v678_v6 = vld [vmem:[%s11504_s25 + $0xc78] sm:$0xff]  ;;  %v10356_v54 = vcombine.low %v686_v29, %v694_v27 }
 0x3b8   : > { %7649 = vmatprep.subr.bf16.mxu0 %v10165_v57  ;;  %v10372_v57 = vcombine.low %v702_v10, %v710_v13  ;;  %v918_v0 = vld [vmem:[%s11504_s25 + $0x13f8] sm:$0xff]  ;;  %v7833_v35 = vadd.f32 %v7832_v24, %v7831_v23  ;;  %v10341_v47 = vcombine.high %v670_v41, %v678_v6 }
 0x3b9   : > { %7689 = vmatpush2.bf16.msra.mxu1 %v10436_v34  ;;  %v7981_v34 = vrot.slane %v7980_v16, 1  ;;  %v1174_v2 = vld [vmem:[%s11504_s25 + $0x1bf8] sm:$0xff] }
 0x3ba   : > { %7690 = vmatprep.subr.bf16.mxu1 %v10421_v37  ;;  %v422_v37 = vld [vmem:[%s11504_s25 + $0x478] sm:$0xff]  ;;  %v7834_v13 = vrot.slane %v7833_v35, 1 }
 0x3bb   : > { %7650 = vmatpush2.bf16.msra.mxu0 %v10164_v43  ;;  %v7844_v43 = vrot.slane %v7843_v30, 4  ;;  %v7982_v5 = vadd.f32 %v7981_v34, %v7980_v16  ;;  %v894_v52 = vld [vmem:[%s11504_s25 + $0x1338] sm:$0xff] }
 0x3bc   : > { %7651 = vmatprep.subr.bf16.mxu0 %v10149_v53  ;;  %v910_v53 = vld [vmem:[%s11504_s25 + $0x13b8] sm:$0xff] }
 0x3bd   : > { %7691 = vmatpush2.bf16.msra.mxu1 %v10420_v51  ;;  %v10100_v51 = vcombine.low %v430_v20, %v438_v21  ;;  %v7845_v1 = vadd.f32 %v7844_v43, %v7843_v30  ;;  %v8070_v40 = vmul.f32 0.5, %v7982_v5  ;;  %v10581_v10 = vcombine.high %v910_v53, %v918_v0  ;;  %v902_v62 = vld [vmem:[%s11504_s25 + $0x1378] sm:$0xff] }
 0x3be   : > { %7692 = vmatprep.subr.bf16.mxu1 %v10405_v63  ;;  %v10085_v63 = vcombine.high %v414_v32, %v422_v37  ;;  %v1150_v20 = vld [vmem:[%s11504_s25 + $0x1b38] sm:$0xff]  ;;  %v10565_v29 = vcombine.high %v894_v52, %v902_v62 }
 0x3bf   : > { %7652 = vmatpush2.bf16.msra.mxu0 %v10148_v33  ;;  %v1166_v33 = vld [vmem:[%s11504_s25 + $0x1bb8] sm:$0xff]  ;;  %v7846_v16 = vrot.slane %v7845_v1, 2  ;;  %v12673_v30 = vadd.f32 1e-05, %v8070_v40 }
 0x3c0   : > { %7653 = vmatprep.subr.bf16.mxu0 %v10133_v9  ;;  %v10084_v9 = vcombine.low %v414_v32, %v422_v37  ;;  %v12670_v21 = vld [vmem:[%s11504_s25 + $0x12b8] sm:$0xff]  ;;  %v12679_v37 = vsub.s32 0, %v11495_v3 }
 0x3c1   : > { %7693 = vmatpush2.bf16.msra.mxu1 %v10404_v4  ;;  %v7813_v4 = vrot.slane %v7812_v60, 1  ;;  %v886_v26 = vld [vmem:[%s11504_s25 + $0x12f8] sm:$0xff]  ;;  %v7847_v32 = vadd.f32 %v7846_v16, %v7845_v1  ;;  %v12694_v1 = vsub.s32 1, %v11495_v3  ;;  %11416 = vrsqrt.f32 %v12673_v30 }
 0x3c2   : > { %7694 = vmatprep.subr.bf16.mxu1 %v10389_v7  ;;  %v10340_v7 = vcombine.low %v670_v41, %v678_v6  ;;  %v10564_v41 = vcombine.low %v894_v52, %v902_v62  ;;  %v862_v43 = vld [vmem:[%s11504_s25 + $0x1238] sm:$0xff]  ;;  %v7822_v52 = vsel %vm7793_vm0, %v12198_v12, 0.0  ;;  %11418 = vrsqrt.f32 %v12592_v44 }
 0x3c3   : > { %7654 = vmatpush2.bf16.msra.mxu0 %v10132_v14  ;;  %v10837_v14 = vcombine.high %v1166_v33, %v1174_v2  ;;  %v7814_v23 = vadd.f32 %v7813_v4, %v7812_v60  ;;  %v10548_v4 = vcombine.low %v12670_v21, %v886_v26 }
 0x3c4   : > { %7655 = vmatprep.subr.bf16.mxu0 %v10117_v19  ;;  %v10580_v19 = vcombine.low %v910_v53, %v918_v0  ;;  %v870_v53 = vld [vmem:[%s11504_s25 + $0x1278] sm:$0xff]  ;;  %v7848_v0 = vrot.slane %v7847_v32, 1 }
 0x3c5   : > { %7695 = vmatpush2.bf16.msra.mxu1 %v10388_v18  ;;  %v1158_v18 = vld [vmem:[%s11504_s25 + $0x1b78] sm:$0xff]  ;;  %v7909_v6 = vmul.f32 0.5, %v7814_v23 }
 0x3c6   : > { %7696 = vmatprep.subr.bf16.mxu1 %v10373_v17  ;;  %v10836_v17 = vcombine.low %v1166_v33, %v1174_v2  ;;  %v10821_v27 = vcombine.high %v1150_v20, %v1158_v18  ;;  %v1126_v33 = vld [vmem:[%s11504_s25 + $0x1a78] sm:$0xff]  ;;  %v7849_v16 = vadd.f32 %v7848_v0, %v7847_v32 }
 0x3c7   : > { %7656 = vmatpush2.bf16.msra.mxu0 %v10116_v31  ;;  %v7835_v31 = vadd.f32 %v7834_v13, %v7833_v35  ;;  %v830_v23 = vld [vmem:[%s11504_s25 + $0x1138] sm:$0xff] }
 0x3c8   : > { %7657 = vmatprep.subr.bf16.mxu0 %v10101_v49  ;;  %v1142_v49 = vld [vmem:[%s11504_s25 + $0x1af8] sm:$0xff] }
 0x3c9   : > { %7697 = vmatpush2.bf16.msra.mxu1 %v10372_v57  ;;  %v1134_v57 = vld [vmem:[%s11504_s25 + $0x1ab8] sm:$0xff] }
 0x3ca   : > { %7698 = vmatprep.subr.bf16.mxu1 %v10357_v39  ;;  %v10804_v40 = vcombine.low %v1134_v57, %v1142_v49  ;;  %v1086_v32 = vld [vmem:[%s11504_s25 + $0x1938] sm:$0xff] }
 0x3cb   : > { %7658 = vmatpush2.bf16.msra.mxu0 %v10100_v51  ;;  %v10549_v51 = vcombine.high %v12670_v21, %v886_v26  ;;  %v10532_v21 = vcombine.low %v862_v43, %v870_v53 }
 0x3cc   : > { %7659 = vmatprep.subr.bf16.mxu0 %v10085_v63  ;;  %v7912_v63 = vmul.f32 0.5, %v7835_v31 }
 0x3cd   : > { %7699 = vmatpush2.bf16.msra.mxu1 %v10356_v54 }
 0x3ce   : > { %7700 = vmatprep.subr.bf16.mxu1 %v10341_v47  ;;  %v1118_v47 = vld [vmem:[%s11504_s25 + $0x1a38] sm:$0xff] }
 0x3cf   : > { %7660 = vmatpush2.bf16.msra.mxu0 %v10084_v9  ;;  %v12701_v9 = vsub.f32 %v12052_v42, %v7909_v6  ;;  %v10789_v13 = vcombine.high %v1118_v47, %v1126_v33  ;;  %v12709_v42 = vsub.s32 2, %v11495_v3  ;;  %v10788_v26 = vcombine.low %v1118_v47, %v1126_v33 }
 0x3d0   : > { %7711 = vmatprep.subr.bf16.mxu0 %v10581_v10  ;;  %v854_v10 = vld [vmem:[%s11504_s25 + $0x11f8] sm:$0xff] }
 0x3d1   : > { %7701 = vmatpush2.bf16.msra.mxu1 %v10340_v7  ;;  %v10533_v7 = vcombine.high %v862_v43, %v870_v53  ;;  %v814_v43 = vld [vmem:[%s11504_s25 + $0x10b8] sm:$0xff] }
 0x3d2   : > { %7752 = vmatprep.subr.bf16.mxu1 %v10837_v14  ;;  %v7417_v34 = vpop.f32.mrf.mxu0  ;;  %7662 = vmatmul.mubr.bf16.vlgmr.msra.gmra.mxu0 %v11602_v28  ;;  %v10820_v28 = vcombine.low %v1150_v20, %v1158_v18  ;;  %v1102_v14 = vld [vmem:[%s11504_s25 + $0x19b8] sm:$0xff]  ;;  %v12712_v20 = vsub.f32 %v12207_v22, %v7912_v63 }
 0x3d3   : > { %v7418_v24 = vadd.f32 %v7417_v34, %v12588_v38  ;;  %7712 = vmatpush1.bf16.msra.mxu0 %v10580_v19  ;;  %7743 = vmatprep.mubr.bf16.mxu0 %v11609_v36  ;;  %v846_v36 = vld [vmem:[%s11504_s25 + $0x11b8] sm:$0xff]  ;;  %v7823_v19 = vrot.slane %v7822_v52, 4  ;;  %v12723_v34 = vsub.s32 3, %v11495_v3 }
 0x3d4   : > { %v7458_v39 = vpop.f32.mrf.mxu1  ;;  %7703 = vmatmul.mubr.bf16.vlgmr.msra.gmra.mxu1 %v11613_v15  ;;  %v7419_v60 = vpop.f32.mrf.mxu0  ;;  %7713 = vmatprep.subr.bf16.mxu0 %v10565_v29  ;;  %v10805_v15 = vcombine.high %v1134_v57, %v1142_v49  ;;  %v1110_v18 = vld [vmem:[%s11504_s25 + $0x19f8] sm:$0xff]  ;;  %v7836_v29 = vsel %vm7793_vm0, %v12344_v58, 0.0  ;;  %v10517_v22 = vcombine.high %v846_v36, %v854_v10  ;;  %v7944_v57 = vmul.f32 %v12712_v20, %v12712_v20 }
 0x3d5   : > { %7753 = vmatpush1.bf16.msra.mxu1 %v10836_v17  ;;  %v12686_v5 = vadd.f32 %v7458_v39, %v7418_v24  ;;  %v7420_v38 = vadd.f32 %v7419_v60, %v12594_v50  ;;  %7784 = vmatprep.mubr.bf16.mxu1 %v11622_v45  ;;  %v7941_v17 = vmul.f32 %v12701_v9, %v12701_v9  ;;  %v7914_v49 = vmul.f32 0.5, %v7849_v16  ;;  %v1094_v24 = vld [vmem:[%s11504_s25 + $0x1978] sm:$0xff] }
 0x3d6   : > { %v7460_v54 = vpop.f32.mrf.mxu1  ;;  %7754 = vmatprep.subr.bf16.mxu1 %v10821_v27  ;;  %v7421_v35 = vpop.f32.mrf.mxu0  ;;  %v838_v27 = vld [vmem:[%s11504_s25 + $0x1178] sm:$0xff]  ;;  %v10773_v31 = vcombine.high %v1102_v14, %v1110_v18  ;;  %v7837_v39 = vrot.slane %v7836_v29, 4  ;;  %v7824_v60 = vadd.f32 %v7823_v19, %v7822_v52  ;;  %v7990_v63 = vsel %vm7793_vm0, %v7944_v57, 0.0 }
 0x3d7   : > { %v12696_v2 = vadd.f32 %v7460_v54, %v7420_v38  ;;  %7714 = vmatpush1.bf16.msra.mxu0 %v10564_v41  ;;  %v10516_v41 = vcombine.low %v846_v36, %v854_v10  ;;  %v7969_v6 = vsel %vm7793_vm0, %v7941_v17, 0.0  ;;  %v822_v53 = vld [vmem:[%s11504_s25 + $0x10f8] sm:$0xff]  ;;  %v12732_v38 = vsub.s32 6, %v11495_v3 }
 0x3d8   : > { %v7462_v50 = vpop.f32.mrf.mxu1  ;;  %v7422_v45 = vpop.f32.mrf.mxu0  ;;  %7715 = vmatprep.subr.bf16.mxu0 %v10549_v51  ;;  %v10501_v51 = vcombine.high %v830_v23, %v838_v27  ;;  %v10757_v54 = vcombine.high %v1086_v32, %v1094_v24  ;;  %v12737_v0 = vsub.f32 %v12353_v8, %v7914_v49  ;;  %v1078_v35 = vld [vmem:[%s11504_s25 + $0x18f8] sm:$0xff]  ;;  %v7970_v47 = vrot.slane %v7969_v6, 4 }
 0x3d9   : > { %7755 = vmatpush1.bf16.msra.mxu1 %v10820_v28  ;;  %v10772_v28 = vcombine.low %v1102_v14, %v1110_v18  ;;  %v7838_v33 = vadd.f32 %v7837_v39, %v7836_v29  ;;  %v10500_v50 = vcombine.low %v830_v23, %v838_v27  ;;  %v7825_v36 = vrot.slane %v7824_v60, 2  ;;  %v1054_v10 = vld [vmem:[%s11504_s25 + $0x1838] sm:$0xff] }
 0x3da   : > { %v7463_v62 = vpop.f32.mrf.mxu1  ;;  %7756 = vmatprep.subr.bf16.mxu1 %v10805_v15  ;;  %v1070_v15 = vld [vmem:[%s11504_s25 + $0x18b8] sm:$0xff]  ;;  %v10756_v52 = vcombine.low %v1086_v32, %v1094_v24  ;;  %v10485_v45 = vcombine.high %v814_v43, %v822_v53  ;;  %v10484_v18 = vcombine.low %v814_v43, %v822_v53  ;;  %v7871_v23 = vsel %vm7793_vm0, %v12696_v2, 0.0 }
 0x3db   : > { %7716 = vmatpush1.bf16.msra.mxu0 %v10548_v4  ;;  %v798_v4 = vld [vmem:[%s11504_s25 + $0x1038] sm:$0xff]  ;;  %v10741_v8 = vcombine.high %v1070_v15, %v1078_v35  ;;  %v7946_v62 = vmul.f32 %v12737_v0, %v12737_v0  ;;  %v7839_v16 = vrot.slane %v7838_v33, 2  ;;  %v10740_v17 = vcombine.low %v1070_v15, %v1078_v35 }
 0x3dc   : > { %7717 = vmatprep.subr.bf16.mxu0 %v10533_v7  ;;  %v7991_v7 = vrot.slane %v7990_v63, 4  ;;  %v1062_v14 = vld [vmem:[%s11504_s25 + $0x1878] sm:$0xff]  ;;  %v7872_v39 = vrot.slane %v7871_v23, 4 }
 0x3dd   : > { %7757 = vmatpush1.bf16.msra.mxu1 %v10804_v40  ;;  %v806_v40 = vld [vmem:[%s11504_s25 + $0x1078] sm:$0xff]  ;;  %v8004_v57 = vsel %vm7793_vm0, %v7946_v62, 0.0 }
 0x3de   : > { %7758 = vmatprep.subr.bf16.mxu1 %v10789_v13  ;;  %v7857_v13 = vsel %vm7793_vm0, %v12501_v11, 0.0  ;;  %v1038_v19 = vld [vmem:[%s11504_s25 + $0x17b8] sm:$0xff]  ;;  %v10469_v29 = vcombine.high %v798_v4, %v806_v40  ;;  %v7992_v24 = vadd.f32 %v7991_v7, %v7990_v63 }
 0x3df   : > { %7718 = vmatpush1.bf16.msra.mxu0 %v10532_v21  ;;  %v7971_v21 = vadd.f32 %v7970_v47, %v7969_v6  ;;  %v7858_v27 = vrot.slane %v7857_v13, 4  ;;  %v1294_v32 = vld [vmem:[%s11504_s25 + $0x1fb8] sm:$0xff]  ;;  %v8005_v47 = vrot.slane %v8004_v57, 4 }
 0x3e0   : > { %7719 = vmatprep.subr.bf16.mxu0 %v10517_v22  ;;  %v7826_v22 = vadd.f32 %v7825_v36, %v7824_v60  ;;  %v1302_v49 = vld [vmem:[%s11504_s25 + $0x1ff8] sm:$0xff]  ;;  %v10724_v60 = vcombine.low %v1054_v10, %v1062_v14  ;;  %v7993_v36 = vrot.slane %v7992_v24, 2 }
 0x3e1   : > { %7759 = vmatpush1.bf16.msra.mxu1 %v10788_v26  ;;  %v1046_v26 = vld [vmem:[%s11504_s25 + $0x17f8] sm:$0xff]  ;;  %v7972_v6 = vrot.slane %v7971_v21, 2  ;;  %v7859_v15 = vadd.f32 %v7858_v27, %v7857_v13  ;;  %v10965_v63 = vcombine.high %v1294_v32, %v1302_v49  ;;  %v10964_v7 = vcombine.low %v1294_v32, %v1302_v49 }
 0x3e2   : > { %7760 = vmatprep.subr.bf16.mxu1 %v10773_v31  ;;  %v10725_v31 = vcombine.high %v1054_v10, %v1062_v14  ;;  %v1022_v43 = vld [vmem:[%s11504_s25 + $0x1738] sm:$0xff] }
 0x3e3   : > { %7720 = vmatpush1.bf16.msra.mxu0 %v10516_v41  ;;  %v10468_v41 = vcombine.low %v798_v4, %v806_v40  ;;  %v1030_v53 = vld [vmem:[%s11504_s25 + $0x1778] sm:$0xff]  ;;  %v7873_v4 = vadd.f32 %v7872_v39, %v7871_v23  ;;  %v7860_v62 = vrot.slane %v7859_v15, 2 }
 0x3e4   : > { %7721 = vmatprep.subr.bf16.mxu0 %v10501_v51  ;;  %v10709_v51 = vcombine.high %v1038_v19, %v1046_v26  ;;  %v1278_v35 = vld [vmem:[%s11504_s25 + $0x1f38] sm:$0xff]  ;;  %v10692_v23 = vcombine.low %v1022_v43, %v1030_v53 }
 0x3e5   : > { %7761 = vmatpush1.bf16.msra.mxu1 %v10772_v28  ;;  %v7840_v28 = vadd.f32 %v7839_v16, %v7838_v33  ;;  %v10708_v33 = vcombine.low %v1038_v19, %v1046_v26  ;;  %v1262_v10 = vld [vmem:[%s11504_s25 + $0x1eb8] sm:$0xff]  ;;  %v8006_v16 = vadd.f32 %v8005_v47, %v8004_v57  ;;  %v7874_v19 = vrot.slane %v7873_v4, 2 }
 0x3e6   : > { %7762 = vmatprep.subr.bf16.mxu1 %v10757_v54  ;;  %v7827_v54 = vrot.slane %v7826_v22, 1  ;;  %v1270_v14 = vld [vmem:[%s11504_s25 + $0x1ef8] sm:$0xff]  ;;  %v7861_v49 = vadd.f32 %v7860_v62, %v7859_v15 }
 0x3e7   : > { %7722 = vmatpush1.bf16.msra.mxu0 %v10500_v50  ;;  %v1286_v50 = vld [vmem:[%s11504_s25 + $0x1f78] sm:$0xff]  ;;  %v7841_v40 = vrot.slane %v7840_v28, 1  ;;  %v10933_v30 = vcombine.high %v1262_v10, %v1270_v14  ;;  %v8007_v57 = vrot.slane %v8006_v16, 2 }
 0x3e8   : > { %7723 = vmatprep.subr.bf16.mxu0 %v10485_v45  ;;  %v1014_v45 = vld [vmem:[%s11504_s25 + $0x16f8] sm:$0xff]  ;;  %v10949_v13 = vcombine.high %v1278_v35, %v1286_v50  ;;  %v10948_v25 = vcombine.low %v1278_v35, %v1286_v50  ;;  %v7828_v27 = vadd.f32 %v7827_v54, %v7826_v22  ;;  %v12791_v35 = vld [vmem:[%s12781_s8] sm:$0xff]  ;;  %v7862_v50 = vrot.slane %v7861_v49, 1 }
 0x3e9   : > { %7763 = vmatpush1.bf16.msra.mxu1 %v10756_v52  ;;  %v1006_v52 = vld [vmem:[%s11504_s25 + $0x16b8] sm:$0xff]  ;;  %v12793_v47 = vadd.f32 %v8007_v57, %v8006_v16  ;;  %v8146_v62 = vrot.slane %v12791_v35, %v12709_v42  ;;  %v8154_v16 = vrot.slane %v12791_v35, %v12732_v38 }
 0x3ea   : > { %7764 = vmatprep.subr.bf16.mxu1 %v10741_v8  ;;  %v10693_v8 = vcombine.high %v1022_v43, %v1030_v53  ;;  %v10677_v26 = vcombine.high %v1006_v52, %v1014_v45  ;;  %v1246_v32 = vld [vmem:[%s11504_s25 + $0x1e38] sm:$0xff]  ;;  %v10676_v43 = vcombine.low %v1006_v52, %v1014_v45  ;;  %v12785_v53 = vmul.f32 0.5, %v7828_v27 }
 0x3eb   : > { %7724 = vmatpush1.bf16.msra.mxu0 %v10484_v18  ;;  %v12765_v18 = vadd.f32 %v7972_v6, %v7971_v21  ;;  %v12773_v21 = vsub.s32 7, %v11495_v3  ;;  %v1254_v39 = vld [vmem:[%s11504_s25 + $0x1e78] sm:$0xff] }
 0x3ec   : > { %7725 = vmatprep.subr.bf16.mxu0 %v10469_v29  ;;  %v998_v29 = vld [vmem:[%s11504_s25 + $0x1678] sm:$0xff]  ;;  %v10917_v15 = vcombine.high %v1246_v32, %v1254_v39 }
 0x3ed   : > { %7765 = vmatpush1.bf16.msra.mxu1 %v10740_v17  ;;  %v990_v17 = vld [vmem:[%s11504_s25 + $0x1638] sm:$0xff]  ;;  %v7974_v22 = vrot.slane %v12765_v18, 1 }
 0x3ee   : > { %7766 = vmatprep.subr.bf16.mxu1 %v10725_v31  ;;  %v12769_v31 = vadd.f32 %v7993_v36, %v7992_v24  ;;  %v7842_v24 = vadd.f32 %v7841_v40, %v7840_v28  ;;  %v974_v6 = vld [vmem:[%s11504_s25 + $0x15b8] sm:$0xff]  ;;  %v10660_v52 = vcombine.low %v990_v17, %v998_v29 }
 0x3ef   : > { %7726 = vmatpush1.bf16.msra.mxu0 %v10468_v41  ;;  %v7875_v41 = vadd.f32 %v7874_v19, %v7873_v4  ;;  %v1230_v28 = vld [vmem:[%s11504_s25 + $0x1db8] sm:$0xff]  ;;  %v8009_v19 = vrot.slane %v12793_v47, 1 }
 0x3f0   : > { %7727 = vmatprep.subr.bf16.mxu0 %v10709_v51  ;;  %v10661_v51 = vcombine.high %v990_v17, %v998_v29  ;;  %v7995_v54 = vrot.slane %v12769_v31, 1  ;;  %v1238_v36 = vld [vmem:[%s11504_s25 + $0x1df8] sm:$0xff]  ;;  %v7913_v4 = vmul.f32 0.5, %v7842_v24 }
 0x3f1   : > { %7767 = vmatpush1.bf16.msra.mxu1 %v10724_v60  ;;  %v10932_v60 = vcombine.low %v1262_v10, %v1270_v14  ;;  %v958_v45 = vld [vmem:[%s11504_s25 + $0x1538] sm:$0xff]  ;;  %v11415_v14 = vpop.eup %11414  ;;  %v10900_v57 = vcombine.low %v1230_v28, %v1238_v36 }
 0x3f2   : > { %7768 = vmatprep.subr.bf16.mxu1 %v10965_v63  ;;  %v982_v63 = vld [vmem:[%s11504_s25 + $0x15f8] sm:$0xff]  ;;  %v11417_v29 = vpop.eup %11416 }
 0x3f3   : > { %7728 = vmatpush2.bf16.msra.mxu0 %v10708_v33  ;;  %v7876_v33 = vrot.slane %v7875_v41, 1  ;;  %v966_v40 = vld [vmem:[%s11504_s25 + $0x1578] sm:$0xff]  ;;  %v10644_v27 = vcombine.low %v974_v6, %v982_v63 }
 0x3f4   : > { %7729 = vmatprep.subr.bf16.mxu0 %v10693_v8  ;;  %v10645_v8 = vcombine.high %v974_v6, %v982_v63  ;;  %v1214_v10 = vld [vmem:[%s11504_s25 + $0x1d38] sm:$0xff]  ;;  %v8314_v6 = vrot.slane %v12791_v35, %v12773_v21  ;;  %v8234_v63 = vrot.slane %v8154_v16, %v12679_v37  ;;  %v7996_v16 = vadd.f32 %v7995_v54, %v12769_v31 }
 0x3f5   : > { %7769 = vmatpush2.bf16.msra.mxu1 %v10964_v7  ;;  %v10916_v7 = vcombine.low %v1246_v32, %v1254_v39  ;;  %v1222_v17 = vld [vmem:[%s11504_s25 + $0x1d78] sm:$0xff]  ;;  %v10629_v39 = vcombine.high %v958_v45, %v966_v40 }
 0x3f6   : > { %7770 = vmatprep.subr.bf16.mxu1 %v10949_v13  ;;  %v10901_v13 = vcombine.high %v1230_v28, %v1238_v36  ;;  %v950_v32 = vld [vmem:[%s11504_s25 + $0x14f8] sm:$0xff] }
 0x3f7   : > { %7730 = vmatpush2.bf16.msra.mxu0 %v10692_v23  ;;  %v7863_v23 = vadd.f32 %v7862_v50, %v7861_v49  ;;  %v1198_v24 = vld [vmem:[%s11504_s25 + $0x1cb8] sm:$0xff]  ;;  %v8306_v49 = vrot.slane %v12791_v35, %v12723_v34 }
 0x3f8   : > { %7731 = vmatprep.subr.bf16.mxu0 %v10677_v26  ;;  %v7877_v26 = vadd.f32 %v7876_v33, %v7875_v41  ;;  %v10885_v41 = vcombine.high %v1214_v10, %v1222_v17  ;;  %v1206_v50 = vld [vmem:[%s11504_s25 + $0x1cf8] sm:$0xff]  ;;  %v10628_v33 = vcombine.low %v958_v45, %v966_v40 }
 0x3f9   : > { %7771 = vmatpush2.bf16.msra.mxu1 %v10948_v25  ;;  %v12807_v25 = vsel %vm7793_vm0, %v12492_v59, 0.0  ;;  %v7916_v28 = vmul.f32 0.5, %v7863_v23  ;;  %v1190_v23 = vld [vmem:[%s11504_s25 + $0x1c78] sm:$0xff] }
 0x3fa   : > { %7772 = vmatprep.subr.bf16.mxu1 %v10933_v30  ;;  %v942_v30 = vld [vmem:[%s11504_s25 + $0x14b8] sm:$0xff]  ;;  %v7918_v36 = vmul.f32 0.5, %v7877_v26  ;;  %v7851_v26 = vrot.slane %v12807_v25, 4 }
 0x3fb   : > { %7732 = vmatpush2.bf16.msra.mxu0 %v10676_v43  ;;  %v8116_v43 = vmul.f32 %v11415_v14, %v12560_v48  ;;  %v926_v48 = vld [vmem:[%s11504_s25 + $0x1438] sm:$0xff]  ;;  %v8394_v14 = vrot.slane %v8314_v6, %v12694_v1 }
 0x3fc   : > { %7733 = vmatprep.subr.bf16.mxu0 %v10661_v51  ;;  %v7975_v51 = vadd.f32 %v7974_v22, %v12765_v18  ;;  %v10869_v22 = vcombine.high %v1198_v24, %v1206_v50  ;;  %v7852_v6 = vadd.f32 %v7851_v26, %v12807_v25 }
 0x3fd   : > { %7773 = vmatpush2.bf16.msra.mxu1 %v10932_v60  ;;  %v8226_v60 = vrot.slane %v8146_v62, %v12679_v37  ;;  %v1182_v62 = vld [vmem:[%s11504_s25 + $0x1c38] sm:$0xff] }
 0x3fe   : > { %7774 = vmatprep.subr.bf16.mxu1 %v10917_v15  ;;  %v8118_v15 = vmul.f32 %v11417_v29, %v12617_v61  ;;  %v12828_v61 = vsub.f32 %v12198_v12, %v12785_v53  ;;  %v8069_v45 = vmul.f32 0.5, %v7975_v51  ;;  %v12840_v29 = vsub.f32 %v12501_v11, %v7916_v28  ;;  %v11287_v51 = vld [vmem:[%s12581_s29 + $0xf8] sm:$0xff]  }
 0x3ff   : > { %7734 = vmatpush2.bf16.msra.mxu0 %v10660_v52  ;;  %v934_v52 = vld [vmem:[%s11504_s25 + $0x1478] sm:$0xff]  ;;  %v8284_v18 = vmul.f32 %v8226_v60, %v8116_v43  ;;  %v7864_v12 = vsel %vm7793_vm0, %v12686_v5, 0.0  ;;  %v10612_v53 = vcombine.low %v942_v30, %v950_v32  ;;  %v10853_v11 = vcombine.high %v1182_v62, %v1190_v23 }
 0x400   : > { %7735 = vmatprep.subr.bf16.mxu0 %v10645_v8  ;;  %v10613_v8 = vcombine.high %v942_v30, %v950_v32  ;;  %v8286_v40 = vmul.f32 %v8234_v63, %v8118_v15  ;;  %v10597_v31 = vcombine.high %v926_v48, %v934_v52  ;;  %v7943_v54 = vmul.f32 %v12828_v61, %v12828_v61  ;;  %v11286_v43 = vld [vmem:[%s12581_s29 + $0x78] sm:$0xff]  }
 0x401   : > { %7775 = vmatpush2.bf16.msra.mxu1 %v10916_v7  ;;  %v10884_v7 = vcombine.low %v1214_v10, %v1222_v17  ;;  %v12835_v10 = vsub.f32 %v12344_v58, %v7913_v4  ;;  %v8010_v17 = vadd.f32 %v8009_v19, %v12793_v47  ;;  %v10868_v58 = vcombine.low %v1198_v24, %v1206_v50 }
 0x402   : > { %7776 = vmatprep.subr.bf16.mxu1 %v10901_v13  ;;  %v8386_v13 = vrot.slane %v8306_v49, %v12694_v1  ;;  %v8072_v47 = vmul.f32 0.5, %v7996_v16  ;;  %v7865_v19 = vrot.slane %v7864_v12, 4  ;;  %v10852_v49 = vcombine.low %v1182_v62, %v1190_v23 }
 0x403   : > { %7736 = vmatpush2.bf16.msra.mxu0 %v10644_v27  ;;  %v12846_v27 = vsub.f32 %v12696_v2, %v7918_v36  ;;  %v7945_v4 = vmul.f32 %v12835_v10, %v12835_v10  ;;  %v8074_v32 = vmul.f32 0.5, %v8010_v17  ;;  %v7948_v2 = vmul.f32 %v12840_v29, %v12840_v29 }
 0x404   : > { %7737 = vmatprep.subr.bf16.mxu0 %v10629_v39  ;;  %v8444_v30 = vadd.f32 %v8386_v13, %v8284_v18  ;;  %v8446_v39 = vadd.f32 %v8394_v14, %v8286_v40  ;;  %v8085_v60 = vadd.f32 1e-05, %v8069_v45  ;;  %v8088_v15 = vadd.f32 1e-05, %v8072_v47  ;;  %v11290_v18 = vld [vmem:[%s12581_s29 + $0x70] sm:$0xff]  }
 0x405   : > { %7777 = vmatpush2.bf16.msra.mxu1 %v10900_v57  ;;  %v10596_v57 = vcombine.low %v926_v48, %v934_v52  ;;  %v7950_v24 = vmul.f32 %v12846_v27, %v12846_v27  ;;  %v7997_v63 = vsel %vm7793_vm0, %v7945_v4, 0.0  ;;  %v7866_v28 = vadd.f32 %v7865_v19, %v7864_v12  ;;  %v11288_v48 = vld [vmem:[%s12581_s29 + $0x38] sm:$0xff]   ;;  %v11291_v40 = vld [vmem:[%s12581_s29 + $0xf0] sm:$0xff]  }
 0x406   : > { %7778 = vmatprep.subr.bf16.mxu1 %v10885_v41  ;;  %v7983_v41 = vsel %vm7793_vm0, %v7943_v54, 0.0  ;;  %v8460_v50 = vmax.f32 %v8444_v30, 0.0  ;;  %v8090_v36 = vadd.f32 1e-05, %v8074_v32  ;;  %v8462_v52 = vmax.f32 %v8446_v39, 0.0  ;;  %v11292_v12 = vld [vmem:[%s12581_s29 + $0x30] sm:$0xff]  }
 0x407   : > { %7738 = vmatpush2.bf16.msra.mxu0 %v10628_v33  ;;  %v8018_v33 = vsel %vm7793_vm0, %v7948_v2, 0.0  ;;  %v8032_v25 = vsel %vm7793_vm0, %v7950_v24, 0.0  ;;  %11420 = vrsqrt.f32 %v8085_v60  ;;  %v7998_v62 = vrot.slane %v7997_v63, 4  ;;  %v11298_v60 = vld [vmem:[%s12581_s29 + $0x60] sm:$0xff]  }
 0x408   : > { %7739 = vmatprep.subr.bf16.mxu0 %v10613_v8  ;;  %v11289_v8 = vld [vmem:[%s12581_s29 + $0xb8] sm:$0xff]   ;;  %v7853_v13 = vrot.slane %v7852_v6, 2  ;;  %11422 = vrsqrt.f32 %v8088_v15  ;;  %v7867_v14 = vrot.slane %v7866_v28, 2  ;;  %v8476_v44 = vpack.c.bf16 %v8460_v50, %v8460_v50  ;;  %v11299_v15 = vld [vmem:[%s12581_s29 + $0xe0] sm:$0xff]  }
 0x409   : > { %7779 = vmatpush2.bf16.msra.mxu1 %v10884_v7  ;;  %v7984_v7 = vrot.slane %v7983_v41, 4  ;;  %11424 = vrsqrt.f32 %v8090_v36  ;;  %v8033_v16 = vrot.slane %v8032_v25, 4  ;;  %v8478_v17 = vpack.c.bf16 %v8462_v52, %v8462_v52 }
 0x40a   : > { %7780 = vmatprep.subr.bf16.mxu1 %v10869_v22  ;;  %v8019_v22 = vrot.slane %v8018_v33, 4  ;;  %v7999_v54 = vadd.f32 %v7998_v62, %v7997_v63  ;;  %v7868_v19 = vadd.f32 %v7867_v14, %v7866_v28  ;;  %v12882_v39 = vsub.s32 4, %v11495_v3 }
 0x40b   : > { %7740 = vmatpush2.bf16.msra.mxu0 %v10612_v53  ;;  %v7985_v53 = vadd.f32 %v7984_v7, %v7983_v41  ;;  %v8034_v32 = vadd.f32 %v8033_v16, %v8032_v25  ;;  %v8142_v50 = vrot.slane %v12791_v35, %v12679_v37  ;;  %v12893_v7 = vld [vmem:[%s12781_s8 + $0x8] sm:$0xff]  ;;  %v11301_v25 = vld [vmem:[%s12581_s29 + $0xa0] sm:$0xff]   ;;  %v12898_v62 = vsub.s32 5, %v11495_v3 }
 0x40c   : > { %7741 = vmatprep.subr.bf16.mxu0 %v10597_v31  ;;  %v11294_v31 = vld [vmem:[%s12581_s29 + $0x68] sm:$0xff]   ;;  %v8020_v4 = vadd.f32 %v8019_v22, %v8018_v33  ;;  %v8000_v41 = vrot.slane %v7999_v54, 2  ;;  %v7869_v28 = vrot.slane %v7868_v19, 1  ;;  %v11300_v33 = vld [vmem:[%s12581_s29 + $0x20] sm:$0xff]   ;;  %v8170_v3 = vrot.slane %v12893_v7, %v12732_v38 }
 0x40d   : > { %7781 = vmatpush2.bf16.msra.mxu1 %v10868_v58  ;;  %v7986_v24 = vrot.slane %v7985_v53, 2  ;;  %v8035_v36 = vrot.slane %v8034_v32, 2 }
 0x40e   : > { %7782 = vmatprep.subr.bf16.mxu1 %v10853_v11  ;;  %v7854_v11 = vadd.f32 %v7853_v13, %v7852_v6  ;;  %v8021_v63 = vrot.slane %v8020_v4, 2  ;;  %v11419_v13 = vpop.eup %11418  ;;  %v8001_v22 = vadd.f32 %v8000_v41, %v7999_v54  ;;  %v7870_v16 = vadd.f32 %v7869_v28, %v7868_v19  ;;  %v11306_v19 = vld [vmem:[%s12581_s29 + $0x50] sm:$0xff]  }
 0x40f   : > { %7742 = vmatpush2.bf16.msra.mxu0 %v10596_v57  ;;  %v11296_v57 = vld [vmem:[%s12581_s29 + $0x28] sm:$0xff]   ;;  %v7987_v52 = vadd.f32 %v7986_v24, %v7985_v53  ;;  %v11304_v53 = vld [vmem:[%s12581_s29 + $0x18] sm:$0xff]   ;;  %v8115_v54 = vmul.f32 %v11419_v13, %v12530_v46  ;;  %v11307_v46 = vld [vmem:[%s12581_s29 + $0xd0] sm:$0xff]   ;;  %v8322_v41 = vrot.slane %v12893_v7, %v12723_v34 }
 0x410   : > { %11100 = vmatprep.subr.bf16.mxu0 %v11286_v43  ;;  %v11297_v43 = vld [vmem:[%s12581_s29 + $0xa8] sm:$0xff]   ;;  %v7855_v6 = vrot.slane %v7854_v11, 1 }
 0x411   : > { %7783 = vmatpush2.bf16.msra.mxu1 %v10852_v49 }
 0x412   : > { %11122 = vmatprep.subr.bf16.mxu1 %v11287_v51  ;;  %v7499_v45 = vpop.f32.mrf.mxu0  ;;  %7744 = vmatmul.mubr.bf16.vlgmr.msra.gmra.mxu0 %v11552_v55  ;;  %v11293_v55 = vld [vmem:[%s12581_s29 + $0xb0] sm:$0xff]   ;;  %v7856_v14 = vadd.f32 %v7855_v6, %v7854_v11 }
 0x413   : > { %11101 = vmatpush3.bf16.msra.mxu0 %v11288_v48  ;;  %9554 = vmatprep.mubr.bf16.mxu0 %v8476_v44  ;;  %v8150_v48 = vrot.slane %v12791_v35, %v12882_v39 }
 0x414   : > { %v7540_v23 = vpop.f32.mrf.mxu1  ;;  %7785 = vmatmul.mubr.bf16.vlgmr.msra.gmra.mxu1 %v11689_v56  ;;  %v12873_v58 = vpop.f32.mrf.mxu0  ;;  %11102 = vmatprep.subr.bf16.mxu0 %v11290_v18  ;;  %v11295_v56 = vld [vmem:[%s12581_s29 + $0xe8] sm:$0xff]   ;;  %v8162_v18 = vrot.slane %v12893_v7, %v12709_v42  ;;  %v7915_v24 = vmul.f32 0.5, %v7856_v14  ;;  %v8402_v14 = vrot.slane %v8322_v41, %v12694_v1 }
 0x415   : > { %v12871_v26 = vadd.f32 %v7540_v23, %v7499_v45  ;;  %11123 = vmatpush3.bf16.msra.mxu1 %v11289_v8  ;;  %9594 = vmatprep.mubr.bf16.mxu1 %v8478_v17  ;;  %v11302_v8 = vld [vmem:[%s12581_s29 + $0x58] sm:$0xff]   ;;  %v11421_v44 = vpop.eup %11420  ;;  %v8222_v17 = vrot.slane %v8142_v50, %v12679_v37  ;;  %v8230_v11 = vrot.slane %v8150_v48, %v12679_v37  ;;  %v11310_v50 = vld [vmem:[%s12581_s29 + $0x48] sm:$0xff]  }
 0x416   : > { %v12877_v47 = vpop.f32.mrf.mxu1  ;;  %v7503_v30 = vpop.f32.mrf.mxu0  ;;  %11124 = vmatprep.subr.bf16.mxu1 %v11291_v40  ;;  %v11303_v45 = vld [vmem:[%s12581_s29 + $0xd8] sm:$0xff]   ;;  %v8022_v40 = vadd.f32 %v8021_v63, %v8020_v4  ;;  %v12930_v48 = vsub.f32 %v12492_v59, %v7915_v24 }
 0x417   : > { %11103 = vmatpush3.bf16.msra.mxu0 %v11292_v12  ;;  %v11423_v23 = vpop.eup %11422  ;;  %v8036_v12 = vadd.f32 %v8035_v36, %v8034_v32  ;;  %v11305_v4 = vld [vmem:[%s12581_s29 + $0x98] sm:$0xff]   ;;  %v8310_v30 = vrot.slane %v12791_v35, %v12898_v62  ;;  %v8117_v32 = vmul.f32 %v11421_v44, %v12701_v9  ;;  %v8283_v63 = vmul.f32 %v8222_v17, %v8115_v54  ;;  %v11314_v17 = vld [vmem:[%s12581_s29 + $0x40] sm:$0xff]  }
 0x418   : > { %v7544_v2 = vpop.f32.mrf.mxu1  ;;  %v7504_v49 = vpop.f32.mrf.mxu0  ;;  %11104 = vmatprep.subr.bf16.mxu0 %v11294_v31 }
 0x419   : > { %11125 = vmatpush3.bf16.msra.mxu1 %v11293_v55  ;;  %v8302_v55 = vrot.slane %v12791_v35, %v12694_v1  ;;  %v11425_v31 = vpop.eup %11424  ;;  %v8242_v2 = vrot.slane %v8162_v18, %v12679_v37  ;;  %v8120_v49 = vmul.f32 %v11423_v23, %v12712_v20  ;;  %v8250_v35 = vrot.slane %v8170_v3, %v12679_v37  ;;  %v11309_v20 = vld [vmem:[%s12581_s29 + $0x90] sm:$0xff]   ;;  %v11313_v23 = vld [vmem:[%s12581_s29 + $0x88] sm:$0xff]  }
 0x41a   : > { %v7545_v51 = vpop.f32.mrf.mxu1  ;;  %11126 = vmatprep.subr.bf16.mxu1 %v11295_v56  ;;  %v7988_v56 = vrot.slane %v7987_v52, 1  ;;  %v8122_v6 = vmul.f32 %v11425_v31, %v12737_v0  ;;  %v8037_v9 = vrot.slane %v8036_v12, 1 }
 0x41b   : > { %11105 = vmatpush3.bf16.msra.mxu0 %v11296_v57  ;;  %v8002_v57 = vrot.slane %v8001_v22, 1  ;;  %v11308_v51 = vld [vmem:[%s12581_s29 + $0x10] sm:$0xff]   ;;  %v8382_v36 = vrot.slane %v8302_v55, %v12694_v1  ;;  %v8288_v13 = vmul.f32 %v8242_v2, %v8120_v49  ;;  %v11318_v2 = vld [vmem:[%s12581_s29 + $0x178] sm:$0xff]  }
 0x41c   : > { %11106 = vmatprep.subr.bf16.mxu0 %v11298_v60  ;;  %v7917_v60 = vmul.f32 0.5, %v7870_v16  ;;  %v7989_v28 = vadd.f32 %v7988_v56, %v7987_v52  ;;  %v8038_v44 = vadd.f32 %v8037_v9, %v8036_v12  ;;  %v11316_v56 = vld [vmem:[%s12581_s29] sm:$0xff]   ;;  %v11319_v49 = vld [vmem:[%s12581_s29 + $0x1f8] sm:$0xff]  }
 0x41d   : > { %11127 = vmatpush3.bf16.msra.mxu1 %v11297_v43  ;;  %v8023_v43 = vrot.slane %v8022_v40, 1  ;;  %v8003_v0 = vadd.f32 %v8002_v57, %v8001_v22  ;;  %v11312_v22 = vld [vmem:[%s12581_s29 + $0x8] sm:$0xff]   ;;  %v8443_v3 = vadd.f32 %v8382_v36, %v8283_v63  ;;  %v8448_v54 = vadd.f32 %v8402_v14, %v8288_v13  ;;  %v11321_v63 = vld [vmem:[%s12581_s29 + $0x1b8] sm:$0xff]   ;;  %v11325_v13 = vld [vmem:[%s12581_s29 + $0x1b0] sm:$0xff]  }
 0x41e   : > { %11128 = vmatprep.subr.bf16.mxu1 %v11299_v15  ;;  %v8330_v15 = vrot.slane %v12893_v7, %v12773_v21  ;;  %v12935_v18 = vsub.f32 %v12686_v5, %v7917_v60  ;;  %v8071_v16 = vmul.f32 0.5, %v7989_v28  ;;  %v7947_v5 = vmul.f32 %v12930_v48, %v12930_v48 }
 0x41f   : > { %11107 = vmatpush3.bf16.msra.mxu0 %v11300_v33  ;;  %v8285_v33 = vmul.f32 %v8230_v11, %v8117_v32  ;;  %v8024_v52 = vadd.f32 %v8023_v43, %v8022_v40  ;;  %v8073_v40 = vmul.f32 0.5, %v8003_v0  ;;  %v8078_v11 = vmul.f32 0.5, %v8038_v44  ;;  %v11328_v44 = vld [vmem:[%s12581_s29 + $0x128] sm:$0xff]  }
 0x420   : > { %11108 = vmatprep.subr.bf16.mxu0 %v11302_v8  ;;  %v8390_v8 = vrot.slane %v8310_v30, %v12694_v1  ;;  %v8410_v59 = vrot.slane %v8330_v15, %v12694_v1  ;;  %v7949_v31 = vmul.f32 %v12935_v18, %v12935_v18  ;;  %v11317_v30 = vld [vmem:[%s12581_s29 + $0x80] sm:$0xff]   ;;  %v8459_v32 = vmax.f32 %v8443_v3, 0.0 }
 0x421   : > { %11129 = vmatpush3.bf16.msra.mxu1 %v11301_v25  ;;  %v11311_v25 = vld [vmem:[%s12581_s29 + $0xc8] sm:$0xff]   ;;  %v8076_v55 = vmul.f32 0.5, %v8024_v52  ;;  %v8089_v57 = vadd.f32 1e-05, %v8073_v40  ;;  %v8011_v24 = vsel %vm7793_vm0, %v7947_v5, 0.0  ;;  %v8464_v41 = vmax.f32 %v8448_v54, 0.0 }
 0x422   : > { %11130 = vmatprep.subr.bf16.mxu1 %v11303_v45  ;;  %v8290_v45 = vmul.f32 %v8250_v35, %v8122_v6  ;;  %v8445_v12 = vadd.f32 %v8390_v8, %v8285_v33  ;;  %v8025_v60 = vsel %vm7793_vm0, %v7949_v31, 0.0  ;;  %v8094_v6 = vadd.f32 1e-05, %v8078_v11  ;;  %v11320_v35 = vld [vmem:[%s12581_s29 + $0x138] sm:$0xff]   ;;  %v11323_v33 = vld [vmem:[%s12581_s29 + $0x1f0] sm:$0xff]   ;;  %v11326_v52 = vld [vmem:[%s12581_s29 + $0x168] sm:$0xff]  }
 0x423   : > { %11109 = vmatpush3.bf16.msra.mxu0 %v11304_v53  ;;  %v11315_v53 = vld [vmem:[%s12581_s29 + $0xc0] sm:$0xff]   ;;  %v8092_v43 = vadd.f32 1e-05, %v8076_v55  ;;  %v8475_v15 = vpack.c.bf16 %v8459_v32, %v8459_v32  ;;  %v8026_v28 = vrot.slane %v8025_v60, 4  ;;  %v8480_v36 = vpack.c.bf16 %v8464_v41, %v8464_v41  ;;  %v12973_v54 = vld [vmem:[%s12781_s8 + $0x10] sm:$0xff] }
 0x424   : > { %11110 = vmatprep.subr.bf16.mxu0 %v11306_v19  ;;  %v8087_v19 = vadd.f32 1e-05, %v8071_v16  ;;  %v11330_v16 = vld [vmem:[%s12581_s29 + $0x160] sm:$0xff]   ;;  %v8158_v40 = vrot.slane %v12893_v7, %v12679_v37  ;;  %v8166_v31 = vrot.slane %v12893_v7, %v12882_v39  ;;  %v8186_v32 = vrot.slane %v12973_v54, %v12732_v38 }
 0x425   : > { %11131 = vmatpush3.bf16.msra.mxu1 %v11305_v4  ;;  %v8450_v4 = vadd.f32 %v8410_v59, %v8290_v45  ;;  %v8027_v14 = vadd.f32 %v8026_v28, %v8025_v60  ;;  %v11327_v45 = vld [vmem:[%s12581_s29 + $0x1e8] sm:$0xff]   ;;  %v11332_v3 = vld [vmem:[%s12581_s29 + $0x120] sm:$0xff]   ;;  %v11338_v60 = vld [vmem:[%s12581_s29 + $0x150] sm:$0xff]   ;;  %v8318_v41 = vrot.slane %v12893_v7, %v12694_v1  ;;  %v8338_v28 = vrot.slane %v12973_v54, %v12723_v34 }
 0x426   : > { %11132 = vmatprep.subr.bf16.mxu1 %v11307_v46  ;;  %v8461_v46 = vmax.f32 %v8445_v12, 0.0  ;;  %11426 = vrsqrt.f32 %v8087_v19  ;;  %v11329_v59 = vld [vmem:[%s12581_s29 + $0x1a8] sm:$0xff]   ;;  %v11334_v12 = vld [vmem:[%s12581_s29 + $0x158] sm:$0xff]   ;;  %v8178_v19 = vrot.slane %v12973_v54, %v12709_v42 }
 0x427   : > { %11111 = vmatpush3.bf16.msra.mxu0 %v11308_v51  ;;  %v8466_v9 = vmax.f32 %v8450_v4, 0.0  ;;  %v8012_v51 = vrot.slane %v8011_v24, 4  ;;  %11428 = vrsqrt.f32 %v8089_v57 }
 0x428   : > { %11112 = vmatprep.subr.bf16.mxu0 %v11310_v50  ;;  %v11322_v50 = vld [vmem:[%s12581_s29 + $0x170] sm:$0xff]   ;;  %11430 = vrsqrt.f32 %v8092_v43  ;;  %v11337_v43 = vld [vmem:[%s12581_s29 + $0x198] sm:$0xff]  }
 0x429   : > { %11133 = vmatpush3.bf16.msra.mxu1 %v11309_v20  ;;  %v8477_v20 = vpack.c.bf16 %v8461_v46, %v8461_v46  ;;  %11432 = vrsqrt.f32 %v8094_v6  ;;  %v8482_v0 = vpack.c.bf16 %v8466_v9, %v8466_v9  ;;  %v8013_v8 = vadd.f32 %v8012_v51, %v8011_v24 }
 0x42a   : > { %11134 = vmatprep.subr.bf16.mxu1 %v11311_v25  ;;  %v11324_v25 = vld [vmem:[%s12581_s29 + $0x130] sm:$0xff]   ;;  %v8238_v46 = vrot.slane %v8158_v40, %v12679_v37  ;;  %v8326_v51 = vrot.slane %v12893_v7, %v12898_v62 }
 0x42b   : > { %11113 = vmatpush3.bf16.msra.mxu0 %v11312_v22  ;;  %v8014_v22 = vrot.slane %v8013_v8, 2 }
 0x42c   : > { %11114 = vmatprep.subr.bf16.mxu0 %v11314_v17  ;;  %v11331_v17 = vld [vmem:[%s12581_s29 + $0x1e0] sm:$0xff]  }
 0x42d   : > { %11135 = vmatpush3.bf16.msra.mxu1 %v11313_v23  ;;  %v8028_v23 = vrot.slane %v8027_v14, 2  ;;  %v8015_v5 = vadd.f32 %v8014_v22, %v8013_v8  ;;  %v11344_v22 = vld [vmem:[%s12581_s29 + $0x108] sm:$0xff]  }
 0x42e   : > { %11136 = vmatprep.subr.bf16.mxu1 %v11315_v53  ;;  %v11333_v53 = vld [vmem:[%s12581_s29 + $0x1a0] sm:$0xff]  }
 0x42f   : > { %11115 = vmatpush3.bf16.msra.mxu0 %v11316_v56  ;;  %v8029_v11 = vadd.f32 %v8028_v23, %v8027_v14  ;;  %v11335_v56 = vld [vmem:[%s12581_s29 + $0x1d8] sm:$0xff]   ;;  %v11345_v23 = vld [vmem:[%s12581_s29 + $0x188] sm:$0xff]  }
 0x430   : > { %11144 = vmatprep.subr.bf16.mxu0 %v11318_v2  ;;  %v11336_v2 = vld [vmem:[%s12581_s29 + $0x118] sm:$0xff]  }
 0x431   : > { %11137 = vmatpush3.bf16.msra.mxu1 %v11317_v30  ;;  %v8030_v9 = vrot.slane %v8029_v11, 1 }
 0x432   : > { %11166 = vmatprep.subr.bf16.mxu1 %v11319_v49  ;;  %9555 = vmatmul.mubr.bf16.vlgmr.msra.gmra.mxu0 %v8475_v15  ;;  %v8016_v49 = vrot.slane %v8015_v5, 1 }
 0x433   : > { %11145 = vmatpush3.bf16.msra.mxu0 %v11320_v35  ;;  %9634 = vmatprep.mubr.bf16.mxu0 %v8480_v36  ;;  %v11427_v55 = vpop.eup %11426  ;;  %v8246_v35 = vrot.slane %v8166_v31, %v12679_v37  ;;  %v8346_v36 = vrot.slane %v12973_v54, %v12773_v21 }
 0x434   : > { %9595 = vmatmul.mubr.bf16.vlgmr.msra.gmra.mxu1 %v8477_v20  ;;  %11146 = vmatprep.subr.bf16.mxu0 %v11322_v50  ;;  %v11429_v4 = vpop.eup %11428  ;;  %v8119_v24 = vmul.f32 %v11427_v55, %v12828_v61  ;;  %v11339_v61 = vld [vmem:[%s12581_s29 + $0x1d0] sm:$0xff]   ;;  %v8266_v20 = vrot.slane %v8186_v32, %v12679_v37  ;;  %v8017_v7 = vadd.f32 %v8016_v49, %v8015_v5  ;;  %v11347_v5 = vld [vmem:[%s12581_s29 + $0x1c0] sm:$0xff]  }
 0x435   : > { %11167 = vmatpush3.bf16.msra.mxu1 %v11321_v63  ;;  %9674 = vmatprep.mubr.bf16.mxu1 %v8482_v0  ;;  %v11431_v30 = vpop.eup %11430  ;;  %v8121_v6 = vmul.f32 %v11429_v4, %v12835_v10  ;;  %v8258_v63 = vrot.slane %v8178_v19, %v12679_v37  ;;  %v11340_v50 = vld [vmem:[%s12581_s29 + $0x110] sm:$0xff]   ;;  %v11342_v0 = vld [vmem:[%s12581_s29 + $0x148] sm:$0xff]   ;;  %v11348_v55 = vld [vmem:[%s12581_s29 + $0x100] sm:$0xff]  }
 0x436   : > { %11168 = vmatprep.subr.bf16.mxu1 %v11323_v33  ;;  %v11433_v57 = vpop.eup %11432  ;;  %v8124_v15 = vmul.f32 %v11431_v30, %v12840_v29  ;;  %v8287_v33 = vmul.f32 %v8238_v46, %v8119_v24  ;;  %v11341_v29 = vld [vmem:[%s12581_s29 + $0x190] sm:$0xff]   ;;  %v11350_v19 = vld [vmem:[%s12581_s29 + $0x278] sm:$0xff]  }
 0x437   : > { %11147 = vmatpush3.bf16.msra.mxu0 %v11324_v25  ;;  %v8126_v10 = vmul.f32 %v11433_v57, %v12846_v27  ;;  %v8398_v25 = vrot.slane %v8318_v41, %v12694_v1  ;;  %v8289_v8 = vmul.f32 %v8246_v35, %v8121_v6  ;;  %v8031_v27 = vadd.f32 %v8030_v9, %v8029_v11  ;;  %v11352_v24 = vld [vmem:[%s12581_s29 + $0x238] sm:$0xff]   ;;  %v11354_v41 = vld [vmem:[%s12581_s29 + $0x270] sm:$0xff]  }
 0x438   : > { %11148 = vmatprep.subr.bf16.mxu0 %v11326_v52  ;;  %v8406_v52 = vrot.slane %v8326_v51, %v12694_v1  ;;  %v8292_v14 = vmul.f32 %v8258_v63, %v8124_v15  ;;  %v11355_v9 = vld [vmem:[%s12581_s29 + $0x2f0] sm:$0xff]  }
 0x439   : > { %11169 = vmatpush3.bf16.msra.mxu1 %v11325_v13  ;;  %v11343_v13 = vld [vmem:[%s12581_s29 + $0x1c8] sm:$0xff]   ;;  %v8077_v40 = vmul.f32 0.5, %v8031_v27 }
 0x43a   : > { %11170 = vmatprep.subr.bf16.mxu1 %v11327_v45  ;;  %v8418_v45 = vrot.slane %v8338_v28, %v12694_v1  ;;  %v11356_v28 = vld [vmem:[%s12581_s29 + $0x230] sm:$0xff]  }
 0x43b   : > { %11149 = vmatpush3.bf16.msra.mxu0 %v11328_v44  ;;  %v8294_v44 = vmul.f32 %v8266_v20, %v8126_v10  ;;  %v8093_v30 = vadd.f32 1e-05, %v8077_v40  ;;  %v11357_v20 = vld [vmem:[%s12581_s29 + $0x2b0] sm:$0xff]   ;;  %v11365_v40 = vld [vmem:[%s12581_s29 + $0x2a0] sm:$0xff]  }
 0x43c   : > { %11150 = vmatprep.subr.bf16.mxu0 %v11330_v16  ;;  %v8075_v16 = vmul.f32 0.5, %v8017_v7 }
 0x43d   : > { %11171 = vmatpush3.bf16.msra.mxu1 %v11329_v59  ;;  %v8426_v59 = vrot.slane %v8346_v36, %v12694_v1 }
 0x43e   : > { %11172 = vmatprep.subr.bf16.mxu1 %v11331_v17  ;;  %v11346_v17 = vld [vmem:[%s12581_s29 + $0x140] sm:$0xff]   ;;  %v8091_v11 = vadd.f32 1e-05, %v8075_v16  ;;  %v8174_v16 = vrot.slane %v12973_v54, %v12679_v37 }
 0x43f   : > { %11151 = vmatpush3.bf16.msra.mxu0 %v11332_v3  ;;  %v8447_v3 = vadd.f32 %v8398_v25, %v8287_v33  ;;  %v8454_v31 = vadd.f32 %v8426_v59, %v8294_v44  ;;  %v11360_v25 = vld [vmem:[%s12581_s29 + $0x228] sm:$0xff]   ;;  %v11363_v44 = vld [vmem:[%s12581_s29 + $0x2e0] sm:$0xff]  }
 0x440   : > { %11152 = vmatprep.subr.bf16.mxu0 %v11334_v12  ;;  %v8452_v12 = vadd.f32 %v8418_v45, %v8292_v14  ;;  %11434 = vrsqrt.f32 %v8091_v11 }
 0x441   : > { %11173 = vmatpush3.bf16.msra.mxu1 %v11333_v53  ;;  %v8449_v53 = vadd.f32 %v8406_v52, %v8289_v8  ;;  %v8463_v4 = vmax.f32 %v8447_v3, 0.0  ;;  %v8470_v46 = vmax.f32 %v8454_v31, 0.0  ;;  %11436 = vrsqrt.f32 %v8093_v30  ;;  %v11362_v52 = vld [vmem:[%s12581_s29 + $0x260] sm:$0xff]  }
 0x442   : > { %11174 = vmatprep.subr.bf16.mxu1 %v11335_v56  ;;  %v11349_v56 = vld [vmem:[%s12581_s29 + $0x180] sm:$0xff]   ;;  %v8468_v57 = vmax.f32 %v8452_v12, 0.0  ;;  %v8182_v12 = vrot.slane %v12973_v54, %v12882_v39 }
 0x443   : > { %11153 = vmatpush3.bf16.msra.mxu0 %v11336_v2  ;;  %v8465_v32 = vmax.f32 %v8449_v53, 0.0  ;;  %v11351_v2 = vld [vmem:[%s12581_s29 + $0x2f8] sm:$0xff]   ;;  %v8479_v49 = vpack.c.bf16 %v8463_v4, %v8463_v4  ;;  %v8486_v63 = vpack.c.bf16 %v8470_v46, %v8470_v46  ;;  %v8254_v4 = vrot.slane %v8174_v16, %v12679_v37 }
 0x444   : > { %11154 = vmatprep.subr.bf16.mxu0 %v11338_v60  ;;  %v8484_v35 = vpack.c.bf16 %v8468_v57, %v8468_v57  ;;  %v11369_v57 = vld [vmem:[%s12581_s29 + $0x298] sm:$0xff]   ;;  %v8334_v46 = vrot.slane %v12973_v54, %v12694_v1 }
 0x445   : > { %11175 = vmatpush3.bf16.msra.mxu1 %v11337_v43  ;;  %v11353_v43 = vld [vmem:[%s12581_s29 + $0x2b8] sm:$0xff]   ;;  %v8481_v60 = vpack.c.bf16 %v8465_v32, %v8465_v32 }
 0x446   : > { %11176 = vmatprep.subr.bf16.mxu1 %v11339_v61  ;;  %v7543_v61 = vadd.f32 %v12877_v47, %v12873_v58 }
 0x447   : > { %11155 = vmatpush3.bf16.msra.mxu0 %v11340_v50  ;;  %v11358_v50 = vld [vmem:[%s12581_s29 + $0x268] sm:$0xff]  }
 0x448   : > { %11156 = vmatprep.subr.bf16.mxu0 %v11342_v0 }
 0x449   : > { %11177 = vmatpush3.bf16.msra.mxu1 %v11341_v29 }
 0x44a   : > { %11178 = vmatprep.subr.bf16.mxu1 %v11343_v13  ;;  %v11361_v13 = vld [vmem:[%s12581_s29 + $0x2a8] sm:$0xff]  }
 0x44b   : > { %11157 = vmatpush3.bf16.msra.mxu0 %v11344_v22 }
 0x44c   : > { %11158 = vmatprep.subr.bf16.mxu0 %v11346_v17 }
 0x44d   : > { %11179 = vmatpush3.bf16.msra.mxu1 %v11345_v23  ;;  %v11364_v23 = vld [vmem:[%s12581_s29 + $0x220] sm:$0xff]   ;;  %v11435_v53 = vpop.eup %11434 }
 0x44e   : > { %11180 = vmatprep.subr.bf16.mxu1 %v11347_v5  ;;  %v11366_v5 = vld [vmem:[%s12581_s29 + $0x258] sm:$0xff]   ;;  %v11437_v31 = vpop.eup %11436  ;;  %v8123_v30 = vmul.f32 %v11435_v53, %v12930_v48  ;;  %v8342_v48 = vrot.slane %v12973_v54, %v12898_v62  ;;  %v11375_v54 = vld [vmem:[%s12581_s29 + $0x2c8] sm:$0xff]  }
 0x44f   : > { %11159 = vmatpush3.bf16.msra.mxu0 %v11348_v55  ;;  %v11367_v55 = vld [vmem:[%s12581_s29 + $0x2d8] sm:$0xff]  }
 0x450   : > { %11188 = vmatprep.subr.bf16.mxu0 %v11350_v19  ;;  %v11368_v19 = vld [vmem:[%s12581_s29 + $0x218] sm:$0xff]  }
 0x451   : > { %11181 = vmatpush3.bf16.msra.mxu1 %v11349_v56 }
 0x452   : > { %11210 = vmatprep.subr.bf16.mxu1 %v11351_v2  ;;  %v7581_v6 = vpop.f32.mrf.mxu0  ;;  %9635 = vmatmul.mubr.bf16.vlgmr.msra.gmra.mxu0 %v8479_v49  ;;  %v8125_v49 = vmul.f32 %v11437_v31, %v12935_v18  ;;  %v11373_v18 = vld [vmem:[%s12581_s29 + $0x290] sm:$0xff]  }
 0x453   : > { %v7582_v51 = vadd.f32 %v7581_v6, %v12871_v26  ;;  %11189 = vmatpush3.bf16.msra.mxu0 %v11352_v24  ;;  %9714 = vmatprep.mubr.bf16.mxu0 %v8484_v35  ;;  %v11359_v26 = vld [vmem:[%s12581_s29 + $0x2e8] sm:$0xff]   ;;  %v11370_v24 = vld [vmem:[%s12581_s29 + $0x250] sm:$0xff]  }
 0x454   : > { %v7622_v15 = vpop.f32.mrf.mxu1  ;;  %9675 = vmatmul.mubr.bf16.vlgmr.msra.gmra.mxu1 %v8481_v60  ;;  %v7583_v10 = vpop.f32.mrf.mxu0  ;;  %11190 = vmatprep.subr.bf16.mxu0 %v11354_v41  ;;  %v11371_v60 = vld [vmem:[%s12581_s29 + $0x2d0] sm:$0xff]  }
 0x455   : > { %11211 = vmatpush3.bf16.msra.mxu1 %v11353_v43  ;;  %v13026_v36 = vadd.f32 %v7622_v15, %v7582_v51  ;;  %9754 = vmatprep.mubr.bf16.mxu1 %v8486_v63  ;;  %v7584_v33 = vadd.f32 %v7583_v10, %v7543_v61  ;;  %v8262_v43 = vrot.slane %v8182_v12, %v12679_v37  ;;  %v11372_v35 = vld [vmem:[%s12581_s29 + $0x210] sm:$0xff]   ;;  %v11374_v15 = vld [vmem:[%s12581_s29 + $0x248] sm:$0xff]  }
 0x456   : > { %v7624_v58 = vpop.f32.mrf.mxu1  ;;  %v7585_v47 = vpop.f32.mrf.mxu0  ;;  %11212 = vmatprep.subr.bf16.mxu1 %v11355_v9  ;;  %v8291_v9 = vmul.f32 %v8254_v4, %v8123_v30  ;;  %v8414_v63 = vrot.slane %v8334_v46, %v12694_v1  ;;  %v8422_v10 = vrot.slane %v8342_v48, %v12694_v1  ;;  %v11386_v4 = vld [vmem:[%s12581_s29 + $0x368] sm:$0xff]   ;;  %v11399_v46 = vld [vmem:[%s12581_s29 + $0x3b8] sm:$0xff]   ;;  %v11400_v48 = vld [vmem:[%s12581_s29 + $0x3f0] sm:$0xff]  }
 0x457   : > { %v7878_v7 = vsel %vm7793_vm0, %v13026_v36, 0.0  ;;  %v13031_v29 = vadd.f32 %v7624_v58, %v7584_v33  ;;  %11191 = vmatpush3.bf16.msra.mxu0 %v11356_v28  ;;  %v8293_v28 = vmul.f32 %v8262_v43, %v8125_v49  ;;  %v11376_v33 = vld [vmem:[%s12581_s29 + $0x208] sm:$0xff]   ;;  %v11388_v49 = vld [vmem:[%s12581_s29 + $0x360] sm:$0xff]  }
 0x458   : > { %v7626_v0 = vpop.f32.mrf.mxu1  ;;  %v7879_v8 = vrot.slane %v7878_v7, 4  ;;  %v7586_v27 = vpop.f32.mrf.mxu0  ;;  %11192 = vmatprep.subr.bf16.mxu0 %v11358_v50  ;;  %v11377_v47 = vld [vmem:[%s12581_s29 + $0x288] sm:$0xff]  }
 0x459   : > { %11213 = vmatpush3.bf16.msra.mxu1 %v11357_v20  ;;  %v7885_v14 = vsel %vm7793_vm0, %v13031_v29, 0.0  ;;  %v8451_v0 = vadd.f32 %v8414_v63, %v8291_v9  ;;  %v11390_v9 = vld [vmem:[%s12581_s29 + $0x358] sm:$0xff]   ;;  %v11392_v63 = vld [vmem:[%s12581_s29 + $0x350] sm:$0xff]  }
 0x45a   : > { %v7627_v45 = vpop.f32.mrf.mxu1  ;;  %11214 = vmatprep.subr.bf16.mxu1 %v11359_v26  ;;  %v7880_v22 = vadd.f32 %v7879_v8, %v7878_v7  ;;  %v7886_v59 = vrot.slane %v7885_v14, 4  ;;  %v11378_v7 = vld [vmem:[%s12581_s29 + $0x240] sm:$0xff]  }
 0x45b   : > { %11193 = vmatpush3.bf16.msra.mxu0 %v11360_v25  ;;  %v8453_v25 = vadd.f32 %v8422_v10, %v8293_v28  ;;  %v8467_v45 = vmax.f32 %v8451_v0, 0.0  ;;  %v11404_v28 = vld [vmem:[%s12581_s29 + $0x3e0] sm:$0xff]   ;;  %v11393_v10 = vld [vmem:[%s12581_s29 + $0x310] sm:$0xff]  }
 0x45c   : > { %v7881_v17 = vrot.slane %v7880_v22, 2  ;;  %v7887_v3 = vadd.f32 %v7886_v59, %v7885_v14  ;;  %11194 = vmatprep.subr.bf16.mxu0 %v11362_v52  ;;  %v11381_v14 = vld [vmem:[%s12581_s29 + $0x280] sm:$0xff]  }
 0x45d   : > { %11215 = vmatpush3.bf16.msra.mxu1 %v11361_v13  ;;  %v8469_v16 = vmax.f32 %v8453_v25, 0.0 }
 0x45e   : > { %11216 = vmatprep.subr.bf16.mxu1 %v11363_v44  ;;  %v7882_v11 = vadd.f32 %v7881_v17, %v7880_v22  ;;  %v7888_v56 = vrot.slane %v7887_v3, 2  ;;  %v11382_v44 = vld [vmem:[%s12581_s29 + $0x378] sm:$0xff]  }
 0x45f   : > { %11195 = vmatpush3.bf16.msra.mxu0 %v11364_v23 }
 0x460   : > { %v7883_v32 = vrot.slane %v7882_v11, 1  ;;  %v7889_v2 = vadd.f32 %v7888_v56, %v7887_v3  ;;  %11196 = vmatprep.subr.bf16.mxu0 %v11366_v5  ;;  %v11383_v3 = vld [vmem:[%s12581_s29 + $0x338] sm:$0xff]   ;;  %v11384_v5 = vld [vmem:[%s12581_s29 + $0x370] sm:$0xff]  }
 0x461   : > { %11217 = vmatpush3.bf16.msra.mxu1 %v11365_v40  ;;  %v8483_v40 = vpack.c.bf16 %v8467_v45, %v8467_v45  ;;  %v11385_v56 = vld [vmem:[%s12581_s29 + $0x330] sm:$0xff]  }
 0x462   : > { %11218 = vmatprep.subr.bf16.mxu1 %v11367_v55  ;;  %v7884_v41 = vadd.f32 %v7883_v32, %v7882_v11  ;;  %v7890_v6 = vrot.slane %v7889_v2, 1  ;;  %v8485_v55 = vpack.c.bf16 %v8469_v16, %v8469_v16  ;;  %v11398_v32 = vld [vmem:[%s12581_s29 + $0x3f8] sm:$0xff]   ;;  %v11408_v45 = vld [vmem:[%s12581_s29 + $0x3d0] sm:$0xff]  }
 0x463   : > { %11197 = vmatpush3.bf16.msra.mxu0 %v11368_v19  ;;  %v11409_v16 = vld [vmem:[%s12581_s29 + $0x390] sm:$0xff]  }
 0x464   : > { %v7919_v61 = vmul.f32 0.5, %v7884_v41  ;;  %v7891_v51 = vadd.f32 %v7890_v6, %v7889_v2  ;;  %11198 = vmatprep.subr.bf16.mxu0 %v11370_v24  ;;  %v11387_v24 = vld [vmem:[%s12581_s29 + $0x328] sm:$0xff]   ;;  %v11389_v6 = vld [vmem:[%s12581_s29 + $0x320] sm:$0xff]  }
 0x465   : > { %11219 = vmatpush3.bf16.msra.mxu1 %v11369_v57 }
 0x466   : > { %11220 = vmatprep.subr.bf16.mxu1 %v11371_v60  ;;  %v13066_v20 = vsub.f32 %v13026_v36, %v7919_v61  ;;  %v7920_v50 = vmul.f32 0.5, %v7891_v51  ;;  %v11379_v36 = vld [vmem:[%s12581_s29 + $0x2c0] sm:$0xff]   ;;  %v11402_v61 = vld [vmem:[%s12581_s29 + $0x3e8] sm:$0xff]   ;;  %v11391_v51 = vld [vmem:[%s12581_s29 + $0x318] sm:$0xff]  }
 0x467   : > { %11199 = vmatpush3.bf16.msra.mxu0 %v11372_v35  ;;  %v11401_v35 = vld [vmem:[%s12581_s29 + $0x3b0] sm:$0xff]  }
 0x468   : > { %v7951_v58 = vmul.f32 %v13066_v20, %v13066_v20  ;;  %v13072_v26 = vsub.f32 %v13031_v29, %v7920_v50  ;;  %11200 = vmatprep.subr.bf16.mxu0 %v11374_v15  ;;  %v11380_v29 = vld [vmem:[%s12581_s29 + $0x200] sm:$0xff]   ;;  %v13100_v15 = vld [vmem:[%s12781_s8 + $0x18] sm:$0xff] }
 0x469   : > { %11221 = vmatpush3.bf16.msra.mxu1 %v11373_v18  ;;  %v11403_v18 = vld [vmem:[%s12581_s29 + $0x3a8] sm:$0xff]   ;;  %v11405_v50 = vld [vmem:[%s12581_s29 + $0x3a0] sm:$0xff]   ;;  %v8354_v25 = vrot.slane %v13100_v15, %v12723_v34 }
 0x46a   : > { %11222 = vmatprep.subr.bf16.mxu1 %v11375_v54  ;;  %v8039_v8 = vsel %vm7793_vm0, %v7951_v58, 0.0  ;;  %v7952_v27 = vmul.f32 %v13072_v26, %v13072_v26  ;;  %v8190_v54 = vrot.slane %v13100_v15, %v12679_v37  ;;  %v8194_v58 = vrot.slane %v13100_v15, %v12709_v42 }
 0x46b   : > { %v8040_v13 = vrot.slane %v8039_v8, 4  ;;  %11201 = vmatpush3.bf16.msra.mxu0 %v11376_v33  ;;  %v11394_v33 = vld [vmem:[%s12581_s29 + $0x348] sm:$0xff]  }
 0x46c   : > { %v8046_v52 = vsel %vm7793_vm0, %v7952_v27, 0.0  ;;  %11202 = vmatprep.subr.bf16.mxu0 %v11378_v7  ;;  %v11406_v7 = vld [vmem:[%s12581_s29 + $0x3d8] sm:$0xff]   ;;  %v8270_v0 = vrot.slane %v8190_v54, %v12679_v37 }
 0x46d   : > { %11223 = vmatpush3.bf16.msra.mxu1 %v11377_v47  ;;  %v8041_v22 = vadd.f32 %v8040_v13, %v8039_v8  ;;  %v8047_v59 = vrot.slane %v8046_v52, 4  ;;  %v8350_v47 = vrot.slane %v13100_v15, %v12694_v1  ;;  %v11407_v8 = vld [vmem:[%s12581_s29 + $0x398] sm:$0xff]   ;;  %v11396_v13 = vld [vmem:[%s12581_s29 + $0x340] sm:$0xff]  }
 0x46e   : > { %11224 = vmatprep.subr.bf16.mxu1 %v11379_v36  ;;  %v11395_v36 = vld [vmem:[%s12581_s29 + $0x308] sm:$0xff]  }
 0x46f   : > { %v8042_v23 = vrot.slane %v8041_v22, 2  ;;  %v8048_v17 = vadd.f32 %v8047_v59, %v8046_v52  ;;  %11203 = vmatpush3.bf16.msra.mxu0 %v11380_v29  ;;  %v8274_v29 = vrot.slane %v8194_v58, %v12679_v37  ;;  %v8430_v52 = vrot.slane %v8350_v47, %v12694_v1 }
 0x470   : > { %11232 = vmatprep.subr.bf16.mxu0 %v11382_v44  ;;  %v8434_v59 = vrot.slane %v8354_v25, %v12694_v1 }
 0x471   : > { %11225 = vmatpush3.bf16.msra.mxu1 %v11381_v14  ;;  %v8043_v53 = vadd.f32 %v8042_v23, %v8041_v22  ;;  %v8049_v12 = vrot.slane %v8048_v17, 2  ;;  %v11397_v22 = vld [vmem:[%s12581_s29 + $0x300] sm:$0xff]  }
 0x472   : > { %9715 = vmatmul.mubr.bf16.vlgmr.msra.gmra.mxu0 %v8483_v40  ;;  %11254 = vmatprep.subr.bf16.mxu1 %v11398_v32 }
 0x473   : > { %v8044_v31 = vrot.slane %v8043_v53, 1  ;;  %v8050_v11 = vadd.f32 %v8049_v12, %v8048_v17  ;;  %11233 = vmatpush3.bf16.msra.mxu0 %v11383_v3  ;;  %v11410_v17 = vld [vmem:[%s12581_s29 + $0x3c8] sm:$0xff]   ;;  %v11412_v12 = vld [vmem:[%s12581_s29 + $0x3c0] sm:$0xff]  }
 0x474   : > { %9755 = vmatmul.mubr.bf16.vlgmr.msra.gmra.mxu1 %v8485_v55  ;;  %11234 = vmatprep.subr.bf16.mxu0 %v11384_v5  ;;  %v11411_v3 = vld [vmem:[%s12581_s29 + $0x388] sm:$0xff]  }
 0x475   : > { %v8045_v19 = vadd.f32 %v8044_v31, %v8043_v53  ;;  %v8051_v30 = vrot.slane %v8050_v11, 1  ;;  %11255 = vmatpush3.bf16.msra.mxu1 %v11399_v46 }
 0x476   : > { %11256 = vmatprep.subr.bf16.mxu1 %v11400_v48 }
 0x477   : > { %v8079_v2 = vmul.f32 0.5, %v8045_v19  ;;  %v8052_v57 = vadd.f32 %v8051_v30, %v8050_v11  ;;  %11235 = vmatpush3.bf16.msra.mxu0 %v11385_v56  ;;  %v11413_v11 = vld [vmem:[%s12581_s29 + $0x380] sm:$0xff]  }
 0x478   : > { %11236 = vmatprep.subr.bf16.mxu0 %v11386_v4 }
 0x479   : > { %v8095_v43 = vadd.f32 1e-05, %v8079_v2  ;;  %v8080_v60 = vmul.f32 0.5, %v8052_v57  ;;  %11257 = vmatpush3.bf16.msra.mxu1 %v11401_v35 }
 0x47a   : > { %11258 = vmatprep.subr.bf16.mxu1 %v11402_v61 }
 0x47b   : > { %11438 = vrsqrt.f32 %v8095_v43  ;;  %v8096_v41 = vadd.f32 1e-05, %v8080_v60  ;;  %11237 = vmatpush3.bf16.msra.mxu0 %v11387_v24 }
 0x47c   : > { %11238 = vmatprep.subr.bf16.mxu0 %v11388_v49 }
 0x47d   : > { %11440 = vrsqrt.f32 %v8096_v41  ;;  %11259 = vmatpush3.bf16.msra.mxu1 %v11403_v18 }
 0x47e   : > { %11260 = vmatprep.subr.bf16.mxu1 %v11404_v28 }
 0x47f   : > { %11239 = vmatpush3.bf16.msra.mxu0 %v11389_v6 }
 0x480   : > { %11240 = vmatprep.subr.bf16.mxu0 %v11390_v9 }
 0x481   : > { %11261 = vmatpush3.bf16.msra.mxu1 %v11405_v50 }
 0x482   : > { %11262 = vmatprep.subr.bf16.mxu1 %v11406_v7 }
 0x483   : > { %11241 = vmatpush3.bf16.msra.mxu0 %v11391_v51 }
 0x484   : > { %11242 = vmatprep.subr.bf16.mxu0 %v11392_v63 }
 0x485   : > { %11263 = vmatpush3.bf16.msra.mxu1 %v11407_v8 }
 0x486   : > { %11264 = vmatprep.subr.bf16.mxu1 %v11408_v45 }
 0x487   : > { %11243 = vmatpush3.bf16.msra.mxu0 %v11393_v10 }
 0x488   : > { %v11439_v27 = vpop.eup %11438  ;;  %11244 = vmatprep.subr.bf16.mxu0 %v11394_v33 }
 0x489   : > { %v8127_v42 = vmul.f32 %v11439_v27, %v13066_v20  ;;  %11265 = vmatpush3.bf16.msra.mxu1 %v11409_v16 }
 0x48a   : > { %v11441_v14 = vpop.eup %11440  ;;  %11266 = vmatprep.subr.bf16.mxu1 %v11410_v17 }
 0x48b   : > { %v8295_v44 = vmul.f32 %v8270_v0, %v8127_v42  ;;  %v8128_v34 = vmul.f32 %v11441_v14, %v13072_v26  ;;  %11245 = vmatpush3.bf16.msra.mxu0 %v11395_v36 }
 0x48c   : > { %11246 = vmatprep.subr.bf16.mxu0 %v11396_v13 }
 0x48d   : > { %v8296_v20 = vmul.f32 %v8274_v29, %v8128_v34  ;;  %v8455_v23 = vadd.f32 %v8430_v52, %v8295_v44  ;;  %11267 = vmatpush3.bf16.msra.mxu1 %v11411_v3 }
 0x48e   : > { %11268 = vmatprep.subr.bf16.mxu1 %v11412_v12 }
 0x48f   : > { %11247 = vmatpush3.bf16.msra.mxu0 %v11397_v22  ;;  %v8456_v40 = vadd.f32 %v8434_v59, %v8296_v20  ;;  %v8471_v5 = vmax.f32 %v8455_v23, 0.0 }
 0x491   : > { %v8472_v53 = vmax.f32 %v8456_v40, 0.0  ;;  %v8487_v19 = vpack.c.bf16 %v8471_v5, %v8471_v5  ;;  %11269 = vmatpush3.bf16.msra.mxu1 %v11413_v11 }
 0x492   : > { %v7663_v26 = vpop.f32.mrf.mxu0 }
 0x493   : > { %v8488_v31 = vpack.c.bf16 %v8472_v53, %v8472_v53 }
 0x494   : > { %v7704_v55 = vpop.f32.mrf.mxu1  ;;  %v7665_v4 = vpop.f32.mrf.mxu0 }
 0x495   : > { %v7705_v56 = vadd.f32 %v7704_v55, %v7663_v26  ;;  %9794 = vmatprep.mubr.bf16.mxu0 %v8488_v31  ;;  %v10966_v55 = vld [vmem:[%s272_s11] ss:$0 sm:$0xff] }
 0x496   : > { %v7706_v30 = vpop.f32.mrf.mxu1  ;;  %v7667_v32 = vpop.f32.mrf.mxu0  ;;  %9795 = vmatmul.mubr.bf16.vlgmr.msra.gmra.mxu0 %v8487_v19 }
 0x497   : > { %v7707_v49 = vadd.f32 %v7706_v30, %v7665_v4 }
 0x498   : > { %v7708_v2 = vpop.f32.mrf.mxu1  ;;  %v7668_v57 = vpop.f32.mrf.mxu0 }
 0x49a   : > { %v7709_v24 = vpop.f32.mrf.mxu1 }
 0x4d2   : > { %v7745_v46 = vpop.f32.mrf.mxu0 }
 0x4d3   : > { %v7746_v43 = vadd.f32 %v7745_v46, %v7705_v56 }
 0x4d4   : > { %v7786_v60 = vpop.f32.mrf.mxu1  ;;  %v7747_v48 = vpop.f32.mrf.mxu0 }
 0x4d5   : > { %v7787_v41 = vadd.f32 %v7786_v60, %v7746_v43  ;;  %v7748_v6 = vadd.f32 %v7747_v48, %v7707_v49 }
 0x4d6   : > { %v7788_v35 = vpop.f32.mrf.mxu1  ;;  %v7749_v9 = vpop.f32.mrf.mxu0 }
 0x4d7   : > { %v7892_v61 = vsel %vm7793_vm0, %v7787_v41, 0.0  ;;  %v7789_v51 = vadd.f32 %v7788_v35, %v7748_v6  ;;  %v8198_v35 = vrot.slane %v13100_v15, %v12882_v39  ;;  %v8202_v9 = vrot.slane %v13100_v15, %v12732_v38 }
 0x4d8   : > { %v7790_v18 = vpop.f32.mrf.mxu1  ;;  %v7893_v63 = vrot.slane %v7892_v61, 4  ;;  %v7750_v28 = vpop.f32.mrf.mxu0 }
 0x4d9   : > { %v7899_v54 = vsel %vm7793_vm0, %v7789_v51, 0.0  ;;  %v8362_v18 = vrot.slane %v13100_v15, %v12773_v21 }
 0x4da   : > { %v7791_v10 = vpop.f32.mrf.mxu1  ;;  %v7894_v50 = vadd.f32 %v7893_v63, %v7892_v61  ;;  %v7900_v33 = vrot.slane %v7899_v54, 4  ;;  %v8358_v61 = vrot.slane %v13100_v15, %v12898_v62 }
 0x4dc   : > { %v7895_v58 = vrot.slane %v7894_v50, 2  ;;  %v7901_v47 = vadd.f32 %v7900_v33, %v7899_v54  ;;  %v8282_v54 = vrot.slane %v8202_v9, %v12679_v37  ;;  %v8438_v10 = vrot.slane %v8358_v61, %v12694_v1 }
 0x4de   : > { %v7896_v7 = vadd.f32 %v7895_v58, %v7894_v50  ;;  %v7902_v0 = vrot.slane %v7901_v47, 2  ;;  %v8442_v58 = vrot.slane %v8362_v18, %v12694_v1 }
 0x4e0   : > { %v7897_v36 = vrot.slane %v7896_v7, 1  ;;  %v7903_v25 = vadd.f32 %v7902_v0, %v7901_v47 }
 0x4e2   : > { %v7898_v8 = vadd.f32 %v7897_v36, %v7896_v7  ;;  %v7904_v27 = vrot.slane %v7903_v25, 1 }
 0x4e4   : > { %v7921_v13 = vmul.f32 0.5, %v7898_v8  ;;  %v7905_v42 = vadd.f32 %v7904_v27, %v7903_v25 }
 0x4e6   : > { %v7937_v29 = vsub.f32 %v7787_v41, %v7921_v13  ;;  %v7922_v52 = vmul.f32 0.5, %v7905_v42 }
 0x4e8   : > { %v7953_v14 = vmul.f32 %v7937_v29, %v7937_v29  ;;  %v7938_v45 = vsub.f32 %v7789_v51, %v7922_v52  ;;  %v8278_v51 = vrot.slane %v8198_v35, %v12679_v37 }
 0x4ea   : > { %v8053_v44 = vsel %vm7793_vm0, %v7953_v14, 0.0  ;;  %v7954_v34 = vmul.f32 %v7938_v45, %v7938_v45 }
 0x4eb   : > { %v8054_v22 = vrot.slane %v8053_v44, 4 }
 0x4ec   : > { %v8060_v59 = vsel %vm7793_vm0, %v7954_v34, 0.0 }
 0x4ed   : > { %v8055_v16 = vadd.f32 %v8054_v22, %v8053_v44  ;;  %v8061_v20 = vrot.slane %v8060_v59, 4 }
 0x4ef   : > { %v8056_v23 = vrot.slane %v8055_v16, 2  ;;  %v8062_v17 = vadd.f32 %v8061_v20, %v8060_v59 }
 0x4f1   : > { %v8057_v3 = vadd.f32 %v8056_v23, %v8055_v16  ;;  %v8063_v40 = vrot.slane %v8062_v17, 2 }
 0x4f2   : > { %v11116_v5 = vpop.f32.mrf.mxu0 }
 0x4f3   : > { %v8058_v53 = vrot.slane %v8057_v3, 1  ;;  %v8064_v26 = vadd.f32 %v8063_v40, %v8062_v17 }
 0x4f4   : > { %v11138_v12 = vpop.f32.mrf.mxu1  ;;  %v11117_v31 = vpop.f32.mrf.mxu0 }
 0x4f5   : > { %v8059_v11 = vadd.f32 %v8058_v53, %v8057_v3  ;;  %v8065_v56 = vrot.slane %v8064_v26, 1  ;;  %v11118_v4 = vadd.f32 %v11117_v31, %v11116_v5 }
 0x4f6   : > { %v11139_v19 = vpop.f32.mrf.mxu1  ;;  %v11119_v32 = vpop.f32.mrf.mxu0 }
 0x4f7   : > { %v11140_v30 = vadd.f32 %v11139_v19, %v11138_v12  ;;  %v8081_v2 = vmul.f32 0.5, %v8059_v11  ;;  %v8066_v57 = vadd.f32 %v8065_v56, %v8064_v26  ;;  %v9557_v24 = vadd.f32 %v11118_v4, %v10966_v55 }
 0x4f8   : > { %v11141_v46 = vpop.f32.mrf.mxu1  ;;  %v11120_v49 = vpop.f32.mrf.mxu0 }
 0x4f9   : > { %v8097_v43 = vadd.f32 1e-05, %v8081_v2  ;;  %v8082_v60 = vmul.f32 0.5, %v8066_v57  ;;  %v9597_v48 = vadd.f32 %v11140_v30, %v9557_v24 }
 0x4fa   : > { %v11142_v41 = vpop.f32.mrf.mxu1 }
 0x4fb   : > { %11442 = vrsqrt.f32 %v8097_v43  ;;  %v8098_v6 = vadd.f32 1e-05, %v8082_v60 }
 0x4fd   : > { %11444 = vrsqrt.f32 %v8098_v6 }
 0x508   : > { %v11443_v63 = vpop.eup %11442 }
 0x509   : > { %v8129_v28 = vmul.f32 %v11443_v63, %v7937_v29 }
 0x50a   : > { %v11445_v50 = vpop.eup %11444 }
 0x50b   : > { %v8297_v33 = vmul.f32 %v8278_v51, %v8129_v28  ;;  %v8130_v39 = vmul.f32 %v11445_v50, %v7938_v45 }
 0x50d   : > { %v8298_v38 = vmul.f32 %v8282_v54, %v8130_v39  ;;  %v8457_v47 = vadd.f32 %v8438_v10, %v8297_v33 }
 0x50f   : > { %v8458_v7 = vadd.f32 %v8442_v58, %v8298_v38  ;;  %v8473_v62 = vmax.f32 %v8457_v47, 0.0 }
 0x511   : > { %v8474_v0 = vmax.f32 %v8458_v7, 0.0  ;;  %v8489_v15 = vpack.c.bf16 %v8473_v62, %v8473_v62 }
 0x512   : > { %v11160_v36 = vpop.f32.mrf.mxu0 }
 0x513   : > { %v8490_v8 = vpack.c.bf16 %v8474_v0, %v8474_v0 }
 0x514   : > { %v11182_v25 = vpop.f32.mrf.mxu1  ;;  %v11161_v21 = vpop.f32.mrf.mxu0 }
 0x515   : > { %v11162_v27 = vadd.f32 %v11161_v21, %v11160_v36  ;;  %9834 = vmatprep.mubr.bf16.mxu1 %v8490_v8 }
 0x516   : > { %v11183_v13 = vpop.f32.mrf.mxu1  ;;  %v11163_v42 = vpop.f32.mrf.mxu0  ;;  %9835 = vmatmul.mubr.bf16.vlgmr.msra.gmra.mxu1 %v8489_v15 }
 0x517   : > { %v11184_v37 = vadd.f32 %v11183_v13, %v11182_v25  ;;  %v9637_v29 = vadd.f32 %v11162_v27, %v9597_v48 }
 0x518   : > { %v11185_v52 = vpop.f32.mrf.mxu1  ;;  %v11164_v14 = vpop.f32.mrf.mxu0 }
 0x519   : > { %v9677_v1 = vadd.f32 %v11184_v37, %v9637_v29 }
 0x51a   : > { %v11186_v45 = vpop.f32.mrf.mxu1 }
 0x532   : > { %v11204_v44 = vpop.f32.mrf.mxu0 }
 0x534   : > { %v11226_v34 = vpop.f32.mrf.mxu1  ;;  %v11205_v22 = vpop.f32.mrf.mxu0 }
 0x535   : > { %v11206_v59 = vadd.f32 %v11205_v22, %v11204_v44 }
 0x536   : > { %v11227_v16 = vpop.f32.mrf.mxu1  ;;  %v11207_v23 = vpop.f32.mrf.mxu0 }
 0x537   : > { %v11228_v20 = vadd.f32 %v11227_v16, %v11226_v34  ;;  %v9717_v17 = vadd.f32 %v11206_v59, %v9677_v1 }
 0x538   : > { %v11229_v3 = vpop.f32.mrf.mxu1  ;;  %v11208_v40 = vpop.f32.mrf.mxu0 }
 0x539   : > { %v9757_v5 = vadd.f32 %v11228_v20, %v9717_v17 }
 0x53a   : > { %v11230_v53 = vpop.f32.mrf.mxu1 }
 0x556   : > { %v11248_v26 = vpop.f32.mrf.mxu0 }
 0x558   : > { %v11249_v12 = vpop.f32.mrf.mxu0 }
 0x559   : > { %v11250_v55 = vadd.f32 %v11249_v12, %v11248_v26 }
 0x55a   : > { %v11251_v31 = vpop.f32.mrf.mxu0 }
 0x55b   : > { %v9797_v11 = vadd.f32 %v11250_v55, %v9757_v5 }
 0x55c   : > { %v11252_v56 = vpop.f32.mrf.mxu0 }
 0x5d6   : > { %v11270_v4 = vpop.f32.mrf.mxu1 }
 0x5d8   : > { %v11271_v19 = vpop.f32.mrf.mxu1 }
 0x5d9   : > { %v11272_v30 = vadd.f32 %v11271_v19, %v11270_v4 }
 0x5da   : > { %v11273_v32 = vpop.f32.mrf.mxu1 }
 0x5db   : > { %v9837_v2 = vadd.f32 %v11272_v30, %v9797_v11 }
 0x5dc   : > { %v11274_v57 = vpop.f32.mrf.mxu1 }
 0x5dd   : > { %9843 = vst.msk [vmem:[%s276_s15] sm:$0x3] %vm9842_vm1, %v9837_v2 }
 0x5de PF: > { %s15_s18 = sadd.s32 1, %s11452_s18  }
 0x5df   : > { %p12_p4 = scmp.ge.s32.totalorder %s15_s18, 4  }
 0x5e1   :  { %14 = sbr.rel (!%p12_p4) target bundleno = 1 (0x1), region = 79 }

</bundles_post_ra>
